<compile_context>
chip_gen: v5e
topology: v5e:2x2
jax: 0.10.0
libtpu: 0.0.40
codegen_flags: <defaults>
</compile_context>

<pallas_src>
import jax
import jax.numpy as jnp
from jax.experimental import pallas as pl
from jax.experimental.pallas import tpu as pltpu

HIDDEN = 256
LANE = 128


def _round_up(v, m):
    return ((v + m - 1) // m) * m


def mlp_kernel(x_ref,
               w1_ref, b1_ref,
               w2_ref, b2_ref,
               w3_ref, b3_ref,
               w4_ref, b4_ref,
               o_ref):
    # In-kernel f32 -> bf16 cast of the activation input (free under the MXU).
    x = x_ref[...].astype(jnp.bfloat16)
    # fc1 + relu (bf16 MXU operands, f32 accumulation; bias/relu stay f32).
    h = jnp.dot(x, w1_ref[...], preferred_element_type=jnp.float32)
    h = jnp.maximum(h + b1_ref[...], 0.0)
    # fc2 + relu
    h = jnp.dot(h.astype(jnp.bfloat16), w2_ref[...],
                preferred_element_type=jnp.float32)
    h = jnp.maximum(h + b2_ref[...], 0.0)
    # fc3 + relu
    h = jnp.dot(h.astype(jnp.bfloat16), w3_ref[...],
                preferred_element_type=jnp.float32)
    h = jnp.maximum(h + b3_ref[...], 0.0)
    # fc4 + tanh (lane-dense: out columns zero-padded to a multiple of 128).
    h = jnp.dot(h.astype(jnp.bfloat16), w4_ref[...],
                preferred_element_type=jnp.float32)
    o_ref[...] = jnp.tanh(h + b4_ref[...]).astype(o_ref.dtype)  # bf16 writeback


def mlp_forward(x, params, *, tile_b=2048):
    """x: [B, input_dim] float32.  params: dict of w1..w4 [in,out], b1..b4 [1,out]."""
    B, input_dim = x.shape
    out_dim = params["w4"].shape[1]
    out_pad = _round_up(out_dim, LANE)

    # Adaptive batch tile: large enough to amortize per-step overhead and keep
    # the MXU pipeline long, but never much larger than B.
    tile_b = max(256, min(int(tile_b), _round_up(B, 16)))
    tile_b = _round_up(tile_b, 16)          # sublane-aligned for bf16 output
    b_pad = _round_up(B, tile_b)
    num_tiles = b_pad // tile_b

    x_p = x.astype(jnp.float32)
    if b_pad != B:
        x_p = jnp.pad(x_p, ((0, b_pad - B), (0, 0)))

    # bf16 weights (MXU operands), f32 biases (VPU adds), lane-padded head.
    w1 = params["w1"].astype(jnp.bfloat16)
    w2 = params["w2"].astype(jnp.bfloat16)
    w3 = params["w3"].astype(jnp.bfloat16)
    w4 = jnp.pad(params["w4"],
                 ((0, 0), (0, out_pad - out_dim))).astype(jnp.bfloat16)
    b1 = params["b1"].astype(jnp.float32)
    b2 = params["b2"].astype(jnp.float32)
    b3 = params["b3"].astype(jnp.float32)
    b4 = jnp.pad(params["b4"],
                 ((0, 0), (0, out_pad - out_dim))).astype(jnp.float32)

    x_map = lambda i: (i, 0)        # batch-tiled operands
    const_map = lambda i: (0, 0)    # VMEM-resident weights / biases

    flops = 2 * b_pad * (input_dim * HIDDEN + 2 * HIDDEN * HIDDEN
                         + HIDDEN * out_pad)
    weight_bytes = sum(int(a.size) * a.dtype.itemsize
                       for a in (w1, w2, w3, w4, b1, b2, b3, b4))
    bytes_accessed = (int(x_p.size) * 4          # f32 input
                      + weight_bytes
                      + b_pad * out_pad * 2)     # bf16 output
    cost = pl.CostEstimate(flops=flops,
                           transcendentals=b_pad * out_pad,
                           bytes_accessed=bytes_accessed)

    def build(dim_sem, const_mode):
        def cspec(shape):
            if const_mode is None:
                return pl.BlockSpec(shape, const_map)
            return pl.BlockSpec(shape, const_map, pipeline_mode=const_mode)

        in_specs = [
            pl.BlockSpec((tile_b, input_dim), x_map),
            cspec((input_dim, HIDDEN)), cspec((1, HIDDEN)),
            cspec((HIDDEN, HIDDEN)),   cspec((1, HIDDEN)),
            cspec((HIDDEN, HIDDEN)),   cspec((1, HIDDEN)),
            cspec((HIDDEN, out_pad)),  cspec((1, out_pad)),
        ]
        out_specs = pl.BlockSpec((tile_b, out_pad), x_map)
        return pl.pallas_call(
            mlp_kernel,
            out_shape=jax.ShapeDtypeStruct((b_pad, out_pad), jnp.bfloat16),
            grid=(num_tiles,),
            in_specs=in_specs,
            out_specs=out_specs,
            compiler_params=pltpu.CompilerParams(
                dimension_semantics=(dim_sem,),
                vmem_limit_bytes=32 * 1024 * 1024),
            cost_estimate=cost,
        )

    args = (x_p, w1, b1, w2, b2, w3, b3, w4, b4)

    # Preferred config: CORE_PARALLEL (real 2-TC sharding on v7x) + single
    # buffering of the never-changing weight/bias blocks.  Fall back to plain
    # configs if the current chip / JAX build rejects either feature, so the
    # kernel always runs on v5e / v6e / v7x.
    batch_sem = pltpu.CORE_PARALLEL if num_tiles > 1 else "arbitrary"
    configs = [
        (batch_sem, pl.Buffered(1)),
        (batch_sem, None),
        ("parallel", None),
    ]
    last_err = None
    for dim_sem, const_mode in configs:
        try:
            out = build(dim_sem, const_mode)(*args)
            break
        except Exception as e:  # lowering / unsupported-feature fallback
            last_err = e
    else:
        raise last_err

    return out[:B, :out_dim].astype(jnp.float32)


def init_params(key, input_dim, output_dim):
    """Deterministic synthetic parameters (PyTorch Linear shapes, transposed)."""
    ks = jax.random.split(key, 8)
    dims = [(input_dim, HIDDEN), (HIDDEN, HIDDEN),
            (HIDDEN, HIDDEN), (HIDDEN, output_dim)]
    params = {}
    for i, (din, dout) in enumerate(dims, start=1):
        scale = 1.0 / jnp.sqrt(jnp.float32(din))
        params[f"w{i}"] = (jax.random.uniform(ks[2 * (i - 1)], (din, dout),
                                              jnp.float32, -1.0, 1.0) * scale)
        params[f"b{i}"] = (jax.random.uniform(ks[2 * (i - 1) + 1], (1, dout),
                                              jnp.float32, -1.0, 1.0) * scale)
    return params


def mlp_reference_bf16(x, params):
    """Reference that mimics the kernel's bf16-operand / f32-accumulate math."""
    bf = jnp.bfloat16

    def lin(h, w, b):
        return jnp.dot(h.astype(bf), w.astype(bf),
                       preferred_element_type=jnp.float32) + b

    h = jnp.maximum(lin(x, params["w1"], params["b1"]), 0.0)
    h = jnp.maximum(lin(h, params["w2"], params["b2"]), 0.0)
    h = jnp.maximum(lin(h, params["w3"], params["b3"]), 0.0)
    return jnp.tanh(lin(h, params["w4"], params["b4"]))


def mlp_reference_f32(x, params):
    h = jnp.maximum(x @ params["w1"] + params["b1"], 0.0)
    h = jnp.maximum(h @ params["w2"] + params["b2"], 0.0)
    h = jnp.maximum(h @ params["w3"] + params["b3"], 0.0)
    return jnp.tanh(h @ params["w4"] + params["b4"])


if __name__ == "__main__":
    key = jax.random.PRNGKey(0)
    k_x, k_p, k_x2, k_x3 = jax.random.split(key, 4)

    input_dim = 32
    output_dim = 8
    params = init_params(k_p, input_dim, output_dim)

    # Small batch (single grid step; adaptive tile shrinks to the 256 floor).
    batch = 8
    x = jax.random.normal(k_x, (batch, input_dim), jnp.float32)
    out = jax.block_until_ready(mlp_forward(x, params))
    assert out.shape == (batch, output_dim)
    assert jnp.allclose(out, mlp_reference_bf16(x, params), atol=4e-3, rtol=4e-3)
    assert jnp.allclose(out, mlp_reference_f32(x, params), atol=5e-2, rtol=5e-2)

    # Non-multiple batch: adaptive tile (304) avoids heavy padding.
    batch2 = 300
    x2 = jax.random.normal(k_x2, (batch2, input_dim), jnp.float32)
    out2 = jax.block_until_ready(mlp_forward(x2, params))
    assert out2.shape == (batch2, output_dim)
    assert jnp.allclose(out2, mlp_reference_bf16(x2, params), atol=4e-3, rtol=4e-3)

    # Multi-tile grid (exercises the pipelined/core-parallel batch axis).
    batch3 = 600
    x3 = jax.random.normal(k_x3, (batch3, input_dim), jnp.float32)
    out3 = jax.block_until_ready(mlp_forward(x3, params, tile_b=256))
    assert out3.shape == (batch3, output_dim)
    assert jnp.allclose(out3, mlp_reference_bf16(x3, params), atol=4e-3, rtol=4e-3)

    print("KERNEL_OK")
</pallas_src>

<mosaic_0001>
module attributes {stable_mosaic.version = 11 : i64} {
  func.func @mlp_kernel(%arg0: i32, %arg1: memref<256x32xf32, #tpu.memory_space<vmem>>, %arg2: memref<32x256xbf16, #tpu.memory_space<vmem>>, %arg3: memref<1x256xf32, #tpu.memory_space<vmem>>, %arg4: memref<256x256xbf16, #tpu.memory_space<vmem>>, %arg5: memref<1x256xf32, #tpu.memory_space<vmem>>, %arg6: memref<256x256xbf16, #tpu.memory_space<vmem>>, %arg7: memref<1x256xf32, #tpu.memory_space<vmem>>, %arg8: memref<256x128xbf16, #tpu.memory_space<vmem>>, %arg9: memref<1x128xf32, #tpu.memory_space<vmem>>, %arg10: memref<256x128xbf16, #tpu.memory_space<vmem>>) attributes {dimension_semantics = [#tpu.dimension_semantics<arbitrary>], iteration_bounds = array<i64: 1>, scalar_prefetch = 0 : i64, scratch_operands = 0 : i64, tpu.core_type = #tpu.core_type<tc>, window_params = [{transform_indices = @transform_0, window_bounds = array<i64: 256, 32>}, {pipeline_mode = #tpu.pipeline_mode<synchronous>, transform_indices = @transform_1, window_bounds = array<i64: 32, 256>}, {pipeline_mode = #tpu.pipeline_mode<synchronous>, transform_indices = @transform_2, window_bounds = array<i64: 1, 256>}, {pipeline_mode = #tpu.pipeline_mode<synchronous>, transform_indices = @transform_3, window_bounds = array<i64: 256, 256>}, {pipeline_mode = #tpu.pipeline_mode<synchronous>, transform_indices = @transform_4, window_bounds = array<i64: 1, 256>}, {pipeline_mode = #tpu.pipeline_mode<synchronous>, transform_indices = @transform_5, window_bounds = array<i64: 256, 256>}, {pipeline_mode = #tpu.pipeline_mode<synchronous>, transform_indices = @transform_6, window_bounds = array<i64: 1, 256>}, {pipeline_mode = #tpu.pipeline_mode<synchronous>, transform_indices = @transform_7, window_bounds = array<i64: 256, 128>}, {pipeline_mode = #tpu.pipeline_mode<synchronous>, transform_indices = @transform_8, window_bounds = array<i64: 1, 128>}, {transform_indices = @transform_9, window_bounds = array<i64: 256, 128>}]} {
    %c0 = arith.constant 0 : index
    %c0_0 = arith.constant 0 : index
    %0 = vector.load %arg1[%c0, %c0_0] : memref<256x32xf32, #tpu.memory_space<vmem>>, vector<256x32xf32>
    %1 = arith.truncf %0 : vector<256x32xf32> to vector<256x32xbf16>
    %c0_1 = arith.constant 0 : index
    %c0_2 = arith.constant 0 : index
    %2 = vector.load %arg2[%c0_1, %c0_2] : memref<32x256xbf16, #tpu.memory_space<vmem>>, vector<32x256xbf16>
    %cst = arith.constant dense<0.000000e+00> : vector<256x256xf32>
    %3 = tpu.matmul %1, %2, %cst {dimension_numbers = #tpu.dot_dimension_numbers<[1], [0], [0], [1], [0, 0, 1, 1], [], []>} : vector<256x32xbf16>, vector<32x256xbf16>, vector<256x256xf32> -> vector<256x256xf32>
    %c0_3 = arith.constant 0 : index
    %c0_4 = arith.constant 0 : index
    %4 = vector.load %arg3[%c0_3, %c0_4] : memref<1x256xf32, #tpu.memory_space<vmem>>, vector<1x256xf32>
    %5 = vector.broadcast %4 : vector<1x256xf32> to vector<256x256xf32>
    %6 = arith.addf %3, %5 : vector<256x256xf32>
    %cst_5 = arith.constant 0.000000e+00 : f32
    %7 = vector.broadcast %cst_5 : f32 to vector<256x256xf32>
    %8 = arith.maximumf %6, %7 : vector<256x256xf32>
    %9 = arith.truncf %8 : vector<256x256xf32> to vector<256x256xbf16>
    %c0_6 = arith.constant 0 : index
    %c0_7 = arith.constant 0 : index
    %10 = vector.load %arg4[%c0_6, %c0_7] : memref<256x256xbf16, #tpu.memory_space<vmem>>, vector<256x256xbf16>
    %cst_8 = arith.constant dense<0.000000e+00> : vector<256x256xf32>
    %11 = tpu.matmul %9, %10, %cst_8 {dimension_numbers = #tpu.dot_dimension_numbers<[1], [0], [0], [1], [0, 0, 1, 1], [], []>} : vector<256x256xbf16>, vector<256x256xbf16>, vector<256x256xf32> -> vector<256x256xf32>
    %c0_9 = arith.constant 0 : index
    %c0_10 = arith.constant 0 : index
    %12 = vector.load %arg5[%c0_9, %c0_10] : memref<1x256xf32, #tpu.memory_space<vmem>>, vector<1x256xf32>
    %13 = vector.broadcast %12 : vector<1x256xf32> to vector<256x256xf32>
    %14 = arith.addf %11, %13 : vector<256x256xf32>
    %cst_11 = arith.constant 0.000000e+00 : f32
    %15 = vector.broadcast %cst_11 : f32 to vector<256x256xf32>
    %16 = arith.maximumf %14, %15 : vector<256x256xf32>
    %17 = arith.truncf %16 : vector<256x256xf32> to vector<256x256xbf16>
    %c0_12 = arith.constant 0 : index
    %c0_13 = arith.constant 0 : index
    %18 = vector.load %arg6[%c0_12, %c0_13] : memref<256x256xbf16, #tpu.memory_space<vmem>>, vector<256x256xbf16>
    %cst_14 = arith.constant dense<0.000000e+00> : vector<256x256xf32>
    %19 = tpu.matmul %17, %18, %cst_14 {dimension_numbers = #tpu.dot_dimension_numbers<[1], [0], [0], [1], [0, 0, 1, 1], [], []>} : vector<256x256xbf16>, vector<256x256xbf16>, vector<256x256xf32> -> vector<256x256xf32>
    %c0_15 = arith.constant 0 : index
    %c0_16 = arith.constant 0 : index
    %20 = vector.load %arg7[%c0_15, %c0_16] : memref<1x256xf32, #tpu.memory_space<vmem>>, vector<1x256xf32>
    %21 = vector.broadcast %20 : vector<1x256xf32> to vector<256x256xf32>
    %22 = arith.addf %19, %21 : vector<256x256xf32>
    %cst_17 = arith.constant 0.000000e+00 : f32
    %23 = vector.broadcast %cst_17 : f32 to vector<256x256xf32>
    %24 = arith.maximumf %22, %23 : vector<256x256xf32>
    %25 = arith.truncf %24 : vector<256x256xf32> to vector<256x256xbf16>
    %c0_18 = arith.constant 0 : index
    %c0_19 = arith.constant 0 : index
    %26 = vector.load %arg8[%c0_18, %c0_19] : memref<256x128xbf16, #tpu.memory_space<vmem>>, vector<256x128xbf16>
    %cst_20 = arith.constant dense<0.000000e+00> : vector<256x128xf32>
    %27 = tpu.matmul %25, %26, %cst_20 {dimension_numbers = #tpu.dot_dimension_numbers<[1], [0], [0], [1], [0, 0, 1, 1], [], []>} : vector<256x256xbf16>, vector<256x128xbf16>, vector<256x128xf32> -> vector<256x128xf32>
    %c0_21 = arith.constant 0 : index
    %c0_22 = arith.constant 0 : index
    %28 = vector.load %arg9[%c0_21, %c0_22] : memref<1x128xf32, #tpu.memory_space<vmem>>, vector<1x128xf32>
    %29 = vector.broadcast %28 : vector<1x128xf32> to vector<256x128xf32>
    %30 = arith.addf %27, %29 : vector<256x128xf32>
    %31 = math.tanh %30 : vector<256x128xf32>
    %32 = arith.truncf %31 : vector<256x128xf32> to vector<256x128xbf16>
    %c0_23 = arith.constant 0 : index
    %c0_24 = arith.constant 0 : index
    %33 = vector.load %arg10[%c0_23, %c0_24] : memref<256x128xbf16, #tpu.memory_space<vmem>>, vector<256x128xbf16>
    tpu.vector_store %arg10[%c0_23, %c0_24], %32 {strides = array<i32>} : memref<256x128xbf16, #tpu.memory_space<vmem>>, vector<256x128xbf16>,
    return
  }
  func.func @transform_0(%arg0: i32) -> (i32, i32) {
    %c0_i32 = arith.constant 0 : i32
    %c0_i32_0 = arith.constant 0 : i32
    return %arg0, %c0_i32 : i32, i32
  }
  func.func @transform_1(%arg0: i32) -> (i32, i32) {
    %c0_i32 = arith.constant 0 : i32
    %c0_i32_0 = arith.constant 0 : i32
    %c0_i32_1 = arith.constant 0 : i32
    return %c0_i32, %c0_i32_0 : i32, i32
  }
  func.func @transform_2(%arg0: i32) -> (i32, i32) {
    %c0_i32 = arith.constant 0 : i32
    %c0_i32_0 = arith.constant 0 : i32
    %c0_i32_1 = arith.constant 0 : i32
    return %c0_i32, %c0_i32_0 : i32, i32
  }
  func.func @transform_3(%arg0: i32) -> (i32, i32) {
    %c0_i32 = arith.constant 0 : i32
    %c0_i32_0 = arith.constant 0 : i32
    %c0_i32_1 = arith.constant 0 : i32
    return %c0_i32, %c0_i32_0 : i32, i32
  }
  func.func @transform_4(%arg0: i32) -> (i32, i32) {
    %c0_i32 = arith.constant 0 : i32
    %c0_i32_0 = arith.constant 0 : i32
    %c0_i32_1 = arith.constant 0 : i32
    return %c0_i32, %c0_i32_0 : i32, i32
  }
  func.func @transform_5(%arg0: i32) -> (i32, i32) {
    %c0_i32 = arith.constant 0 : i32
    %c0_i32_0 = arith.constant 0 : i32
    %c0_i32_1 = arith.constant 0 : i32
    return %c0_i32, %c0_i32_0 : i32, i32
  }
  func.func @transform_6(%arg0: i32) -> (i32, i32) {
    %c0_i32 = arith.constant 0 : i32
    %c0_i32_0 = arith.constant 0 : i32
    %c0_i32_1 = arith.constant 0 : i32
    return %c0_i32, %c0_i32_0 : i32, i32
  }
  func.func @transform_7(%arg0: i32) -> (i32, i32) {
    %c0_i32 = arith.constant 0 : i32
    %c0_i32_0 = arith.constant 0 : i32
    %c0_i32_1 = arith.constant 0 : i32
    return %c0_i32, %c0_i32_0 : i32, i32
  }
  func.func @transform_8(%arg0: i32) -> (i32, i32) {
    %c0_i32 = arith.constant 0 : i32
    %c0_i32_0 = arith.constant 0 : i32
    %c0_i32_1 = arith.constant 0 : i32
    return %c0_i32, %c0_i32_0 : i32, i32
  }
  func.func @transform_9(%arg0: i32) -> (i32, i32) {
    %c0_i32 = arith.constant 0 : i32
    %c0_i32_0 = arith.constant 0 : i32
    return %arg0, %c0_i32 : i32, i32
  }
}

module attributes {stable_mosaic.version = 11 : i64} {
  func.func @mlp_kernel(%arg0: i32, %arg1: memref<256x32xf32, #tpu.memory_space<vmem>>, %arg2: memref<32x256xbf16, #tpu.memory_space<vmem>>, %arg3: memref<1x256xf32, #tpu.memory_space<vmem>>, %arg4: memref<256x256xbf16, #tpu.memory_space<vmem>>, %arg5: memref<1x256xf32, #tpu.memory_space<vmem>>, %arg6: memref<256x256xbf16, #tpu.memory_space<vmem>>, %arg7: memref<1x256xf32, #tpu.memory_space<vmem>>, %arg8: memref<256x128xbf16, #tpu.memory_space<vmem>>, %arg9: memref<1x128xf32, #tpu.memory_space<vmem>>, %arg10: memref<256x128xbf16, #tpu.memory_space<vmem>>) attributes {dimension_semantics = [#tpu.dimension_semantics<arbitrary>], iteration_bounds = array<i64: 1>, scalar_prefetch = 0 : i64, scratch_operands = 0 : i64, tpu.core_type = #tpu.core_type<tc>, window_params = [{transform_indices = @transform_0, window_bounds = array<i64: 256, 32>}, {pipeline_mode = #tpu.pipeline_mode<synchronous>, transform_indices = @transform_1, window_bounds = array<i64: 32, 256>}, {pipeline_mode = #tpu.pipeline_mode<synchronous>, transform_indices = @transform_2, window_bounds = array<i64: 1, 256>}, {pipeline_mode = #tpu.pipeline_mode<synchronous>, transform_indices = @transform_3, window_bounds = array<i64: 256, 256>}, {pipeline_mode = #tpu.pipeline_mode<synchronous>, transform_indices = @transform_4, window_bounds = array<i64: 1, 256>}, {pipeline_mode = #tpu.pipeline_mode<synchronous>, transform_indices = @transform_5, window_bounds = array<i64: 256, 256>}, {pipeline_mode = #tpu.pipeline_mode<synchronous>, transform_indices = @transform_6, window_bounds = array<i64: 1, 256>}, {pipeline_mode = #tpu.pipeline_mode<synchronous>, transform_indices = @transform_7, window_bounds = array<i64: 256, 128>}, {pipeline_mode = #tpu.pipeline_mode<synchronous>, transform_indices = @transform_8, window_bounds = array<i64: 1, 128>}, {transform_indices = @transform_9, window_bounds = array<i64: 256, 128>}]} {
    %c0 = arith.constant 0 : index
    %c0_0 = arith.constant 0 : index
    %0 = vector.load %arg1[%c0, %c0_0] : memref<256x32xf32, #tpu.memory_space<vmem>>, vector<256x32xf32>
    %1 = arith.truncf %0 : vector<256x32xf32> to vector<256x32xbf16>
    %c0_1 = arith.constant 0 : index
    %c0_2 = arith.constant 0 : index
    %2 = vector.load %arg2[%c0_1, %c0_2] : memref<32x256xbf16, #tpu.memory_space<vmem>>, vector<32x256xbf16>
    %cst = arith.constant dense<0.000000e+00> : vector<256x256xf32>
    %3 = tpu.matmul %1, %2, %cst {dimension_numbers = #tpu.dot_dimension_numbers<[1], [0], [0], [1], [0, 0, 1, 1], [], []>} : vector<256x32xbf16>, vector<32x256xbf16>, vector<256x256xf32> -> vector<256x256xf32>
    %c0_3 = arith.constant 0 : index
    %c0_4 = arith.constant 0 : index
    %4 = vector.load %arg3[%c0_3, %c0_4] : memref<1x256xf32, #tpu.memory_space<vmem>>, vector<1x256xf32>
    %5 = vector.broadcast %4 : vector<1x256xf32> to vector<256x256xf32>
    %6 = arith.addf %3, %5 : vector<256x256xf32>
    %cst_5 = arith.constant 0.000000e+00 : f32
    %7 = vector.broadcast %cst_5 : f32 to vector<256x256xf32>
    %8 = arith.maximumf %6, %7 : vector<256x256xf32>
    %9 = arith.truncf %8 : vector<256x256xf32> to vector<256x256xbf16>
    %c0_6 = arith.constant 0 : index
    %c0_7 = arith.constant 0 : index
    %10 = vector.load %arg4[%c0_6, %c0_7] : memref<256x256xbf16, #tpu.memory_space<vmem>>, vector<256x256xbf16>
    %cst_8 = arith.constant dense<0.000000e+00> : vector<256x256xf32>
    %11 = tpu.matmul %9, %10, %cst_8 {dimension_numbers = #tpu.dot_dimension_numbers<[1], [0], [0], [1], [0, 0, 1, 1], [], []>} : vector<256x256xbf16>, vector<256x256xbf16>, vector<256x256xf32> -> vector<256x256xf32>
    %c0_9 = arith.constant 0 : index
    %c0_10 = arith.constant 0 : index
    %12 = vector.load %arg5[%c0_9, %c0_10] : memref<1x256xf32, #tpu.memory_space<vmem>>, vector<1x256xf32>
    %13 = vector.broadcast %12 : vector<1x256xf32> to vector<256x256xf32>
    %14 = arith.addf %11, %13 : vector<256x256xf32>
    %cst_11 = arith.constant 0.000000e+00 : f32
    %15 = vector.broadcast %cst_11 : f32 to vector<256x256xf32>
    %16 = arith.maximumf %14, %15 : vector<256x256xf32>
    %17 = arith.truncf %16 : vector<256x256xf32> to vector<256x256xbf16>
    %c0_12 = arith.constant 0 : index
    %c0_13 = arith.constant 0 : index
    %18 = vector.load %arg6[%c0_12, %c0_13] : memref<256x256xbf16, #tpu.memory_space<vmem>>, vector<256x256xbf16>
    %cst_14 = arith.constant dense<0.000000e+00> : vector<256x256xf32>
    %19 = tpu.matmul %17, %18, %cst_14 {dimension_numbers = #tpu.dot_dimension_numbers<[1], [0], [0], [1], [0, 0, 1, 1], [], []>} : vector<256x256xbf16>, vector<256x256xbf16>, vector<256x256xf32> -> vector<256x256xf32>
    %c0_15 = arith.constant 0 : index
    %c0_16 = arith.constant 0 : index
    %20 = vector.load %arg7[%c0_15, %c0_16] : memref<1x256xf32, #tpu.memory_space<vmem>>, vector<1x256xf32>
    %21 = vector.broadcast %20 : vector<1x256xf32> to vector<256x256xf32>
    %22 = arith.addf %19, %21 : vector<256x256xf32>
    %cst_17 = arith.constant 0.000000e+00 : f32
    %23 = vector.broadcast %cst_17 : f32 to vector<256x256xf32>
    %24 = arith.maximumf %22, %23 : vector<256x256xf32>
    %25 = arith.truncf %24 : vector<256x256xf32> to vector<256x256xbf16>
    %c0_18 = arith.constant 0 : index
    %c0_19 = arith.constant 0 : index
    %26 = vector.load %arg8[%c0_18, %c0_19] : memref<256x128xbf16, #tpu.memory_space<vmem>>, vector<256x128xbf16>
    %cst_20 = arith.constant dense<0.000000e+00> : vector<256x128xf32>
    %27 = tpu.matmul %25, %26, %cst_20 {dimension_numbers = #tpu.dot_dimension_numbers<[1], [0], [0], [1], [0, 0, 1, 1], [], []>} : vector<256x256xbf16>, vector<256x128xbf16>, vector<256x128xf32> -> vector<256x128xf32>
    %c0_21 = arith.constant 0 : index
    %c0_22 = arith.constant 0 : index
    %28 = vector.load %arg9[%c0_21, %c0_22] : memref<1x128xf32, #tpu.memory_space<vmem>>, vector<1x128xf32>
    %29 = vector.broadcast %28 : vector<1x128xf32> to vector<256x128xf32>
    %30 = arith.addf %27, %29 : vector<256x128xf32>
    %31 = math.tanh %30 : vector<256x128xf32>
    %32 = arith.truncf %31 : vector<256x128xf32> to vector<256x128xbf16>
    %c0_23 = arith.constant 0 : index
    %c0_24 = arith.constant 0 : index
    %33 = vector.load %arg10[%c0_23, %c0_24] : memref<256x128xbf16, #tpu.memory_space<vmem>>, vector<256x128xbf16>
    tpu.vector_store %arg10[%c0_23, %c0_24], %32 {strides = array<i32>} : memref<256x128xbf16, #tpu.memory_space<vmem>>, vector<256x128xbf16>,
    return
  }
  func.func @transform_0(%arg0: i32) -> (i32, i32) {
    %c0_i32 = arith.constant 0 : i32
    %c0_i32_0 = arith.constant 0 : i32
    return %arg0, %c0_i32 : i32, i32
  }
  func.func @transform_1(%arg0: i32) -> (i32, i32) {
    %c0_i32 = arith.constant 0 : i32
    %c0_i32_0 = arith.constant 0 : i32
    %c0_i32_1 = arith.constant 0 : i32
    return %c0_i32, %c0_i32_0 : i32, i32
  }
  func.func @transform_2(%arg0: i32) -> (i32, i32) {
    %c0_i32 = arith.constant 0 : i32
    %c0_i32_0 = arith.constant 0 : i32
    %c0_i32_1 = arith.constant 0 : i32
    return %c0_i32, %c0_i32_0 : i32, i32
  }
  func.func @transform_3(%arg0: i32) -> (i32, i32) {
    %c0_i32 = arith.constant 0 : i32
    %c0_i32_0 = arith.constant 0 : i32
    %c0_i32_1 = arith.constant 0 : i32
    return %c0_i32, %c0_i32_0 : i32, i32
  }
  func.func @transform_4(%arg0: i32) -> (i32, i32) {
    %c0_i32 = arith.constant 0 : i32
    %c0_i32_0 = arith.constant 0 : i32
    %c0_i32_1 = arith.constant 0 : i32
    return %c0_i32, %c0_i32_0 : i32, i32
  }
  func.func @transform_5(%arg0: i32) -> (i32, i32) {
    %c0_i32 = arith.constant 0 : i32
    %c0_i32_0 = arith.constant 0 : i32
    %c0_i32_1 = arith.constant 0 : i32
    return %c0_i32, %c0_i32_0 : i32, i32
  }
  func.func @transform_6(%arg0: i32) -> (i32, i32) {
    %c0_i32 = arith.constant 0 : i32
    %c0_i32_0 = arith.constant 0 : i32
    %c0_i32_1 = arith.constant 0 : i32
    return %c0_i32, %c0_i32_0 : i32, i32
  }
  func.func @transform_7(%arg0: i32) -> (i32, i32) {
    %c0_i32 = arith.constant 0 : i32
    %c0_i32_0 = arith.constant 0 : i32
    %c0_i32_1 = arith.constant 0 : i32
    return %c0_i32, %c0_i32_0 : i32, i32
  }
  func.func @transform_8(%arg0: i32) -> (i32, i32) {
    %c0_i32 = arith.constant 0 : i32
    %c0_i32_0 = arith.constant 0 : i32
    %c0_i32_1 = arith.constant 0 : i32
    return %c0_i32, %c0_i32_0 : i32, i32
  }
  func.func @transform_9(%arg0: i32) -> (i32, i32) {
    %c0_i32 = arith.constant 0 : i32
    %c0_i32_0 = arith.constant 0 : i32
    return %arg0, %c0_i32 : i32, i32
  }
}

module attributes {stable_mosaic.version = 11 : i64} {
  func.func @mlp_kernel(%arg0: i32, %arg1: memref<256x32xf32, #tpu.memory_space<vmem>>, %arg2: memref<32x256xbf16, #tpu.memory_space<vmem>>, %arg3: memref<1x256xf32, #tpu.memory_space<vmem>>, %arg4: memref<256x256xbf16, #tpu.memory_space<vmem>>, %arg5: memref<1x256xf32, #tpu.memory_space<vmem>>, %arg6: memref<256x256xbf16, #tpu.memory_space<vmem>>, %arg7: memref<1x256xf32, #tpu.memory_space<vmem>>, %arg8: memref<256x128xbf16, #tpu.memory_space<vmem>>, %arg9: memref<1x128xf32, #tpu.memory_space<vmem>>, %arg10: memref<256x128xbf16, #tpu.memory_space<vmem>>) attributes {dimension_semantics = [#tpu.dimension_semantics<parallel>], iteration_bounds = array<i64: 1>, scalar_prefetch = 0 : i64, scratch_operands = 0 : i64, tpu.core_type = #tpu.core_type<tc>, window_params = [{transform_indices = @transform_0, window_bounds = array<i64: 256, 32>}, {pipeline_mode = #tpu.pipeline_mode<synchronous>, transform_indices = @transform_1, window_bounds = array<i64: 32, 256>}, {pipeline_mode = #tpu.pipeline_mode<synchronous>, transform_indices = @transform_2, window_bounds = array<i64: 1, 256>}, {pipeline_mode = #tpu.pipeline_mode<synchronous>, transform_indices = @transform_3, window_bounds = array<i64: 256, 256>}, {pipeline_mode = #tpu.pipeline_mode<synchronous>, transform_indices = @transform_4, window_bounds = array<i64: 1, 256>}, {pipeline_mode = #tpu.pipeline_mode<synchronous>, transform_indices = @transform_5, window_bounds = array<i64: 256, 256>}, {pipeline_mode = #tpu.pipeline_mode<synchronous>, transform_indices = @transform_6, window_bounds = array<i64: 1, 256>}, {pipeline_mode = #tpu.pipeline_mode<synchronous>, transform_indices = @transform_7, window_bounds = array<i64: 256, 128>}, {pipeline_mode = #tpu.pipeline_mode<synchronous>, transform_indices = @transform_8, window_bounds = array<i64: 1, 128>}, {transform_indices = @transform_9, window_bounds = array<i64: 256, 128>}]} {
    %c0 = arith.constant 0 : index
    %c0_0 = arith.constant 0 : index
    %0 = vector.load %arg1[%c0, %c0_0] : memref<256x32xf32, #tpu.memory_space<vmem>>, vector<256x32xf32>
    %1 = arith.truncf %0 : vector<256x32xf32> to vector<256x32xbf16>
    %c0_1 = arith.constant 0 : index
    %c0_2 = arith.constant 0 : index
    %2 = vector.load %arg2[%c0_1, %c0_2] : memref<32x256xbf16, #tpu.memory_space<vmem>>, vector<32x256xbf16>
    %cst = arith.constant dense<0.000000e+00> : vector<256x256xf32>
    %3 = tpu.matmul %1, %2, %cst {dimension_numbers = #tpu.dot_dimension_numbers<[1], [0], [0], [1], [0, 0, 1, 1], [], []>} : vector<256x32xbf16>, vector<32x256xbf16>, vector<256x256xf32> -> vector<256x256xf32>
    %c0_3 = arith.constant 0 : index
    %c0_4 = arith.constant 0 : index
    %4 = vector.load %arg3[%c0_3, %c0_4] : memref<1x256xf32, #tpu.memory_space<vmem>>, vector<1x256xf32>
    %5 = vector.broadcast %4 : vector<1x256xf32> to vector<256x256xf32>
    %6 = arith.addf %3, %5 : vector<256x256xf32>
    %cst_5 = arith.constant 0.000000e+00 : f32
    %7 = vector.broadcast %cst_5 : f32 to vector<256x256xf32>
    %8 = arith.maximumf %6, %7 : vector<256x256xf32>
    %9 = arith.truncf %8 : vector<256x256xf32> to vector<256x256xbf16>
    %c0_6 = arith.constant 0 : index
    %c0_7 = arith.constant 0 : index
    %10 = vector.load %arg4[%c0_6, %c0_7] : memref<256x256xbf16, #tpu.memory_space<vmem>>, vector<256x256xbf16>
    %cst_8 = arith.constant dense<0.000000e+00> : vector<256x256xf32>
    %11 = tpu.matmul %9, %10, %cst_8 {dimension_numbers = #tpu.dot_dimension_numbers<[1], [0], [0], [1], [0, 0, 1, 1], [], []>} : vector<256x256xbf16>, vector<256x256xbf16>, vector<256x256xf32> -> vector<256x256xf32>
    %c0_9 = arith.constant 0 : index
    %c0_10 = arith.constant 0 : index
    %12 = vector.load %arg5[%c0_9, %c0_10] : memref<1x256xf32, #tpu.memory_space<vmem>>, vector<1x256xf32>
    %13 = vector.broadcast %12 : vector<1x256xf32> to vector<256x256xf32>
    %14 = arith.addf %11, %13 : vector<256x256xf32>
    %cst_11 = arith.constant 0.000000e+00 : f32
    %15 = vector.broadcast %cst_11 : f32 to vector<256x256xf32>
    %16 = arith.maximumf %14, %15 : vector<256x256xf32>
    %17 = arith.truncf %16 : vector<256x256xf32> to vector<256x256xbf16>
    %c0_12 = arith.constant 0 : index
    %c0_13 = arith.constant 0 : index
    %18 = vector.load %arg6[%c0_12, %c0_13] : memref<256x256xbf16, #tpu.memory_space<vmem>>, vector<256x256xbf16>
    %cst_14 = arith.constant dense<0.000000e+00> : vector<256x256xf32>
    %19 = tpu.matmul %17, %18, %cst_14 {dimension_numbers = #tpu.dot_dimension_numbers<[1], [0], [0], [1], [0, 0, 1, 1], [], []>} : vector<256x256xbf16>, vector<256x256xbf16>, vector<256x256xf32> -> vector<256x256xf32>
    %c0_15 = arith.constant 0 : index
    %c0_16 = arith.constant 0 : index
    %20 = vector.load %arg7[%c0_15, %c0_16] : memref<1x256xf32, #tpu.memory_space<vmem>>, vector<1x256xf32>
    %21 = vector.broadcast %20 : vector<1x256xf32> to vector<256x256xf32>
    %22 = arith.addf %19, %21 : vector<256x256xf32>
    %cst_17 = arith.constant 0.000000e+00 : f32
    %23 = vector.broadcast %cst_17 : f32 to vector<256x256xf32>
    %24 = arith.maximumf %22, %23 : vector<256x256xf32>
    %25 = arith.truncf %24 : vector<256x256xf32> to vector<256x256xbf16>
    %c0_18 = arith.constant 0 : index
    %c0_19 = arith.constant 0 : index
    %26 = vector.load %arg8[%c0_18, %c0_19] : memref<256x128xbf16, #tpu.memory_space<vmem>>, vector<256x128xbf16>
    %cst_20 = arith.constant dense<0.000000e+00> : vector<256x128xf32>
    %27 = tpu.matmul %25, %26, %cst_20 {dimension_numbers = #tpu.dot_dimension_numbers<[1], [0], [0], [1], [0, 0, 1, 1], [], []>} : vector<256x256xbf16>, vector<256x128xbf16>, vector<256x128xf32> -> vector<256x128xf32>
    %c0_21 = arith.constant 0 : index
    %c0_22 = arith.constant 0 : index
    %28 = vector.load %arg9[%c0_21, %c0_22] : memref<1x128xf32, #tpu.memory_space<vmem>>, vector<1x128xf32>
    %29 = vector.broadcast %28 : vector<1x128xf32> to vector<256x128xf32>
    %30 = arith.addf %27, %29 : vector<256x128xf32>
    %31 = math.tanh %30 : vector<256x128xf32>
    %32 = arith.truncf %31 : vector<256x128xf32> to vector<256x128xbf16>
    %c0_23 = arith.constant 0 : index
    %c0_24 = arith.constant 0 : index
    %33 = vector.load %arg10[%c0_23, %c0_24] : memref<256x128xbf16, #tpu.memory_space<vmem>>, vector<256x128xbf16>
    tpu.vector_store %arg10[%c0_23, %c0_24], %32 {strides = array<i32>} : memref<256x128xbf16, #tpu.memory_space<vmem>>, vector<256x128xbf16>,
    return
  }
  func.func @transform_0(%arg0: i32) -> (i32, i32) {
    %c0_i32 = arith.constant 0 : i32
    %c0_i32_0 = arith.constant 0 : i32
    return %arg0, %c0_i32 : i32, i32
  }
  func.func @transform_1(%arg0: i32) -> (i32, i32) {
    %c0_i32 = arith.constant 0 : i32
    %c0_i32_0 = arith.constant 0 : i32
    %c0_i32_1 = arith.constant 0 : i32
    return %c0_i32, %c0_i32_0 : i32, i32
  }
  func.func @transform_2(%arg0: i32) -> (i32, i32) {
    %c0_i32 = arith.constant 0 : i32
    %c0_i32_0 = arith.constant 0 : i32
    %c0_i32_1 = arith.constant 0 : i32
    return %c0_i32, %c0_i32_0 : i32, i32
  }
  func.func @transform_3(%arg0: i32) -> (i32, i32) {
    %c0_i32 = arith.constant 0 : i32
    %c0_i32_0 = arith.constant 0 : i32
    %c0_i32_1 = arith.constant 0 : i32
    return %c0_i32, %c0_i32_0 : i32, i32
  }
  func.func @transform_4(%arg0: i32) -> (i32, i32) {
    %c0_i32 = arith.constant 0 : i32
    %c0_i32_0 = arith.constant 0 : i32
    %c0_i32_1 = arith.constant 0 : i32
    return %c0_i32, %c0_i32_0 : i32, i32
  }
  func.func @transform_5(%arg0: i32) -> (i32, i32) {
    %c0_i32 = arith.constant 0 : i32
    %c0_i32_0 = arith.constant 0 : i32
    %c0_i32_1 = arith.constant 0 : i32
    return %c0_i32, %c0_i32_0 : i32, i32
  }
  func.func @transform_6(%arg0: i32) -> (i32, i32) {
    %c0_i32 = arith.constant 0 : i32
    %c0_i32_0 = arith.constant 0 : i32
    %c0_i32_1 = arith.constant 0 : i32
    return %c0_i32, %c0_i32_0 : i32, i32
  }
  func.func @transform_7(%arg0: i32) -> (i32, i32) {
    %c0_i32 = arith.constant 0 : i32
    %c0_i32_0 = arith.constant 0 : i32
    %c0_i32_1 = arith.constant 0 : i32
    return %c0_i32, %c0_i32_0 : i32, i32
  }
  func.func @transform_8(%arg0: i32) -> (i32, i32) {
    %c0_i32 = arith.constant 0 : i32
    %c0_i32_0 = arith.constant 0 : i32
    %c0_i32_1 = arith.constant 0 : i32
    return %c0_i32, %c0_i32_0 : i32, i32
  }
  func.func @transform_9(%arg0: i32) -> (i32, i32) {
    %c0_i32 = arith.constant 0 : i32
    %c0_i32_0 = arith.constant 0 : i32
    return %arg0, %c0_i32 : i32, i32
  }
}

</mosaic_0001>

<bundles_post_ra>
// kernel: tpu_custom_call.1
= control target key start
LH: loop header
LB: loop body
LE: loop exit
PB: predicated region body
PF: predicated region fallthrough
CT: control target
= control target key end

     0   :  { %14 = vsyncpa [#allocation3], 0  ;;  %s3868_s0 = inlined_call_operand.vmem [shape: f32[256,32], index: 0, kind: input, shape index: {}]   ;;  %s3869_s1 = inlined_call_operand.vmem [shape: bf16[32,256], index: 1, kind: input, shape index: {}]   ;;  %s3870_s2 = inlined_call_operand.vmem [shape: f32[1,256], index: 2, kind: input, shape index: {}]   ;;  %s3871_s3 = inlined_call_operand.vmem [shape: bf16[256,256], index: 3, kind: input, shape index: {}]   ;;  %s3872_s4 = inlined_call_operand.vmem [shape: f32[1,256], index: 4, kind: input, shape index: {}]   ;;  %s3873_s5 = inlined_call_operand.hbm [shape: bf16[256,256], index: 5, kind: input, shape index: {}]   ;;  %s3874_s6 = inlined_call_operand.vmem [shape: f32[1,256], index: 6, kind: input, shape index: {}]   ;;  %s3875_s7 = inlined_call_operand.hbm [shape: bf16[256,128], index: 7, kind: input, shape index: {}]   ;;  %s3876_s8 = inlined_call_operand.vmem [shape: f32[1,128], index: 8, kind: input, shape index: {}]   ;;  %s3877_s9 = inlined_call_operand.hbm [shape: bf16[256,128], index: 9, kind: output, shape index: {}]  }
   0x1   :  { %15 = vsyncpa [#allocation6], 0 }
   0x2   :  { %16 = vsyncpa [#allocation4], 0  ;;  %s31_s11 = sshll.u32 %s3873_s5, 4  ;;  %s2890_s12 = smov [#allocation2]   ;;  %s32_s11 = int_to_ptr.hbm [resolvable:$true] %s31_s11 }
   0x3   :  { %s33_s13 = sshll.u32 %s2890_s12, 4  ;;  %s46_s16 = sshll.u32 %s3875_s7, 4  ;;  %s34_s13 = int_to_ptr.vmem [resolvable:$true] %s33_s13  ;;  %s47_s16 = int_to_ptr.hbm [resolvable:$true] %s46_s16 }
   0x4   :  { %s2891_s17 = smov 128   ;;  %s2892_s18 = smov 8  }
   0x5   :  { %39 = dma.hbm_to_vmem [thread:$0]  %s32_s11, 4096, %s34_s13, [#allocation3], %s2891_s17, %s2891_s17, %s2892_s18  }
   0x6   :  { %s2893_s19 = smov [#allocation5]   ;;  %s2894_s21 = smov 64  }
   0x7   :  { %s48_s20 = sshll.u32 %s2893_s19, 4  ;;  %s2895_s22 = smov 4   ;;  %s49_s20 = int_to_ptr.vmem [resolvable:$true] %s48_s20 }
   0x8   :  { %54 = dma.hbm_to_vmem [thread:$0]  %s47_s16, 2048, %s49_s20, [#allocation6], %s2894_s21, %s2894_s21, %s2895_s22  }
   0x9   :  { %2884 = dma.done.wait [#allocation3], 4096  }
   0xa   :  { %2885 = vsyncadd [#allocation3], 4294963200 }
   0xb   :  { %2886 = dma.done.wait [#allocation6], 2048  }
   0xc   :  { %2887 = vsyncadd [#allocation6], 4294965248  ;;  %v2203_v0 = vld [vmem:[%s3869_s1 + $0x10] sm:$0xf]  ;;  %v2564_v1 = vld [vmem:[%s3869_s1 + $0x14] sm:$0xf0] }
   0xd   :  { %v2563_v2 = vld [vmem:[%s3869_s1 + $0x14] sm:$0xf]  ;;  %v2204_v3 = vor.u32 %v2564_v1, %v2203_v0  ;;  %v2205_v4 = vld [vmem:[%s3869_s1 + $0x18] sm:$0xf0]  ;;  %v2195_v5 = vld [vmem:[%s3869_s1] sm:$0xf] }
   0xe   :  { %v2562_v6 = vld [vmem:[%s3869_s1 + $0x4] sm:$0xf0]  ;;  %v2208_v7 = vor.u32 %v2563_v2, %v2205_v4  ;;  %v2561_v8 = vld [vmem:[%s3869_s1 + $0x4] sm:$0xf]  ;;  %v2197_v9 = vld [vmem:[%s3869_s1 + $0x8] sm:$0xf0] }
   0xf   :  { %v66_v10 = vld [vmem:[%s3868_s0] sm:$0xff]  ;;  %199 = vmatpush.bf16.msra.mxu0 %v2204_v3  ;;  %v2196_v11 = vor.u32 %v2562_v6, %v2195_v5  ;;  %v67_v12 = vld [vmem:[%s3868_s0 + $0x8] sm:$0xff]  ;;  %v2579_v13 = vld [vmem:[%s3871_s3 + $0x74] sm:$0xf]  ;;  %v2200_v15 = vor.u32 %v2561_v8, %v2197_v9  ;;  %vm144_vm0 = vcmask 261120   ;;  %s2179_s14 = sshll.u32 %s3877_s9, 4  ;;  %s2180_s14 = int_to_ptr.hbm [resolvable:$true] %s2179_s14 }
  0x10   :  { %v2301_v14 = vld [vmem:[%s3871_s3 + $0x78] sm:$0xf0]  ;;  %288 = vmatpush.bf16.msra.mxu1 %v2208_v7  ;;  %v2595_v17 = vld [vmem:[%s3871_s3 + $0xf4] sm:$0xf]  ;;  %v98_v20 = vpack.c.bf16 %v67_v12, %v66_v10  ;;  %v2577_v21 = vld [vmem:[%s3871_s3 + $0x64] sm:$0xf] }
  0x11   :  { %v2304_v16 = vor.u32 %v2579_v13, %v2301_v14  ;;  %v2365_v18 = vld [vmem:[%s3871_s3 + $0xf8] sm:$0xf0]  ;;  %v2293_v22 = vld [vmem:[%s3871_s3 + $0x68] sm:$0xf0]  ;;  %v2593_v23 = vld [vmem:[%s3871_s3 + $0xe4] sm:$0xf] }
  0x12   :  { %v2368_v19 = vor.u32 %v2595_v17, %v2365_v18  ;;  %v2296_v24 = vor.u32 %v2577_v21, %v2293_v22  ;;  %v2357_v25 = vld [vmem:[%s3871_s3 + $0xe8] sm:$0xf0]  ;;  %v68_v27 = vld [vmem:[%s3868_s0 + $0x10] sm:$0xff]  ;;  %v69_v28 = vld [vmem:[%s3868_s0 + $0x18] sm:$0xff] }
  0x13   :  { %200 = vmatpush.bf16.msra.mxu0 %v2196_v11  ;;  %v2360_v26 = vor.u32 %v2593_v23, %v2357_v25  ;;  %v99_v29 = vpack.c.bf16 %v69_v28, %v68_v27  ;;  %v70_v30 = vld [vmem:[%s3868_s0 + $0x20] sm:$0xff]  ;;  %v71_v31 = vld [vmem:[%s3868_s0 + $0x28] sm:$0xff]  ;;  %v2575_v33 = vld [vmem:[%s3871_s3 + $0x54] sm:$0xf] }
  0x14   :  { %289 = vmatpush.bf16.msra.mxu1 %v2200_v15  ;;  %v100_v32 = vpack.c.bf16 %v71_v31, %v70_v30  ;;  %v2285_v34 = vld [vmem:[%s3871_s3 + $0x58] sm:$0xf0]  ;;  %v2591_v35 = vld [vmem:[%s3871_s3 + $0xd4] sm:$0xf]  ;;  %v74_v42 = vld [vmem:[%s3868_s0 + $0x40] sm:$0xff] }
  0x15   :  { %v2288_v36 = vor.u32 %v2575_v33, %v2285_v34  ;;  %v2349_v37 = vld [vmem:[%s3871_s3 + $0xd8] sm:$0xf0]  ;;  %v72_v39 = vld [vmem:[%s3868_s0 + $0x30] sm:$0xff]  ;;  %v75_v43 = vld [vmem:[%s3868_s0 + $0x48] sm:$0xff] }
  0x16   :  { %2209 = vmatmul.msk.bf16.vlgmr.msra.gmra.mxu0 %vm144_vm0, %v98_v20  ;;  %v2352_v38 = vor.u32 %v2591_v35, %v2349_v37  ;;  %v73_v40 = vld [vmem:[%s3868_s0 + $0x38] sm:$0xff]  ;;  %v102_v44 = vpack.c.bf16 %v75_v43, %v74_v42  ;;  %v2573_v45 = vld [vmem:[%s3871_s3 + $0x44] sm:$0xf]  ;;  %v2277_v46 = vld [vmem:[%s3871_s3 + $0x48] sm:$0xf0] }
  0x17   :  { %843 = vmatpush.bf16.msrb.mxu0 %v2304_v16  ;;  %2225 = vmatmul.msk.bf16.vlgmr.msra.gmra.mxu1 %vm144_vm0, %v98_v20  ;;  %v101_v41 = vpack.c.bf16 %v73_v40, %v72_v39  ;;  %v2589_v47 = vld [vmem:[%s3871_s3 + $0xc4] sm:$0xf]  ;;  %v2280_v48 = vor.u32 %v2573_v45, %v2277_v46  ;;  %v2341_v49 = vld [vmem:[%s3871_s3 + $0xc8] sm:$0xf0]  ;;  %v2299_v50 = vld [vmem:[%s3871_s3 + $0x70] sm:$0xf] }
  0x18   :  { %932 = vmatpush.bf16.msrb.mxu1 %v2368_v19  ;;  %v2580_v51 = vld [vmem:[%s3871_s3 + $0x74] sm:$0xf0]  ;;  %v2344_v52 = vor.u32 %v2589_v47, %v2341_v49  ;;  %v2363_v54 = vld [vmem:[%s3871_s3 + $0xf0] sm:$0xf]  ;;  %v2291_v60 = vld [vmem:[%s3871_s3 + $0x60] sm:$0xf] }
  0x19   :  { %v2300_v53 = vor.u32 %v2580_v51, %v2299_v50  ;;  %v2596_v55 = vld [vmem:[%s3871_s3 + $0xf4] sm:$0xf0]  ;;  %v76_v57 = vld [vmem:[%s3868_s0 + $0x50] sm:$0xff]  ;;  %v2578_v61 = vld [vmem:[%s3871_s3 + $0x64] sm:$0xf0] }
  0x1a   :  { %v2364_v56 = vor.u32 %v2596_v55, %v2363_v54  ;;  %v77_v58 = vld [vmem:[%s3868_s0 + $0x58] sm:$0xff]  ;;  %v2355_v62 = vld [vmem:[%s3871_s3 + $0xe0] sm:$0xf]  ;;  %v2292_v63 = vor.u32 %v2578_v61, %v2291_v60  ;;  %v2594_v0 = vld [vmem:[%s3871_s3 + $0xe4] sm:$0xf0] }
  0x1b   :  { %844 = vmatpush.bf16.msrb.mxu0 %v2296_v24  ;;  %665 = vmatpush.bf16.msra.mxu2 %v2300_v53  ;;  %v103_v59 = vpack.c.bf16 %v77_v58, %v76_v57  ;;  %v2356_v1 = vor.u32 %v2594_v0, %v2355_v62  ;;  %v2283_v2 = vld [vmem:[%s3871_s3 + $0x50] sm:$0xf]  ;;  %v2576_v3 = vld [vmem:[%s3871_s3 + $0x54] sm:$0xf0]  ;;  %v2275_v8 = vld [vmem:[%s3871_s3 + $0x40] sm:$0xf] }
  0x1c   :  { %933 = vmatpush.bf16.msrb.mxu1 %v2360_v26  ;;  %754 = vmatpush.bf16.msra.mxu3 %v2364_v56  ;;  %v2347_v4 = vld [vmem:[%s3871_s3 + $0xd0] sm:$0xf]  ;;  %v2284_v5 = vor.u32 %v2576_v3, %v2283_v2  ;;  %v2592_v6 = vld [vmem:[%s3871_s3 + $0xd4] sm:$0xf0]  ;;  %v2574_v9 = vld [vmem:[%s3871_s3 + $0x44] sm:$0xf0] }
  0x1d   :  { %v2348_v7 = vor.u32 %v2592_v6, %v2347_v4  ;;  %v2339_v10 = vld [vmem:[%s3871_s3 + $0xc0] sm:$0xf]  ;;  %v2590_v11 = vld [vmem:[%s3871_s3 + $0xc4] sm:$0xf0]  ;;  %v2276_v12 = vor.u32 %v2574_v9, %v2275_v8  ;;  %v2267_v16 = vld [vmem:[%s3871_s3 + $0x30] sm:$0xf] }
  0x1e   :  { %v2340_v13 = vor.u32 %v2590_v11, %v2339_v10  ;;  %v78_v14 = vld [vmem:[%s3868_s0 + $0x60] sm:$0xff]  ;;  %v79_v15 = vld [vmem:[%s3868_s0 + $0x68] sm:$0xff]  ;;  %v2572_v17 = vld [vmem:[%s3871_s3 + $0x34] sm:$0xf0] }
  0x1f   :  { %845 = vmatpush.bf16.msrb.mxu0 %v2288_v36  ;;  %666 = vmatpush.bf16.msra.mxu2 %v2292_v63  ;;  %v2331_v18 = vld [vmem:[%s3871_s3 + $0xb0] sm:$0xf]  ;;  %v104_v19 = vpack.c.bf16 %v79_v15, %v78_v14  ;;  %v2268_v20 = vor.u32 %v2572_v17, %v2267_v16  ;;  %v2588_v21 = vld [vmem:[%s3871_s3 + $0xb4] sm:$0xf0]  ;;  %v2259_v23 = vld [vmem:[%s3871_s3 + $0x20] sm:$0xf] }
  0x20   :  { %934 = vmatpush.bf16.msrb.mxu1 %v2352_v38  ;;  %755 = vmatpush.bf16.msra.mxu3 %v2356_v1  ;;  %v2332_v22 = vor.u32 %v2588_v21, %v2331_v18  ;;  %v2570_v24 = vld [vmem:[%s3871_s3 + $0x24] sm:$0xf0]  ;;  %v2323_v26 = vld [vmem:[%s3871_s3 + $0xa0] sm:$0xf]  ;;  %v2571_v28 = vld [vmem:[%s3871_s3 + $0x34] sm:$0xf] }
  0x21   :  { %v2260_v25 = vor.u32 %v2570_v24, %v2259_v23  ;;  %v2586_v27 = vld [vmem:[%s3871_s3 + $0xa4] sm:$0xf0]  ;;  %v2587_v31 = vld [vmem:[%s3871_s3 + $0xb4] sm:$0xf]  ;;  %v2333_v33 = vld [vmem:[%s3871_s3 + $0xb8] sm:$0xf0] }
  0x22   :  { %v2324_v30 = vor.u32 %v2586_v27, %v2323_v26  ;;  %v2336_v34 = vor.u32 %v2587_v31, %v2333_v33  ;;  %v2251_v35 = vld [vmem:[%s3871_s3 + $0x10] sm:$0xf]  ;;  %v2568_v36 = vld [vmem:[%s3871_s3 + $0x14] sm:$0xf0]  ;;  %v2566_v42 = vld [vmem:[%s3871_s3 + $0x4] sm:$0xf0] }
  0x23   :  { %846 = vmatpush.bf16.msrb.mxu0 %v2280_v48  ;;  %667 = vmatpush.bf16.msra.mxu2 %v2284_v5  ;;  %v2315_v37 = vld [vmem:[%s3871_s3 + $0x90] sm:$0xf]  ;;  %v2252_v38 = vor.u32 %v2568_v36, %v2251_v35  ;;  %v2584_v39 = vld [vmem:[%s3871_s3 + $0x94] sm:$0xf0]  ;;  %v2307_v43 = vld [vmem:[%s3871_s3 + $0x80] sm:$0xf] }
  0x24   :  { %935 = vmatpush.bf16.msrb.mxu1 %v2344_v52  ;;  %756 = vmatpush.bf16.msra.mxu3 %v2348_v7  ;;  %v2316_v40 = vor.u32 %v2584_v39, %v2315_v37  ;;  %v2582_v45 = vld [vmem:[%s3871_s3 + $0x84] sm:$0xf0]  ;;  %v80_v46 = vld [vmem:[%s3868_s0 + $0x70] sm:$0xff]  ;;  %v81_v47 = vld [vmem:[%s3868_s0 + $0x78] sm:$0xff] }
  0x25   :  { %v2308_v48 = vor.u32 %v2582_v45, %v2307_v43  ;;  %v105_v49 = vpack.c.bf16 %v81_v47, %v80_v46  ;;  %v2427_v50 = vld [vmem:[#allocation2 + $0x70] sm:$0xf]  ;;  %v2612_v51 = vld [vmem:[#allocation2 + $0x74] sm:$0xf0]  ;;  %v82_v56 = vld [vmem:[%s3868_s0 + $0x80] sm:$0xff] }
  0x26   :  { %2210 = vmatmul.msk.bf16.gmra.mxu0 %vm144_vm0, %v99_v29  ;;  %v2428_v52 = vor.u32 %v2612_v51, %v2427_v50  ;;  %v2491_v53 = vld [vmem:[#allocation2 + $0xf0] sm:$0xf]  ;;  %v2628_v54 = vld [vmem:[#allocation2 + $0xf4] sm:$0xf0]  ;;  %v83_v57 = vld [vmem:[%s3868_s0 + $0x88] sm:$0xff] }
  0x27   :  { %2226 = vmatmul.msk.bf16.gmra.mxu1 %vm144_vm0, %v99_v29  ;;  %668 = vmatpush.bf16.msra.mxu2 %v2276_v12  ;;  %v2269_v29 = vld [vmem:[%s3871_s3 + $0x38] sm:$0xf0]  ;;  %v2492_v55 = vor.u32 %v2628_v54, %v2491_v53  ;;  %v106_v58 = vpack.c.bf16 %v83_v57, %v82_v56  ;;  %v2569_v0 = vld [vmem:[%s3871_s3 + $0x24] sm:$0xf]  ;;  %v2261_v1 = vld [vmem:[%s3871_s3 + $0x28] sm:$0xf0] }
  0x28   :  { %757 = vmatpush.bf16.msra.mxu3 %v2340_v13  ;;  %936 = vmatpush.bf16.msrb.mxu1 %v2336_v34  ;;  %v2264_v2 = vor.u32 %v2569_v0, %v2261_v1  ;;  %v2585_v3 = vld [vmem:[%s3871_s3 + $0xa4] sm:$0xf]  ;;  %v2325_v4 = vld [vmem:[%s3871_s3 + $0xa8] sm:$0xf0]  ;;  %v84_v16 = vld [vmem:[%s3868_s0 + $0x90] sm:$0xff] }
  0x29   :  { %v2328_v5 = vor.u32 %v2585_v3, %v2325_v4  ;;  %v85_v17 = vld [vmem:[%s3868_s0 + $0x98] sm:$0xff]  ;;  %v2610_v23 = vld [vmem:[#allocation2 + $0x64] sm:$0xf0]  ;;  %v2483_v26 = vld [vmem:[#allocation2 + $0xe0] sm:$0xf] }
  0x2a   :  { %v2626_v27 = vld [vmem:[#allocation2 + $0xe4] sm:$0xf0]  ;;  %v86_v39 = vld [vmem:[%s3868_s0 + $0xa0] sm:$0xff]  ;;  %v2567_v46 = vld [vmem:[%s3871_s3 + $0x14] sm:$0xf] }
  0x2b   :  { %669 = vmatpush.bf16.msra.mxu2 %v2268_v20  ;;  %v107_v20 = vpack.c.bf16 %v85_v17, %v84_v16  ;;  %v2253_v47 = vld [vmem:[%s3871_s3 + $0x18] sm:$0xf0]  ;;  %v88_v0 = vld [vmem:[%s3868_s0 + $0xb0] sm:$0xff] }
  0x2c   :  { %758 = vmatpush.bf16.msra.mxu3 %v2332_v22  ;;  %937 = vmatpush.bf16.msrb.mxu1 %v2328_v5  ;;  %v2419_v22 = vld [vmem:[#allocation2 + $0x60] sm:$0xf]  ;;  %v2317_v50 = vld [vmem:[%s3871_s3 + $0x98] sm:$0xf0] }
  0x2d   :  { %v89_v1 = vld [vmem:[%s3868_s0 + $0xb8] sm:$0xff] }
  0x2e   :  { %v109_v4 = vpack.c.bf16 %v89_v1, %v88_v0 }
  0x2f   :  { %670 = vmatpush.bf16.msra.mxu2 %v2260_v25  ;;  %v2420_v25 = vor.u32 %v2610_v23, %v2419_v22 }
  0x30   :  { %759 = vmatpush.bf16.msra.mxu3 %v2324_v30 }
  0x33   :  { %671 = vmatpush.bf16.msra.mxu2 %v2252_v38 }
  0x34   :  { %760 = vmatpush.bf16.msra.mxu3 %v2316_v40  ;;  %v87_v40 = vld [vmem:[%s3868_s0 + $0xa8] sm:$0xff] }
  0x35   :  { %v108_v43 = vpack.c.bf16 %v87_v40, %v86_v39 }
  0x36   :  { %2211 = vmatmul.msk.bf16.gmra.mxu0 %vm144_vm0, %v100_v32 }
  0x37   :  { %2227 = vmatmul.msk.bf16.gmra.mxu1 %vm144_vm0, %v100_v32  ;;  %v2272_v32 = vor.u32 %v2571_v28, %v2269_v29  ;;  %v2484_v28 = vor.u32 %v2626_v27, %v2483_v26  ;;  %v91_v26 = vld [vmem:[%s3868_s0 + $0xc8] sm:$0xff] }
  0x38   :  { %761 = vmatpush.bf16.msra.mxu3 %v2308_v48  ;;  %v2256_v48 = vor.u32 %v2567_v46, %v2253_v47 }
  0x39   :  { %847 = vmatpush.bf16.msrb.mxu0 %v2272_v32 }
  0x3c   :  { %1404 = vmatpush.bf16.msrb.mxu3 %v2492_v55 }
  0x3d   :  { %848 = vmatpush.bf16.msrb.mxu0 %v2264_v2 }
  0x40   :  { %1405 = vmatpush.bf16.msrb.mxu3 %v2484_v28 }
  0x41   :  { %849 = vmatpush.bf16.msrb.mxu0 %v2256_v48 }
  0x46   :  { %2212 = vmatmul.msk.bf16.gmra.mxu0 %vm144_vm0, %v101_v41 }
  0x47   :  { %2228 = vmatmul.msk.bf16.gmra.mxu1 %vm144_vm0, %v101_v41  ;;  %v2243_v41 = vld [vmem:[%s3871_s3] sm:$0xf] }
  0x56   :  { %2213 = vmatmul.msk.bf16.gmra.mxu0 %vm144_vm0, %v102_v44 }
  0x57   :  { %2229 = vmatmul.msk.bf16.gmra.mxu1 %vm144_vm0, %v102_v44  ;;  %v2244_v44 = vor.u32 %v2566_v42, %v2243_v41 }
  0x59   :  { %672 = vmatpush.bf16.msra.mxu2 %v2244_v44 }
  0x5d   :  { %1315 = vmatpush.bf16.msrb.mxu2 %v2428_v52 }
  0x61   :  { %1316 = vmatpush.bf16.msrb.mxu2 %v2420_v25  ;;  %v90_v25 = vld [vmem:[%s3868_s0 + $0xc0] sm:$0xff] }
  0x66   :  { %2214 = vmatmul.msk.bf16.gmra.mxu0 %vm144_vm0, %v103_v59 }
  0x67   :  { %2230 = vmatmul.msk.bf16.gmra.mxu1 %vm144_vm0, %v103_v59  ;;  %v118_v59 = vld [vmem:[%s3870_s2] sm:$0x3] }
  0x68   :  { %v3209_v62 = vperm.slane %v118_v59, 0  ;;  %v3212_v63 = vperm.slane %v118_v59, 1 }
  0x76   :  { %2215 = vmatmul.msk.bf16.gmra.mxu0 %vm144_vm0, %v104_v19 }
  0x77   :  { %2231 = vmatmul.msk.bf16.gmra.mxu1 %vm144_vm0, %v104_v19 }
  0x86   :  { %2216 = vmatmul.msk.bf16.gmra.mxu0 %vm144_vm0, %v105_v49 }
  0x87   :  { %2232 = vmatmul.msk.bf16.gmra.mxu1 %vm144_vm0, %v105_v49  ;;  %v2583_v49 = vld [vmem:[%s3871_s3 + $0x94] sm:$0xf] }
  0x88   :  { %v2320_v51 = vor.u32 %v2583_v49, %v2317_v50  ;;  %v92_v50 = vld [vmem:[%s3868_s0 + $0xd0] sm:$0xff] }
  0x8a   :  { %938 = vmatpush.bf16.msrb.mxu1 %v2320_v51  ;;  %v93_v51 = vld [vmem:[%s3868_s0 + $0xd8] sm:$0xff] }
  0x93   :  { %v202_v60 = vpop.f32.mrf.mxu0 }
  0x94   :  { %v291_v61 = vpop.f32.mrf.mxu1  ;;  %v203_v6 = vadd.f32 %v202_v60, %v3209_v62 }
  0x95   :  { %v292_v7 = vadd.f32 %v291_v61, %v3212_v63 }
  0x96   :  { %2217 = vmatmul.msk.bf16.gmra.mxu0 %vm144_vm0, %v106_v58  ;;  %v371_v12 = vmax.f32 %v203_v6, 0.0  ;;  %v2411_v6 = vld [vmem:[#allocation2 + $0x50] sm:$0xf] }
  0x97   :  { %2233 = vmatmul.msk.bf16.gmra.mxu1 %vm144_vm0, %v106_v58  ;;  %v372_v14 = vmax.f32 %v292_v7, 0.0  ;;  %v2608_v7 = vld [vmem:[#allocation2 + $0x54] sm:$0xf0] }
  0x9b   :  { %v204_v8 = vpop.f32.mrf.mxu0 }
  0x9c   :  { %v205_v9 = vadd.f32 %v204_v8, %v3209_v62  ;;  %v293_v10 = vpop.f32.mrf.mxu1 }
  0x9d   :  { %v294_v11 = vadd.f32 %v293_v10, %v3212_v63  ;;  %v2475_v10 = vld [vmem:[#allocation2 + $0xd0] sm:$0xf] }
  0x9e   :  { %v373_v13 = vmax.f32 %v205_v9, 0.0  ;;  %v2412_v9 = vor.u32 %v2608_v7, %v2411_v6 }
  0x9f   :  { %v374_v15 = vmax.f32 %v294_v11, 0.0  ;;  %v2624_v11 = vld [vmem:[#allocation2 + $0xd4] sm:$0xf0] }
  0xa0   :  { %v3237_v18 = vpack.c.bf16 %v373_v13, %v371_v12  ;;  %1317 = vmatpush.bf16.msrb.mxu2 %v2412_v9  ;;  %v2476_v12 = vor.u32 %v2624_v11, %v2475_v10 }
  0xa1   :  { %v3239_v19 = vpack.c.bf16 %v374_v15, %v372_v14 }
  0xa2   :  { %673 = vmatmul.bf16.vlgmr.msra.gmra.mxu2 %v3237_v18  ;;  %1406 = vmatpush.bf16.msrb.mxu3 %v2476_v12 }
  0xa3   :  { %762 = vmatmul.bf16.vlgmr.msra.gmra.mxu3 %v3239_v19  ;;  %v207_v21 = vpop.f32.mrf.mxu0 }
  0xa4   :  { %v296_v24 = vpop.f32.mrf.mxu1  ;;  %v208_v29 = vadd.f32 %v207_v21, %v3209_v62 }
  0xa5   :  { %v297_v30 = vadd.f32 %v296_v24, %v3212_v63 }
  0xa6   :  { %2218 = vmatmul.msk.bf16.gmra.mxu0 %vm144_vm0, %v107_v20  ;;  %v375_v35 = vmax.f32 %v208_v29, 0.0  ;;  %v110_v29 = vpack.c.bf16 %v91_v26, %v90_v25  ;;  %v2627_v25 = vld [vmem:[#allocation2 + $0xf4] sm:$0xf]  ;;  %v2493_v26 = vld [vmem:[#allocation2 + $0xf8] sm:$0xf0] }
  0xa7   :  { %2234 = vmatmul.msk.bf16.gmra.mxu1 %vm144_vm0, %v107_v20  ;;  %v376_v37 = vmax.f32 %v297_v30, 0.0 }
  0xab   :  { %v209_v31 = vpop.f32.mrf.mxu0 }
  0xac   :  { %v210_v32 = vadd.f32 %v209_v31, %v3209_v62  ;;  %v298_v33 = vpop.f32.mrf.mxu1 }
  0xad   :  { %v299_v34 = vadd.f32 %v298_v33, %v3212_v63  ;;  %v2245_v33 = vld [vmem:[%s3871_s3 + $0x8] sm:$0xf0] }
  0xae   :  { %v377_v36 = vmax.f32 %v210_v32, 0.0  ;;  %v2565_v32 = vld [vmem:[%s3871_s3 + $0x4] sm:$0xf] }
  0xaf   :  { %v378_v38 = vmax.f32 %v299_v34, 0.0  ;;  %v2248_v34 = vor.u32 %v2565_v32, %v2245_v33 }
  0xb0   :  { %v3255_v41 = vpack.c.bf16 %v377_v36, %v375_v35  ;;  %v2581_v35 = vld [vmem:[%s3871_s3 + $0x84] sm:$0xf]  ;;  %v2309_v36 = vld [vmem:[%s3871_s3 + $0x88] sm:$0xf0] }
  0xb1   :  { %v3257_v42 = vpack.c.bf16 %v378_v38, %v376_v37  ;;  %v2312_v37 = vor.u32 %v2581_v35, %v2309_v36  ;;  %850 = vmatpush.bf16.msrb.mxu0 %v2248_v34 }
  0xb2   :  { %678 = vmatmul.bf16.gmra.mxu2 %v3255_v41 }
  0xb3   :  { %767 = vmatmul.bf16.gmra.mxu3 %v3257_v42  ;;  %v212_v44 = vpop.f32.mrf.mxu0  ;;  %939 = vmatpush.bf16.msrb.mxu1 %v2312_v37 }
  0xb4   :  { %v301_v45 = vpop.f32.mrf.mxu1  ;;  %v213_v52 = vadd.f32 %v212_v44, %v3209_v62 }
  0xb5   :  { %v302_v53 = vadd.f32 %v301_v45, %v3212_v63 }
  0xb6   :  { %2219 = vmatmul.msk.bf16.gmra.mxu0 %vm144_vm0, %v108_v43  ;;  %v379_v58 = vmax.f32 %v213_v52, 0.0 }
  0xb7   :  { %2235 = vmatmul.msk.bf16.gmra.mxu1 %vm144_vm0, %v108_v43  ;;  %v380_v60 = vmax.f32 %v302_v53, 0.0 }
  0xbb   :  { %v214_v54 = vpop.f32.mrf.mxu0 }
  0xbc   :  { %v215_v55 = vadd.f32 %v214_v54, %v3209_v62  ;;  %v303_v56 = vpop.f32.mrf.mxu1  ;;  %v111_v54 = vpack.c.bf16 %v93_v51, %v92_v50 }
  0xbd   :  { %v304_v57 = vadd.f32 %v303_v56, %v3212_v63  ;;  %v2403_v56 = vld [vmem:[#allocation2 + $0x40] sm:$0xf] }
  0xbe   :  { %v381_v59 = vmax.f32 %v215_v55, 0.0 }
  0xbf   :  { %v382_v61 = vmax.f32 %v304_v57, 0.0  ;;  %v2606_v57 = vld [vmem:[#allocation2 + $0x44] sm:$0xf0] }
  0xc0   :  { %v3285_v2 = vpack.c.bf16 %v381_v59, %v379_v58  ;;  %v2404_v59 = vor.u32 %v2606_v57, %v2403_v56 }
  0xc1   :  { %v3287_v3 = vpack.c.bf16 %v382_v61, %v380_v60  ;;  %v2467_v60 = vld [vmem:[#allocation2 + $0xc0] sm:$0xf]  ;;  %v2622_v61 = vld [vmem:[#allocation2 + $0xc4] sm:$0xf0] }
  0xc2   :  { %683 = vmatmul.bf16.gmra.mxu2 %v3285_v2  ;;  %v2468_v0 = vor.u32 %v2622_v61, %v2467_v60 }
  0xc3   :  { %772 = vmatmul.bf16.gmra.mxu3 %v3287_v3  ;;  %v217_v5 = vpop.f32.mrf.mxu0  ;;  %1318 = vmatpush.bf16.msrb.mxu2 %v2404_v59 }
  0xc4   :  { %v306_v8 = vpop.f32.mrf.mxu1  ;;  %v218_v13 = vadd.f32 %v217_v5, %v3209_v62  ;;  %1407 = vmatpush.bf16.msrb.mxu3 %v2468_v0 }
  0xc5   :  { %v307_v14 = vadd.f32 %v306_v8, %v3212_v63 }
  0xc6   :  { %2220 = vmatmul.msk.bf16.gmra.mxu0 %vm144_vm0, %v109_v4  ;;  %v383_v21 = vmax.f32 %v218_v13, 0.0  ;;  %v94_v13 = vld [vmem:[%s3868_s0 + $0xe0] sm:$0xff] }
  0xc7   :  { %2236 = vmatmul.msk.bf16.gmra.mxu1 %vm144_vm0, %v109_v4  ;;  %v384_v23 = vmax.f32 %v307_v14, 0.0  ;;  %v95_v14 = vld [vmem:[%s3868_s0 + $0xe8] sm:$0xff] }
  0xcb   :  { %v219_v15 = vpop.f32.mrf.mxu0 }
  0xcc   :  { %v220_v16 = vadd.f32 %v219_v15, %v3209_v62  ;;  %v308_v17 = vpop.f32.mrf.mxu1 }
  0xcd   :  { %v309_v20 = vadd.f32 %v308_v17, %v3212_v63  ;;  %v112_v17 = vpack.c.bf16 %v95_v14, %v94_v13  ;;  %v2421_v13 = vld [vmem:[#allocation2 + $0x68] sm:$0xf0]  ;;  %v2625_v14 = vld [vmem:[#allocation2 + $0xe4] sm:$0xf] }
  0xce   :  { %v385_v22 = vmax.f32 %v220_v16, 0.0 }
  0xcf   :  { %v386_v24 = vmax.f32 %v309_v20, 0.0 }
  0xd0   :  { %v3303_v27 = vpack.c.bf16 %v385_v22, %v383_v21  ;;  %v2611_v22 = vld [vmem:[#allocation2 + $0x74] sm:$0xf] }
  0xd1   :  { %v3305_v28 = vpack.c.bf16 %v386_v24, %v384_v23  ;;  %v2429_v23 = vld [vmem:[#allocation2 + $0x78] sm:$0xf0] }
  0xd2   :  { %688 = vmatmul.bf16.gmra.mxu2 %v3303_v27  ;;  %v2432_v24 = vor.u32 %v2611_v22, %v2429_v23  ;;  %v2485_v22 = vld [vmem:[#allocation2 + $0xe8] sm:$0xf0] }
  0xd3   :  { %777 = vmatmul.bf16.gmra.mxu3 %v3305_v28  ;;  %v222_v30 = vpop.f32.mrf.mxu0 }
  0xd4   :  { %v311_v31 = vpop.f32.mrf.mxu1  ;;  %v223_v38 = vadd.f32 %v222_v30, %v3209_v62  ;;  %1493 = vmatpush.bf16.msra.mxu0 %v2432_v24 }
  0xd5   :  { %v312_v39 = vadd.f32 %v311_v31, %v3212_v63 }
  0xd6   :  { %2221 = vmatmul.msk.bf16.gmra.mxu0 %vm144_vm0, %v110_v29  ;;  %v387_v46 = vmax.f32 %v223_v38, 0.0 }
  0xd7   :  { %2237 = vmatmul.msk.bf16.gmra.mxu1 %vm144_vm0, %v110_v29  ;;  %v388_v48 = vmax.f32 %v312_v39, 0.0  ;;  %v2496_v29 = vor.u32 %v2627_v25, %v2493_v26  ;;  %v2488_v25 = vor.u32 %v2625_v14, %v2485_v22 }
  0xd9   :  { %1582 = vmatpush.bf16.msra.mxu1 %v2496_v29 }
  0xdb   :  { %v224_v40 = vpop.f32.mrf.mxu0 }
  0xdc   :  { %v225_v43 = vadd.f32 %v224_v40, %v3209_v62  ;;  %v313_v44 = vpop.f32.mrf.mxu1  ;;  %v96_v40 = vld [vmem:[%s3868_s0 + $0xf0] sm:$0xff] }
  0xdd   :  { %v314_v45 = vadd.f32 %v313_v44, %v3212_v63  ;;  %1583 = vmatpush.bf16.msra.mxu1 %v2488_v25 }
  0xde   :  { %v389_v47 = vmax.f32 %v225_v43, 0.0  ;;  %v97_v43 = vld [vmem:[%s3868_s0 + $0xf8] sm:$0xff] }
  0xdf   :  { %v390_v49 = vmax.f32 %v314_v45, 0.0 }
  0xe0   :  { %v3333_v52 = vpack.c.bf16 %v389_v47, %v387_v46  ;;  %v113_v46 = vpack.c.bf16 %v97_v43, %v96_v40 }
  0xe1   :  { %v3335_v53 = vpack.c.bf16 %v390_v49, %v388_v48  ;;  %v2395_v48 = vld [vmem:[#allocation2 + $0x30] sm:$0xf]  ;;  %v2604_v49 = vld [vmem:[#allocation2 + $0x34] sm:$0xf0] }
  0xe2   :  { %693 = vmatmul.bf16.gmra.mxu2 %v3333_v52  ;;  %v2396_v51 = vor.u32 %v2604_v49, %v2395_v48  ;;  %v2618_v48 = vld [vmem:[#allocation2 + $0xa4] sm:$0xf0] }
  0xe3   :  { %782 = vmatmul.bf16.gmra.mxu3 %v3335_v53  ;;  %v227_v55 = vpop.f32.mrf.mxu0 }
  0xe4   :  { %v316_v58 = vpop.f32.mrf.mxu1  ;;  %v228_v1 = vadd.f32 %v227_v55, %v3209_v62  ;;  %1319 = vmatpush.bf16.msrb.mxu2 %v2396_v51  ;;  %v2620_v55 = vld [vmem:[#allocation2 + $0xb4] sm:$0xf0] }
  0xe5   :  { %v317_v4 = vadd.f32 %v316_v58, %v3212_v63 }
  0xe6   :  { %2222 = vmatmul.msk.bf16.gmra.mxu0 %vm144_vm0, %v111_v54  ;;  %v391_v9 = vmax.f32 %v228_v1, 0.0 }
  0xe7   :  { %2238 = vmatmul.msk.bf16.gmra.mxu1 %vm144_vm0, %v111_v54  ;;  %v392_v11 = vmax.f32 %v317_v4, 0.0  ;;  %v2459_v54 = vld [vmem:[#allocation2 + $0xb0] sm:$0xf] }
  0xe8   :  { %v2460_v56 = vor.u32 %v2620_v55, %v2459_v54 }
  0xea   :  { %1408 = vmatpush.bf16.msrb.mxu3 %v2460_v56 }
  0xeb   :  { %v229_v5 = vpop.f32.mrf.mxu0 }
  0xec   :  { %v230_v6 = vadd.f32 %v229_v5, %v3209_v62  ;;  %v318_v7 = vpop.f32.mrf.mxu1 }
  0xed   :  { %v319_v8 = vadd.f32 %v318_v7, %v3212_v63 }
  0xee   :  { %v393_v10 = vmax.f32 %v230_v6, 0.0 }
  0xef   :  { %v394_v12 = vmax.f32 %v319_v8, 0.0 }
  0xf0   :  { %v3351_v15 = vpack.c.bf16 %v393_v10, %v391_v9 }
  0xf1   :  { %v3353_v16 = vpack.c.bf16 %v394_v12, %v392_v11  ;;  %v2609_v12 = vld [vmem:[#allocation2 + $0x64] sm:$0xf] }
  0xf2   :  { %698 = vmatmul.bf16.gmra.mxu2 %v3351_v15 }
  0xf3   :  { %787 = vmatmul.bf16.gmra.mxu3 %v3353_v16  ;;  %v232_v20 = vpop.f32.mrf.mxu0 }
  0xf4   :  { %v321_v21 = vpop.f32.mrf.mxu1  ;;  %v233_v30 = vadd.f32 %v232_v20, %v3209_v62 }
  0xf5   :  { %v322_v31 = vadd.f32 %v321_v21, %v3212_v63  ;;  %v2424_v21 = vor.u32 %v2609_v12, %v2421_v13 }
  0xf6   :  { %2223 = vmatmul.msk.bf16.gmra.mxu0 %vm144_vm0, %v112_v17  ;;  %v395_v36 = vmax.f32 %v233_v30, 0.0 }
  0xf7   :  { %2239 = vmatmul.msk.bf16.gmra.mxu1 %vm144_vm0, %v112_v17  ;;  %v396_v38 = vmax.f32 %v322_v31, 0.0  ;;  %1494 = vmatpush.bf16.msra.mxu0 %v2424_v21  ;;  %v3396_v31 = vld [vmem:[%s3872_s4] sm:$0x3] }
  0xfb   :  { %v234_v32 = vpop.f32.mrf.mxu0 }
  0xfc   :  { %v235_v33 = vadd.f32 %v234_v32, %v3209_v62  ;;  %v323_v34 = vpop.f32.mrf.mxu1 }
  0xfd   :  { %v324_v35 = vadd.f32 %v323_v34, %v3212_v63  ;;  %v3404_v34 = vperm.slane %v3396_v31, 0 }
  0xfe   :  { %v397_v37 = vmax.f32 %v235_v33, 0.0 }
  0xff   :  { %v398_v39 = vmax.f32 %v324_v35, 0.0 }
 0x100   :  { %v3369_v44 = vpack.c.bf16 %v397_v37, %v395_v36  ;;  %v2387_v36 = vld [vmem:[#allocation2 + $0x20] sm:$0xf]  ;;  %v2602_v37 = vld [vmem:[#allocation2 + $0x24] sm:$0xf0] }
 0x101   :  { %v3371_v45 = vpack.c.bf16 %v398_v39, %v396_v38  ;;  %v2388_v39 = vor.u32 %v2602_v37, %v2387_v36 }
 0x102   :  { %703 = vmatmul.bf16.gmra.mxu2 %v3369_v44 }
 0x103   :  { %792 = vmatmul.bf16.gmra.mxu3 %v3371_v45  ;;  %v237_v47 = vpop.f32.mrf.mxu0  ;;  %1320 = vmatpush.bf16.msrb.mxu2 %v2388_v39 }
 0x104   :  { %v326_v50 = vpop.f32.mrf.mxu1  ;;  %v238_v57 = vadd.f32 %v237_v47, %v3209_v62  ;;  %v2451_v47 = vld [vmem:[#allocation2 + $0xa0] sm:$0xf] }
 0x105   :  { %v327_v58 = vadd.f32 %v326_v50, %v3212_v63  ;;  %v2452_v50 = vor.u32 %v2618_v48, %v2451_v47 }
 0x106   :  { %2224 = vmatmul.msk.bf16.gmra.mxu0 %vm144_vm0, %v113_v46  ;;  %v399_v1 = vmax.f32 %v238_v57, 0.0 }
 0x107   :  { %2240 = vmatmul.msk.bf16.gmra.mxu1 %vm144_vm0, %v113_v46  ;;  %v400_v5 = vmax.f32 %v327_v58, 0.0  ;;  %1409 = vmatpush.bf16.msrb.mxu3 %v2452_v50 }
 0x10b   :  { %v239_v59 = vpop.f32.mrf.mxu0 }
 0x10c   :  { %v240_v60 = vadd.f32 %v239_v59, %v3209_v62  ;;  %v328_v61 = vpop.f32.mrf.mxu1 }
 0x10d   :  { %v329_v0 = vadd.f32 %v328_v61, %v3212_v63 }
 0x10e   :  { %v401_v4 = vmax.f32 %v240_v60, 0.0 }
 0x10f   :  { %v402_v6 = vmax.f32 %v329_v0, 0.0 }
 0x110   :  { %v3381_v7 = vpack.c.bf16 %v401_v4, %v399_v1 }
 0x111   :  { %v3383_v8 = vpack.c.bf16 %v402_v6, %v400_v5 }
 0x112   :  { %708 = vmatmul.bf16.gmra.mxu2 %v3381_v7 }
 0x113   :  { %797 = vmatmul.bf16.gmra.mxu3 %v3383_v8  ;;  %v242_v9 = vpop.f32.mrf.mxu0 }
 0x114   :  { %v331_v10 = vpop.f32.mrf.mxu1  ;;  %v243_v11 = vadd.f32 %v242_v9, %v3209_v62 }
 0x115   :  { %v332_v17 = vadd.f32 %v331_v10, %v3212_v63 }
 0x116   :  { %851 = vmatmul.bf16.vlgmr.msrb.gmra.mxu0 %v3237_v18  ;;  %v403_v18 = vmax.f32 %v243_v11, 0.0 }
 0x117   :  { %940 = vmatmul.bf16.vlgmr.msrb.gmra.mxu1 %v3239_v19  ;;  %v404_v19 = vmax.f32 %v332_v17, 0.0 }
 0x11b   :  { %v244_v20 = vpop.f32.mrf.mxu0 }
 0x11c   :  { %v245_v23 = vadd.f32 %v244_v20, %v3209_v62  ;;  %v333_v24 = vpop.f32.mrf.mxu1 }
 0x11d   :  { %v334_v26 = vadd.f32 %v333_v24, %v3212_v63  ;;  %v2413_v24 = vld [vmem:[#allocation2 + $0x58] sm:$0xf0] }
 0x11e   :  { %v405_v29 = vmax.f32 %v245_v23, 0.0  ;;  %v2607_v23 = vld [vmem:[#allocation2 + $0x54] sm:$0xf] }
 0x11f   :  { %v406_v30 = vmax.f32 %v334_v26, 0.0 }
 0x120   :  { %v3398_v32 = vpack.c.bf16 %v405_v29, %v403_v18  ;;  %v2416_v18 = vor.u32 %v2607_v23, %v2413_v24  ;;  %v2623_v29 = vld [vmem:[#allocation2 + $0xd4] sm:$0xf] }
 0x121   :  { %v3400_v33 = vpack.c.bf16 %v406_v30, %v404_v19  ;;  %v2477_v19 = vld [vmem:[#allocation2 + $0xd8] sm:$0xf0] }
 0x122   :  { %713 = vmatmul.bf16.gmra.mxu2 %v3398_v32  ;;  %v2480_v36 = vor.u32 %v2623_v29, %v2477_v19  ;;  %1495 = vmatpush.bf16.msra.mxu0 %v2416_v18 }
 0x123   :  { %802 = vmatmul.bf16.gmra.mxu3 %v3400_v33  ;;  %v247_v35 = vpop.f32.mrf.mxu0 }
 0x124   :  { %v336_v38 = vpop.f32.mrf.mxu1  ;;  %v248_v51 = vadd.f32 %v247_v35, %v3209_v62  ;;  %1584 = vmatpush.bf16.msra.mxu1 %v2480_v36 }
 0x125   :  { %v674_v40 = vpop.f32.mrf.mxu2  ;;  %v337_v54 = vadd.f32 %v336_v38, %v3212_v63 }
 0x126   :  { %v675_v43 = vadd.f32 %v674_v40, %v3404_v34  ;;  %v763_v46 = vpop.f32.mrf.mxu3  ;;  %856 = vmatmul.bf16.gmra.mxu0 %v3255_v41  ;;  %v407_v41 = vmax.f32 %v248_v51, 0.0 }
 0x127   :  { %945 = vmatmul.bf16.gmra.mxu1 %v3257_v42  ;;  %v408_v0 = vmax.f32 %v337_v54, 0.0 }
 0x128   :  { %v764_v49 = vadd.f32 %v763_v46, %v675_v43 }
 0x12a   :  { %v1021_v9 = vmax.f32 %v764_v49, 0.0 }
 0x12b   :  { %v249_v55 = vpop.f32.mrf.mxu0 }
 0x12c   :  { %v250_v56 = vadd.f32 %v249_v55, %v3209_v62  ;;  %v338_v57 = vpop.f32.mrf.mxu1  ;;  %v2379_v55 = vld [vmem:[#allocation2 + $0x10] sm:$0xf] }
 0x12d   :  { %v339_v58 = vadd.f32 %v338_v57, %v3212_v63  ;;  %v676_v59 = vpop.f32.mrf.mxu2 }
 0x12e   :  { %v409_v60 = vmax.f32 %v250_v56, 0.0  ;;  %v677_v42 = vadd.f32 %v676_v59, %v3404_v34  ;;  %v765_v61 = vpop.f32.mrf.mxu3  ;;  %v2600_v56 = vld [vmem:[#allocation2 + $0x14] sm:$0xf0] }
 0x12f   :  { %v410_v1 = vmax.f32 %v339_v58, 0.0  ;;  %v2380_v58 = vor.u32 %v2600_v56, %v2379_v55 }
 0x130   :  { %v766_v4 = vadd.f32 %v765_v61, %v677_v42  ;;  %v3415_v5 = vpack.c.bf16 %v409_v60, %v407_v41  ;;  %v2443_v61 = vld [vmem:[#allocation2 + $0x90] sm:$0xf] }
 0x131   :  { %v3417_v6 = vpack.c.bf16 %v410_v1, %v408_v0  ;;  %1321 = vmatpush.bf16.msrb.mxu2 %v2380_v58  ;;  %v2616_v0 = vld [vmem:[#allocation2 + $0x94] sm:$0xf0] }
 0x132   :  { %v1023_v10 = vmax.f32 %v766_v4, 0.0  ;;  %718 = vmatmul.bf16.gmra.mxu2 %v3415_v5  ;;  %v2444_v4 = vor.u32 %v2616_v0, %v2443_v61 }
 0x133   :  { %807 = vmatmul.bf16.gmra.mxu3 %v3417_v6  ;;  %v252_v11 = vpop.f32.mrf.mxu0 }
 0x134   :  { %v3421_v12 = vpack.c.bf16 %v1023_v10, %v1021_v9  ;;  %v341_v13 = vpop.f32.mrf.mxu1  ;;  %v253_v22 = vadd.f32 %v252_v11, %v3209_v62  ;;  %1410 = vmatpush.bf16.msrb.mxu3 %v2444_v4 }
 0x135   :  { %v679_v14 = vpop.f32.mrf.mxu2  ;;  %v342_v25 = vadd.f32 %v341_v13, %v3212_v63 }
 0x136   :  { %v680_v17 = vadd.f32 %v679_v14, %v3404_v34  ;;  %v768_v20 = vpop.f32.mrf.mxu3  ;;  %861 = vmatmul.bf16.gmra.mxu0 %v3285_v2 }
 0x137   :  { %950 = vmatmul.bf16.gmra.mxu1 %v3287_v3  ;;  %v411_v3 = vmax.f32 %v253_v22, 0.0  ;;  %v412_v43 = vmax.f32 %v342_v25, 0.0 }
 0x138   :  { %v769_v21 = vadd.f32 %v768_v20, %v680_v17 }
 0x13a   :  { %v1025_v50 = vmax.f32 %v769_v21, 0.0 }
 0x13b   :  { %v254_v26 = vpop.f32.mrf.mxu0 }
 0x13c   :  { %v255_v30 = vadd.f32 %v254_v26, %v3209_v62  ;;  %v343_v35 = vpop.f32.mrf.mxu1 }
 0x13d   :  { %v344_v37 = vadd.f32 %v343_v35, %v3212_v63  ;;  %v681_v2 = vpop.f32.mrf.mxu2 }
 0x13e   :  { %v413_v38 = vmax.f32 %v255_v30, 0.0  ;;  %v682_v39 = vadd.f32 %v681_v2, %v3404_v34  ;;  %v770_v40 = vpop.f32.mrf.mxu3 }
 0x13f   :  { %v414_v46 = vmax.f32 %v344_v37, 0.0 }
 0x140   :  { %v771_v47 = vadd.f32 %v770_v40, %v682_v39  ;;  %v3431_v48 = vpack.c.bf16 %v413_v38, %v411_v3  ;;  %v2605_v40 = vld [vmem:[#allocation2 + $0x44] sm:$0xf] }
 0x141   :  { %v3433_v49 = vpack.c.bf16 %v414_v46, %v412_v43  ;;  %v2405_v43 = vld [vmem:[#allocation2 + $0x48] sm:$0xf0] }
 0x142   :  { %v1027_v51 = vmax.f32 %v771_v47, 0.0  ;;  %723 = vmatmul.bf16.gmra.mxu2 %v3431_v48 }
 0x143   :  { %812 = vmatmul.bf16.gmra.mxu3 %v3433_v49  ;;  %v257_v54 = vpop.f32.mrf.mxu0 }
 0x144   :  { %v346_v57 = vpop.f32.mrf.mxu1  ;;  %v3437_v59 = vpack.c.bf16 %v1027_v51, %v1025_v50  ;;  %v258_v9 = vadd.f32 %v257_v54, %v3209_v62  ;;  %v2408_v50 = vor.u32 %v2605_v40, %v2405_v43  ;;  %v2621_v51 = vld [vmem:[#allocation2 + $0xc4] sm:$0xf]  ;;  %v2469_v54 = vld [vmem:[#allocation2 + $0xc8] sm:$0xf0] }
 0x145   :  { %v684_v41 = vpop.f32.mrf.mxu2  ;;  %v347_v10 = vadd.f32 %v346_v57, %v3212_v63  ;;  %v2472_v57 = vor.u32 %v2621_v51, %v2469_v54 }
 0x146   :  { %v685_v60 = vadd.f32 %v684_v41, %v3404_v34  ;;  %v773_v42 = vpop.f32.mrf.mxu3  ;;  %866 = vmatmul.bf16.gmra.mxu0 %v3303_v27  ;;  %v415_v27 = vmax.f32 %v258_v9, 0.0 }
 0x147   :  { %955 = vmatmul.bf16.gmra.mxu1 %v3305_v28  ;;  %v416_v23 = vmax.f32 %v347_v10, 0.0  ;;  %1496 = vmatpush.bf16.msra.mxu0 %v2408_v50 }
 0x148   :  { %v774_v1 = vadd.f32 %v773_v42, %v685_v60  ;;  %1585 = vmatpush.bf16.msra.mxu1 %v2472_v57 }
 0x14a   :  { %v1029_v29 = vmax.f32 %v774_v1, 0.0 }
 0x14b   :  { %v259_v11 = vpop.f32.mrf.mxu0 }
 0x14c   :  { %v260_v13 = vadd.f32 %v259_v11, %v3209_v62  ;;  %v348_v14 = vpop.f32.mrf.mxu1 }
 0x14d   :  { %v349_v17 = vadd.f32 %v348_v14, %v3212_v63  ;;  %v686_v20 = vpop.f32.mrf.mxu2  ;;  %v2371_v14 = vld [vmem:[#allocation2] sm:$0xf] }
 0x14e   :  { %v417_v21 = vmax.f32 %v260_v13, 0.0  ;;  %v687_v28 = vadd.f32 %v686_v20, %v3404_v34  ;;  %v775_v22 = vpop.f32.mrf.mxu3 }
 0x14f   :  { %v418_v24 = vmax.f32 %v349_v17, 0.0  ;;  %v2598_v17 = vld [vmem:[#allocation2 + $0x4] sm:$0xf0] }
 0x150   :  { %v776_v25 = vadd.f32 %v775_v22, %v687_v28  ;;  %v3447_v26 = vpack.c.bf16 %v417_v21, %v415_v27  ;;  %v2372_v27 = vor.u32 %v2598_v17, %v2371_v14  ;;  %v2619_v14 = vld [vmem:[#allocation2 + $0xb4] sm:$0xf]  ;;  %v2461_v17 = vld [vmem:[#allocation2 + $0xb8] sm:$0xf0] }
 0x151   :  { %v3449_v18 = vpack.c.bf16 %v418_v24, %v416_v23  ;;  %v2435_v24 = vld [vmem:[#allocation2 + $0x80] sm:$0xf] }
 0x152   :  { %v1031_v19 = vmax.f32 %v776_v25, 0.0  ;;  %728 = vmatmul.bf16.gmra.mxu2 %v3447_v26  ;;  %v2614_v25 = vld [vmem:[#allocation2 + $0x84] sm:$0xf0] }
 0x153   :  { %817 = vmatmul.bf16.gmra.mxu3 %v3449_v18  ;;  %v262_v30 = vpop.f32.mrf.mxu0  ;;  %1322 = vmatpush.bf16.msrb.mxu2 %v2372_v27 }
 0x154   :  { %v351_v35 = vpop.f32.mrf.mxu1  ;;  %v3453_v36 = vpack.c.bf16 %v1031_v19, %v1029_v29  ;;  %v263_v39 = vadd.f32 %v262_v30, %v3209_v62  ;;  %v2436_v19 = vor.u32 %v2614_v25, %v2435_v24 }
 0x155   :  { %v689_v37 = vpop.f32.mrf.mxu2  ;;  %v352_v46 = vadd.f32 %v351_v35, %v3212_v63 }
 0x156   :  { %v690_v2 = vadd.f32 %v689_v37, %v3404_v34  ;;  %v778_v3 = vpop.f32.mrf.mxu3  ;;  %871 = vmatmul.bf16.gmra.mxu0 %v3333_v52  ;;  %1411 = vmatpush.bf16.msrb.mxu3 %v2436_v19 }
 0x157   :  { %960 = vmatmul.bf16.gmra.mxu1 %v3335_v53  ;;  %v419_v53 = vmax.f32 %v263_v39, 0.0  ;;  %v420_v61 = vmax.f32 %v352_v46, 0.0 }
 0x158   :  { %v779_v38 = vadd.f32 %v778_v3, %v690_v2 }
 0x15a   :  { %v1033_v10 = vmax.f32 %v779_v38, 0.0 }
 0x15b   :  { %v264_v47 = vpop.f32.mrf.mxu0 }
 0x15c   :  { %v265_v55 = vadd.f32 %v264_v47, %v3209_v62  ;;  %v353_v56 = vpop.f32.mrf.mxu1 }
 0x15d   :  { %v354_v58 = vadd.f32 %v353_v56, %v3212_v63  ;;  %v691_v52 = vpop.f32.mrf.mxu2 }
 0x15e   :  { %v421_v41 = vmax.f32 %v265_v55, 0.0  ;;  %v692_v60 = vadd.f32 %v691_v52, %v3404_v34  ;;  %v780_v42 = vpop.f32.mrf.mxu3 }
 0x15f   :  { %v422_v0 = vmax.f32 %v354_v58, 0.0 }
 0x160   :  { %v781_v1 = vadd.f32 %v780_v42, %v692_v60  ;;  %v3463_v4 = vpack.c.bf16 %v421_v41, %v419_v53 }
 0x161   :  { %v3465_v9 = vpack.c.bf16 %v422_v0, %v420_v61  ;;  %v2603_v0 = vld [vmem:[#allocation2 + $0x34] sm:$0xf] }
 0x162   :  { %v1035_v11 = vmax.f32 %v781_v1, 0.0  ;;  %733 = vmatmul.bf16.gmra.mxu2 %v3463_v4  ;;  %v2397_v1 = vld [vmem:[#allocation2 + $0x38] sm:$0xf0] }
 0x163   :  { %822 = vmatmul.bf16.gmra.mxu3 %v3465_v9  ;;  %v267_v13 = vpop.f32.mrf.mxu0 }
 0x164   :  { %v356_v20 = vpop.f32.mrf.mxu1  ;;  %v3469_v21 = vpack.c.bf16 %v1035_v11, %v1033_v10  ;;  %v268_v30 = vadd.f32 %v267_v13, %v3209_v62  ;;  %v2400_v13 = vor.u32 %v2603_v0, %v2397_v1 }
 0x165   :  { %v694_v28 = vpop.f32.mrf.mxu2  ;;  %v357_v35 = vadd.f32 %v356_v20, %v3212_v63 }
 0x166   :  { %v695_v22 = vadd.f32 %v694_v28, %v3404_v34  ;;  %v783_v23 = vpop.f32.mrf.mxu3  ;;  %876 = vmatmul.bf16.gmra.mxu0 %v3351_v15  ;;  %v423_v15 = vmax.f32 %v268_v30, 0.0  ;;  %v2464_v28 = vor.u32 %v2619_v14, %v2461_v17 }
 0x167   :  { %965 = vmatmul.bf16.gmra.mxu1 %v3353_v16  ;;  %v424_v46 = vmax.f32 %v357_v35, 0.0  ;;  %1497 = vmatpush.bf16.msra.mxu0 %v2400_v13 }
 0x168   :  { %v784_v29 = vadd.f32 %v783_v23, %v695_v22  ;;  %1586 = vmatpush.bf16.msra.mxu1 %v2464_v28 }
 0x16a   :  { %v1037_v55 = vmax.f32 %v784_v29, 0.0 }
 0x16b   :  { %v269_v37 = vpop.f32.mrf.mxu0 }
 0x16c   :  { %v270_v2 = vadd.f32 %v269_v37, %v3209_v62  ;;  %v358_v3 = vpop.f32.mrf.mxu1 }
 0x16d   :  { %v359_v38 = vadd.f32 %v358_v3, %v3212_v63  ;;  %v696_v39 = vpop.f32.mrf.mxu2 }
 0x16e   :  { %v425_v40 = vmax.f32 %v270_v2, 0.0  ;;  %v697_v16 = vadd.f32 %v696_v39, %v3404_v34  ;;  %v785_v43 = vpop.f32.mrf.mxu3 }
 0x16f   :  { %v426_v47 = vmax.f32 %v359_v38, 0.0  ;;  %v2636_v38 = vld [vmem:[#allocation5 + $0x38] sm:$0xff] }
 0x170   :  { %v786_v50 = vadd.f32 %v785_v43, %v697_v16  ;;  %v3479_v51 = vpack.c.bf16 %v425_v40, %v423_v15  ;;  %1899 = vmatpush.bf16.msra.mxu2 %v2636_v38 }
 0x171   :  { %v3481_v54 = vpack.c.bf16 %v426_v47, %v424_v46 }
 0x172   :  { %v1039_v56 = vmax.f32 %v786_v50, 0.0  ;;  %738 = vmatmul.bf16.gmra.mxu2 %v3479_v51  ;;  %v2644_v50 = vld [vmem:[#allocation5 + $0x78] sm:$0xff] }
 0x173   :  { %827 = vmatmul.bf16.gmra.mxu3 %v3481_v54  ;;  %v272_v57 = vpop.f32.mrf.mxu0 }
 0x174   :  { %v361_v58 = vpop.f32.mrf.mxu1  ;;  %v3485_v52 = vpack.c.bf16 %v1039_v56, %v1037_v55  ;;  %v273_v61 = vadd.f32 %v272_v57, %v3209_v62  ;;  %1988 = vmatpush.bf16.msra.mxu3 %v2644_v50 }
 0x175   :  { %v699_v53 = vpop.f32.mrf.mxu2  ;;  %v362_v10 = vadd.f32 %v361_v58, %v3212_v63 }
 0x176   :  { %v700_v41 = vadd.f32 %v699_v53, %v3404_v34  ;;  %v788_v60 = vpop.f32.mrf.mxu3  ;;  %881 = vmatmul.bf16.gmra.mxu0 %v3369_v44 }
 0x177   :  { %970 = vmatmul.bf16.gmra.mxu1 %v3371_v45  ;;  %v427_v45 = vmax.f32 %v273_v61, 0.0  ;;  %v428_v29 = vmax.f32 %v362_v10, 0.0 }
 0x178   :  { %v789_v42 = vadd.f32 %v788_v60, %v700_v41 }
 0x17a   :  { %v1041_v2 = vmax.f32 %v789_v42, 0.0 }
 0x17b   :  { %v274_v11 = vpop.f32.mrf.mxu0 }
 0x17c   :  { %v275_v20 = vadd.f32 %v274_v11, %v3209_v62  ;;  %v363_v27 = vpop.f32.mrf.mxu1 }
 0x17d   :  { %v364_v22 = vadd.f32 %v363_v27, %v3212_v63  ;;  %v701_v44 = vpop.f32.mrf.mxu2 }
 0x17e   :  { %v429_v23 = vmax.f32 %v275_v20, 0.0  ;;  %v702_v24 = vadd.f32 %v701_v44, %v3404_v34  ;;  %v790_v25 = vpop.f32.mrf.mxu3 }
 0x17f   :  { %v430_v19 = vmax.f32 %v364_v22, 0.0 }
 0x180   :  { %v791_v30 = vadd.f32 %v790_v25, %v702_v24  ;;  %v3495_v35 = vpack.c.bf16 %v429_v23, %v427_v45  ;;  %v2601_v24 = vld [vmem:[#allocation2 + $0x24] sm:$0xf]  ;;  %v2389_v25 = vld [vmem:[#allocation2 + $0x28] sm:$0xf0] }
 0x181   :  { %v3497_v37 = vpack.c.bf16 %v430_v19, %v428_v29  ;;  %v2392_v19 = vor.u32 %v2601_v24, %v2389_v25 }
 0x182   :  { %v1043_v3 = vmax.f32 %v791_v30, 0.0  ;;  %743 = vmatmul.bf16.gmra.mxu2 %v3495_v35  ;;  %v2453_v30 = vld [vmem:[#allocation2 + $0xa8] sm:$0xf0] }
 0x183   :  { %832 = vmatmul.bf16.gmra.mxu3 %v3497_v37  ;;  %v277_v39 = vpop.f32.mrf.mxu0  ;;  %1498 = vmatpush.bf16.msra.mxu0 %v2392_v19 }
 0x184   :  { %v366_v15 = vpop.f32.mrf.mxu1  ;;  %v3501_v40 = vpack.c.bf16 %v1043_v3, %v1041_v2  ;;  %v278_v55 = vadd.f32 %v277_v39, %v3209_v62 }
 0x185   :  { %v704_v16 = vpop.f32.mrf.mxu2  ;;  %v367_v56 = vadd.f32 %v366_v15, %v3212_v63 }
 0x186   :  { %v705_v43 = vadd.f32 %v704_v16, %v3404_v34  ;;  %v793_v46 = vpop.f32.mrf.mxu3  ;;  %886 = vmatmul.bf16.gmra.mxu0 %v3381_v7  ;;  %v431_v42 = vmax.f32 %v278_v55, 0.0 }
 0x187   :  { %975 = vmatmul.bf16.gmra.mxu1 %v3383_v8  ;;  %v432_v8 = vmax.f32 %v367_v56, 0.0 }
 0x188   :  { %v794_v47 = vadd.f32 %v793_v46, %v705_v43 }
 0x18a   :  { %v1045_v14 = vmax.f32 %v794_v47, 0.0 }
 0x18b   :  { %v279_v57 = vpop.f32.mrf.mxu0 }
 0x18c   :  { %v280_v58 = vadd.f32 %v279_v57, %v3209_v62  ;;  %v368_v53 = vpop.f32.mrf.mxu1  ;;  %v2635_v57 = vld [vmem:[#allocation5 + $0x30] sm:$0xff] }
 0x18d   :  { %v369_v41 = vadd.f32 %v368_v53, %v3212_v63  ;;  %v706_v60 = vpop.f32.mrf.mxu2  ;;  %v3518_v63 = vperm.slane %v3396_v31, 1  ;;  %v2617_v31 = vld [vmem:[#allocation2 + $0xa4] sm:$0xf]  ;;  %1900 = vmatpush.bf16.msra.mxu2 %v2635_v57 }
 0x18e   :  { %v433_v61 = vmax.f32 %v280_v58, 0.0  ;;  %v707_v7 = vadd.f32 %v706_v60, %v3404_v34  ;;  %v795_v0 = vpop.f32.mrf.mxu3  ;;  %v2456_v39 = vor.u32 %v2617_v31, %v2453_v30 }
 0x18f   :  { %v434_v1 = vmax.f32 %v369_v41, 0.0 }
 0x190   :  { %v796_v10 = vadd.f32 %v795_v0, %v707_v7  ;;  %v3511_v11 = vpack.c.bf16 %v433_v61, %v431_v42  ;;  %1587 = vmatpush.bf16.msra.mxu1 %v2456_v39  ;;  %v2599_v39 = vld [vmem:[#allocation2 + $0x14] sm:$0xf] }
 0x191   :  { %v3513_v13 = vpack.c.bf16 %v434_v1, %v432_v8  ;;  %v2643_v8 = vld [vmem:[#allocation5 + $0x70] sm:$0xff] }
 0x192   :  { %v1047_v17 = vmax.f32 %v796_v10, 0.0  ;;  %748 = vmatmul.bf16.gmra.mxu2 %v3511_v11  ;;  %1989 = vmatpush.bf16.msra.mxu3 %v2643_v8  ;;  %v2634_v8 = vld [vmem:[#allocation5 + $0x28] sm:$0xff] }
 0x193   :  { %837 = vmatmul.bf16.gmra.mxu3 %v3513_v13  ;;  %v852_v62 = vpop.f32.mrf.mxu0  ;;  %1901 = vmatpush.bf16.msra.mxu2 %v2634_v8 }
 0x194   :  { %v941_v20 = vpop.f32.mrf.mxu1  ;;  %v3520_v27 = vpack.c.bf16 %v1047_v17, %v1045_v14  ;;  %v853_v45 = vadd.f32 %v852_v62, %v3518_v63 }
 0x195   :  { %v709_v28 = vpop.f32.mrf.mxu2 }
 0x196   :  { %v710_v22 = vadd.f32 %v709_v28, %v3404_v34  ;;  %v798_v44 = vpop.f32.mrf.mxu3  ;;  %891 = vmatmul.bf16.gmra.mxu0 %v3398_v32  ;;  %v942_v2 = vadd.f32 %v941_v20, %v853_v45 }
 0x197   :  { %980 = vmatmul.bf16.gmra.mxu1 %v3400_v33 }
 0x198   :  { %v799_v23 = vadd.f32 %v798_v44, %v710_v22  ;;  %v1022_v43 = vmax.f32 %v942_v2, 0.0 }
 0x19a   :  { %v1049_v50 = vmax.f32 %v799_v23, 0.0 }
 0x19b   :  { %v854_v29 = vpop.f32.mrf.mxu0 }
 0x19c   :  { %v855_v3 = vadd.f32 %v854_v29, %v3518_v63  ;;  %v943_v38 = vpop.f32.mrf.mxu1 }
 0x19d   :  { %v711_v15 = vpop.f32.mrf.mxu2 }
 0x19e   :  { %v944_v16 = vadd.f32 %v943_v38, %v855_v3  ;;  %v712_v32 = vadd.f32 %v711_v15, %v3404_v34  ;;  %v800_v33 = vpop.f32.mrf.mxu3  ;;  %v2381_v15 = vld [vmem:[#allocation2 + $0x18] sm:$0xf0] }
 0x1a0   :  { %v1024_v46 = vmax.f32 %v944_v16, 0.0  ;;  %v801_v47 = vadd.f32 %v800_v33, %v712_v32  ;;  %v2384_v32 = vor.u32 %v2599_v39, %v2381_v15  ;;  %v2615_v33 = vld [vmem:[#allocation2 + $0x94] sm:$0xf] }
 0x1a2   :  { %v3528_v55 = vpack.c.bf16 %v1024_v46, %v1022_v43  ;;  %v1051_v56 = vmax.f32 %v801_v47, 0.0  ;;  %1323 = vmatmul.bf16.vlgmr.msrb.gmra.mxu2 %v3421_v12  ;;  %v2445_v43 = vld [vmem:[#allocation2 + $0x98] sm:$0xf0]  ;;  %1499 = vmatpush.bf16.msra.mxu0 %v2384_v32 }
 0x1a3   :  { %v857_v58 = vpop.f32.mrf.mxu0 }
 0x1a4   :  { %v946_v53 = vpop.f32.mrf.mxu1  ;;  %1412 = vmatmul.bf16.vlgmr.msrb.gmra.mxu3 %v3528_v55  ;;  %v3532_v41 = vpack.c.bf16 %v1051_v56, %v1049_v50  ;;  %v858_v7 = vadd.f32 %v857_v58, %v3518_v63  ;;  %v2448_v56 = vor.u32 %v2615_v33, %v2445_v43 }
 0x1a5   :  { %v714_v60 = vpop.f32.mrf.mxu2 }
 0x1a6   :  { %v715_v42 = vadd.f32 %v714_v60, %v3404_v34  ;;  %v803_v61 = vpop.f32.mrf.mxu3  ;;  %896 = vmatmul.bf16.gmra.mxu0 %v3415_v5  ;;  %v947_v10 = vadd.f32 %v946_v53, %v858_v7  ;;  %1588 = vmatpush.bf16.msra.mxu1 %v2448_v56  ;;  %v2597_v56 = vld [vmem:[#allocation2 + $0x4] sm:$0xf] }
 0x1a7   :  { %985 = vmatmul.bf16.gmra.mxu1 %v3417_v6 }
 0x1a8   :  { %v804_v0 = vadd.f32 %v803_v61, %v715_v42  ;;  %v1026_v44 = vmax.f32 %v947_v10, 0.0 }
 0x1aa   :  { %v1053_v23 = vmax.f32 %v804_v0, 0.0 }
 0x1ab   :  { %v859_v1 = vpop.f32.mrf.mxu0 }
 0x1ac   :  { %v860_v14 = vadd.f32 %v859_v1, %v3518_v63  ;;  %v948_v17 = vpop.f32.mrf.mxu1 }
 0x1ad   :  { %v716_v62 = vpop.f32.mrf.mxu2 }
 0x1ae   :  { %v949_v20 = vadd.f32 %v948_v17, %v860_v14  ;;  %v717_v28 = vadd.f32 %v716_v62, %v3404_v34  ;;  %v805_v22 = vpop.f32.mrf.mxu3 }
 0x1b0   :  { %v1028_v45 = vmax.f32 %v949_v20, 0.0  ;;  %v806_v5 = vadd.f32 %v805_v22, %v717_v28 }
 0x1b2   :  { %v1055_v6 = vmax.f32 %v806_v5, 0.0  ;;  %1328 = vmatmul.bf16.gmra.mxu2 %v3437_v59  ;;  %v3541_v24 = vpack.c.bf16 %v1028_v45, %v1026_v44  ;;  %v2642_v44 = vld [vmem:[#allocation5 + $0x68] sm:$0xff] }
 0x1b3   :  { %v862_v25 = vpop.f32.mrf.mxu0  ;;  %1990 = vmatpush.bf16.msra.mxu3 %v2642_v44  ;;  %v2633_v44 = vld [vmem:[#allocation5 + $0x20] sm:$0xff] }
 0x1b4   :  { %v951_v29 = vpop.f32.mrf.mxu1  ;;  %1417 = vmatmul.bf16.gmra.mxu3 %v3541_v24  ;;  %v3544_v19 = vpack.c.bf16 %v1055_v6, %v1053_v23  ;;  %v863_v3 = vadd.f32 %v862_v25, %v3518_v63  ;;  %1902 = vmatpush.bf16.msra.mxu2 %v2633_v44 }
 0x1b5   :  { %v719_v31 = vpop.f32.mrf.mxu2 }
 0x1b6   :  { %v720_v30 = vadd.f32 %v719_v31, %v3404_v34  ;;  %v808_v2 = vpop.f32.mrf.mxu3  ;;  %901 = vmatmul.bf16.gmra.mxu0 %v3431_v48  ;;  %v952_v46 = vadd.f32 %v951_v29, %v863_v3 }
 0x1b7   :  { %990 = vmatmul.bf16.gmra.mxu1 %v3433_v49 }
 0x1b8   :  { %v809_v38 = vadd.f32 %v808_v2, %v720_v30  ;;  %v1030_v53 = vmax.f32 %v952_v46, 0.0 }
 0x1ba   :  { %v1057_v61 = vmax.f32 %v809_v38, 0.0 }
 0x1bb   :  { %v864_v16 = vpop.f32.mrf.mxu0 }
 0x1bc   :  { %v865_v47 = vadd.f32 %v864_v16, %v3518_v63  ;;  %v953_v50 = vpop.f32.mrf.mxu1 }
 0x1bd   :  { %v721_v57 = vpop.f32.mrf.mxu2 }
 0x1be   :  { %v954_v58 = vadd.f32 %v953_v50, %v865_v47  ;;  %v722_v48 = vadd.f32 %v721_v57, %v3404_v34  ;;  %v810_v49 = vpop.f32.mrf.mxu3  ;;  %v2373_v57 = vld [vmem:[#allocation2 + $0x8] sm:$0xf0] }
 0x1c0   :  { %v1032_v60 = vmax.f32 %v954_v58, 0.0  ;;  %v811_v42 = vadd.f32 %v810_v49, %v722_v48  ;;  %v2376_v48 = vor.u32 %v2597_v56, %v2373_v57  ;;  %v2613_v49 = vld [vmem:[#allocation2 + $0x84] sm:$0xf] }
 0x1c2   :  { %v1059_v7 = vmax.f32 %v811_v42, 0.0  ;;  %1333 = vmatmul.bf16.gmra.mxu2 %v3453_v36  ;;  %v3553_v0 = vpack.c.bf16 %v1032_v60, %v1030_v53  ;;  %v2437_v53 = vld [vmem:[#allocation2 + $0x88] sm:$0xf0]  ;;  %1500 = vmatpush.bf16.msra.mxu0 %v2376_v48 }
 0x1c3   :  { %v867_v1 = vpop.f32.mrf.mxu0 }
 0x1c4   :  { %v956_v10 = vpop.f32.mrf.mxu1  ;;  %1422 = vmatmul.bf16.gmra.mxu3 %v3553_v0  ;;  %v3556_v14 = vpack.c.bf16 %v1059_v7, %v1057_v61  ;;  %v868_v28 = vadd.f32 %v867_v1, %v3518_v63  ;;  %v2440_v7 = vor.u32 %v2613_v49, %v2437_v53 }
 0x1c5   :  { %v724_v17 = vpop.f32.mrf.mxu2 }
 0x1c6   :  { %v725_v62 = vadd.f32 %v724_v17, %v3404_v34  ;;  %v813_v20 = vpop.f32.mrf.mxu3  ;;  %906 = vmatmul.bf16.gmra.mxu0 %v3447_v26  ;;  %v957_v5 = vadd.f32 %v956_v10, %v868_v28  ;;  %1589 = vmatpush.bf16.msra.mxu1 %v2440_v7 }
 0x1c7   :  { %995 = vmatmul.bf16.gmra.mxu1 %v3449_v18 }
 0x1c8   :  { %v814_v22 = vadd.f32 %v813_v20, %v725_v62  ;;  %v1034_v2 = vmax.f32 %v957_v5, 0.0 }
 0x1ca   :  { %v1061_v38 = vmax.f32 %v814_v22, 0.0 }
 0x1cb   :  { %v869_v45 = vpop.f32.mrf.mxu0 }
 0x1cc   :  { %v870_v23 = vadd.f32 %v869_v45, %v3518_v63  ;;  %v958_v6 = vpop.f32.mrf.mxu1 }
 0x1cd   :  { %v726_v25 = vpop.f32.mrf.mxu2 }
 0x1ce   :  { %v959_v29 = vadd.f32 %v958_v6, %v870_v23  ;;  %v727_v31 = vadd.f32 %v726_v25, %v3404_v34  ;;  %v815_v30 = vpop.f32.mrf.mxu3 }
 0x1d0   :  { %v1036_v3 = vmax.f32 %v959_v29, 0.0  ;;  %v816_v26 = vadd.f32 %v815_v30, %v727_v31 }
 0x1d2   :  { %v1063_v18 = vmax.f32 %v816_v26, 0.0  ;;  %1338 = vmatmul.bf16.gmra.mxu2 %v3469_v21  ;;  %v3565_v39 = vpack.c.bf16 %v1036_v3, %v1034_v2  ;;  %v2641_v2 = vld [vmem:[#allocation5 + $0x60] sm:$0xff] }
 0x1d3   :  { %v872_v15 = vpop.f32.mrf.mxu0  ;;  %1991 = vmatpush.bf16.msra.mxu3 %v2641_v2 }
 0x1d4   :  { %v961_v16 = vpop.f32.mrf.mxu1  ;;  %1427 = vmatmul.bf16.gmra.mxu3 %v3565_v39  ;;  %v3568_v32 = vpack.c.bf16 %v1063_v18, %v1061_v38  ;;  %v873_v47 = vadd.f32 %v872_v15, %v3518_v63 }
 0x1d5   :  { %v729_v33 = vpop.f32.mrf.mxu2 }
 0x1d6   :  { %v730_v43 = vadd.f32 %v729_v33, %v3404_v34  ;;  %v818_v46 = vpop.f32.mrf.mxu3  ;;  %911 = vmatmul.bf16.gmra.mxu0 %v3463_v4  ;;  %v962_v60 = vadd.f32 %v961_v16, %v873_v47 }
 0x1d7   :  { %1000 = vmatmul.bf16.gmra.mxu1 %v3465_v9 }
 0x1d8   :  { %v819_v50 = vadd.f32 %v818_v46, %v730_v43  ;;  %v1038_v10 = vmax.f32 %v962_v60, 0.0 }
 0x1da   :  { %v1065_v20 = vmax.f32 %v819_v50, 0.0 }
 0x1db   :  { %v874_v58 = vpop.f32.mrf.mxu0 }
 0x1dc   :  { %v875_v42 = vadd.f32 %v874_v58, %v3518_v63  ;;  %v963_v61 = vpop.f32.mrf.mxu1 }
 0x1dd   :  { %v731_v8 = vpop.f32.mrf.mxu2 }
 0x1de   :  { %v964_v1 = vadd.f32 %v963_v61, %v875_v42  ;;  %v732_v4 = vadd.f32 %v731_v8, %v3404_v34  ;;  %v820_v9 = vpop.f32.mrf.mxu3 }
 0x1e0   :  { %v1040_v17 = vmax.f32 %v964_v1, 0.0  ;;  %v821_v62 = vadd.f32 %v820_v9, %v732_v4 }
 0x1e2   :  { %v1067_v28 = vmax.f32 %v821_v62, 0.0  ;;  %1343 = vmatmul.bf16.gmra.mxu2 %v3485_v52  ;;  %v3577_v22 = vpack.c.bf16 %v1040_v17, %v1038_v10 }
 0x1e3   :  { %v877_v45 = vpop.f32.mrf.mxu0 }
 0x1e4   :  { %v966_v5 = vpop.f32.mrf.mxu1  ;;  %1432 = vmatmul.bf16.gmra.mxu3 %v3577_v22  ;;  %v3580_v23 = vpack.c.bf16 %v1067_v28, %v1065_v20  ;;  %v878_v31 = vadd.f32 %v877_v45, %v3518_v63 }
 0x1e5   :  { %v734_v6 = vpop.f32.mrf.mxu2 }
 0x1e6   :  { %v735_v25 = vadd.f32 %v734_v6, %v3404_v34  ;;  %v823_v29 = vpop.f32.mrf.mxu3  ;;  %916 = vmatmul.bf16.gmra.mxu0 %v3479_v51  ;;  %v967_v26 = vadd.f32 %v966_v5, %v878_v31  ;;  %v2632_v5 = vld [vmem:[#allocation5 + $0x18] sm:$0xff] }
 0x1e7   :  { %1005 = vmatmul.bf16.gmra.mxu1 %v3481_v54  ;;  %1903 = vmatpush.bf16.msra.mxu2 %v2632_v5 }
 0x1e8   :  { %v824_v30 = vadd.f32 %v823_v29, %v735_v25  ;;  %v1042_v46 = vmax.f32 %v967_v26, 0.0 }
 0x1ea   :  { %v1069_v50 = vmax.f32 %v824_v30, 0.0 }
 0x1eb   :  { %v879_v3 = vpop.f32.mrf.mxu0 }
 0x1ec   :  { %v880_v38 = vadd.f32 %v879_v3, %v3518_v63  ;;  %v968_v18 = vpop.f32.mrf.mxu1 }
 0x1ed   :  { %v736_v15 = vpop.f32.mrf.mxu2 }
 0x1ee   :  { %v969_v16 = vadd.f32 %v968_v18, %v880_v38  ;;  %v737_v33 = vadd.f32 %v736_v15, %v3404_v34  ;;  %v825_v43 = vpop.f32.mrf.mxu3  ;;  %v2640_v38 = vld [vmem:[#allocation5 + $0x58] sm:$0xff] }
 0x1ef   :  { %1992 = vmatpush.bf16.msra.mxu3 %v2640_v38 }
 0x1f0   :  { %v1044_v47 = vmax.f32 %v969_v16, 0.0  ;;  %v826_v51 = vadd.f32 %v825_v43, %v737_v33 }
 0x1f2   :  { %v1071_v54 = vmax.f32 %v826_v51, 0.0  ;;  %1348 = vmatmul.bf16.gmra.mxu2 %v3501_v40  ;;  %v3589_v56 = vpack.c.bf16 %v1044_v47, %v1042_v46 }
 0x1f3   :  { %v882_v57 = vpop.f32.mrf.mxu0 }
 0x1f4   :  { %v971_v58 = vpop.f32.mrf.mxu1  ;;  %1437 = vmatmul.bf16.gmra.mxu3 %v3589_v56  ;;  %v3592_v48 = vpack.c.bf16 %v1071_v54, %v1069_v50  ;;  %v883_v42 = vadd.f32 %v882_v57, %v3518_v63 }
 0x1f5   :  { %v739_v49 = vpop.f32.mrf.mxu2 }
 0x1f6   :  { %v740_v53 = vadd.f32 %v739_v49, %v3404_v34  ;;  %v828_v60 = vpop.f32.mrf.mxu3  ;;  %921 = vmatmul.bf16.gmra.mxu0 %v3495_v35  ;;  %v972_v8 = vadd.f32 %v971_v58, %v883_v42 }
 0x1f7   :  { %1010 = vmatmul.bf16.gmra.mxu1 %v3497_v37 }
 0x1f8   :  { %v829_v61 = vadd.f32 %v828_v60, %v740_v53  ;;  %v1046_v20 = vmax.f32 %v972_v8, 0.0 }
 0x1fa   :  { %v1073_v45 = vmax.f32 %v829_v61, 0.0 }
 0x1fb   :  { %v884_v7 = vpop.f32.mrf.mxu0 }
 0x1fc   :  { %v885_v1 = vadd.f32 %v884_v7, %v3518_v63  ;;  %v973_v4 = vpop.f32.mrf.mxu1 }
 0x1fd   :  { %v741_v9 = vpop.f32.mrf.mxu2 }
 0x1fe   :  { %v974_v10 = vadd.f32 %v973_v4, %v885_v1  ;;  %v742_v17 = vadd.f32 %v741_v9, %v3404_v34  ;;  %v830_v62 = vpop.f32.mrf.mxu3 }
 0x200   :  { %v1048_v28 = vmax.f32 %v974_v10, 0.0  ;;  %v831_v44 = vadd.f32 %v830_v62, %v742_v17 }
 0x202   :  { %v1075_v35 = vmax.f32 %v831_v44, 0.0  ;;  %1353 = vmatmul.bf16.gmra.mxu2 %v3520_v27  ;;  %v3601_v37 = vpack.c.bf16 %v1048_v28, %v1046_v20 }
 0x203   :  { %v887_v6 = vpop.f32.mrf.mxu0 }
 0x204   :  { %v976_v25 = vpop.f32.mrf.mxu1  ;;  %1442 = vmatmul.bf16.gmra.mxu3 %v3601_v37  ;;  %v3604_v29 = vpack.c.bf16 %v1075_v35, %v1073_v45  ;;  %v888_v3 = vadd.f32 %v887_v6, %v3518_v63  ;;  %v3627_v45 = vld [vmem:[%s3874_s6] sm:$0x3] }
 0x205   :  { %v744_v31 = vpop.f32.mrf.mxu2 }
 0x206   :  { %v745_v30 = vadd.f32 %v744_v31, %v3404_v34  ;;  %v833_v2 = vpop.f32.mrf.mxu3  ;;  %926 = vmatmul.bf16.gmra.mxu0 %v3511_v11  ;;  %v977_v15 = vadd.f32 %v976_v25, %v888_v3  ;;  %v3633_v31 = vperm.slane %v3627_v45, 0 }
 0x207   :  { %1015 = vmatmul.bf16.gmra.mxu1 %v3513_v13 }
 0x208   :  { %v834_v26 = vadd.f32 %v833_v2, %v745_v30  ;;  %v1050_v50 = vmax.f32 %v977_v15, 0.0  ;;  %v2631_v30 = vld [vmem:[#allocation5 + $0x10] sm:$0xff] }
 0x209   :  { %1904 = vmatpush.bf16.msra.mxu2 %v2631_v30 }
 0x20a   :  { %v1077_v57 = vmax.f32 %v834_v26, 0.0 }
 0x20b   :  { %v889_v18 = vpop.f32.mrf.mxu0 }
 0x20c   :  { %v890_v16 = vadd.f32 %v889_v18, %v3518_v63  ;;  %v978_v33 = vpop.f32.mrf.mxu1 }
 0x20d   :  { %v746_v43 = vpop.f32.mrf.mxu2 }
 0x20e   :  { %v979_v46 = vadd.f32 %v978_v33, %v890_v16  ;;  %v747_v47 = vadd.f32 %v746_v43, %v3404_v34  ;;  %v835_v51 = vpop.f32.mrf.mxu3  ;;  %v2639_v33 = vld [vmem:[#allocation5 + $0x50] sm:$0xff] }
 0x20f   :  { %1993 = vmatpush.bf16.msra.mxu3 %v2639_v33 }
 0x210   :  { %v1052_v54 = vmax.f32 %v979_v46, 0.0  ;;  %v836_v11 = vadd.f32 %v835_v51, %v747_v47 }
 0x212   :  { %v1079_v13 = vmax.f32 %v836_v11, 0.0  ;;  %1358 = vmatmul.bf16.gmra.mxu2 %v3532_v41  ;;  %v3613_v58 = vpack.c.bf16 %v1052_v54, %v1050_v50 }
 0x213   :  { %v892_v49 = vpop.f32.mrf.mxu0 }
 0x214   :  { %v981_v53 = vpop.f32.mrf.mxu1  ;;  %1447 = vmatmul.bf16.gmra.mxu3 %v3613_v58  ;;  %v3616_v60 = vpack.c.bf16 %v1079_v13, %v1077_v57  ;;  %v893_v8 = vadd.f32 %v892_v49, %v3518_v63 }
 0x215   :  { %v749_v42 = vpop.f32.mrf.mxu2 }
 0x216   :  { %v750_v61 = vadd.f32 %v749_v42, %v3404_v34  ;;  %v838_v7 = vpop.f32.mrf.mxu3  ;;  %1501 = vmatmul.bf16.vlgmr.msra.gmra.mxu0 %v3421_v12  ;;  %v982_v9 = vadd.f32 %v981_v53, %v893_v8 }
 0x217   :  { %1590 = vmatmul.bf16.vlgmr.msra.gmra.mxu1 %v3528_v55 }
 0x218   :  { %v839_v1 = vadd.f32 %v838_v7, %v750_v61  ;;  %v1054_v12 = vmax.f32 %v982_v9, 0.0 }
 0x21a   :  { %v1081_v5 = vmax.f32 %v839_v1, 0.0 }
 0x21b   :  { %v894_v4 = vpop.f32.mrf.mxu0 }
 0x21c   :  { %v895_v10 = vadd.f32 %v894_v4, %v3518_v63  ;;  %v983_v17 = vpop.f32.mrf.mxu1 }
 0x21d   :  { %v751_v62 = vpop.f32.mrf.mxu2 }
 0x21e   :  { %v984_v20 = vadd.f32 %v983_v17, %v895_v10  ;;  %v752_v28 = vadd.f32 %v751_v62, %v3404_v34  ;;  %v840_v44 = vpop.f32.mrf.mxu3 }
 0x220   :  { %v1056_v55 = vmax.f32 %v984_v20, 0.0  ;;  %v841_v35 = vadd.f32 %v840_v44, %v752_v28 }
 0x222   :  { %v1083_v6 = vmax.f32 %v841_v35, 0.0  ;;  %1363 = vmatmul.bf16.gmra.mxu2 %v3544_v19  ;;  %v3630_v25 = vpack.c.bf16 %v1056_v55, %v1054_v12 }
 0x223   :  { %v897_v34 = vpop.f32.mrf.mxu0 }
 0x224   :  { %v986_v2 = vpop.f32.mrf.mxu1  ;;  %1452 = vmatmul.bf16.gmra.mxu3 %v3630_v25  ;;  %v3636_v3 = vpack.c.bf16 %v1083_v6, %v1081_v5  ;;  %v898_v15 = vadd.f32 %v897_v34, %v3518_v63 }
 0x225   :  { %v1324_v26 = vpop.f32.mrf.mxu2 }
 0x226   :  { %v1325_v38 = vadd.f32 %v1324_v26, %v3633_v31  ;;  %1506 = vmatmul.bf16.gmra.mxu0 %v3437_v59  ;;  %v987_v46 = vadd.f32 %v986_v2, %v898_v15  ;;  %v2630_v26 = vld [vmem:[#allocation5 + $0x8] sm:$0xff] }
 0x227   :  { %1595 = vmatmul.bf16.gmra.mxu1 %v3541_v24  ;;  %v1413_v18 = vpop.f32.mrf.mxu3  ;;  %1905 = vmatpush.bf16.msra.mxu2 %v2630_v26 }
 0x228   :  { %v1414_v16 = vadd.f32 %v1413_v18, %v1325_v38  ;;  %v1058_v13 = vmax.f32 %v987_v46, 0.0 }
 0x22a   :  { %v1671_v24 = vmax.f32 %v1414_v16, 0.0 }
 0x22b   :  { %v899_v43 = vpop.f32.mrf.mxu0 }
 0x22c   :  { %v900_v47 = vadd.f32 %v899_v43, %v3518_v63  ;;  %v988_v51 = vpop.f32.mrf.mxu1 }
 0x22d   :  { %v1326_v50 = vpop.f32.mrf.mxu2 }
 0x22e   :  { %v989_v54 = vadd.f32 %v988_v51, %v900_v47  ;;  %v1327_v11 = vadd.f32 %v1326_v50, %v3633_v31  ;;  %v2638_v51 = vld [vmem:[#allocation5 + $0x48] sm:$0xff] }
 0x22f   :  { %v1415_v57 = vpop.f32.mrf.mxu3  ;;  %1994 = vmatpush.bf16.msra.mxu3 %v2638_v51 }
 0x230   :  { %v1060_v59 = vmax.f32 %v989_v54, 0.0  ;;  %v1416_v49 = vadd.f32 %v1415_v57, %v1327_v11 }
 0x232   :  { %v1673_v53 = vmax.f32 %v1416_v49, 0.0  ;;  %1368 = vmatmul.bf16.gmra.mxu2 %v3556_v14  ;;  %v3645_v42 = vpack.c.bf16 %v1060_v59, %v1058_v13 }
 0x233   :  { %v902_v61 = vpop.f32.mrf.mxu0 }
 0x234   :  { %v3647_v7 = vpack.c.bf16 %v1673_v53, %v1671_v24  ;;  %v991_v8 = vpop.f32.mrf.mxu1  ;;  %1457 = vmatmul.bf16.gmra.mxu3 %v3645_v42  ;;  %v903_v10 = vadd.f32 %v902_v61, %v3518_v63 }
 0x235   :  { %v1329_v1 = vpop.f32.mrf.mxu2 }
 0x236   :  { %v1330_v4 = vadd.f32 %v1329_v1, %v3633_v31  ;;  %1511 = vmatmul.bf16.gmra.mxu0 %v3453_v36  ;;  %v992_v20 = vadd.f32 %v991_v8, %v903_v10 }
 0x237   :  { %1600 = vmatmul.bf16.gmra.mxu1 %v3553_v0  ;;  %v1418_v9 = vpop.f32.mrf.mxu3 }
 0x238   :  { %v1419_v17 = vadd.f32 %v1418_v9, %v1330_v4  ;;  %v1062_v6 = vmax.f32 %v992_v20, 0.0 }
 0x23a   :  { %v1675_v36 = vmax.f32 %v1419_v17, 0.0 }
 0x23b   :  { %v904_v62 = vpop.f32.mrf.mxu0 }
 0x23c   :  { %v905_v28 = vadd.f32 %v904_v62, %v3518_v63  ;;  %v993_v44 = vpop.f32.mrf.mxu1 }
 0x23d   :  { %v1331_v12 = vpop.f32.mrf.mxu2 }
 0x23e   :  { %v994_v55 = vadd.f32 %v993_v44, %v905_v28  ;;  %v1332_v35 = vadd.f32 %v1331_v12, %v3633_v31 }
 0x23f   :  { %v1420_v5 = vpop.f32.mrf.mxu3 }
 0x240   :  { %v1064_v30 = vmax.f32 %v994_v55, 0.0  ;;  %v1421_v34 = vadd.f32 %v1420_v5, %v1332_v35 }
 0x242   :  { %v1677_v2 = vmax.f32 %v1421_v34, 0.0  ;;  %1373 = vmatmul.bf16.gmra.mxu2 %v3568_v32  ;;  %v3657_v0 = vpack.c.bf16 %v1064_v30, %v1062_v6 }
 0x243   :  { %v907_v38 = vpop.f32.mrf.mxu0 }
 0x244   :  { %v996_v18 = vpop.f32.mrf.mxu1  ;;  %1462 = vmatmul.bf16.gmra.mxu3 %v3657_v0  ;;  %v3660_v15 = vpack.c.bf16 %v1677_v2, %v1675_v36  ;;  %v908_v46 = vadd.f32 %v907_v38, %v3518_v63 }
 0x245   :  { %v1334_v16 = vpop.f32.mrf.mxu2 }
 0x246   :  { %v1335_v33 = vadd.f32 %v1334_v16, %v3633_v31  ;;  %1516 = vmatmul.bf16.gmra.mxu0 %v3469_v21  ;;  %v997_v54 = vadd.f32 %v996_v18, %v908_v46  ;;  %v2629_v16 = vld [vmem:[#allocation5] sm:$0xff] }
 0x247   :  { %1605 = vmatmul.bf16.gmra.mxu1 %v3565_v39  ;;  %v1423_v43 = vpop.f32.mrf.mxu3  ;;  %1906 = vmatpush.bf16.msra.mxu2 %v2629_v16 }
 0x248   :  { %v1424_v47 = vadd.f32 %v1423_v43, %v1335_v33  ;;  %v1066_v53 = vmax.f32 %v997_v54, 0.0 }
 0x24a   :  { %v1679_v39 = vmax.f32 %v1424_v47, 0.0 }
 0x24b   :  { %v909_v50 = vpop.f32.mrf.mxu0 }
 0x24c   :  { %v910_v11 = vadd.f32 %v909_v50, %v3518_v63  ;;  %v998_v57 = vpop.f32.mrf.mxu1 }
 0x24d   :  { %v1336_v13 = vpop.f32.mrf.mxu2 }
 0x24e   :  { %v999_v59 = vadd.f32 %v998_v57, %v910_v11  ;;  %v1337_v49 = vadd.f32 %v1336_v13, %v3633_v31  ;;  %v2637_v57 = vld [vmem:[#allocation5 + $0x40] sm:$0xff] }
 0x24f   :  { %v1425_v24 = vpop.f32.mrf.mxu3  ;;  %1995 = vmatpush.bf16.msra.mxu3 %v2637_v57 }
 0x250   :  { %v1068_v21 = vmax.f32 %v999_v59, 0.0  ;;  %v1426_v61 = vadd.f32 %v1425_v24, %v1337_v49 }
 0x252   :  { %v1681_v8 = vmax.f32 %v1426_v61, 0.0  ;;  %1378 = vmatmul.bf16.gmra.mxu2 %v3580_v23  ;;  %v3669_v1 = vpack.c.bf16 %v1068_v21, %v1066_v53 }
 0x253   :  { %v912_v4 = vpop.f32.mrf.mxu0 }
 0x254   :  { %v1001_v9 = vpop.f32.mrf.mxu1  ;;  %1467 = vmatmul.bf16.gmra.mxu3 %v3669_v1  ;;  %v3672_v10 = vpack.c.bf16 %v1681_v8, %v1679_v39  ;;  %v913_v28 = vadd.f32 %v912_v4, %v3518_v63 }
 0x255   :  { %v1339_v17 = vpop.f32.mrf.mxu2 }
 0x256   :  { %v1340_v62 = vadd.f32 %v1339_v17, %v3633_v31  ;;  %1521 = vmatmul.bf16.gmra.mxu0 %v3485_v52  ;;  %v1002_v55 = vadd.f32 %v1001_v9, %v913_v28 }
 0x257   :  { %1610 = vmatmul.bf16.gmra.mxu1 %v3577_v22  ;;  %v1428_v20 = vpop.f32.mrf.mxu3 }
 0x258   :  { %v1429_v44 = vadd.f32 %v1428_v20, %v1340_v62  ;;  %v1070_v2 = vmax.f32 %v1002_v55, 0.0 }
 0x25a   :  { %v1683_v52 = vmax.f32 %v1429_v44, 0.0 }
 0x25b   :  { %v914_v12 = vpop.f32.mrf.mxu0 }
 0x25c   :  { %v915_v35 = vadd.f32 %v914_v12, %v3518_v63  ;;  %v1003_v5 = vpop.f32.mrf.mxu1 }
 0x25d   :  { %v1341_v6 = vpop.f32.mrf.mxu2 }
 0x25e   :  { %v1004_v30 = vadd.f32 %v1003_v5, %v915_v35  ;;  %v1342_v34 = vadd.f32 %v1341_v6, %v3633_v31 }
 0x25f   :  { %v1430_v36 = vpop.f32.mrf.mxu3 }
 0x260   :  { %v1072_v26 = vmax.f32 %v1004_v30, 0.0  ;;  %v1431_v38 = vadd.f32 %v1430_v36, %v1342_v34 }
 0x262   :  { %v1685_v18 = vmax.f32 %v1431_v38, 0.0  ;;  %1383 = vmatmul.bf16.gmra.mxu2 %v3592_v48  ;;  %v3681_v22 = vpack.c.bf16 %v1072_v26, %v1070_v2 }
 0x263   :  { %v917_v33 = vpop.f32.mrf.mxu0 }
 0x264   :  { %v1006_v43 = vpop.f32.mrf.mxu1  ;;  %1472 = vmatmul.bf16.gmra.mxu3 %v3681_v22  ;;  %v3684_v46 = vpack.c.bf16 %v1685_v18, %v1683_v52  ;;  %v918_v54 = vadd.f32 %v917_v33, %v3518_v63 }
 0x265   :  { %v1344_v47 = vpop.f32.mrf.mxu2 }
 0x266   :  { %v1345_v51 = vadd.f32 %v1344_v47, %v3633_v31  ;;  %1526 = vmatmul.bf16.gmra.mxu0 %v3501_v40  ;;  %v1007_v59 = vadd.f32 %v1006_v43, %v918_v54 }
 0x267   :  { %1615 = vmatmul.bf16.gmra.mxu1 %v3589_v56  ;;  %v1433_v50 = vpop.f32.mrf.mxu3 }
 0x268   :  { %v1434_v11 = vadd.f32 %v1433_v50, %v1345_v51  ;;  %v1074_v8 = vmax.f32 %v1007_v59, 0.0 }
 0x26a   :  { %v1687_v56 = vmax.f32 %v1434_v11, 0.0 }
 0x26b   :  { %v919_v13 = vpop.f32.mrf.mxu0 }
 0x26c   :  { %v920_v49 = vadd.f32 %v919_v13, %v3518_v63  ;;  %v1008_v24 = vpop.f32.mrf.mxu1 }
 0x26d   :  { %v1346_v53 = vpop.f32.mrf.mxu2 }
 0x26e   :  { %v1009_v21 = vadd.f32 %v1008_v24, %v920_v49  ;;  %v1347_v61 = vadd.f32 %v1346_v53, %v3633_v31 }
 0x26f   :  { %v1435_v39 = vpop.f32.mrf.mxu3 }
 0x270   :  { %v1076_v40 = vmax.f32 %v1009_v21, 0.0  ;;  %v1436_v4 = vadd.f32 %v1435_v39, %v1347_v61 }
 0x272   :  { %v1689_v9 = vmax.f32 %v1436_v4, 0.0  ;;  %1388 = vmatmul.bf16.gmra.mxu2 %v3604_v29  ;;  %v3693_v17 = vpack.c.bf16 %v1076_v40, %v1074_v8 }
 0x273   :  { %v922_v62 = vpop.f32.mrf.mxu0 }
 0x274   :  { %v1011_v20 = vpop.f32.mrf.mxu1  ;;  %1477 = vmatmul.bf16.gmra.mxu3 %v3693_v17  ;;  %v3696_v28 = vpack.c.bf16 %v1689_v9, %v1687_v56  ;;  %v923_v35 = vadd.f32 %v922_v62, %v3518_v63 }
 0x275   :  { %v1349_v44 = vpop.f32.mrf.mxu2 }
 0x276   :  { %v1350_v12 = vadd.f32 %v1349_v44, %v3633_v31  ;;  %1531 = vmatmul.bf16.gmra.mxu0 %v3520_v27  ;;  %v1012_v30 = vadd.f32 %v1011_v20, %v923_v35  ;;  %v3720_v44 = vperm.slane %v3627_v45, 1 }
 0x277   :  { %1620 = vmatmul.bf16.gmra.mxu1 %v3601_v37  ;;  %v1438_v55 = vpop.f32.mrf.mxu3 }
 0x278   :  { %v1439_v5 = vadd.f32 %v1438_v55, %v1350_v12  ;;  %v1078_v18 = vmax.f32 %v1012_v30, 0.0 }
 0x27a   :  { %v1691_v27 = vmax.f32 %v1439_v5, 0.0 }
 0x27b   :  { %v924_v6 = vpop.f32.mrf.mxu0 }
 0x27c   :  { %v925_v34 = vadd.f32 %v924_v6, %v3518_v63  ;;  %v1013_v36 = vpop.f32.mrf.mxu1 }
 0x27d   :  { %v1351_v2 = vpop.f32.mrf.mxu2 }
 0x27e   :  { %v1014_v26 = vadd.f32 %v1013_v36, %v925_v34  ;;  %v1352_v38 = vadd.f32 %v1351_v2, %v3633_v31 }
 0x27f   :  { %v1440_v52 = vpop.f32.mrf.mxu3 }
 0x280   :  { %v1080_v16 = vmax.f32 %v1014_v26, 0.0  ;;  %v1441_v33 = vadd.f32 %v1440_v52, %v1352_v38 }
 0x282   :  { %v1693_v43 = vmax.f32 %v1441_v33, 0.0  ;;  %1393 = vmatmul.bf16.gmra.mxu2 %v3616_v60  ;;  %v3705_v37 = vpack.c.bf16 %v1080_v16, %v1078_v18 }
 0x283   :  { %v927_v47 = vpop.f32.mrf.mxu0 }
 0x284   :  { %v1016_v51 = vpop.f32.mrf.mxu1  ;;  %1482 = vmatmul.bf16.gmra.mxu3 %v3705_v37  ;;  %v3708_v50 = vpack.c.bf16 %v1693_v43, %v1691_v27  ;;  %v928_v13 = vadd.f32 %v927_v47, %v3518_v63 }
 0x285   :  { %v1354_v54 = vpop.f32.mrf.mxu2 }
 0x286   :  { %v1355_v11 = vadd.f32 %v1354_v54, %v3633_v31  ;;  %1536 = vmatmul.bf16.gmra.mxu0 %v3532_v41  ;;  %v1017_v24 = vadd.f32 %v1016_v51, %v928_v13 }
 0x287   :  { %1625 = vmatmul.bf16.gmra.mxu1 %v3613_v58  ;;  %v1443_v57 = vpop.f32.mrf.mxu3 }
 0x288   :  { %v1444_v59 = vadd.f32 %v1443_v57, %v1355_v11  ;;  %v1082_v4 = vmax.f32 %v1017_v24, 0.0 }
 0x28a   :  { %v1695_v41 = vmax.f32 %v1444_v59, 0.0 }
 0x28b   :  { %v929_v49 = vpop.f32.mrf.mxu0 }
 0x28c   :  { %v930_v53 = vadd.f32 %v929_v49, %v3518_v63  ;;  %v1018_v21 = vpop.f32.mrf.mxu1 }
 0x28d   :  { %v1356_v61 = vpop.f32.mrf.mxu2 }
 0x28e   :  { %v1019_v39 = vadd.f32 %v1018_v21, %v930_v53  ;;  %v1357_v8 = vadd.f32 %v1356_v61, %v3633_v31 }
 0x28f   :  { %v1445_v40 = vpop.f32.mrf.mxu3 }
 0x290   :  { %v1084_v56 = vmax.f32 %v1019_v39, 0.0  ;;  %v1446_v9 = vadd.f32 %v1445_v40, %v1357_v8 }
 0x292   :  { %v1697_v62 = vmax.f32 %v1446_v9, 0.0  ;;  %1398 = vmatmul.bf16.gmra.mxu2 %v3636_v3  ;;  %v3717_v58 = vpack.c.bf16 %v1084_v56, %v1082_v4 }
 0x293   :  { %v1502_v20 = vpop.f32.mrf.mxu0 }
 0x294   :  { %v1591_v63 = vpop.f32.mrf.mxu1  ;;  %1487 = vmatmul.bf16.gmra.mxu3 %v3717_v58  ;;  %v3723_v12 = vpack.c.bf16 %v1697_v62, %v1695_v41  ;;  %v1503_v6 = vadd.f32 %v1502_v20, %v3720_v44 }
 0x295   :  { %v1359_v55 = vpop.f32.mrf.mxu2 }
 0x296   :  { %v1360_v35 = vadd.f32 %v1359_v55, %v3633_v31  ;;  %1541 = vmatmul.bf16.gmra.mxu0 %v3544_v19  ;;  %v1592_v36 = vadd.f32 %v1591_v63, %v1503_v6 }
 0x297   :  { %1630 = vmatmul.bf16.gmra.mxu1 %v3630_v25  ;;  %v1448_v5 = vpop.f32.mrf.mxu3 }
 0x298   :  { %v1449_v30 = vadd.f32 %v1448_v5, %v1360_v35  ;;  %v1672_v16 = vmax.f32 %v1592_v36, 0.0 }
 0x29a   :  { %v1699_v19 = vmax.f32 %v1449_v30, 0.0 }
 0x29b   :  { %v1504_v34 = vpop.f32.mrf.mxu0 }
 0x29c   :  { %v1505_v45 = vadd.f32 %v1504_v34, %v3720_v44  ;;  %v1593_v2 = vpop.f32.mrf.mxu1 }
 0x29d   :  { %v1361_v26 = vpop.f32.mrf.mxu2 }
 0x29e   :  { %v1594_v38 = vadd.f32 %v1593_v2, %v1505_v45  ;;  %v1362_v52 = vadd.f32 %v1361_v26, %v3633_v31 }
 0x29f   :  { %v1450_v18 = vpop.f32.mrf.mxu3 }
 0x2a0   :  { %v1674_v33 = vmax.f32 %v1594_v38, 0.0  ;;  %v1451_v27 = vadd.f32 %v1450_v18, %v1362_v52 }
 0x2a2   :  { %v1736_v43 = vpack.c.bf16 %v1674_v33, %v1672_v16  ;;  %v1701_v25 = vmax.f32 %v1451_v27, 0.0  ;;  %1907 = vmatmul.bf16.vlgmr.msra.gmra.mxu2 %v3647_v7 }
 0x2a3   :  { %v1507_v47 = vpop.f32.mrf.mxu0 }
 0x2a4   :  { %v1596_v51 = vpop.f32.mrf.mxu1  ;;  %1996 = vmatmul.bf16.vlgmr.msra.gmra.mxu3 %v1736_v43  ;;  %v3732_v54 = vpack.c.bf16 %v1701_v25, %v1699_v19  ;;  %v1508_v59 = vadd.f32 %v1507_v47, %v3720_v44 }
 0x2a5   :  { %v1364_v11 = vpop.f32.mrf.mxu2 }
 0x2a6   :  { %v1365_v57 = vadd.f32 %v1364_v11, %v3633_v31  ;;  %1546 = vmatmul.bf16.gmra.mxu0 %v3556_v14  ;;  %v1597_v53 = vadd.f32 %v1596_v51, %v1508_v59 }
 0x2a7   :  { %1635 = vmatmul.bf16.gmra.mxu1 %v3645_v42  ;;  %v1453_v13 = vpop.f32.mrf.mxu3 }
 0x2a8   :  { %v1454_v49 = vadd.f32 %v1453_v13, %v1365_v57  ;;  %v1676_v4 = vmax.f32 %v1597_v53, 0.0 }
 0x2aa   :  { %v1703_v14 = vmax.f32 %v1454_v49, 0.0 }
 0x2ab   :  { %v1509_v24 = vpop.f32.mrf.mxu0 }
 0x2ac   :  { %v1510_v7 = vadd.f32 %v1509_v24, %v3720_v44  ;;  %v1598_v21 = vpop.f32.mrf.mxu1 }
 0x2ad   :  { %v1366_v61 = vpop.f32.mrf.mxu2 }
 0x2ae   :  { %v1599_v39 = vadd.f32 %v1598_v21, %v1510_v7  ;;  %v1367_v8 = vadd.f32 %v1366_v61, %v3633_v31 }
 0x2af   :  { %v1455_v40 = vpop.f32.mrf.mxu3 }
 0x2b0   :  { %v1678_v56 = vmax.f32 %v1599_v39, 0.0  ;;  %v1456_v9 = vadd.f32 %v1455_v40, %v1367_v8 }
 0x2b2   :  { %v1705_v41 = vmax.f32 %v1456_v9, 0.0  ;;  %1912 = vmatmul.bf16.gmra.mxu2 %v3660_v15  ;;  %v1738_v42 = vpack.c.bf16 %v1678_v56, %v1676_v4 }
 0x2b3   :  { %v1512_v62 = vpop.f32.mrf.mxu0 }
 0x2b4   :  { %v1601_v20 = vpop.f32.mrf.mxu1  ;;  %2001 = vmatmul.bf16.gmra.mxu3 %v1738_v42  ;;  %v3741_v63 = vpack.c.bf16 %v1705_v41, %v1703_v14  ;;  %v1513_v6 = vadd.f32 %v1512_v62, %v3720_v44 }
 0x2b5   :  { %v1369_v55 = vpop.f32.mrf.mxu2 }
 0x2b6   :  { %v1370_v35 = vadd.f32 %v1369_v55, %v3633_v31  ;;  %1551 = vmatmul.bf16.gmra.mxu0 %v3568_v32  ;;  %v1602_v36 = vadd.f32 %v1601_v20, %v1513_v6 }
 0x2b7   :  { %1640 = vmatmul.bf16.gmra.mxu1 %v3657_v0  ;;  %v1458_v5 = vpop.f32.mrf.mxu3 }
 0x2b8   :  { %v1459_v30 = vadd.f32 %v1458_v5, %v1370_v35  ;;  %v1680_v18 = vmax.f32 %v1602_v36, 0.0 }
 0x2ba   :  { %v1707_v32 = vmax.f32 %v1459_v30, 0.0 }
 0x2bb   :  { %v1514_v34 = vpop.f32.mrf.mxu0 }
 0x2bc   :  { %v1515_v15 = vadd.f32 %v1514_v34, %v3720_v44  ;;  %v1603_v45 = vpop.f32.mrf.mxu1 }
 0x2bd   :  { %v1371_v2 = vpop.f32.mrf.mxu2 }
 0x2be   :  { %v1604_v26 = vadd.f32 %v1603_v45, %v1515_v15  ;;  %v1372_v38 = vadd.f32 %v1371_v2, %v3633_v31 }
 0x2bf   :  { %v1460_v52 = vpop.f32.mrf.mxu3 }
 0x2c0   :  { %v1682_v16 = vmax.f32 %v1604_v26, 0.0  ;;  %v1461_v33 = vadd.f32 %v1460_v52, %v1372_v38 }
 0x2c2   :  { %v1709_v27 = vmax.f32 %v1461_v33, 0.0  ;;  %1917 = vmatmul.bf16.gmra.mxu2 %v3672_v10  ;;  %v1740_v0 = vpack.c.bf16 %v1682_v16, %v1680_v18 }
 0x2c3   :  { %v1517_v19 = vpop.f32.mrf.mxu0 }
 0x2c4   :  { %v1606_v43 = vpop.f32.mrf.mxu1  ;;  %2006 = vmatmul.bf16.gmra.mxu3 %v1740_v0  ;;  %v3750_v25 = vpack.c.bf16 %v1709_v27, %v1707_v32  ;;  %v1518_v57 = vadd.f32 %v1517_v19, %v3720_v44 }
 0x2c5   :  { %v1374_v47 = vpop.f32.mrf.mxu2 }
 0x2c6   :  { %v1375_v51 = vadd.f32 %v1374_v47, %v3633_v31  ;;  %1556 = vmatmul.bf16.gmra.mxu0 %v3580_v23  ;;  %v1607_v49 = vadd.f32 %v1606_v43, %v1518_v57 }
 0x2c7   :  { %1645 = vmatmul.bf16.gmra.mxu1 %v3669_v1  ;;  %v1463_v11 = vpop.f32.mrf.mxu3 }
 0x2c8   :  { %v1464_v13 = vadd.f32 %v1463_v11, %v1375_v51  ;;  %v1684_v39 = vmax.f32 %v1607_v49, 0.0 }
 0x2ca   :  { %v1711_v23 = vmax.f32 %v1464_v13, 0.0 }
 0x2cb   :  { %v1519_v59 = vpop.f32.mrf.mxu0 }
 0x2cc   :  { %v1520_v10 = vadd.f32 %v1519_v59, %v3720_v44  ;;  %v1608_v24 = vpop.f32.mrf.mxu1 }
 0x2cd   :  { %v1376_v53 = vpop.f32.mrf.mxu2 }
 0x2ce   :  { %v1609_v7 = vadd.f32 %v1608_v24, %v1520_v10  ;;  %v1377_v21 = vadd.f32 %v1376_v53, %v3633_v31 }
 0x2cf   :  { %v1465_v61 = vpop.f32.mrf.mxu3 }
 0x2d0   :  { %v1686_v8 = vmax.f32 %v1609_v7, 0.0  ;;  %v1466_v40 = vadd.f32 %v1465_v61, %v1377_v21 }
 0x2d2   :  { %v1713_v4 = vmax.f32 %v1466_v40, 0.0  ;;  %1922 = vmatmul.bf16.gmra.mxu2 %v3684_v46  ;;  %v1742_v1 = vpack.c.bf16 %v1686_v8, %v1684_v39 }
 0x2d3   :  { %v1522_v56 = vpop.f32.mrf.mxu0 }
 0x2d4   :  { %v1611_v9 = vpop.f32.mrf.mxu1  ;;  %2011 = vmatmul.bf16.gmra.mxu3 %v1742_v1  ;;  %v3759_v14 = vpack.c.bf16 %v1713_v4, %v1711_v23  ;;  %v1523_v20 = vadd.f32 %v1522_v56, %v3720_v44 }
 0x2d5   :  { %v1379_v41 = vpop.f32.mrf.mxu2 }
 0x2d6   :  { %v1380_v42 = vadd.f32 %v1379_v41, %v3633_v31  ;;  %1561 = vmatmul.bf16.gmra.mxu0 %v3592_v48  ;;  %v1612_v5 = vadd.f32 %v1611_v9, %v1523_v20 }
 0x2d7   :  { %1650 = vmatmul.bf16.gmra.mxu1 %v3681_v22  ;;  %v1468_v62 = vpop.f32.mrf.mxu3 }
 0x2d8   :  { %v1469_v55 = vadd.f32 %v1468_v62, %v1380_v42  ;;  %v1688_v45 = vmax.f32 %v1612_v5, 0.0 }
 0x2da   :  { %v1715_v48 = vmax.f32 %v1469_v55, 0.0 }
 0x2db   :  { %v1524_v35 = vpop.f32.mrf.mxu0 }
 0x2dc   :  { %v1525_v46 = vadd.f32 %v1524_v35, %v3720_v44  ;;  %v1613_v6 = vpop.f32.mrf.mxu1 }
 0x2dd   :  { %v1381_v30 = vpop.f32.mrf.mxu2 }
 0x2de   :  { %v1614_v34 = vadd.f32 %v1613_v6, %v1525_v46  ;;  %v1382_v36 = vadd.f32 %v1381_v30, %v3633_v31 }
 0x2df   :  { %v1470_v15 = vpop.f32.mrf.mxu3 }
 0x2e0   :  { %v1690_v2 = vmax.f32 %v1614_v34, 0.0  ;;  %v1471_v26 = vadd.f32 %v1470_v15, %v1382_v36 }
 0x2e2   :  { %v1744_v38 = vpack.c.bf16 %v1690_v2, %v1688_v45  ;;  %v1717_v22 = vmax.f32 %v1471_v26, 0.0  ;;  %1927 = vmatmul.bf16.gmra.mxu2 %v3696_v28 }
 0x2e3   :  { %v1527_v52 = vpop.f32.mrf.mxu0 }
 0x2e4   :  { %v1616_v18 = vpop.f32.mrf.mxu1  ;;  %2016 = vmatmul.bf16.gmra.mxu3 %v1744_v38  ;;  %v3768_v16 = vpack.c.bf16 %v1717_v22, %v1715_v48  ;;  %v1528_v0 = vadd.f32 %v1527_v52, %v3720_v44 }
 0x2e5   :  { %v1384_v33 = vpop.f32.mrf.mxu2 }
 0x2e6   :  { %v1385_v32 = vadd.f32 %v1384_v33, %v3633_v31  ;;  %1566 = vmatmul.bf16.gmra.mxu0 %v3604_v29  ;;  %v1617_v47 = vadd.f32 %v1616_v18, %v1528_v0 }
 0x2e7   :  { %1655 = vmatmul.bf16.gmra.mxu1 %v3693_v17  ;;  %v1473_v27 = vpop.f32.mrf.mxu3 }
 0x2e8   :  { %v1474_v19 = vadd.f32 %v1473_v27, %v1385_v32  ;;  %v1692_v49 = vmax.f32 %v1617_v47, 0.0 }
 0x2ea   :  { %v1719_v29 = vmax.f32 %v1474_v19, 0.0 }
 0x2eb   :  { %v1529_v43 = vpop.f32.mrf.mxu0 }
 0x2ec   :  { %v1530_v28 = vadd.f32 %v1529_v43, %v3720_v44  ;;  %v1618_v51 = vpop.f32.mrf.mxu1 }
 0x2ed   :  { %v1386_v11 = vpop.f32.mrf.mxu2 }
 0x2ee   :  { %v1619_v57 = vadd.f32 %v1618_v51, %v1530_v28  ;;  %v1387_v13 = vadd.f32 %v1386_v11, %v3633_v31 }
 0x2ef   :  { %v1475_v59 = vpop.f32.mrf.mxu3 }
 0x2f0   :  { %v1694_v10 = vmax.f32 %v1619_v57, 0.0  ;;  %v1476_v24 = vadd.f32 %v1475_v59, %v1387_v13 }
 0x2f2   :  { %v1746_v53 = vpack.c.bf16 %v1694_v10, %v1692_v49  ;;  %v1721_v17 = vmax.f32 %v1476_v24, 0.0  ;;  %1932 = vmatmul.bf16.gmra.mxu2 %v3708_v50 }
 0x2f3   :  { %v1532_v7 = vpop.f32.mrf.mxu0 }
 0x2f4   :  { %v1621_v21 = vpop.f32.mrf.mxu1  ;;  %2021 = vmatmul.bf16.gmra.mxu3 %v1746_v53  ;;  %v3777_v61 = vpack.c.bf16 %v1721_v17, %v1719_v29  ;;  %v1533_v23 = vadd.f32 %v1532_v7, %v3720_v44 }
 0x2f5   :  { %v1389_v39 = vpop.f32.mrf.mxu2 }
 0x2f6   :  { %v1390_v8 = vadd.f32 %v1389_v39, %v3633_v31  ;;  %1571 = vmatmul.bf16.gmra.mxu0 %v3616_v60  ;;  %v1622_v56 = vadd.f32 %v1621_v21, %v1533_v23 }
 0x2f7   :  { %1660 = vmatmul.bf16.gmra.mxu1 %v3705_v37  ;;  %v1478_v40 = vpop.f32.mrf.mxu3 }
 0x2f8   :  { %v1479_v4 = vadd.f32 %v1478_v40, %v1390_v8  ;;  %v1696_v55 = vmax.f32 %v1622_v56, 0.0 }
 0x2fa   :  { %v1723_v60 = vmax.f32 %v1479_v4, 0.0 }
 0x2fb   :  { %v1534_v1 = vpop.f32.mrf.mxu0 }
 0x2fc   :  { %v1535_v50 = vadd.f32 %v1534_v1, %v3720_v44  ;;  %v1623_v9 = vpop.f32.mrf.mxu1 }
 0x2fd   :  { %v1391_v41 = vpop.f32.mrf.mxu2 }
 0x2fe   :  { %v1624_v42 = vadd.f32 %v1623_v9, %v1535_v50  ;;  %v1392_v62 = vadd.f32 %v1391_v41, %v3633_v31  ;;  %v3807_v41 = vld [vmem:[%s3876_s8] ss:$0 sm:$0xff]  ;;  %s2896_s8 = smov [#allocation7]  }
 0x2ff   :  { %v1480_v20 = vpop.f32.mrf.mxu3  ;;  %s2177_s11 = sshll.u32 %s2896_s8, 4  ;;  %s2178_s11 = int_to_ptr.vmem [resolvable:$true] %s2177_s11 }
 0x300   :  { %v1698_v35 = vmax.f32 %v1624_v42, 0.0  ;;  %v1481_v5 = vadd.f32 %v1480_v20, %v1392_v62 }
 0x302   :  { %v1748_v46 = vpack.c.bf16 %v1698_v35, %v1696_v55  ;;  %v1725_v37 = vmax.f32 %v1481_v5, 0.0  ;;  %1937 = vmatmul.bf16.gmra.mxu2 %v3723_v12 }
 0x303   :  { %v1537_v6 = vpop.f32.mrf.mxu0 }
 0x304   :  { %v1626_v30 = vpop.f32.mrf.mxu1  ;;  %2026 = vmatmul.bf16.gmra.mxu3 %v1748_v46  ;;  %v3786_v34 = vpack.c.bf16 %v1725_v37, %v1723_v60  ;;  %v1538_v2 = vadd.f32 %v1537_v6, %v3720_v44 }
 0x305   :  { %v1394_v36 = vpop.f32.mrf.mxu2 }
 0x306   :  { %v1395_v15 = vadd.f32 %v1394_v36, %v3633_v31  ;;  %1576 = vmatmul.bf16.gmra.mxu0 %v3636_v3  ;;  %v1627_v38 = vadd.f32 %v1626_v30, %v1538_v2 }
 0x307   :  { %1665 = vmatmul.bf16.gmra.mxu1 %v3717_v58  ;;  %v1483_v45 = vpop.f32.mrf.mxu3 }
 0x308   :  { %v1484_v26 = vadd.f32 %v1483_v45, %v1395_v15  ;;  %v1700_v27 = vmax.f32 %v1627_v38, 0.0 }
 0x30a   :  { %v1727_v3 = vmax.f32 %v1484_v26, 0.0 }
 0x30b   :  { %v1539_v48 = vpop.f32.mrf.mxu0 }
 0x30c   :  { %v1540_v12 = vadd.f32 %v1539_v48, %v3720_v44  ;;  %v1628_v22 = vpop.f32.mrf.mxu1 }
 0x30d   :  { %v1396_v52 = vpop.f32.mrf.mxu2 }
 0x30e   :  { %v1629_v18 = vadd.f32 %v1628_v22, %v1540_v12  ;;  %v1397_v33 = vadd.f32 %v1396_v52, %v3633_v31 }
 0x30f   :  { %v1485_v32 = vpop.f32.mrf.mxu3 }
 0x310   :  { %v1702_v0 = vmax.f32 %v1629_v18, 0.0  ;;  %v1486_v19 = vadd.f32 %v1485_v32, %v1397_v33 }
 0x312   :  { %v1750_v43 = vpack.c.bf16 %v1702_v0, %v1700_v27  ;;  %v1729_v58 = vmax.f32 %v1486_v19, 0.0  ;;  %1942 = vmatmul.bf16.gmra.mxu2 %v3732_v54 }
 0x313   :  { %v1542_v47 = vpop.f32.mrf.mxu0 }
 0x314   :  { %v1631_v28 = vpop.f32.mrf.mxu1  ;;  %2031 = vmatmul.bf16.gmra.mxu3 %v1750_v43  ;;  %v3795_v51 = vpack.c.bf16 %v1729_v58, %v1727_v3  ;;  %v1543_v59 = vadd.f32 %v1542_v47, %v3720_v44 }
 0x315   :  { %v1399_v11 = vpop.f32.mrf.mxu2 }
 0x316   :  { %v1400_v57 = vadd.f32 %v1399_v11, %v3633_v31  ;;  %v1632_v24 = vadd.f32 %v1631_v28, %v1543_v59 }
 0x317   :  { %v1488_v13 = vpop.f32.mrf.mxu3 }
 0x318   :  { %v1489_v49 = vadd.f32 %v1488_v13, %v1400_v57  ;;  %v1704_v39 = vmax.f32 %v1632_v24, 0.0 }
 0x31a   :  { %v1731_v23 = vmax.f32 %v1489_v49, 0.0 }
 0x31b   :  { %v1544_v10 = vpop.f32.mrf.mxu0 }
 0x31c   :  { %v1545_v29 = vadd.f32 %v1544_v10, %v3720_v44  ;;  %v1633_v53 = vpop.f32.mrf.mxu1 }
 0x31d   :  { %v1401_v17 = vpop.f32.mrf.mxu2 }
 0x31e   :  { %v1634_v7 = vadd.f32 %v1633_v53, %v1545_v29  ;;  %v1402_v54 = vadd.f32 %v1401_v17, %v3633_v31 }
 0x31f   :  { %v1490_v21 = vpop.f32.mrf.mxu3 }
 0x320   :  { %v1706_v8 = vmax.f32 %v1634_v7, 0.0  ;;  %v1491_v40 = vadd.f32 %v1490_v21, %v1402_v54 }
 0x322   :  { %v1752_v4 = vpack.c.bf16 %v1706_v8, %v1704_v39  ;;  %v1733_v1 = vmax.f32 %v1491_v40, 0.0  ;;  %1947 = vmatmul.bf16.gmra.mxu2 %v3741_v63 }
 0x323   :  { %v1547_v56 = vpop.f32.mrf.mxu0 }
 0x324   :  { %v1636_v50 = vpop.f32.mrf.mxu1  ;;  %2036 = vmatmul.bf16.gmra.mxu3 %v1752_v4  ;;  %v3802_v9 = vpack.c.bf16 %v1733_v1, %v1731_v23  ;;  %v1548_v62 = vadd.f32 %v1547_v56, %v3720_v44 }
 0x325   :  { %v1908_v31 = vpop.f32.mrf.mxu2 }
 0x326   :  { %v1909_v20 = vadd.f32 %v3807_v41, %v1908_v31  ;;  %v1637_v35 = vadd.f32 %v1636_v50, %v1548_v62 }
 0x327   :  { %v1997_v42 = vpop.f32.mrf.mxu3 }
 0x328   :  { %v1998_v60 = vadd.f32 %v1997_v42, %v1909_v20  ;;  %v1708_v36 = vmax.f32 %v1637_v35, 0.0 }
 0x32a   :  { %2748 = vtanh.f32 %v1998_v60 }
 0x32b   :  { %v1549_v55 = vpop.f32.mrf.mxu0 }
 0x32c   :  { %v1550_v63 = vadd.f32 %v1549_v55, %v3720_v44  ;;  %v1638_v5 = vpop.f32.mrf.mxu1 }
 0x32d   :  { %v1910_v46 = vpop.f32.mrf.mxu2 }
 0x32e   :  { %v1639_v37 = vadd.f32 %v1638_v5, %v1550_v63  ;;  %v1911_v6 = vadd.f32 %v3807_v41, %v1910_v46 }
 0x32f   :  { %v1999_v30 = vpop.f32.mrf.mxu3 }
 0x330   :  { %v1710_v15 = vmax.f32 %v1639_v37, 0.0  ;;  %v2000_v45 = vadd.f32 %v1999_v30, %v1911_v6  ;;  %v2749_v12 = vpop.eup %2748 }
 0x332   :  { %v1754_v2 = vpack.c.bf16 %v1710_v15, %v1708_v36  ;;  %2750 = vtanh.f32 %v2000_v45  ;;  %1952 = vmatmul.bf16.gmra.mxu2 %v3750_v25 }
 0x333   :  { %v1552_v26 = vpop.f32.mrf.mxu0 }
 0x334   :  { %v1641_v48 = vpop.f32.mrf.mxu1  ;;  %2041 = vmatmul.bf16.gmra.mxu3 %v1754_v2  ;;  %v1553_v18 = vadd.f32 %v1552_v26, %v3720_v44 }
 0x335   :  { %v1913_v38 = vpop.f32.mrf.mxu2 }
 0x336   :  { %v1914_v32 = vadd.f32 %v3807_v41, %v1913_v38  ;;  %v1642_v0 = vadd.f32 %v1641_v48, %v1553_v18 }
 0x337   :  { %v2002_v22 = vpop.f32.mrf.mxu3 }
 0x338   :  { %v2751_v52 = vpop.eup %2750  ;;  %v2003_v43 = vadd.f32 %v2002_v22, %v1914_v32  ;;  %v1712_v11 = vmax.f32 %v1642_v0, 0.0 }
 0x339   :  { %v2648_v33 = vpack.c.bf16 %v2751_v52, %v2749_v12 }
 0x33a   :  { %2752 = vtanh.f32 %v2003_v43 }
 0x33b   :  { %2649 = vst [vmem:[#allocation7] sm:$0xff] %v2648_v33   ;;  %v1554_v27 = vpop.f32.mrf.mxu0 }
 0x33c   :  { %v1555_v19 = vadd.f32 %v1554_v27, %v3720_v44  ;;  %v1643_v3 = vpop.f32.mrf.mxu1 }
 0x33d   :  { %v1915_v25 = vpop.f32.mrf.mxu2 }
 0x33e   :  { %v1644_v58 = vadd.f32 %v1643_v3, %v1555_v19  ;;  %v1916_v47 = vadd.f32 %v3807_v41, %v1915_v25 }
 0x33f   :  { %v2004_v28 = vpop.f32.mrf.mxu3 }
 0x340   :  { %v1714_v57 = vmax.f32 %v1644_v58, 0.0  ;;  %v2005_v13 = vadd.f32 %v2004_v28, %v1916_v47  ;;  %v2753_v29 = vpop.eup %2752 }
 0x342   :  { %v1756_v59 = vpack.c.bf16 %v1714_v57, %v1712_v11  ;;  %2754 = vtanh.f32 %v2005_v13  ;;  %1957 = vmatmul.bf16.gmra.mxu2 %v3759_v14 }
 0x343   :  { %v1557_v49 = vpop.f32.mrf.mxu0 }
 0x344   :  { %v1646_v10 = vpop.f32.mrf.mxu1  ;;  %2046 = vmatmul.bf16.gmra.mxu3 %v1756_v59  ;;  %v1558_v7 = vadd.f32 %v1557_v49, %v3720_v44 }
 0x345   :  { %v1918_v24 = vpop.f32.mrf.mxu2 }
 0x346   :  { %v1919_v21 = vadd.f32 %v3807_v41, %v1918_v24  ;;  %v1647_v8 = vadd.f32 %v1646_v10, %v1558_v7 }
 0x347   :  { %v2007_v53 = vpop.f32.mrf.mxu3 }
 0x348   :  { %v2755_v17 = vpop.eup %2754  ;;  %v2008_v4 = vadd.f32 %v2007_v53, %v1919_v21  ;;  %v1716_v31 = vmax.f32 %v1647_v8, 0.0 }
 0x349   :  { %v2653_v54 = vpack.c.bf16 %v2755_v17, %v2753_v29 }
 0x34a   :  { %2756 = vtanh.f32 %v2008_v4 }
 0x34b   :  { %2725 = vst [vmem:[#allocation7 + $0x8] sm:$0xff] %v2653_v54   ;;  %v1559_v39 = vpop.f32.mrf.mxu0 }
 0x34c   :  { %v1560_v40 = vadd.f32 %v1559_v39, %v3720_v44  ;;  %v1648_v23 = vpop.f32.mrf.mxu1 }
 0x34d   :  { %v1920_v14 = vpop.f32.mrf.mxu2 }
 0x34e   :  { %v1649_v1 = vadd.f32 %v1648_v23, %v1560_v40  ;;  %v1921_v56 = vadd.f32 %v3807_v41, %v1920_v14 }
 0x34f   :  { %v2009_v50 = vpop.f32.mrf.mxu3 }
 0x350   :  { %v1718_v42 = vmax.f32 %v1649_v1, 0.0  ;;  %v2010_v62 = vadd.f32 %v2009_v50, %v1921_v56  ;;  %v2757_v5 = vpop.eup %2756 }
 0x352   :  { %v1758_v20 = vpack.c.bf16 %v1718_v42, %v1716_v31  ;;  %2758 = vtanh.f32 %v2010_v62  ;;  %1962 = vmatmul.bf16.gmra.mxu2 %v3768_v16 }
 0x353   :  { %v1562_v55 = vpop.f32.mrf.mxu0 }
 0x354   :  { %v1651_v35 = vpop.f32.mrf.mxu1  ;;  %2051 = vmatmul.bf16.gmra.mxu3 %v1758_v20  ;;  %v1563_v37 = vadd.f32 %v1562_v55, %v3720_v44 }
 0x355   :  { %v1923_v63 = vpop.f32.mrf.mxu2 }
 0x356   :  { %v1924_v30 = vadd.f32 %v3807_v41, %v1923_v63  ;;  %v1652_v15 = vadd.f32 %v1651_v35, %v1563_v37 }
 0x357   :  { %v2012_v60 = vpop.f32.mrf.mxu3 }
 0x358   :  { %v2759_v46 = vpop.eup %2758  ;;  %v2013_v26 = vadd.f32 %v2012_v60, %v1924_v30  ;;  %v1720_v22 = vmax.f32 %v1652_v15, 0.0 }
 0x359   :  { %v2658_v6 = vpack.c.bf16 %v2759_v46, %v2757_v5 }
 0x35a   :  { %2760 = vtanh.f32 %v2013_v26 }
 0x35b   :  { %2726 = vst [vmem:[#allocation7 + $0x10] sm:$0xff] %v2658_v6   ;;  %v1564_v36 = vpop.f32.mrf.mxu0 }
 0x35c   :  { %v1565_v45 = vadd.f32 %v1564_v36, %v3720_v44  ;;  %v1653_v2 = vpop.f32.mrf.mxu1 }
 0x35d   :  { %v1925_v16 = vpop.f32.mrf.mxu2 }
 0x35e   :  { %v1654_v48 = vadd.f32 %v1653_v2, %v1565_v45  ;;  %v1926_v38 = vadd.f32 %v3807_v41, %v1925_v16 }
 0x35f   :  { %v2014_v12 = vpop.f32.mrf.mxu3 }
 0x360   :  { %v1722_v52 = vmax.f32 %v1654_v48, 0.0  ;;  %v2015_v18 = vadd.f32 %v2014_v12, %v1926_v38  ;;  %v2761_v19 = vpop.eup %2760 }
 0x362   :  { %v1760_v33 = vpack.c.bf16 %v1722_v52, %v1720_v22  ;;  %2762 = vtanh.f32 %v2015_v18  ;;  %1967 = vmatmul.bf16.gmra.mxu2 %v3777_v61 }
 0x363   :  { %v1567_v32 = vpop.f32.mrf.mxu0 }
 0x364   :  { %v1656_v27 = vpop.f32.mrf.mxu1  ;;  %2056 = vmatmul.bf16.gmra.mxu3 %v1760_v33  ;;  %v1568_v25 = vadd.f32 %v1567_v32, %v3720_v44 }
 0x365   :  { %v1928_v0 = vpop.f32.mrf.mxu2 }
 0x366   :  { %v1929_v47 = vadd.f32 %v3807_v41, %v1928_v0  ;;  %v1657_v11 = vadd.f32 %v1656_v27, %v1568_v25 }
 0x367   :  { %v2017_v3 = vpop.f32.mrf.mxu3 }
 0x368   :  { %v2763_v43 = vpop.eup %2762  ;;  %v2018_v59 = vadd.f32 %v2017_v3, %v1929_v47  ;;  %v1724_v29 = vmax.f32 %v1657_v11, 0.0 }
 0x369   :  { %v2663_v58 = vpack.c.bf16 %v2763_v43, %v2761_v19 }
 0x36a   :  { %2764 = vtanh.f32 %v2018_v59 }
 0x36b   :  { %2727 = vst [vmem:[#allocation7 + $0x18] sm:$0xff] %v2663_v58   ;;  %v1569_v28 = vpop.f32.mrf.mxu0 }
 0x36c   :  { %v1570_v57 = vadd.f32 %v1569_v28, %v3720_v44  ;;  %v1658_v13 = vpop.f32.mrf.mxu1 }
 0x36d   :  { %v1930_v61 = vpop.f32.mrf.mxu2 }
 0x36e   :  { %v1659_v49 = vadd.f32 %v1658_v13, %v1570_v57  ;;  %v1931_v10 = vadd.f32 %v3807_v41, %v1930_v61 }
 0x36f   :  { %v2019_v24 = vpop.f32.mrf.mxu3 }
 0x370   :  { %v1726_v53 = vmax.f32 %v1659_v49, 0.0  ;;  %v2020_v17 = vadd.f32 %v2019_v24, %v1931_v10  ;;  %v2765_v8 = vpop.eup %2764 }
 0x372   :  { %v1762_v7 = vpack.c.bf16 %v1726_v53, %v1724_v29  ;;  %2766 = vtanh.f32 %v2020_v17  ;;  %1972 = vmatmul.bf16.gmra.mxu2 %v3786_v34 }
 0x373   :  { %v1572_v54 = vpop.f32.mrf.mxu0 }
 0x374   :  { %v1661_v21 = vpop.f32.mrf.mxu1  ;;  %2061 = vmatmul.bf16.gmra.mxu3 %v1762_v7  ;;  %v1573_v4 = vadd.f32 %v1572_v54, %v3720_v44 }
 0x375   :  { %v1933_v39 = vpop.f32.mrf.mxu2 }
 0x376   :  { %v1934_v1 = vadd.f32 %v3807_v41, %v1933_v39  ;;  %v1662_v50 = vadd.f32 %v1661_v21, %v1573_v4 }
 0x377   :  { %v2022_v40 = vpop.f32.mrf.mxu3 }
 0x378   :  { %v2767_v23 = vpop.eup %2766  ;;  %v2023_v62 = vadd.f32 %v2022_v40, %v1934_v1  ;;  %v1728_v63 = vmax.f32 %v1662_v50, 0.0 }
 0x379   :  { %v2668_v14 = vpack.c.bf16 %v2767_v23, %v2765_v8 }
 0x37a   :  { %2768 = vtanh.f32 %v2023_v62 }
 0x37b   :  { %2728 = vst [vmem:[#allocation7 + $0x20] sm:$0xff] %v2668_v14   ;;  %v1574_v56 = vpop.f32.mrf.mxu0 }
 0x37c   :  { %v1575_v31 = vadd.f32 %v1574_v56, %v3720_v44  ;;  %v1663_v42 = vpop.f32.mrf.mxu1 }
 0x37d   :  { %v1935_v34 = vpop.f32.mrf.mxu2 }
 0x37e   :  { %v1664_v20 = vadd.f32 %v1663_v42, %v1575_v31  ;;  %v1936_v55 = vadd.f32 %v3807_v41, %v1935_v34 }
 0x37f   :  { %v2024_v35 = vpop.f32.mrf.mxu3 }
 0x380   :  { %v1730_v5 = vmax.f32 %v1664_v20, 0.0  ;;  %v2025_v60 = vadd.f32 %v2024_v35, %v1936_v55  ;;  %v2769_v36 = vpop.eup %2768 }
 0x382   :  { %v1764_v46 = vpack.c.bf16 %v1730_v5, %v1728_v63  ;;  %2770 = vtanh.f32 %v2025_v60  ;;  %1977 = vmatmul.bf16.gmra.mxu2 %v3795_v51 }
 0x383   :  { %v1577_v37 = vpop.f32.mrf.mxu0 }
 0x384   :  { %v1666_v6 = vpop.f32.mrf.mxu1  ;;  %2066 = vmatmul.bf16.gmra.mxu3 %v1764_v46  ;;  %v1578_v2 = vadd.f32 %v1577_v37, %v3720_v44 }
 0x385   :  { %v1938_v30 = vpop.f32.mrf.mxu2 }
 0x386   :  { %v1939_v16 = vadd.f32 %v3807_v41, %v1938_v30  ;;  %v1667_v38 = vadd.f32 %v1666_v6, %v1578_v2 }
 0x387   :  { %v2027_v15 = vpop.f32.mrf.mxu3 }
 0x388   :  { %v2771_v45 = vpop.eup %2770  ;;  %v2028_v22 = vadd.f32 %v2027_v15, %v1939_v16  ;;  %v1732_v27 = vmax.f32 %v1667_v38, 0.0 }
 0x389   :  { %v2673_v26 = vpack.c.bf16 %v2771_v45, %v2769_v36 }
 0x38a   :  { %2772 = vtanh.f32 %v2028_v22 }
 0x38b   :  { %2729 = vst [vmem:[#allocation7 + $0x28] sm:$0xff] %v2673_v26   ;;  %v1579_v48 = vpop.f32.mrf.mxu0 }
 0x38c   :  { %v1580_v12 = vadd.f32 %v1579_v48, %v3720_v44  ;;  %v1668_v52 = vpop.f32.mrf.mxu1 }
 0x38d   :  { %v1940_v51 = vpop.f32.mrf.mxu2 }
 0x38e   :  { %v1669_v18 = vadd.f32 %v1668_v52, %v1580_v12  ;;  %v1941_v33 = vadd.f32 %v3807_v41, %v1940_v51 }
 0x38f   :  { %v2029_v32 = vpop.f32.mrf.mxu3 }
 0x390   :  { %v1734_v0 = vmax.f32 %v1669_v18, 0.0  ;;  %v2030_v19 = vadd.f32 %v2029_v32, %v1941_v33  ;;  %v2773_v25 = vpop.eup %2772 }
 0x392   :  { %v1766_v3 = vpack.c.bf16 %v1734_v0, %v1732_v27  ;;  %2774 = vtanh.f32 %v2030_v19  ;;  %1982 = vmatmul.bf16.gmra.mxu2 %v3802_v9 }
 0x394   :  { %2071 = vmatmul.bf16.gmra.mxu3 %v1766_v3 }
 0x395   :  { %v1943_v43 = vpop.f32.mrf.mxu2 }
 0x396   :  { %v1944_v28 = vadd.f32 %v3807_v41, %v1943_v43 }
 0x397   :  { %v2032_v58 = vpop.f32.mrf.mxu3 }
 0x398   :  { %v2775_v44 = vpop.eup %2774  ;;  %v2033_v11 = vadd.f32 %v2032_v58, %v1944_v28 }
 0x399   :  { %v2678_v47 = vpack.c.bf16 %v2775_v44, %v2773_v25 }
 0x39a   :  { %2776 = vtanh.f32 %v2033_v11 }
 0x39b   :  { %2730 = vst [vmem:[#allocation7 + $0x30] sm:$0xff] %v2678_v47  }
 0x39d   :  { %v1945_v57 = vpop.f32.mrf.mxu2 }
 0x39e   :  { %v1946_v13 = vadd.f32 %v3807_v41, %v1945_v57 }
 0x39f   :  { %v2034_v59 = vpop.f32.mrf.mxu3 }
 0x3a0   :  { %v2035_v61 = vadd.f32 %v2034_v59, %v1946_v13  ;;  %v2777_v10 = vpop.eup %2776 }
 0x3a2   :  { %2778 = vtanh.f32 %v2035_v61 }
 0x3a5   :  { %v1948_v49 = vpop.f32.mrf.mxu2 }
 0x3a6   :  { %v1949_v53 = vadd.f32 %v3807_v41, %v1948_v49 }
 0x3a7   :  { %v2037_v9 = vpop.f32.mrf.mxu3 }
 0x3a8   :  { %v2779_v24 = vpop.eup %2778  ;;  %v2038_v17 = vadd.f32 %v2037_v9, %v1949_v53 }
 0x3a9   :  { %v2683_v29 = vpack.c.bf16 %v2779_v24, %v2777_v10 }
 0x3aa   :  { %2780 = vtanh.f32 %v2038_v17 }
 0x3ab   :  { %2731 = vst [vmem:[#allocation7 + $0x38] sm:$0xff] %v2683_v29  }
 0x3ad   :  { %v1950_v7 = vpop.f32.mrf.mxu2 }
 0x3ae   :  { %v1951_v54 = vadd.f32 %v3807_v41, %v1950_v7 }
 0x3af   :  { %v2039_v21 = vpop.f32.mrf.mxu3 }
 0x3b0   :  { %v2040_v39 = vadd.f32 %v2039_v21, %v1951_v54  ;;  %v2781_v40 = vpop.eup %2780 }
 0x3b2   :  { %2782 = vtanh.f32 %v2040_v39 }
 0x3b5   :  { %v1953_v8 = vpop.f32.mrf.mxu2 }
 0x3b6   :  { %v1954_v1 = vadd.f32 %v3807_v41, %v1953_v8 }
 0x3b7   :  { %v2042_v23 = vpop.f32.mrf.mxu3 }
 0x3b8   :  { %v2783_v4 = vpop.eup %2782  ;;  %v2043_v56 = vadd.f32 %v2042_v23, %v1954_v1 }
 0x3b9   :  { %v2688_v14 = vpack.c.bf16 %v2783_v4, %v2781_v40 }
 0x3ba   :  { %2784 = vtanh.f32 %v2043_v56 }
 0x3bb   :  { %2732 = vst [vmem:[#allocation7 + $0x40] sm:$0xff] %v2688_v14  }
 0x3bd   :  { %v1955_v50 = vpop.f32.mrf.mxu2 }
 0x3be   :  { %v1956_v31 = vadd.f32 %v3807_v41, %v1955_v50 }
 0x3bf   :  { %v2044_v42 = vpop.f32.mrf.mxu3 }
 0x3c0   :  { %v2045_v62 = vadd.f32 %v2044_v42, %v1956_v31  ;;  %v2785_v20 = vpop.eup %2784 }
 0x3c2   :  { %2786 = vtanh.f32 %v2045_v62 }
 0x3c5   :  { %v1958_v34 = vpop.f32.mrf.mxu2 }
 0x3c6   :  { %v1959_v5 = vadd.f32 %v3807_v41, %v1958_v34 }
 0x3c7   :  { %v2047_v55 = vpop.f32.mrf.mxu3 }
 0x3c8   :  { %v2787_v35 = vpop.eup %2786  ;;  %v2048_v60 = vadd.f32 %v2047_v55, %v1959_v5 }
 0x3c9   :  { %v2693_v63 = vpack.c.bf16 %v2787_v35, %v2785_v20 }
 0x3ca   :  { %2788 = vtanh.f32 %v2048_v60 }
 0x3cb   :  { %2733 = vst [vmem:[#allocation7 + $0x48] sm:$0xff] %v2693_v63  }
 0x3cd   :  { %v1960_v46 = vpop.f32.mrf.mxu2 }
 0x3ce   :  { %v1961_v37 = vadd.f32 %v3807_v41, %v1960_v46 }
 0x3cf   :  { %v2049_v6 = vpop.f32.mrf.mxu3 }
 0x3d0   :  { %v2050_v30 = vadd.f32 %v2049_v6, %v1961_v37  ;;  %v2789_v15 = vpop.eup %2788 }
 0x3d2   :  { %2790 = vtanh.f32 %v2050_v30 }
 0x3d5   :  { %v1963_v36 = vpop.f32.mrf.mxu2 }
 0x3d6   :  { %v1964_v16 = vadd.f32 %v3807_v41, %v1963_v36 }
 0x3d7   :  { %v2052_v45 = vpop.f32.mrf.mxu3 }
 0x3d8   :  { %v2791_v2 = vpop.eup %2790  ;;  %v2053_v48 = vadd.f32 %v2052_v45, %v1964_v16 }
 0x3d9   :  { %v2698_v26 = vpack.c.bf16 %v2791_v2, %v2789_v15 }
 0x3da   :  { %2792 = vtanh.f32 %v2053_v48 }
 0x3db   :  { %2734 = vst [vmem:[#allocation7 + $0x50] sm:$0xff] %v2698_v26  }
 0x3dd   :  { %v1965_v38 = vpop.f32.mrf.mxu2 }
 0x3de   :  { %v1966_v12 = vadd.f32 %v3807_v41, %v1965_v38 }
 0x3df   :  { %v2054_v22 = vpop.f32.mrf.mxu3 }
 0x3e0   :  { %v2055_v52 = vadd.f32 %v2054_v22, %v1966_v12  ;;  %v2793_v18 = vpop.eup %2792 }
 0x3e2   :  { %2794 = vtanh.f32 %v2055_v52 }
 0x3e5   :  { %v1968_v51 = vpop.f32.mrf.mxu2 }
 0x3e6   :  { %v1969_v0 = vadd.f32 %v3807_v41, %v1968_v51 }
 0x3e7   :  { %v2057_v33 = vpop.f32.mrf.mxu3 }
 0x3e8   :  { %v2795_v32 = vpop.eup %2794  ;;  %v2058_v19 = vadd.f32 %v2057_v33, %v1969_v0 }
 0x3e9   :  { %v2703_v27 = vpack.c.bf16 %v2795_v32, %v2793_v18 }
 0x3ea   :  { %2796 = vtanh.f32 %v2058_v19 }
 0x3eb   :  { %2735 = vst [vmem:[#allocation7 + $0x58] sm:$0xff] %v2703_v27  }
 0x3ed   :  { %v1970_v3 = vpop.f32.mrf.mxu2 }
 0x3ee   :  { %v1971_v43 = vadd.f32 %v3807_v41, %v1970_v3 }
 0x3ef   :  { %v2059_v25 = vpop.f32.mrf.mxu3 }
 0x3f0   :  { %v2060_v58 = vadd.f32 %v2059_v25, %v1971_v43  ;;  %v2797_v47 = vpop.eup %2796 }
 0x3f2   :  { %2798 = vtanh.f32 %v2060_v58 }
 0x3f5   :  { %v1973_v44 = vpop.f32.mrf.mxu2 }
 0x3f6   :  { %v1974_v13 = vadd.f32 %v3807_v41, %v1973_v44 }
 0x3f7   :  { %v2062_v28 = vpop.f32.mrf.mxu3 }
 0x3f8   :  { %v2799_v11 = vpop.eup %2798  ;;  %v2063_v59 = vadd.f32 %v2062_v28, %v1974_v13 }
 0x3f9   :  { %v2708_v57 = vpack.c.bf16 %v2799_v11, %v2797_v47 }
 0x3fa   :  { %2800 = vtanh.f32 %v2063_v59 }
 0x3fb   :  { %2736 = vst [vmem:[#allocation7 + $0x60] sm:$0xff] %v2708_v57  }
 0x3fd   :  { %v1975_v61 = vpop.f32.mrf.mxu2 }
 0x3fe   :  { %v1976_v49 = vadd.f32 %v3807_v41, %v1975_v61 }
 0x3ff   :  { %v2064_v10 = vpop.f32.mrf.mxu3 }
 0x400   :  { %v2065_v9 = vadd.f32 %v2064_v10, %v1976_v49  ;;  %v2801_v29 = vpop.eup %2800 }
 0x402   :  { %2802 = vtanh.f32 %v2065_v9 }
 0x405   :  { %v1978_v24 = vpop.f32.mrf.mxu2 }
 0x406   :  { %v1979_v54 = vadd.f32 %v3807_v41, %v1978_v24 }
 0x407   :  { %v2067_v53 = vpop.f32.mrf.mxu3 }
 0x408   :  { %v2803_v17 = vpop.eup %2802  ;;  %v2068_v21 = vadd.f32 %v2067_v53, %v1979_v54 }
 0x409   :  { %v2713_v7 = vpack.c.bf16 %v2803_v17, %v2801_v29 }
 0x40a   :  { %2804 = vtanh.f32 %v2068_v21 }
 0x40b   :  { %2737 = vst [vmem:[#allocation7 + $0x68] sm:$0xff] %v2713_v7  }
 0x40d   :  { %v1980_v39 = vpop.f32.mrf.mxu2 }
 0x40e   :  { %v1981_v8 = vadd.f32 %v3807_v41, %v1980_v39 }
 0x40f   :  { %v2069_v40 = vpop.f32.mrf.mxu3 }
 0x410   :  { %v2070_v23 = vadd.f32 %v2069_v40, %v1981_v8  ;;  %v2805_v14 = vpop.eup %2804 }
 0x412   :  { %2806 = vtanh.f32 %v2070_v23 }
 0x415   :  { %v1983_v4 = vpop.f32.mrf.mxu2 }
 0x416   :  { %v1984_v31 = vadd.f32 %v3807_v41, %v1983_v4 }
 0x417   :  { %v2072_v1 = vpop.f32.mrf.mxu3 }
 0x418   :  { %v2807_v56 = vpop.eup %2806  ;;  %v2073_v42 = vadd.f32 %v2072_v1, %v1984_v31 }
 0x419   :  { %v2718_v50 = vpack.c.bf16 %v2807_v56, %v2805_v14 }
 0x41a   :  { %2808 = vtanh.f32 %v2073_v42 }
 0x41b   :  { %2738 = vst [vmem:[#allocation7 + $0x70] sm:$0xff] %v2718_v50  }
 0x41d   :  { %v1985_v62 = vpop.f32.mrf.mxu2 }
 0x41e   :  { %v1986_v34 = vadd.f32 %v3807_v41, %v1985_v62 }
 0x41f   :  { %v2074_v20 = vpop.f32.mrf.mxu3 }
 0x420   :  { %v2075_v55 = vadd.f32 %v2074_v20, %v1986_v34  ;;  %v2809_v35 = vpop.eup %2808 }
 0x422   :  { %2810 = vtanh.f32 %v2075_v55 }
 0x428   :  { %v2811_v63 = vpop.eup %2810 }
 0x429   :  { %v2723_v5 = vpack.c.bf16 %v2811_v63, %v2809_v35 }
 0x42b   :  { %2739 = vst [vmem:[#allocation7 + $0x78] sm:$0xff] %v2723_v5  }
 0x42c   :  { %2185 = dma.vmem_to_hbm [thread:$0]  %s2178_s11, 2048, %s2180_s14, [#allocation4], %s2894_s21, %s2894_s21, %s2895_s22  }
 0x42d   :  { %2888 = dma.done.wait [#allocation4], 2048  }
 0x42e   :  { %2889 = vsyncadd [#allocation4], 4294965248 }
 0x42f   :  { %2190 = vsyncpa [#allocation3], 1 }
 0x430   :  { %2191 = vsyncpa [#allocation6], 1 }
 0x431   :  { %2192 = vsyncpa [#allocation4], 1 }

// kernel: tpu_custom_call.1
= control target key start
LH: loop header
LB: loop body
LE: loop exit
PB: predicated region body
PF: predicated region fallthrough
CT: control target
= control target key end

     0   :  { %14 = vsyncpa [#allocation3], 0  ;;  %s3868_s0 = inlined_call_operand.vmem [shape: f32[256,32], index: 0, kind: input, shape index: {}]   ;;  %s3869_s1 = inlined_call_operand.vmem [shape: bf16[32,256], index: 1, kind: input, shape index: {}]   ;;  %s3870_s2 = inlined_call_operand.vmem [shape: f32[1,256], index: 2, kind: input, shape index: {}]   ;;  %s3871_s3 = inlined_call_operand.vmem [shape: bf16[256,256], index: 3, kind: input, shape index: {}]   ;;  %s3872_s4 = inlined_call_operand.vmem [shape: f32[1,256], index: 4, kind: input, shape index: {}]   ;;  %s3873_s5 = inlined_call_operand.hbm [shape: bf16[256,256], index: 5, kind: input, shape index: {}]   ;;  %s3874_s6 = inlined_call_operand.vmem [shape: f32[1,256], index: 6, kind: input, shape index: {}]   ;;  %s3875_s7 = inlined_call_operand.hbm [shape: bf16[256,128], index: 7, kind: input, shape index: {}]   ;;  %s3876_s8 = inlined_call_operand.vmem [shape: f32[1,128], index: 8, kind: input, shape index: {}]   ;;  %s3877_s9 = inlined_call_operand.hbm [shape: bf16[256,128], index: 9, kind: output, shape index: {}]  }
   0x1   :  { %15 = vsyncpa [#allocation6], 0 }
   0x2   :  { %16 = vsyncpa [#allocation4], 0  ;;  %s31_s11 = sshll.u32 %s3873_s5, 4  ;;  %s2890_s12 = smov [#allocation2]   ;;  %s32_s11 = int_to_ptr.hbm [resolvable:$true] %s31_s11 }
   0x3   :  { %s33_s13 = sshll.u32 %s2890_s12, 4  ;;  %s46_s16 = sshll.u32 %s3875_s7, 4  ;;  %s34_s13 = int_to_ptr.vmem [resolvable:$true] %s33_s13  ;;  %s47_s16 = int_to_ptr.hbm [resolvable:$true] %s46_s16 }
   0x4   :  { %s2891_s17 = smov 128   ;;  %s2892_s18 = smov 8  }
   0x5   :  { %39 = dma.hbm_to_vmem [thread:$0]  %s32_s11, 4096, %s34_s13, [#allocation3], %s2891_s17, %s2891_s17, %s2892_s18  }
   0x6   :  { %s2893_s19 = smov [#allocation5]   ;;  %s2894_s21 = smov 64  }
   0x7   :  { %s48_s20 = sshll.u32 %s2893_s19, 4  ;;  %s2895_s22 = smov 4   ;;  %s49_s20 = int_to_ptr.vmem [resolvable:$true] %s48_s20 }
   0x8   :  { %54 = dma.hbm_to_vmem [thread:$0]  %s47_s16, 2048, %s49_s20, [#allocation6], %s2894_s21, %s2894_s21, %s2895_s22  }
   0x9   :  { %2884 = dma.done.wait [#allocation3], 4096  }
   0xa   :  { %2885 = vsyncadd [#allocation3], 4294963200 }
   0xb   :  { %2886 = dma.done.wait [#allocation6], 2048  }
   0xc   :  { %2887 = vsyncadd [#allocation6], 4294965248  ;;  %v2203_v0 = vld [vmem:[%s3869_s1 + $0x10] sm:$0xf]  ;;  %v2564_v1 = vld [vmem:[%s3869_s1 + $0x14] sm:$0xf0] }
   0xd   :  { %v2563_v2 = vld [vmem:[%s3869_s1 + $0x14] sm:$0xf]  ;;  %v2204_v3 = vor.u32 %v2564_v1, %v2203_v0  ;;  %v2205_v4 = vld [vmem:[%s3869_s1 + $0x18] sm:$0xf0]  ;;  %v2195_v5 = vld [vmem:[%s3869_s1] sm:$0xf] }
   0xe   :  { %v2562_v6 = vld [vmem:[%s3869_s1 + $0x4] sm:$0xf0]  ;;  %v2208_v7 = vor.u32 %v2563_v2, %v2205_v4  ;;  %v2561_v8 = vld [vmem:[%s3869_s1 + $0x4] sm:$0xf]  ;;  %v2197_v9 = vld [vmem:[%s3869_s1 + $0x8] sm:$0xf0] }
   0xf   :  { %v66_v10 = vld [vmem:[%s3868_s0] sm:$0xff]  ;;  %199 = vmatpush.bf16.msra.mxu0 %v2204_v3  ;;  %v2196_v11 = vor.u32 %v2562_v6, %v2195_v5  ;;  %v67_v12 = vld [vmem:[%s3868_s0 + $0x8] sm:$0xff]  ;;  %v2579_v13 = vld [vmem:[%s3871_s3 + $0x74] sm:$0xf]  ;;  %v2200_v15 = vor.u32 %v2561_v8, %v2197_v9  ;;  %vm144_vm0 = vcmask 261120   ;;  %s2179_s14 = sshll.u32 %s3877_s9, 4  ;;  %s2180_s14 = int_to_ptr.hbm [resolvable:$true] %s2179_s14 }
  0x10   :  { %v2301_v14 = vld [vmem:[%s3871_s3 + $0x78] sm:$0xf0]  ;;  %288 = vmatpush.bf16.msra.mxu1 %v2208_v7  ;;  %v2595_v17 = vld [vmem:[%s3871_s3 + $0xf4] sm:$0xf]  ;;  %v98_v20 = vpack.c.bf16 %v67_v12, %v66_v10  ;;  %v2577_v21 = vld [vmem:[%s3871_s3 + $0x64] sm:$0xf] }
  0x11   :  { %v2304_v16 = vor.u32 %v2579_v13, %v2301_v14  ;;  %v2365_v18 = vld [vmem:[%s3871_s3 + $0xf8] sm:$0xf0]  ;;  %v2293_v22 = vld [vmem:[%s3871_s3 + $0x68] sm:$0xf0]  ;;  %v2593_v23 = vld [vmem:[%s3871_s3 + $0xe4] sm:$0xf] }
  0x12   :  { %v2368_v19 = vor.u32 %v2595_v17, %v2365_v18  ;;  %v2296_v24 = vor.u32 %v2577_v21, %v2293_v22  ;;  %v2357_v25 = vld [vmem:[%s3871_s3 + $0xe8] sm:$0xf0]  ;;  %v68_v27 = vld [vmem:[%s3868_s0 + $0x10] sm:$0xff]  ;;  %v69_v28 = vld [vmem:[%s3868_s0 + $0x18] sm:$0xff] }
  0x13   :  { %200 = vmatpush.bf16.msra.mxu0 %v2196_v11  ;;  %v2360_v26 = vor.u32 %v2593_v23, %v2357_v25  ;;  %v99_v29 = vpack.c.bf16 %v69_v28, %v68_v27  ;;  %v70_v30 = vld [vmem:[%s3868_s0 + $0x20] sm:$0xff]  ;;  %v71_v31 = vld [vmem:[%s3868_s0 + $0x28] sm:$0xff]  ;;  %v2575_v33 = vld [vmem:[%s3871_s3 + $0x54] sm:$0xf] }
  0x14   :  { %289 = vmatpush.bf16.msra.mxu1 %v2200_v15  ;;  %v100_v32 = vpack.c.bf16 %v71_v31, %v70_v30  ;;  %v2285_v34 = vld [vmem:[%s3871_s3 + $0x58] sm:$0xf0]  ;;  %v2591_v35 = vld [vmem:[%s3871_s3 + $0xd4] sm:$0xf]  ;;  %v74_v42 = vld [vmem:[%s3868_s0 + $0x40] sm:$0xff] }
  0x15   :  { %v2288_v36 = vor.u32 %v2575_v33, %v2285_v34  ;;  %v2349_v37 = vld [vmem:[%s3871_s3 + $0xd8] sm:$0xf0]  ;;  %v72_v39 = vld [vmem:[%s3868_s0 + $0x30] sm:$0xff]  ;;  %v75_v43 = vld [vmem:[%s3868_s0 + $0x48] sm:$0xff] }
  0x16   :  { %2209 = vmatmul.msk.bf16.vlgmr.msra.gmra.mxu0 %vm144_vm0, %v98_v20  ;;  %v2352_v38 = vor.u32 %v2591_v35, %v2349_v37  ;;  %v73_v40 = vld [vmem:[%s3868_s0 + $0x38] sm:$0xff]  ;;  %v102_v44 = vpack.c.bf16 %v75_v43, %v74_v42  ;;  %v2573_v45 = vld [vmem:[%s3871_s3 + $0x44] sm:$0xf]  ;;  %v2277_v46 = vld [vmem:[%s3871_s3 + $0x48] sm:$0xf0] }
  0x17   :  { %843 = vmatpush.bf16.msrb.mxu0 %v2304_v16  ;;  %2225 = vmatmul.msk.bf16.vlgmr.msra.gmra.mxu1 %vm144_vm0, %v98_v20  ;;  %v101_v41 = vpack.c.bf16 %v73_v40, %v72_v39  ;;  %v2589_v47 = vld [vmem:[%s3871_s3 + $0xc4] sm:$0xf]  ;;  %v2280_v48 = vor.u32 %v2573_v45, %v2277_v46  ;;  %v2341_v49 = vld [vmem:[%s3871_s3 + $0xc8] sm:$0xf0]  ;;  %v2299_v50 = vld [vmem:[%s3871_s3 + $0x70] sm:$0xf] }
  0x18   :  { %932 = vmatpush.bf16.msrb.mxu1 %v2368_v19  ;;  %v2580_v51 = vld [vmem:[%s3871_s3 + $0x74] sm:$0xf0]  ;;  %v2344_v52 = vor.u32 %v2589_v47, %v2341_v49  ;;  %v2363_v54 = vld [vmem:[%s3871_s3 + $0xf0] sm:$0xf]  ;;  %v2291_v60 = vld [vmem:[%s3871_s3 + $0x60] sm:$0xf] }
  0x19   :  { %v2300_v53 = vor.u32 %v2580_v51, %v2299_v50  ;;  %v2596_v55 = vld [vmem:[%s3871_s3 + $0xf4] sm:$0xf0]  ;;  %v76_v57 = vld [vmem:[%s3868_s0 + $0x50] sm:$0xff]  ;;  %v2578_v61 = vld [vmem:[%s3871_s3 + $0x64] sm:$0xf0] }
  0x1a   :  { %v2364_v56 = vor.u32 %v2596_v55, %v2363_v54  ;;  %v77_v58 = vld [vmem:[%s3868_s0 + $0x58] sm:$0xff]  ;;  %v2355_v62 = vld [vmem:[%s3871_s3 + $0xe0] sm:$0xf]  ;;  %v2292_v63 = vor.u32 %v2578_v61, %v2291_v60  ;;  %v2594_v0 = vld [vmem:[%s3871_s3 + $0xe4] sm:$0xf0] }
  0x1b   :  { %844 = vmatpush.bf16.msrb.mxu0 %v2296_v24  ;;  %665 = vmatpush.bf16.msra.mxu2 %v2300_v53  ;;  %v103_v59 = vpack.c.bf16 %v77_v58, %v76_v57  ;;  %v2356_v1 = vor.u32 %v2594_v0, %v2355_v62  ;;  %v2283_v2 = vld [vmem:[%s3871_s3 + $0x50] sm:$0xf]  ;;  %v2576_v3 = vld [vmem:[%s3871_s3 + $0x54] sm:$0xf0]  ;;  %v2275_v8 = vld [vmem:[%s3871_s3 + $0x40] sm:$0xf] }
  0x1c   :  { %933 = vmatpush.bf16.msrb.mxu1 %v2360_v26  ;;  %754 = vmatpush.bf16.msra.mxu3 %v2364_v56  ;;  %v2347_v4 = vld [vmem:[%s3871_s3 + $0xd0] sm:$0xf]  ;;  %v2284_v5 = vor.u32 %v2576_v3, %v2283_v2  ;;  %v2592_v6 = vld [vmem:[%s3871_s3 + $0xd4] sm:$0xf0]  ;;  %v2574_v9 = vld [vmem:[%s3871_s3 + $0x44] sm:$0xf0] }
  0x1d   :  { %v2348_v7 = vor.u32 %v2592_v6, %v2347_v4  ;;  %v2339_v10 = vld [vmem:[%s3871_s3 + $0xc0] sm:$0xf]  ;;  %v2590_v11 = vld [vmem:[%s3871_s3 + $0xc4] sm:$0xf0]  ;;  %v2276_v12 = vor.u32 %v2574_v9, %v2275_v8  ;;  %v2267_v16 = vld [vmem:[%s3871_s3 + $0x30] sm:$0xf] }
  0x1e   :  { %v2340_v13 = vor.u32 %v2590_v11, %v2339_v10  ;;  %v78_v14 = vld [vmem:[%s3868_s0 + $0x60] sm:$0xff]  ;;  %v79_v15 = vld [vmem:[%s3868_s0 + $0x68] sm:$0xff]  ;;  %v2572_v17 = vld [vmem:[%s3871_s3 + $0x34] sm:$0xf0] }
  0x1f   :  { %845 = vmatpush.bf16.msrb.mxu0 %v2288_v36  ;;  %666 = vmatpush.bf16.msra.mxu2 %v2292_v63  ;;  %v2331_v18 = vld [vmem:[%s3871_s3 + $0xb0] sm:$0xf]  ;;  %v104_v19 = vpack.c.bf16 %v79_v15, %v78_v14  ;;  %v2268_v20 = vor.u32 %v2572_v17, %v2267_v16  ;;  %v2588_v21 = vld [vmem:[%s3871_s3 + $0xb4] sm:$0xf0]  ;;  %v2259_v23 = vld [vmem:[%s3871_s3 + $0x20] sm:$0xf] }
  0x20   :  { %934 = vmatpush.bf16.msrb.mxu1 %v2352_v38  ;;  %755 = vmatpush.bf16.msra.mxu3 %v2356_v1  ;;  %v2332_v22 = vor.u32 %v2588_v21, %v2331_v18  ;;  %v2570_v24 = vld [vmem:[%s3871_s3 + $0x24] sm:$0xf0]  ;;  %v2323_v26 = vld [vmem:[%s3871_s3 + $0xa0] sm:$0xf]  ;;  %v2571_v28 = vld [vmem:[%s3871_s3 + $0x34] sm:$0xf] }
  0x21   :  { %v2260_v25 = vor.u32 %v2570_v24, %v2259_v23  ;;  %v2586_v27 = vld [vmem:[%s3871_s3 + $0xa4] sm:$0xf0]  ;;  %v2587_v31 = vld [vmem:[%s3871_s3 + $0xb4] sm:$0xf]  ;;  %v2333_v33 = vld [vmem:[%s3871_s3 + $0xb8] sm:$0xf0] }
  0x22   :  { %v2324_v30 = vor.u32 %v2586_v27, %v2323_v26  ;;  %v2336_v34 = vor.u32 %v2587_v31, %v2333_v33  ;;  %v2251_v35 = vld [vmem:[%s3871_s3 + $0x10] sm:$0xf]  ;;  %v2568_v36 = vld [vmem:[%s3871_s3 + $0x14] sm:$0xf0]  ;;  %v2566_v42 = vld [vmem:[%s3871_s3 + $0x4] sm:$0xf0] }
  0x23   :  { %846 = vmatpush.bf16.msrb.mxu0 %v2280_v48  ;;  %667 = vmatpush.bf16.msra.mxu2 %v2284_v5  ;;  %v2315_v37 = vld [vmem:[%s3871_s3 + $0x90] sm:$0xf]  ;;  %v2252_v38 = vor.u32 %v2568_v36, %v2251_v35  ;;  %v2584_v39 = vld [vmem:[%s3871_s3 + $0x94] sm:$0xf0]  ;;  %v2307_v43 = vld [vmem:[%s3871_s3 + $0x80] sm:$0xf] }
  0x24   :  { %935 = vmatpush.bf16.msrb.mxu1 %v2344_v52  ;;  %756 = vmatpush.bf16.msra.mxu3 %v2348_v7  ;;  %v2316_v40 = vor.u32 %v2584_v39, %v2315_v37  ;;  %v2582_v45 = vld [vmem:[%s3871_s3 + $0x84] sm:$0xf0]  ;;  %v80_v46 = vld [vmem:[%s3868_s0 + $0x70] sm:$0xff]  ;;  %v81_v47 = vld [vmem:[%s3868_s0 + $0x78] sm:$0xff] }
  0x25   :  { %v2308_v48 = vor.u32 %v2582_v45, %v2307_v43  ;;  %v105_v49 = vpack.c.bf16 %v81_v47, %v80_v46  ;;  %v2427_v50 = vld [vmem:[#allocation2 + $0x70] sm:$0xf]  ;;  %v2612_v51 = vld [vmem:[#allocation2 + $0x74] sm:$0xf0]  ;;  %v82_v56 = vld [vmem:[%s3868_s0 + $0x80] sm:$0xff] }
  0x26   :  { %2210 = vmatmul.msk.bf16.gmra.mxu0 %vm144_vm0, %v99_v29  ;;  %v2428_v52 = vor.u32 %v2612_v51, %v2427_v50  ;;  %v2491_v53 = vld [vmem:[#allocation2 + $0xf0] sm:$0xf]  ;;  %v2628_v54 = vld [vmem:[#allocation2 + $0xf4] sm:$0xf0]  ;;  %v83_v57 = vld [vmem:[%s3868_s0 + $0x88] sm:$0xff] }
  0x27   :  { %2226 = vmatmul.msk.bf16.gmra.mxu1 %vm144_vm0, %v99_v29  ;;  %668 = vmatpush.bf16.msra.mxu2 %v2276_v12  ;;  %v2269_v29 = vld [vmem:[%s3871_s3 + $0x38] sm:$0xf0]  ;;  %v2492_v55 = vor.u32 %v2628_v54, %v2491_v53  ;;  %v106_v58 = vpack.c.bf16 %v83_v57, %v82_v56  ;;  %v2569_v0 = vld [vmem:[%s3871_s3 + $0x24] sm:$0xf]  ;;  %v2261_v1 = vld [vmem:[%s3871_s3 + $0x28] sm:$0xf0] }
  0x28   :  { %757 = vmatpush.bf16.msra.mxu3 %v2340_v13  ;;  %936 = vmatpush.bf16.msrb.mxu1 %v2336_v34  ;;  %v2264_v2 = vor.u32 %v2569_v0, %v2261_v1  ;;  %v2585_v3 = vld [vmem:[%s3871_s3 + $0xa4] sm:$0xf]  ;;  %v2325_v4 = vld [vmem:[%s3871_s3 + $0xa8] sm:$0xf0]  ;;  %v84_v16 = vld [vmem:[%s3868_s0 + $0x90] sm:$0xff] }
  0x29   :  { %v2328_v5 = vor.u32 %v2585_v3, %v2325_v4  ;;  %v85_v17 = vld [vmem:[%s3868_s0 + $0x98] sm:$0xff]  ;;  %v2610_v23 = vld [vmem:[#allocation2 + $0x64] sm:$0xf0]  ;;  %v2483_v26 = vld [vmem:[#allocation2 + $0xe0] sm:$0xf] }
  0x2a   :  { %v2626_v27 = vld [vmem:[#allocation2 + $0xe4] sm:$0xf0]  ;;  %v86_v39 = vld [vmem:[%s3868_s0 + $0xa0] sm:$0xff]  ;;  %v2567_v46 = vld [vmem:[%s3871_s3 + $0x14] sm:$0xf] }
  0x2b   :  { %669 = vmatpush.bf16.msra.mxu2 %v2268_v20  ;;  %v107_v20 = vpack.c.bf16 %v85_v17, %v84_v16  ;;  %v2253_v47 = vld [vmem:[%s3871_s3 + $0x18] sm:$0xf0]  ;;  %v88_v0 = vld [vmem:[%s3868_s0 + $0xb0] sm:$0xff] }
  0x2c   :  { %758 = vmatpush.bf16.msra.mxu3 %v2332_v22  ;;  %937 = vmatpush.bf16.msrb.mxu1 %v2328_v5  ;;  %v2419_v22 = vld [vmem:[#allocation2 + $0x60] sm:$0xf]  ;;  %v2317_v50 = vld [vmem:[%s3871_s3 + $0x98] sm:$0xf0] }
  0x2d   :  { %v89_v1 = vld [vmem:[%s3868_s0 + $0xb8] sm:$0xff] }
  0x2e   :  { %v109_v4 = vpack.c.bf16 %v89_v1, %v88_v0 }
  0x2f   :  { %670 = vmatpush.bf16.msra.mxu2 %v2260_v25  ;;  %v2420_v25 = vor.u32 %v2610_v23, %v2419_v22 }
  0x30   :  { %759 = vmatpush.bf16.msra.mxu3 %v2324_v30 }
  0x33   :  { %671 = vmatpush.bf16.msra.mxu2 %v2252_v38 }
  0x34   :  { %760 = vmatpush.bf16.msra.mxu3 %v2316_v40  ;;  %v87_v40 = vld [vmem:[%s3868_s0 + $0xa8] sm:$0xff] }
  0x35   :  { %v108_v43 = vpack.c.bf16 %v87_v40, %v86_v39 }
  0x36   :  { %2211 = vmatmul.msk.bf16.gmra.mxu0 %vm144_vm0, %v100_v32 }
  0x37   :  { %2227 = vmatmul.msk.bf16.gmra.mxu1 %vm144_vm0, %v100_v32  ;;  %v2272_v32 = vor.u32 %v2571_v28, %v2269_v29  ;;  %v2484_v28 = vor.u32 %v2626_v27, %v2483_v26  ;;  %v91_v26 = vld [vmem:[%s3868_s0 + $0xc8] sm:$0xff] }
  0x38   :  { %761 = vmatpush.bf16.msra.mxu3 %v2308_v48  ;;  %v2256_v48 = vor.u32 %v2567_v46, %v2253_v47 }
  0x39   :  { %847 = vmatpush.bf16.msrb.mxu0 %v2272_v32 }
  0x3c   :  { %1404 = vmatpush.bf16.msrb.mxu3 %v2492_v55 }
  0x3d   :  { %848 = vmatpush.bf16.msrb.mxu0 %v2264_v2 }
  0x40   :  { %1405 = vmatpush.bf16.msrb.mxu3 %v2484_v28 }
  0x41   :  { %849 = vmatpush.bf16.msrb.mxu0 %v2256_v48 }
  0x46   :  { %2212 = vmatmul.msk.bf16.gmra.mxu0 %vm144_vm0, %v101_v41 }
  0x47   :  { %2228 = vmatmul.msk.bf16.gmra.mxu1 %vm144_vm0, %v101_v41  ;;  %v2243_v41 = vld [vmem:[%s3871_s3] sm:$0xf] }
  0x56   :  { %2213 = vmatmul.msk.bf16.gmra.mxu0 %vm144_vm0, %v102_v44 }
  0x57   :  { %2229 = vmatmul.msk.bf16.gmra.mxu1 %vm144_vm0, %v102_v44  ;;  %v2244_v44 = vor.u32 %v2566_v42, %v2243_v41 }
  0x59   :  { %672 = vmatpush.bf16.msra.mxu2 %v2244_v44 }
  0x5d   :  { %1315 = vmatpush.bf16.msrb.mxu2 %v2428_v52 }
  0x61   :  { %1316 = vmatpush.bf16.msrb.mxu2 %v2420_v25  ;;  %v90_v25 = vld [vmem:[%s3868_s0 + $0xc0] sm:$0xff] }
  0x66   :  { %2214 = vmatmul.msk.bf16.gmra.mxu0 %vm144_vm0, %v103_v59 }
  0x67   :  { %2230 = vmatmul.msk.bf16.gmra.mxu1 %vm144_vm0, %v103_v59  ;;  %v118_v59 = vld [vmem:[%s3870_s2] sm:$0x3] }
  0x68   :  { %v3209_v62 = vperm.slane %v118_v59, 0  ;;  %v3212_v63 = vperm.slane %v118_v59, 1 }
  0x76   :  { %2215 = vmatmul.msk.bf16.gmra.mxu0 %vm144_vm0, %v104_v19 }
  0x77   :  { %2231 = vmatmul.msk.bf16.gmra.mxu1 %vm144_vm0, %v104_v19 }
  0x86   :  { %2216 = vmatmul.msk.bf16.gmra.mxu0 %vm144_vm0, %v105_v49 }
  0x87   :  { %2232 = vmatmul.msk.bf16.gmra.mxu1 %vm144_vm0, %v105_v49  ;;  %v2583_v49 = vld [vmem:[%s3871_s3 + $0x94] sm:$0xf] }
  0x88   :  { %v2320_v51 = vor.u32 %v2583_v49, %v2317_v50  ;;  %v92_v50 = vld [vmem:[%s3868_s0 + $0xd0] sm:$0xff] }
  0x8a   :  { %938 = vmatpush.bf16.msrb.mxu1 %v2320_v51  ;;  %v93_v51 = vld [vmem:[%s3868_s0 + $0xd8] sm:$0xff] }
  0x93   :  { %v202_v60 = vpop.f32.mrf.mxu0 }
  0x94   :  { %v291_v61 = vpop.f32.mrf.mxu1  ;;  %v203_v6 = vadd.f32 %v202_v60, %v3209_v62 }
  0x95   :  { %v292_v7 = vadd.f32 %v291_v61, %v3212_v63 }
  0x96   :  { %2217 = vmatmul.msk.bf16.gmra.mxu0 %vm144_vm0, %v106_v58  ;;  %v371_v12 = vmax.f32 %v203_v6, 0.0  ;;  %v2411_v6 = vld [vmem:[#allocation2 + $0x50] sm:$0xf] }
  0x97   :  { %2233 = vmatmul.msk.bf16.gmra.mxu1 %vm144_vm0, %v106_v58  ;;  %v372_v14 = vmax.f32 %v292_v7, 0.0  ;;  %v2608_v7 = vld [vmem:[#allocation2 + $0x54] sm:$0xf0] }
  0x9b   :  { %v204_v8 = vpop.f32.mrf.mxu0 }
  0x9c   :  { %v205_v9 = vadd.f32 %v204_v8, %v3209_v62  ;;  %v293_v10 = vpop.f32.mrf.mxu1 }
  0x9d   :  { %v294_v11 = vadd.f32 %v293_v10, %v3212_v63  ;;  %v2475_v10 = vld [vmem:[#allocation2 + $0xd0] sm:$0xf] }
  0x9e   :  { %v373_v13 = vmax.f32 %v205_v9, 0.0  ;;  %v2412_v9 = vor.u32 %v2608_v7, %v2411_v6 }
  0x9f   :  { %v374_v15 = vmax.f32 %v294_v11, 0.0  ;;  %v2624_v11 = vld [vmem:[#allocation2 + $0xd4] sm:$0xf0] }
  0xa0   :  { %v3237_v18 = vpack.c.bf16 %v373_v13, %v371_v12  ;;  %1317 = vmatpush.bf16.msrb.mxu2 %v2412_v9  ;;  %v2476_v12 = vor.u32 %v2624_v11, %v2475_v10 }
  0xa1   :  { %v3239_v19 = vpack.c.bf16 %v374_v15, %v372_v14 }
  0xa2   :  { %673 = vmatmul.bf16.vlgmr.msra.gmra.mxu2 %v3237_v18  ;;  %1406 = vmatpush.bf16.msrb.mxu3 %v2476_v12 }
  0xa3   :  { %762 = vmatmul.bf16.vlgmr.msra.gmra.mxu3 %v3239_v19  ;;  %v207_v21 = vpop.f32.mrf.mxu0 }
  0xa4   :  { %v296_v24 = vpop.f32.mrf.mxu1  ;;  %v208_v29 = vadd.f32 %v207_v21, %v3209_v62 }
  0xa5   :  { %v297_v30 = vadd.f32 %v296_v24, %v3212_v63 }
  0xa6   :  { %2218 = vmatmul.msk.bf16.gmra.mxu0 %vm144_vm0, %v107_v20  ;;  %v375_v35 = vmax.f32 %v208_v29, 0.0  ;;  %v110_v29 = vpack.c.bf16 %v91_v26, %v90_v25  ;;  %v2627_v25 = vld [vmem:[#allocation2 + $0xf4] sm:$0xf]  ;;  %v2493_v26 = vld [vmem:[#allocation2 + $0xf8] sm:$0xf0] }
  0xa7   :  { %2234 = vmatmul.msk.bf16.gmra.mxu1 %vm144_vm0, %v107_v20  ;;  %v376_v37 = vmax.f32 %v297_v30, 0.0 }
  0xab   :  { %v209_v31 = vpop.f32.mrf.mxu0 }
  0xac   :  { %v210_v32 = vadd.f32 %v209_v31, %v3209_v62  ;;  %v298_v33 = vpop.f32.mrf.mxu1 }
  0xad   :  { %v299_v34 = vadd.f32 %v298_v33, %v3212_v63  ;;  %v2245_v33 = vld [vmem:[%s3871_s3 + $0x8] sm:$0xf0] }
  0xae   :  { %v377_v36 = vmax.f32 %v210_v32, 0.0  ;;  %v2565_v32 = vld [vmem:[%s3871_s3 + $0x4] sm:$0xf] }
  0xaf   :  { %v378_v38 = vmax.f32 %v299_v34, 0.0  ;;  %v2248_v34 = vor.u32 %v2565_v32, %v2245_v33 }
  0xb0   :  { %v3255_v41 = vpack.c.bf16 %v377_v36, %v375_v35  ;;  %v2581_v35 = vld [vmem:[%s3871_s3 + $0x84] sm:$0xf]  ;;  %v2309_v36 = vld [vmem:[%s3871_s3 + $0x88] sm:$0xf0] }
  0xb1   :  { %v3257_v42 = vpack.c.bf16 %v378_v38, %v376_v37  ;;  %v2312_v37 = vor.u32 %v2581_v35, %v2309_v36  ;;  %850 = vmatpush.bf16.msrb.mxu0 %v2248_v34 }
  0xb2   :  { %678 = vmatmul.bf16.gmra.mxu2 %v3255_v41 }
  0xb3   :  { %767 = vmatmul.bf16.gmra.mxu3 %v3257_v42  ;;  %v212_v44 = vpop.f32.mrf.mxu0  ;;  %939 = vmatpush.bf16.msrb.mxu1 %v2312_v37 }
  0xb4   :  { %v301_v45 = vpop.f32.mrf.mxu1  ;;  %v213_v52 = vadd.f32 %v212_v44, %v3209_v62 }
  0xb5   :  { %v302_v53 = vadd.f32 %v301_v45, %v3212_v63 }
  0xb6   :  { %2219 = vmatmul.msk.bf16.gmra.mxu0 %vm144_vm0, %v108_v43  ;;  %v379_v58 = vmax.f32 %v213_v52, 0.0 }
  0xb7   :  { %2235 = vmatmul.msk.bf16.gmra.mxu1 %vm144_vm0, %v108_v43  ;;  %v380_v60 = vmax.f32 %v302_v53, 0.0 }
  0xbb   :  { %v214_v54 = vpop.f32.mrf.mxu0 }
  0xbc   :  { %v215_v55 = vadd.f32 %v214_v54, %v3209_v62  ;;  %v303_v56 = vpop.f32.mrf.mxu1  ;;  %v111_v54 = vpack.c.bf16 %v93_v51, %v92_v50 }
  0xbd   :  { %v304_v57 = vadd.f32 %v303_v56, %v3212_v63  ;;  %v2403_v56 = vld [vmem:[#allocation2 + $0x40] sm:$0xf] }
  0xbe   :  { %v381_v59 = vmax.f32 %v215_v55, 0.0 }
  0xbf   :  { %v382_v61 = vmax.f32 %v304_v57, 0.0  ;;  %v2606_v57 = vld [vmem:[#allocation2 + $0x44] sm:$0xf0] }
  0xc0   :  { %v3285_v2 = vpack.c.bf16 %v381_v59, %v379_v58  ;;  %v2404_v59 = vor.u32 %v2606_v57, %v2403_v56 }
  0xc1   :  { %v3287_v3 = vpack.c.bf16 %v382_v61, %v380_v60  ;;  %v2467_v60 = vld [vmem:[#allocation2 + $0xc0] sm:$0xf]  ;;  %v2622_v61 = vld [vmem:[#allocation2 + $0xc4] sm:$0xf0] }
  0xc2   :  { %683 = vmatmul.bf16.gmra.mxu2 %v3285_v2  ;;  %v2468_v0 = vor.u32 %v2622_v61, %v2467_v60 }
  0xc3   :  { %772 = vmatmul.bf16.gmra.mxu3 %v3287_v3  ;;  %v217_v5 = vpop.f32.mrf.mxu0  ;;  %1318 = vmatpush.bf16.msrb.mxu2 %v2404_v59 }
  0xc4   :  { %v306_v8 = vpop.f32.mrf.mxu1  ;;  %v218_v13 = vadd.f32 %v217_v5, %v3209_v62  ;;  %1407 = vmatpush.bf16.msrb.mxu3 %v2468_v0 }
  0xc5   :  { %v307_v14 = vadd.f32 %v306_v8, %v3212_v63 }
  0xc6   :  { %2220 = vmatmul.msk.bf16.gmra.mxu0 %vm144_vm0, %v109_v4  ;;  %v383_v21 = vmax.f32 %v218_v13, 0.0  ;;  %v94_v13 = vld [vmem:[%s3868_s0 + $0xe0] sm:$0xff] }
  0xc7   :  { %2236 = vmatmul.msk.bf16.gmra.mxu1 %vm144_vm0, %v109_v4  ;;  %v384_v23 = vmax.f32 %v307_v14, 0.0  ;;  %v95_v14 = vld [vmem:[%s3868_s0 + $0xe8] sm:$0xff] }
  0xcb   :  { %v219_v15 = vpop.f32.mrf.mxu0 }
  0xcc   :  { %v220_v16 = vadd.f32 %v219_v15, %v3209_v62  ;;  %v308_v17 = vpop.f32.mrf.mxu1 }
  0xcd   :  { %v309_v20 = vadd.f32 %v308_v17, %v3212_v63  ;;  %v112_v17 = vpack.c.bf16 %v95_v14, %v94_v13  ;;  %v2421_v13 = vld [vmem:[#allocation2 + $0x68] sm:$0xf0]  ;;  %v2625_v14 = vld [vmem:[#allocation2 + $0xe4] sm:$0xf] }
  0xce   :  { %v385_v22 = vmax.f32 %v220_v16, 0.0 }
  0xcf   :  { %v386_v24 = vmax.f32 %v309_v20, 0.0 }
  0xd0   :  { %v3303_v27 = vpack.c.bf16 %v385_v22, %v383_v21  ;;  %v2611_v22 = vld [vmem:[#allocation2 + $0x74] sm:$0xf] }
  0xd1   :  { %v3305_v28 = vpack.c.bf16 %v386_v24, %v384_v23  ;;  %v2429_v23 = vld [vmem:[#allocation2 + $0x78] sm:$0xf0] }
  0xd2   :  { %688 = vmatmul.bf16.gmra.mxu2 %v3303_v27  ;;  %v2432_v24 = vor.u32 %v2611_v22, %v2429_v23  ;;  %v2485_v22 = vld [vmem:[#allocation2 + $0xe8] sm:$0xf0] }
  0xd3   :  { %777 = vmatmul.bf16.gmra.mxu3 %v3305_v28  ;;  %v222_v30 = vpop.f32.mrf.mxu0 }
  0xd4   :  { %v311_v31 = vpop.f32.mrf.mxu1  ;;  %v223_v38 = vadd.f32 %v222_v30, %v3209_v62  ;;  %1493 = vmatpush.bf16.msra.mxu0 %v2432_v24 }
  0xd5   :  { %v312_v39 = vadd.f32 %v311_v31, %v3212_v63 }
  0xd6   :  { %2221 = vmatmul.msk.bf16.gmra.mxu0 %vm144_vm0, %v110_v29  ;;  %v387_v46 = vmax.f32 %v223_v38, 0.0 }
  0xd7   :  { %2237 = vmatmul.msk.bf16.gmra.mxu1 %vm144_vm0, %v110_v29  ;;  %v388_v48 = vmax.f32 %v312_v39, 0.0  ;;  %v2496_v29 = vor.u32 %v2627_v25, %v2493_v26  ;;  %v2488_v25 = vor.u32 %v2625_v14, %v2485_v22 }
  0xd9   :  { %1582 = vmatpush.bf16.msra.mxu1 %v2496_v29 }
  0xdb   :  { %v224_v40 = vpop.f32.mrf.mxu0 }
  0xdc   :  { %v225_v43 = vadd.f32 %v224_v40, %v3209_v62  ;;  %v313_v44 = vpop.f32.mrf.mxu1  ;;  %v96_v40 = vld [vmem:[%s3868_s0 + $0xf0] sm:$0xff] }
  0xdd   :  { %v314_v45 = vadd.f32 %v313_v44, %v3212_v63  ;;  %1583 = vmatpush.bf16.msra.mxu1 %v2488_v25 }
  0xde   :  { %v389_v47 = vmax.f32 %v225_v43, 0.0  ;;  %v97_v43 = vld [vmem:[%s3868_s0 + $0xf8] sm:$0xff] }
  0xdf   :  { %v390_v49 = vmax.f32 %v314_v45, 0.0 }
  0xe0   :  { %v3333_v52 = vpack.c.bf16 %v389_v47, %v387_v46  ;;  %v113_v46 = vpack.c.bf16 %v97_v43, %v96_v40 }
  0xe1   :  { %v3335_v53 = vpack.c.bf16 %v390_v49, %v388_v48  ;;  %v2395_v48 = vld [vmem:[#allocation2 + $0x30] sm:$0xf]  ;;  %v2604_v49 = vld [vmem:[#allocation2 + $0x34] sm:$0xf0] }
  0xe2   :  { %693 = vmatmul.bf16.gmra.mxu2 %v3333_v52  ;;  %v2396_v51 = vor.u32 %v2604_v49, %v2395_v48  ;;  %v2618_v48 = vld [vmem:[#allocation2 + $0xa4] sm:$0xf0] }
  0xe3   :  { %782 = vmatmul.bf16.gmra.mxu3 %v3335_v53  ;;  %v227_v55 = vpop.f32.mrf.mxu0 }
  0xe4   :  { %v316_v58 = vpop.f32.mrf.mxu1  ;;  %v228_v1 = vadd.f32 %v227_v55, %v3209_v62  ;;  %1319 = vmatpush.bf16.msrb.mxu2 %v2396_v51  ;;  %v2620_v55 = vld [vmem:[#allocation2 + $0xb4] sm:$0xf0] }
  0xe5   :  { %v317_v4 = vadd.f32 %v316_v58, %v3212_v63 }
  0xe6   :  { %2222 = vmatmul.msk.bf16.gmra.mxu0 %vm144_vm0, %v111_v54  ;;  %v391_v9 = vmax.f32 %v228_v1, 0.0 }
  0xe7   :  { %2238 = vmatmul.msk.bf16.gmra.mxu1 %vm144_vm0, %v111_v54  ;;  %v392_v11 = vmax.f32 %v317_v4, 0.0  ;;  %v2459_v54 = vld [vmem:[#allocation2 + $0xb0] sm:$0xf] }
  0xe8   :  { %v2460_v56 = vor.u32 %v2620_v55, %v2459_v54 }
  0xea   :  { %1408 = vmatpush.bf16.msrb.mxu3 %v2460_v56 }
  0xeb   :  { %v229_v5 = vpop.f32.mrf.mxu0 }
  0xec   :  { %v230_v6 = vadd.f32 %v229_v5, %v3209_v62  ;;  %v318_v7 = vpop.f32.mrf.mxu1 }
  0xed   :  { %v319_v8 = vadd.f32 %v318_v7, %v3212_v63 }
  0xee   :  { %v393_v10 = vmax.f32 %v230_v6, 0.0 }
  0xef   :  { %v394_v12 = vmax.f32 %v319_v8, 0.0 }
  0xf0   :  { %v3351_v15 = vpack.c.bf16 %v393_v10, %v391_v9 }
  0xf1   :  { %v3353_v16 = vpack.c.bf16 %v394_v12, %v392_v11  ;;  %v2609_v12 = vld [vmem:[#allocation2 + $0x64] sm:$0xf] }
  0xf2   :  { %698 = vmatmul.bf16.gmra.mxu2 %v3351_v15 }
  0xf3   :  { %787 = vmatmul.bf16.gmra.mxu3 %v3353_v16  ;;  %v232_v20 = vpop.f32.mrf.mxu0 }
  0xf4   :  { %v321_v21 = vpop.f32.mrf.mxu1  ;;  %v233_v30 = vadd.f32 %v232_v20, %v3209_v62 }
  0xf5   :  { %v322_v31 = vadd.f32 %v321_v21, %v3212_v63  ;;  %v2424_v21 = vor.u32 %v2609_v12, %v2421_v13 }
  0xf6   :  { %2223 = vmatmul.msk.bf16.gmra.mxu0 %vm144_vm0, %v112_v17  ;;  %v395_v36 = vmax.f32 %v233_v30, 0.0 }
  0xf7   :  { %2239 = vmatmul.msk.bf16.gmra.mxu1 %vm144_vm0, %v112_v17  ;;  %v396_v38 = vmax.f32 %v322_v31, 0.0  ;;  %1494 = vmatpush.bf16.msra.mxu0 %v2424_v21  ;;  %v3396_v31 = vld [vmem:[%s3872_s4] sm:$0x3] }
  0xfb   :  { %v234_v32 = vpop.f32.mrf.mxu0 }
  0xfc   :  { %v235_v33 = vadd.f32 %v234_v32, %v3209_v62  ;;  %v323_v34 = vpop.f32.mrf.mxu1 }
  0xfd   :  { %v324_v35 = vadd.f32 %v323_v34, %v3212_v63  ;;  %v3404_v34 = vperm.slane %v3396_v31, 0 }
  0xfe   :  { %v397_v37 = vmax.f32 %v235_v33, 0.0 }
  0xff   :  { %v398_v39 = vmax.f32 %v324_v35, 0.0 }
 0x100   :  { %v3369_v44 = vpack.c.bf16 %v397_v37, %v395_v36  ;;  %v2387_v36 = vld [vmem:[#allocation2 + $0x20] sm:$0xf]  ;;  %v2602_v37 = vld [vmem:[#allocation2 + $0x24] sm:$0xf0] }
 0x101   :  { %v3371_v45 = vpack.c.bf16 %v398_v39, %v396_v38  ;;  %v2388_v39 = vor.u32 %v2602_v37, %v2387_v36 }
 0x102   :  { %703 = vmatmul.bf16.gmra.mxu2 %v3369_v44 }
 0x103   :  { %792 = vmatmul.bf16.gmra.mxu3 %v3371_v45  ;;  %v237_v47 = vpop.f32.mrf.mxu0  ;;  %1320 = vmatpush.bf16.msrb.mxu2 %v2388_v39 }
 0x104   :  { %v326_v50 = vpop.f32.mrf.mxu1  ;;  %v238_v57 = vadd.f32 %v237_v47, %v3209_v62  ;;  %v2451_v47 = vld [vmem:[#allocation2 + $0xa0] sm:$0xf] }
 0x105   :  { %v327_v58 = vadd.f32 %v326_v50, %v3212_v63  ;;  %v2452_v50 = vor.u32 %v2618_v48, %v2451_v47 }
 0x106   :  { %2224 = vmatmul.msk.bf16.gmra.mxu0 %vm144_vm0, %v113_v46  ;;  %v399_v1 = vmax.f32 %v238_v57, 0.0 }
 0x107   :  { %2240 = vmatmul.msk.bf16.gmra.mxu1 %vm144_vm0, %v113_v46  ;;  %v400_v5 = vmax.f32 %v327_v58, 0.0  ;;  %1409 = vmatpush.bf16.msrb.mxu3 %v2452_v50 }
 0x10b   :  { %v239_v59 = vpop.f32.mrf.mxu0 }
 0x10c   :  { %v240_v60 = vadd.f32 %v239_v59, %v3209_v62  ;;  %v328_v61 = vpop.f32.mrf.mxu1 }
 0x10d   :  { %v329_v0 = vadd.f32 %v328_v61, %v3212_v63 }
 0x10e   :  { %v401_v4 = vmax.f32 %v240_v60, 0.0 }
 0x10f   :  { %v402_v6 = vmax.f32 %v329_v0, 0.0 }
 0x110   :  { %v3381_v7 = vpack.c.bf16 %v401_v4, %v399_v1 }
 0x111   :  { %v3383_v8 = vpack.c.bf16 %v402_v6, %v400_v5 }
 0x112   :  { %708 = vmatmul.bf16.gmra.mxu2 %v3381_v7 }
 0x113   :  { %797 = vmatmul.bf16.gmra.mxu3 %v3383_v8  ;;  %v242_v9 = vpop.f32.mrf.mxu0 }
 0x114   :  { %v331_v10 = vpop.f32.mrf.mxu1  ;;  %v243_v11 = vadd.f32 %v242_v9, %v3209_v62 }
 0x115   :  { %v332_v17 = vadd.f32 %v331_v10, %v3212_v63 }
 0x116   :  { %851 = vmatmul.bf16.vlgmr.msrb.gmra.mxu0 %v3237_v18  ;;  %v403_v18 = vmax.f32 %v243_v11, 0.0 }
 0x117   :  { %940 = vmatmul.bf16.vlgmr.msrb.gmra.mxu1 %v3239_v19  ;;  %v404_v19 = vmax.f32 %v332_v17, 0.0 }
 0x11b   :  { %v244_v20 = vpop.f32.mrf.mxu0 }
 0x11c   :  { %v245_v23 = vadd.f32 %v244_v20, %v3209_v62  ;;  %v333_v24 = vpop.f32.mrf.mxu1 }
 0x11d   :  { %v334_v26 = vadd.f32 %v333_v24, %v3212_v63  ;;  %v2413_v24 = vld [vmem:[#allocation2 + $0x58] sm:$0xf0] }
 0x11e   :  { %v405_v29 = vmax.f32 %v245_v23, 0.0  ;;  %v2607_v23 = vld [vmem:[#allocation2 + $0x54] sm:$0xf] }
 0x11f   :  { %v406_v30 = vmax.f32 %v334_v26, 0.0 }
 0x120   :  { %v3398_v32 = vpack.c.bf16 %v405_v29, %v403_v18  ;;  %v2416_v18 = vor.u32 %v2607_v23, %v2413_v24  ;;  %v2623_v29 = vld [vmem:[#allocation2 + $0xd4] sm:$0xf] }
 0x121   :  { %v3400_v33 = vpack.c.bf16 %v406_v30, %v404_v19  ;;  %v2477_v19 = vld [vmem:[#allocation2 + $0xd8] sm:$0xf0] }
 0x122   :  { %713 = vmatmul.bf16.gmra.mxu2 %v3398_v32  ;;  %v2480_v36 = vor.u32 %v2623_v29, %v2477_v19  ;;  %1495 = vmatpush.bf16.msra.mxu0 %v2416_v18 }
 0x123   :  { %802 = vmatmul.bf16.gmra.mxu3 %v3400_v33  ;;  %v247_v35 = vpop.f32.mrf.mxu0 }
 0x124   :  { %v336_v38 = vpop.f32.mrf.mxu1  ;;  %v248_v51 = vadd.f32 %v247_v35, %v3209_v62  ;;  %1584 = vmatpush.bf16.msra.mxu1 %v2480_v36 }
 0x125   :  { %v674_v40 = vpop.f32.mrf.mxu2  ;;  %v337_v54 = vadd.f32 %v336_v38, %v3212_v63 }
 0x126   :  { %v675_v43 = vadd.f32 %v674_v40, %v3404_v34  ;;  %v763_v46 = vpop.f32.mrf.mxu3  ;;  %856 = vmatmul.bf16.gmra.mxu0 %v3255_v41  ;;  %v407_v41 = vmax.f32 %v248_v51, 0.0 }
 0x127   :  { %945 = vmatmul.bf16.gmra.mxu1 %v3257_v42  ;;  %v408_v0 = vmax.f32 %v337_v54, 0.0 }
 0x128   :  { %v764_v49 = vadd.f32 %v763_v46, %v675_v43 }
 0x12a   :  { %v1021_v9 = vmax.f32 %v764_v49, 0.0 }
 0x12b   :  { %v249_v55 = vpop.f32.mrf.mxu0 }
 0x12c   :  { %v250_v56 = vadd.f32 %v249_v55, %v3209_v62  ;;  %v338_v57 = vpop.f32.mrf.mxu1  ;;  %v2379_v55 = vld [vmem:[#allocation2 + $0x10] sm:$0xf] }
 0x12d   :  { %v339_v58 = vadd.f32 %v338_v57, %v3212_v63  ;;  %v676_v59 = vpop.f32.mrf.mxu2 }
 0x12e   :  { %v409_v60 = vmax.f32 %v250_v56, 0.0  ;;  %v677_v42 = vadd.f32 %v676_v59, %v3404_v34  ;;  %v765_v61 = vpop.f32.mrf.mxu3  ;;  %v2600_v56 = vld [vmem:[#allocation2 + $0x14] sm:$0xf0] }
 0x12f   :  { %v410_v1 = vmax.f32 %v339_v58, 0.0  ;;  %v2380_v58 = vor.u32 %v2600_v56, %v2379_v55 }
 0x130   :  { %v766_v4 = vadd.f32 %v765_v61, %v677_v42  ;;  %v3415_v5 = vpack.c.bf16 %v409_v60, %v407_v41  ;;  %v2443_v61 = vld [vmem:[#allocation2 + $0x90] sm:$0xf] }
 0x131   :  { %v3417_v6 = vpack.c.bf16 %v410_v1, %v408_v0  ;;  %1321 = vmatpush.bf16.msrb.mxu2 %v2380_v58  ;;  %v2616_v0 = vld [vmem:[#allocation2 + $0x94] sm:$0xf0] }
 0x132   :  { %v1023_v10 = vmax.f32 %v766_v4, 0.0  ;;  %718 = vmatmul.bf16.gmra.mxu2 %v3415_v5  ;;  %v2444_v4 = vor.u32 %v2616_v0, %v2443_v61 }
 0x133   :  { %807 = vmatmul.bf16.gmra.mxu3 %v3417_v6  ;;  %v252_v11 = vpop.f32.mrf.mxu0 }
 0x134   :  { %v3421_v12 = vpack.c.bf16 %v1023_v10, %v1021_v9  ;;  %v341_v13 = vpop.f32.mrf.mxu1  ;;  %v253_v22 = vadd.f32 %v252_v11, %v3209_v62  ;;  %1410 = vmatpush.bf16.msrb.mxu3 %v2444_v4 }
 0x135   :  { %v679_v14 = vpop.f32.mrf.mxu2  ;;  %v342_v25 = vadd.f32 %v341_v13, %v3212_v63 }
 0x136   :  { %v680_v17 = vadd.f32 %v679_v14, %v3404_v34  ;;  %v768_v20 = vpop.f32.mrf.mxu3  ;;  %861 = vmatmul.bf16.gmra.mxu0 %v3285_v2 }
 0x137   :  { %950 = vmatmul.bf16.gmra.mxu1 %v3287_v3  ;;  %v411_v3 = vmax.f32 %v253_v22, 0.0  ;;  %v412_v43 = vmax.f32 %v342_v25, 0.0 }
 0x138   :  { %v769_v21 = vadd.f32 %v768_v20, %v680_v17 }
 0x13a   :  { %v1025_v50 = vmax.f32 %v769_v21, 0.0 }
 0x13b   :  { %v254_v26 = vpop.f32.mrf.mxu0 }
 0x13c   :  { %v255_v30 = vadd.f32 %v254_v26, %v3209_v62  ;;  %v343_v35 = vpop.f32.mrf.mxu1 }
 0x13d   :  { %v344_v37 = vadd.f32 %v343_v35, %v3212_v63  ;;  %v681_v2 = vpop.f32.mrf.mxu2 }
 0x13e   :  { %v413_v38 = vmax.f32 %v255_v30, 0.0  ;;  %v682_v39 = vadd.f32 %v681_v2, %v3404_v34  ;;  %v770_v40 = vpop.f32.mrf.mxu3 }
 0x13f   :  { %v414_v46 = vmax.f32 %v344_v37, 0.0 }
 0x140   :  { %v771_v47 = vadd.f32 %v770_v40, %v682_v39  ;;  %v3431_v48 = vpack.c.bf16 %v413_v38, %v411_v3  ;;  %v2605_v40 = vld [vmem:[#allocation2 + $0x44] sm:$0xf] }
 0x141   :  { %v3433_v49 = vpack.c.bf16 %v414_v46, %v412_v43  ;;  %v2405_v43 = vld [vmem:[#allocation2 + $0x48] sm:$0xf0] }
 0x142   :  { %v1027_v51 = vmax.f32 %v771_v47, 0.0  ;;  %723 = vmatmul.bf16.gmra.mxu2 %v3431_v48 }
 0x143   :  { %812 = vmatmul.bf16.gmra.mxu3 %v3433_v49  ;;  %v257_v54 = vpop.f32.mrf.mxu0 }
 0x144   :  { %v346_v57 = vpop.f32.mrf.mxu1  ;;  %v3437_v59 = vpack.c.bf16 %v1027_v51, %v1025_v50  ;;  %v258_v9 = vadd.f32 %v257_v54, %v3209_v62  ;;  %v2408_v50 = vor.u32 %v2605_v40, %v2405_v43  ;;  %v2621_v51 = vld [vmem:[#allocation2 + $0xc4] sm:$0xf]  ;;  %v2469_v54 = vld [vmem:[#allocation2 + $0xc8] sm:$0xf0] }
 0x145   :  { %v684_v41 = vpop.f32.mrf.mxu2  ;;  %v347_v10 = vadd.f32 %v346_v57, %v3212_v63  ;;  %v2472_v57 = vor.u32 %v2621_v51, %v2469_v54 }
 0x146   :  { %v685_v60 = vadd.f32 %v684_v41, %v3404_v34  ;;  %v773_v42 = vpop.f32.mrf.mxu3  ;;  %866 = vmatmul.bf16.gmra.mxu0 %v3303_v27  ;;  %v415_v27 = vmax.f32 %v258_v9, 0.0 }
 0x147   :  { %955 = vmatmul.bf16.gmra.mxu1 %v3305_v28  ;;  %v416_v23 = vmax.f32 %v347_v10, 0.0  ;;  %1496 = vmatpush.bf16.msra.mxu0 %v2408_v50 }
 0x148   :  { %v774_v1 = vadd.f32 %v773_v42, %v685_v60  ;;  %1585 = vmatpush.bf16.msra.mxu1 %v2472_v57 }
 0x14a   :  { %v1029_v29 = vmax.f32 %v774_v1, 0.0 }
 0x14b   :  { %v259_v11 = vpop.f32.mrf.mxu0 }
 0x14c   :  { %v260_v13 = vadd.f32 %v259_v11, %v3209_v62  ;;  %v348_v14 = vpop.f32.mrf.mxu1 }
 0x14d   :  { %v349_v17 = vadd.f32 %v348_v14, %v3212_v63  ;;  %v686_v20 = vpop.f32.mrf.mxu2  ;;  %v2371_v14 = vld [vmem:[#allocation2] sm:$0xf] }
 0x14e   :  { %v417_v21 = vmax.f32 %v260_v13, 0.0  ;;  %v687_v28 = vadd.f32 %v686_v20, %v3404_v34  ;;  %v775_v22 = vpop.f32.mrf.mxu3 }
 0x14f   :  { %v418_v24 = vmax.f32 %v349_v17, 0.0  ;;  %v2598_v17 = vld [vmem:[#allocation2 + $0x4] sm:$0xf0] }
 0x150   :  { %v776_v25 = vadd.f32 %v775_v22, %v687_v28  ;;  %v3447_v26 = vpack.c.bf16 %v417_v21, %v415_v27  ;;  %v2372_v27 = vor.u32 %v2598_v17, %v2371_v14  ;;  %v2619_v14 = vld [vmem:[#allocation2 + $0xb4] sm:$0xf]  ;;  %v2461_v17 = vld [vmem:[#allocation2 + $0xb8] sm:$0xf0] }
 0x151   :  { %v3449_v18 = vpack.c.bf16 %v418_v24, %v416_v23  ;;  %v2435_v24 = vld [vmem:[#allocation2 + $0x80] sm:$0xf] }
 0x152   :  { %v1031_v19 = vmax.f32 %v776_v25, 0.0  ;;  %728 = vmatmul.bf16.gmra.mxu2 %v3447_v26  ;;  %v2614_v25 = vld [vmem:[#allocation2 + $0x84] sm:$0xf0] }
 0x153   :  { %817 = vmatmul.bf16.gmra.mxu3 %v3449_v18  ;;  %v262_v30 = vpop.f32.mrf.mxu0  ;;  %1322 = vmatpush.bf16.msrb.mxu2 %v2372_v27 }
 0x154   :  { %v351_v35 = vpop.f32.mrf.mxu1  ;;  %v3453_v36 = vpack.c.bf16 %v1031_v19, %v1029_v29  ;;  %v263_v39 = vadd.f32 %v262_v30, %v3209_v62  ;;  %v2436_v19 = vor.u32 %v2614_v25, %v2435_v24 }
 0x155   :  { %v689_v37 = vpop.f32.mrf.mxu2  ;;  %v352_v46 = vadd.f32 %v351_v35, %v3212_v63 }
 0x156   :  { %v690_v2 = vadd.f32 %v689_v37, %v3404_v34  ;;  %v778_v3 = vpop.f32.mrf.mxu3  ;;  %871 = vmatmul.bf16.gmra.mxu0 %v3333_v52  ;;  %1411 = vmatpush.bf16.msrb.mxu3 %v2436_v19 }
 0x157   :  { %960 = vmatmul.bf16.gmra.mxu1 %v3335_v53  ;;  %v419_v53 = vmax.f32 %v263_v39, 0.0  ;;  %v420_v61 = vmax.f32 %v352_v46, 0.0 }
 0x158   :  { %v779_v38 = vadd.f32 %v778_v3, %v690_v2 }
 0x15a   :  { %v1033_v10 = vmax.f32 %v779_v38, 0.0 }
 0x15b   :  { %v264_v47 = vpop.f32.mrf.mxu0 }
 0x15c   :  { %v265_v55 = vadd.f32 %v264_v47, %v3209_v62  ;;  %v353_v56 = vpop.f32.mrf.mxu1 }
 0x15d   :  { %v354_v58 = vadd.f32 %v353_v56, %v3212_v63  ;;  %v691_v52 = vpop.f32.mrf.mxu2 }
 0x15e   :  { %v421_v41 = vmax.f32 %v265_v55, 0.0  ;;  %v692_v60 = vadd.f32 %v691_v52, %v3404_v34  ;;  %v780_v42 = vpop.f32.mrf.mxu3 }
 0x15f   :  { %v422_v0 = vmax.f32 %v354_v58, 0.0 }
 0x160   :  { %v781_v1 = vadd.f32 %v780_v42, %v692_v60  ;;  %v3463_v4 = vpack.c.bf16 %v421_v41, %v419_v53 }
 0x161   :  { %v3465_v9 = vpack.c.bf16 %v422_v0, %v420_v61  ;;  %v2603_v0 = vld [vmem:[#allocation2 + $0x34] sm:$0xf] }
 0x162   :  { %v1035_v11 = vmax.f32 %v781_v1, 0.0  ;;  %733 = vmatmul.bf16.gmra.mxu2 %v3463_v4  ;;  %v2397_v1 = vld [vmem:[#allocation2 + $0x38] sm:$0xf0] }
 0x163   :  { %822 = vmatmul.bf16.gmra.mxu3 %v3465_v9  ;;  %v267_v13 = vpop.f32.mrf.mxu0 }
 0x164   :  { %v356_v20 = vpop.f32.mrf.mxu1  ;;  %v3469_v21 = vpack.c.bf16 %v1035_v11, %v1033_v10  ;;  %v268_v30 = vadd.f32 %v267_v13, %v3209_v62  ;;  %v2400_v13 = vor.u32 %v2603_v0, %v2397_v1 }
 0x165   :  { %v694_v28 = vpop.f32.mrf.mxu2  ;;  %v357_v35 = vadd.f32 %v356_v20, %v3212_v63 }
 0x166   :  { %v695_v22 = vadd.f32 %v694_v28, %v3404_v34  ;;  %v783_v23 = vpop.f32.mrf.mxu3  ;;  %876 = vmatmul.bf16.gmra.mxu0 %v3351_v15  ;;  %v423_v15 = vmax.f32 %v268_v30, 0.0  ;;  %v2464_v28 = vor.u32 %v2619_v14, %v2461_v17 }
 0x167   :  { %965 = vmatmul.bf16.gmra.mxu1 %v3353_v16  ;;  %v424_v46 = vmax.f32 %v357_v35, 0.0  ;;  %1497 = vmatpush.bf16.msra.mxu0 %v2400_v13 }
 0x168   :  { %v784_v29 = vadd.f32 %v783_v23, %v695_v22  ;;  %1586 = vmatpush.bf16.msra.mxu1 %v2464_v28 }
 0x16a   :  { %v1037_v55 = vmax.f32 %v784_v29, 0.0 }
 0x16b   :  { %v269_v37 = vpop.f32.mrf.mxu0 }
 0x16c   :  { %v270_v2 = vadd.f32 %v269_v37, %v3209_v62  ;;  %v358_v3 = vpop.f32.mrf.mxu1 }
 0x16d   :  { %v359_v38 = vadd.f32 %v358_v3, %v3212_v63  ;;  %v696_v39 = vpop.f32.mrf.mxu2 }
 0x16e   :  { %v425_v40 = vmax.f32 %v270_v2, 0.0  ;;  %v697_v16 = vadd.f32 %v696_v39, %v3404_v34  ;;  %v785_v43 = vpop.f32.mrf.mxu3 }
 0x16f   :  { %v426_v47 = vmax.f32 %v359_v38, 0.0  ;;  %v2636_v38 = vld [vmem:[#allocation5 + $0x38] sm:$0xff] }
 0x170   :  { %v786_v50 = vadd.f32 %v785_v43, %v697_v16  ;;  %v3479_v51 = vpack.c.bf16 %v425_v40, %v423_v15  ;;  %1899 = vmatpush.bf16.msra.mxu2 %v2636_v38 }
 0x171   :  { %v3481_v54 = vpack.c.bf16 %v426_v47, %v424_v46 }
 0x172   :  { %v1039_v56 = vmax.f32 %v786_v50, 0.0  ;;  %738 = vmatmul.bf16.gmra.mxu2 %v3479_v51  ;;  %v2644_v50 = vld [vmem:[#allocation5 + $0x78] sm:$0xff] }
 0x173   :  { %827 = vmatmul.bf16.gmra.mxu3 %v3481_v54  ;;  %v272_v57 = vpop.f32.mrf.mxu0 }
 0x174   :  { %v361_v58 = vpop.f32.mrf.mxu1  ;;  %v3485_v52 = vpack.c.bf16 %v1039_v56, %v1037_v55  ;;  %v273_v61 = vadd.f32 %v272_v57, %v3209_v62  ;;  %1988 = vmatpush.bf16.msra.mxu3 %v2644_v50 }
 0x175   :  { %v699_v53 = vpop.f32.mrf.mxu2  ;;  %v362_v10 = vadd.f32 %v361_v58, %v3212_v63 }
 0x176   :  { %v700_v41 = vadd.f32 %v699_v53, %v3404_v34  ;;  %v788_v60 = vpop.f32.mrf.mxu3  ;;  %881 = vmatmul.bf16.gmra.mxu0 %v3369_v44 }
 0x177   :  { %970 = vmatmul.bf16.gmra.mxu1 %v3371_v45  ;;  %v427_v45 = vmax.f32 %v273_v61, 0.0  ;;  %v428_v29 = vmax.f32 %v362_v10, 0.0 }
 0x178   :  { %v789_v42 = vadd.f32 %v788_v60, %v700_v41 }
 0x17a   :  { %v1041_v2 = vmax.f32 %v789_v42, 0.0 }
 0x17b   :  { %v274_v11 = vpop.f32.mrf.mxu0 }
 0x17c   :  { %v275_v20 = vadd.f32 %v274_v11, %v3209_v62  ;;  %v363_v27 = vpop.f32.mrf.mxu1 }
 0x17d   :  { %v364_v22 = vadd.f32 %v363_v27, %v3212_v63  ;;  %v701_v44 = vpop.f32.mrf.mxu2 }
 0x17e   :  { %v429_v23 = vmax.f32 %v275_v20, 0.0  ;;  %v702_v24 = vadd.f32 %v701_v44, %v3404_v34  ;;  %v790_v25 = vpop.f32.mrf.mxu3 }
 0x17f   :  { %v430_v19 = vmax.f32 %v364_v22, 0.0 }
 0x180   :  { %v791_v30 = vadd.f32 %v790_v25, %v702_v24  ;;  %v3495_v35 = vpack.c.bf16 %v429_v23, %v427_v45  ;;  %v2601_v24 = vld [vmem:[#allocation2 + $0x24] sm:$0xf]  ;;  %v2389_v25 = vld [vmem:[#allocation2 + $0x28] sm:$0xf0] }
 0x181   :  { %v3497_v37 = vpack.c.bf16 %v430_v19, %v428_v29  ;;  %v2392_v19 = vor.u32 %v2601_v24, %v2389_v25 }
 0x182   :  { %v1043_v3 = vmax.f32 %v791_v30, 0.0  ;;  %743 = vmatmul.bf16.gmra.mxu2 %v3495_v35  ;;  %v2453_v30 = vld [vmem:[#allocation2 + $0xa8] sm:$0xf0] }
 0x183   :  { %832 = vmatmul.bf16.gmra.mxu3 %v3497_v37  ;;  %v277_v39 = vpop.f32.mrf.mxu0  ;;  %1498 = vmatpush.bf16.msra.mxu0 %v2392_v19 }
 0x184   :  { %v366_v15 = vpop.f32.mrf.mxu1  ;;  %v3501_v40 = vpack.c.bf16 %v1043_v3, %v1041_v2  ;;  %v278_v55 = vadd.f32 %v277_v39, %v3209_v62 }
 0x185   :  { %v704_v16 = vpop.f32.mrf.mxu2  ;;  %v367_v56 = vadd.f32 %v366_v15, %v3212_v63 }
 0x186   :  { %v705_v43 = vadd.f32 %v704_v16, %v3404_v34  ;;  %v793_v46 = vpop.f32.mrf.mxu3  ;;  %886 = vmatmul.bf16.gmra.mxu0 %v3381_v7  ;;  %v431_v42 = vmax.f32 %v278_v55, 0.0 }
 0x187   :  { %975 = vmatmul.bf16.gmra.mxu1 %v3383_v8  ;;  %v432_v8 = vmax.f32 %v367_v56, 0.0 }
 0x188   :  { %v794_v47 = vadd.f32 %v793_v46, %v705_v43 }
 0x18a   :  { %v1045_v14 = vmax.f32 %v794_v47, 0.0 }
 0x18b   :  { %v279_v57 = vpop.f32.mrf.mxu0 }
 0x18c   :  { %v280_v58 = vadd.f32 %v279_v57, %v3209_v62  ;;  %v368_v53 = vpop.f32.mrf.mxu1  ;;  %v2635_v57 = vld [vmem:[#allocation5 + $0x30] sm:$0xff] }
 0x18d   :  { %v369_v41 = vadd.f32 %v368_v53, %v3212_v63  ;;  %v706_v60 = vpop.f32.mrf.mxu2  ;;  %v3518_v63 = vperm.slane %v3396_v31, 1  ;;  %v2617_v31 = vld [vmem:[#allocation2 + $0xa4] sm:$0xf]  ;;  %1900 = vmatpush.bf16.msra.mxu2 %v2635_v57 }
 0x18e   :  { %v433_v61 = vmax.f32 %v280_v58, 0.0  ;;  %v707_v7 = vadd.f32 %v706_v60, %v3404_v34  ;;  %v795_v0 = vpop.f32.mrf.mxu3  ;;  %v2456_v39 = vor.u32 %v2617_v31, %v2453_v30 }
 0x18f   :  { %v434_v1 = vmax.f32 %v369_v41, 0.0 }
 0x190   :  { %v796_v10 = vadd.f32 %v795_v0, %v707_v7  ;;  %v3511_v11 = vpack.c.bf16 %v433_v61, %v431_v42  ;;  %1587 = vmatpush.bf16.msra.mxu1 %v2456_v39  ;;  %v2599_v39 = vld [vmem:[#allocation2 + $0x14] sm:$0xf] }
 0x191   :  { %v3513_v13 = vpack.c.bf16 %v434_v1, %v432_v8  ;;  %v2643_v8 = vld [vmem:[#allocation5 + $0x70] sm:$0xff] }
 0x192   :  { %v1047_v17 = vmax.f32 %v796_v10, 0.0  ;;  %748 = vmatmul.bf16.gmra.mxu2 %v3511_v11  ;;  %1989 = vmatpush.bf16.msra.mxu3 %v2643_v8  ;;  %v2634_v8 = vld [vmem:[#allocation5 + $0x28] sm:$0xff] }
 0x193   :  { %837 = vmatmul.bf16.gmra.mxu3 %v3513_v13  ;;  %v852_v62 = vpop.f32.mrf.mxu0  ;;  %1901 = vmatpush.bf16.msra.mxu2 %v2634_v8 }
 0x194   :  { %v941_v20 = vpop.f32.mrf.mxu1  ;;  %v3520_v27 = vpack.c.bf16 %v1047_v17, %v1045_v14  ;;  %v853_v45 = vadd.f32 %v852_v62, %v3518_v63 }
 0x195   :  { %v709_v28 = vpop.f32.mrf.mxu2 }
 0x196   :  { %v710_v22 = vadd.f32 %v709_v28, %v3404_v34  ;;  %v798_v44 = vpop.f32.mrf.mxu3  ;;  %891 = vmatmul.bf16.gmra.mxu0 %v3398_v32  ;;  %v942_v2 = vadd.f32 %v941_v20, %v853_v45 }
 0x197   :  { %980 = vmatmul.bf16.gmra.mxu1 %v3400_v33 }
 0x198   :  { %v799_v23 = vadd.f32 %v798_v44, %v710_v22  ;;  %v1022_v43 = vmax.f32 %v942_v2, 0.0 }
 0x19a   :  { %v1049_v50 = vmax.f32 %v799_v23, 0.0 }
 0x19b   :  { %v854_v29 = vpop.f32.mrf.mxu0 }
 0x19c   :  { %v855_v3 = vadd.f32 %v854_v29, %v3518_v63  ;;  %v943_v38 = vpop.f32.mrf.mxu1 }
 0x19d   :  { %v711_v15 = vpop.f32.mrf.mxu2 }
 0x19e   :  { %v944_v16 = vadd.f32 %v943_v38, %v855_v3  ;;  %v712_v32 = vadd.f32 %v711_v15, %v3404_v34  ;;  %v800_v33 = vpop.f32.mrf.mxu3  ;;  %v2381_v15 = vld [vmem:[#allocation2 + $0x18] sm:$0xf0] }
 0x1a0   :  { %v1024_v46 = vmax.f32 %v944_v16, 0.0  ;;  %v801_v47 = vadd.f32 %v800_v33, %v712_v32  ;;  %v2384_v32 = vor.u32 %v2599_v39, %v2381_v15  ;;  %v2615_v33 = vld [vmem:[#allocation2 + $0x94] sm:$0xf] }
 0x1a2   :  { %v3528_v55 = vpack.c.bf16 %v1024_v46, %v1022_v43  ;;  %v1051_v56 = vmax.f32 %v801_v47, 0.0  ;;  %1323 = vmatmul.bf16.vlgmr.msrb.gmra.mxu2 %v3421_v12  ;;  %v2445_v43 = vld [vmem:[#allocation2 + $0x98] sm:$0xf0]  ;;  %1499 = vmatpush.bf16.msra.mxu0 %v2384_v32 }
 0x1a3   :  { %v857_v58 = vpop.f32.mrf.mxu0 }
 0x1a4   :  { %v946_v53 = vpop.f32.mrf.mxu1  ;;  %1412 = vmatmul.bf16.vlgmr.msrb.gmra.mxu3 %v3528_v55  ;;  %v3532_v41 = vpack.c.bf16 %v1051_v56, %v1049_v50  ;;  %v858_v7 = vadd.f32 %v857_v58, %v3518_v63  ;;  %v2448_v56 = vor.u32 %v2615_v33, %v2445_v43 }
 0x1a5   :  { %v714_v60 = vpop.f32.mrf.mxu2 }
 0x1a6   :  { %v715_v42 = vadd.f32 %v714_v60, %v3404_v34  ;;  %v803_v61 = vpop.f32.mrf.mxu3  ;;  %896 = vmatmul.bf16.gmra.mxu0 %v3415_v5  ;;  %v947_v10 = vadd.f32 %v946_v53, %v858_v7  ;;  %1588 = vmatpush.bf16.msra.mxu1 %v2448_v56  ;;  %v2597_v56 = vld [vmem:[#allocation2 + $0x4] sm:$0xf] }
 0x1a7   :  { %985 = vmatmul.bf16.gmra.mxu1 %v3417_v6 }
 0x1a8   :  { %v804_v0 = vadd.f32 %v803_v61, %v715_v42  ;;  %v1026_v44 = vmax.f32 %v947_v10, 0.0 }
 0x1aa   :  { %v1053_v23 = vmax.f32 %v804_v0, 0.0 }
 0x1ab   :  { %v859_v1 = vpop.f32.mrf.mxu0 }
 0x1ac   :  { %v860_v14 = vadd.f32 %v859_v1, %v3518_v63  ;;  %v948_v17 = vpop.f32.mrf.mxu1 }
 0x1ad   :  { %v716_v62 = vpop.f32.mrf.mxu2 }
 0x1ae   :  { %v949_v20 = vadd.f32 %v948_v17, %v860_v14  ;;  %v717_v28 = vadd.f32 %v716_v62, %v3404_v34  ;;  %v805_v22 = vpop.f32.mrf.mxu3 }
 0x1b0   :  { %v1028_v45 = vmax.f32 %v949_v20, 0.0  ;;  %v806_v5 = vadd.f32 %v805_v22, %v717_v28 }
 0x1b2   :  { %v1055_v6 = vmax.f32 %v806_v5, 0.0  ;;  %1328 = vmatmul.bf16.gmra.mxu2 %v3437_v59  ;;  %v3541_v24 = vpack.c.bf16 %v1028_v45, %v1026_v44  ;;  %v2642_v44 = vld [vmem:[#allocation5 + $0x68] sm:$0xff] }
 0x1b3   :  { %v862_v25 = vpop.f32.mrf.mxu0  ;;  %1990 = vmatpush.bf16.msra.mxu3 %v2642_v44  ;;  %v2633_v44 = vld [vmem:[#allocation5 + $0x20] sm:$0xff] }
 0x1b4   :  { %v951_v29 = vpop.f32.mrf.mxu1  ;;  %1417 = vmatmul.bf16.gmra.mxu3 %v3541_v24  ;;  %v3544_v19 = vpack.c.bf16 %v1055_v6, %v1053_v23  ;;  %v863_v3 = vadd.f32 %v862_v25, %v3518_v63  ;;  %1902 = vmatpush.bf16.msra.mxu2 %v2633_v44 }
 0x1b5   :  { %v719_v31 = vpop.f32.mrf.mxu2 }
 0x1b6   :  { %v720_v30 = vadd.f32 %v719_v31, %v3404_v34  ;;  %v808_v2 = vpop.f32.mrf.mxu3  ;;  %901 = vmatmul.bf16.gmra.mxu0 %v3431_v48  ;;  %v952_v46 = vadd.f32 %v951_v29, %v863_v3 }
 0x1b7   :  { %990 = vmatmul.bf16.gmra.mxu1 %v3433_v49 }
 0x1b8   :  { %v809_v38 = vadd.f32 %v808_v2, %v720_v30  ;;  %v1030_v53 = vmax.f32 %v952_v46, 0.0 }
 0x1ba   :  { %v1057_v61 = vmax.f32 %v809_v38, 0.0 }
 0x1bb   :  { %v864_v16 = vpop.f32.mrf.mxu0 }
 0x1bc   :  { %v865_v47 = vadd.f32 %v864_v16, %v3518_v63  ;;  %v953_v50 = vpop.f32.mrf.mxu1 }
 0x1bd   :  { %v721_v57 = vpop.f32.mrf.mxu2 }
 0x1be   :  { %v954_v58 = vadd.f32 %v953_v50, %v865_v47  ;;  %v722_v48 = vadd.f32 %v721_v57, %v3404_v34  ;;  %v810_v49 = vpop.f32.mrf.mxu3  ;;  %v2373_v57 = vld [vmem:[#allocation2 + $0x8] sm:$0xf0] }
 0x1c0   :  { %v1032_v60 = vmax.f32 %v954_v58, 0.0  ;;  %v811_v42 = vadd.f32 %v810_v49, %v722_v48  ;;  %v2376_v48 = vor.u32 %v2597_v56, %v2373_v57  ;;  %v2613_v49 = vld [vmem:[#allocation2 + $0x84] sm:$0xf] }
 0x1c2   :  { %v1059_v7 = vmax.f32 %v811_v42, 0.0  ;;  %1333 = vmatmul.bf16.gmra.mxu2 %v3453_v36  ;;  %v3553_v0 = vpack.c.bf16 %v1032_v60, %v1030_v53  ;;  %v2437_v53 = vld [vmem:[#allocation2 + $0x88] sm:$0xf0]  ;;  %1500 = vmatpush.bf16.msra.mxu0 %v2376_v48 }
 0x1c3   :  { %v867_v1 = vpop.f32.mrf.mxu0 }
 0x1c4   :  { %v956_v10 = vpop.f32.mrf.mxu1  ;;  %1422 = vmatmul.bf16.gmra.mxu3 %v3553_v0  ;;  %v3556_v14 = vpack.c.bf16 %v1059_v7, %v1057_v61  ;;  %v868_v28 = vadd.f32 %v867_v1, %v3518_v63  ;;  %v2440_v7 = vor.u32 %v2613_v49, %v2437_v53 }
 0x1c5   :  { %v724_v17 = vpop.f32.mrf.mxu2 }
 0x1c6   :  { %v725_v62 = vadd.f32 %v724_v17, %v3404_v34  ;;  %v813_v20 = vpop.f32.mrf.mxu3  ;;  %906 = vmatmul.bf16.gmra.mxu0 %v3447_v26  ;;  %v957_v5 = vadd.f32 %v956_v10, %v868_v28  ;;  %1589 = vmatpush.bf16.msra.mxu1 %v2440_v7 }
 0x1c7   :  { %995 = vmatmul.bf16.gmra.mxu1 %v3449_v18 }
 0x1c8   :  { %v814_v22 = vadd.f32 %v813_v20, %v725_v62  ;;  %v1034_v2 = vmax.f32 %v957_v5, 0.0 }
 0x1ca   :  { %v1061_v38 = vmax.f32 %v814_v22, 0.0 }
 0x1cb   :  { %v869_v45 = vpop.f32.mrf.mxu0 }
 0x1cc   :  { %v870_v23 = vadd.f32 %v869_v45, %v3518_v63  ;;  %v958_v6 = vpop.f32.mrf.mxu1 }
 0x1cd   :  { %v726_v25 = vpop.f32.mrf.mxu2 }
 0x1ce   :  { %v959_v29 = vadd.f32 %v958_v6, %v870_v23  ;;  %v727_v31 = vadd.f32 %v726_v25, %v3404_v34  ;;  %v815_v30 = vpop.f32.mrf.mxu3 }
 0x1d0   :  { %v1036_v3 = vmax.f32 %v959_v29, 0.0  ;;  %v816_v26 = vadd.f32 %v815_v30, %v727_v31 }
 0x1d2   :  { %v1063_v18 = vmax.f32 %v816_v26, 0.0  ;;  %1338 = vmatmul.bf16.gmra.mxu2 %v3469_v21  ;;  %v3565_v39 = vpack.c.bf16 %v1036_v3, %v1034_v2  ;;  %v2641_v2 = vld [vmem:[#allocation5 + $0x60] sm:$0xff] }
 0x1d3   :  { %v872_v15 = vpop.f32.mrf.mxu0  ;;  %1991 = vmatpush.bf16.msra.mxu3 %v2641_v2 }
 0x1d4   :  { %v961_v16 = vpop.f32.mrf.mxu1  ;;  %1427 = vmatmul.bf16.gmra.mxu3 %v3565_v39  ;;  %v3568_v32 = vpack.c.bf16 %v1063_v18, %v1061_v38  ;;  %v873_v47 = vadd.f32 %v872_v15, %v3518_v63 }
 0x1d5   :  { %v729_v33 = vpop.f32.mrf.mxu2 }
 0x1d6   :  { %v730_v43 = vadd.f32 %v729_v33, %v3404_v34  ;;  %v818_v46 = vpop.f32.mrf.mxu3  ;;  %911 = vmatmul.bf16.gmra.mxu0 %v3463_v4  ;;  %v962_v60 = vadd.f32 %v961_v16, %v873_v47 }
 0x1d7   :  { %1000 = vmatmul.bf16.gmra.mxu1 %v3465_v9 }
 0x1d8   :  { %v819_v50 = vadd.f32 %v818_v46, %v730_v43  ;;  %v1038_v10 = vmax.f32 %v962_v60, 0.0 }
 0x1da   :  { %v1065_v20 = vmax.f32 %v819_v50, 0.0 }
 0x1db   :  { %v874_v58 = vpop.f32.mrf.mxu0 }
 0x1dc   :  { %v875_v42 = vadd.f32 %v874_v58, %v3518_v63  ;;  %v963_v61 = vpop.f32.mrf.mxu1 }
 0x1dd   :  { %v731_v8 = vpop.f32.mrf.mxu2 }
 0x1de   :  { %v964_v1 = vadd.f32 %v963_v61, %v875_v42  ;;  %v732_v4 = vadd.f32 %v731_v8, %v3404_v34  ;;  %v820_v9 = vpop.f32.mrf.mxu3 }
 0x1e0   :  { %v1040_v17 = vmax.f32 %v964_v1, 0.0  ;;  %v821_v62 = vadd.f32 %v820_v9, %v732_v4 }
 0x1e2   :  { %v1067_v28 = vmax.f32 %v821_v62, 0.0  ;;  %1343 = vmatmul.bf16.gmra.mxu2 %v3485_v52  ;;  %v3577_v22 = vpack.c.bf16 %v1040_v17, %v1038_v10 }
 0x1e3   :  { %v877_v45 = vpop.f32.mrf.mxu0 }
 0x1e4   :  { %v966_v5 = vpop.f32.mrf.mxu1  ;;  %1432 = vmatmul.bf16.gmra.mxu3 %v3577_v22  ;;  %v3580_v23 = vpack.c.bf16 %v1067_v28, %v1065_v20  ;;  %v878_v31 = vadd.f32 %v877_v45, %v3518_v63 }
 0x1e5   :  { %v734_v6 = vpop.f32.mrf.mxu2 }
 0x1e6   :  { %v735_v25 = vadd.f32 %v734_v6, %v3404_v34  ;;  %v823_v29 = vpop.f32.mrf.mxu3  ;;  %916 = vmatmul.bf16.gmra.mxu0 %v3479_v51  ;;  %v967_v26 = vadd.f32 %v966_v5, %v878_v31  ;;  %v2632_v5 = vld [vmem:[#allocation5 + $0x18] sm:$0xff] }
 0x1e7   :  { %1005 = vmatmul.bf16.gmra.mxu1 %v3481_v54  ;;  %1903 = vmatpush.bf16.msra.mxu2 %v2632_v5 }
 0x1e8   :  { %v824_v30 = vadd.f32 %v823_v29, %v735_v25  ;;  %v1042_v46 = vmax.f32 %v967_v26, 0.0 }
 0x1ea   :  { %v1069_v50 = vmax.f32 %v824_v30, 0.0 }
 0x1eb   :  { %v879_v3 = vpop.f32.mrf.mxu0 }
 0x1ec   :  { %v880_v38 = vadd.f32 %v879_v3, %v3518_v63  ;;  %v968_v18 = vpop.f32.mrf.mxu1 }
 0x1ed   :  { %v736_v15 = vpop.f32.mrf.mxu2 }
 0x1ee   :  { %v969_v16 = vadd.f32 %v968_v18, %v880_v38  ;;  %v737_v33 = vadd.f32 %v736_v15, %v3404_v34  ;;  %v825_v43 = vpop.f32.mrf.mxu3  ;;  %v2640_v38 = vld [vmem:[#allocation5 + $0x58] sm:$0xff] }
 0x1ef   :  { %1992 = vmatpush.bf16.msra.mxu3 %v2640_v38 }
 0x1f0   :  { %v1044_v47 = vmax.f32 %v969_v16, 0.0  ;;  %v826_v51 = vadd.f32 %v825_v43, %v737_v33 }
 0x1f2   :  { %v1071_v54 = vmax.f32 %v826_v51, 0.0  ;;  %1348 = vmatmul.bf16.gmra.mxu2 %v3501_v40  ;;  %v3589_v56 = vpack.c.bf16 %v1044_v47, %v1042_v46 }
 0x1f3   :  { %v882_v57 = vpop.f32.mrf.mxu0 }
 0x1f4   :  { %v971_v58 = vpop.f32.mrf.mxu1  ;;  %1437 = vmatmul.bf16.gmra.mxu3 %v3589_v56  ;;  %v3592_v48 = vpack.c.bf16 %v1071_v54, %v1069_v50  ;;  %v883_v42 = vadd.f32 %v882_v57, %v3518_v63 }
 0x1f5   :  { %v739_v49 = vpop.f32.mrf.mxu2 }
 0x1f6   :  { %v740_v53 = vadd.f32 %v739_v49, %v3404_v34  ;;  %v828_v60 = vpop.f32.mrf.mxu3  ;;  %921 = vmatmul.bf16.gmra.mxu0 %v3495_v35  ;;  %v972_v8 = vadd.f32 %v971_v58, %v883_v42 }
 0x1f7   :  { %1010 = vmatmul.bf16.gmra.mxu1 %v3497_v37 }
 0x1f8   :  { %v829_v61 = vadd.f32 %v828_v60, %v740_v53  ;;  %v1046_v20 = vmax.f32 %v972_v8, 0.0 }
 0x1fa   :  { %v1073_v45 = vmax.f32 %v829_v61, 0.0 }
 0x1fb   :  { %v884_v7 = vpop.f32.mrf.mxu0 }
 0x1fc   :  { %v885_v1 = vadd.f32 %v884_v7, %v3518_v63  ;;  %v973_v4 = vpop.f32.mrf.mxu1 }
 0x1fd   :  { %v741_v9 = vpop.f32.mrf.mxu2 }
 0x1fe   :  { %v974_v10 = vadd.f32 %v973_v4, %v885_v1  ;;  %v742_v17 = vadd.f32 %v741_v9, %v3404_v34  ;;  %v830_v62 = vpop.f32.mrf.mxu3 }
 0x200   :  { %v1048_v28 = vmax.f32 %v974_v10, 0.0  ;;  %v831_v44 = vadd.f32 %v830_v62, %v742_v17 }
 0x202   :  { %v1075_v35 = vmax.f32 %v831_v44, 0.0  ;;  %1353 = vmatmul.bf16.gmra.mxu2 %v3520_v27  ;;  %v3601_v37 = vpack.c.bf16 %v1048_v28, %v1046_v20 }
 0x203   :  { %v887_v6 = vpop.f32.mrf.mxu0 }
 0x204   :  { %v976_v25 = vpop.f32.mrf.mxu1  ;;  %1442 = vmatmul.bf16.gmra.mxu3 %v3601_v37  ;;  %v3604_v29 = vpack.c.bf16 %v1075_v35, %v1073_v45  ;;  %v888_v3 = vadd.f32 %v887_v6, %v3518_v63  ;;  %v3627_v45 = vld [vmem:[%s3874_s6] sm:$0x3] }
 0x205   :  { %v744_v31 = vpop.f32.mrf.mxu2 }
 0x206   :  { %v745_v30 = vadd.f32 %v744_v31, %v3404_v34  ;;  %v833_v2 = vpop.f32.mrf.mxu3  ;;  %926 = vmatmul.bf16.gmra.mxu0 %v3511_v11  ;;  %v977_v15 = vadd.f32 %v976_v25, %v888_v3  ;;  %v3633_v31 = vperm.slane %v3627_v45, 0 }
 0x207   :  { %1015 = vmatmul.bf16.gmra.mxu1 %v3513_v13 }
 0x208   :  { %v834_v26 = vadd.f32 %v833_v2, %v745_v30  ;;  %v1050_v50 = vmax.f32 %v977_v15, 0.0  ;;  %v2631_v30 = vld [vmem:[#allocation5 + $0x10] sm:$0xff] }
 0x209   :  { %1904 = vmatpush.bf16.msra.mxu2 %v2631_v30 }
 0x20a   :  { %v1077_v57 = vmax.f32 %v834_v26, 0.0 }
 0x20b   :  { %v889_v18 = vpop.f32.mrf.mxu0 }
 0x20c   :  { %v890_v16 = vadd.f32 %v889_v18, %v3518_v63  ;;  %v978_v33 = vpop.f32.mrf.mxu1 }
 0x20d   :  { %v746_v43 = vpop.f32.mrf.mxu2 }
 0x20e   :  { %v979_v46 = vadd.f32 %v978_v33, %v890_v16  ;;  %v747_v47 = vadd.f32 %v746_v43, %v3404_v34  ;;  %v835_v51 = vpop.f32.mrf.mxu3  ;;  %v2639_v33 = vld [vmem:[#allocation5 + $0x50] sm:$0xff] }
 0x20f   :  { %1993 = vmatpush.bf16.msra.mxu3 %v2639_v33 }
 0x210   :  { %v1052_v54 = vmax.f32 %v979_v46, 0.0  ;;  %v836_v11 = vadd.f32 %v835_v51, %v747_v47 }
 0x212   :  { %v1079_v13 = vmax.f32 %v836_v11, 0.0  ;;  %1358 = vmatmul.bf16.gmra.mxu2 %v3532_v41  ;;  %v3613_v58 = vpack.c.bf16 %v1052_v54, %v1050_v50 }
 0x213   :  { %v892_v49 = vpop.f32.mrf.mxu0 }
 0x214   :  { %v981_v53 = vpop.f32.mrf.mxu1  ;;  %1447 = vmatmul.bf16.gmra.mxu3 %v3613_v58  ;;  %v3616_v60 = vpack.c.bf16 %v1079_v13, %v1077_v57  ;;  %v893_v8 = vadd.f32 %v892_v49, %v3518_v63 }
 0x215   :  { %v749_v42 = vpop.f32.mrf.mxu2 }
 0x216   :  { %v750_v61 = vadd.f32 %v749_v42, %v3404_v34  ;;  %v838_v7 = vpop.f32.mrf.mxu3  ;;  %1501 = vmatmul.bf16.vlgmr.msra.gmra.mxu0 %v3421_v12  ;;  %v982_v9 = vadd.f32 %v981_v53, %v893_v8 }
 0x217   :  { %1590 = vmatmul.bf16.vlgmr.msra.gmra.mxu1 %v3528_v55 }
 0x218   :  { %v839_v1 = vadd.f32 %v838_v7, %v750_v61  ;;  %v1054_v12 = vmax.f32 %v982_v9, 0.0 }
 0x21a   :  { %v1081_v5 = vmax.f32 %v839_v1, 0.0 }
 0x21b   :  { %v894_v4 = vpop.f32.mrf.mxu0 }
 0x21c   :  { %v895_v10 = vadd.f32 %v894_v4, %v3518_v63  ;;  %v983_v17 = vpop.f32.mrf.mxu1 }
 0x21d   :  { %v751_v62 = vpop.f32.mrf.mxu2 }
 0x21e   :  { %v984_v20 = vadd.f32 %v983_v17, %v895_v10  ;;  %v752_v28 = vadd.f32 %v751_v62, %v3404_v34  ;;  %v840_v44 = vpop.f32.mrf.mxu3 }
 0x220   :  { %v1056_v55 = vmax.f32 %v984_v20, 0.0  ;;  %v841_v35 = vadd.f32 %v840_v44, %v752_v28 }
 0x222   :  { %v1083_v6 = vmax.f32 %v841_v35, 0.0  ;;  %1363 = vmatmul.bf16.gmra.mxu2 %v3544_v19  ;;  %v3630_v25 = vpack.c.bf16 %v1056_v55, %v1054_v12 }
 0x223   :  { %v897_v34 = vpop.f32.mrf.mxu0 }
 0x224   :  { %v986_v2 = vpop.f32.mrf.mxu1  ;;  %1452 = vmatmul.bf16.gmra.mxu3 %v3630_v25  ;;  %v3636_v3 = vpack.c.bf16 %v1083_v6, %v1081_v5  ;;  %v898_v15 = vadd.f32 %v897_v34, %v3518_v63 }
 0x225   :  { %v1324_v26 = vpop.f32.mrf.mxu2 }
 0x226   :  { %v1325_v38 = vadd.f32 %v1324_v26, %v3633_v31  ;;  %1506 = vmatmul.bf16.gmra.mxu0 %v3437_v59  ;;  %v987_v46 = vadd.f32 %v986_v2, %v898_v15  ;;  %v2630_v26 = vld [vmem:[#allocation5 + $0x8] sm:$0xff] }
 0x227   :  { %1595 = vmatmul.bf16.gmra.mxu1 %v3541_v24  ;;  %v1413_v18 = vpop.f32.mrf.mxu3  ;;  %1905 = vmatpush.bf16.msra.mxu2 %v2630_v26 }
 0x228   :  { %v1414_v16 = vadd.f32 %v1413_v18, %v1325_v38  ;;  %v1058_v13 = vmax.f32 %v987_v46, 0.0 }
 0x22a   :  { %v1671_v24 = vmax.f32 %v1414_v16, 0.0 }
 0x22b   :  { %v899_v43 = vpop.f32.mrf.mxu0 }
 0x22c   :  { %v900_v47 = vadd.f32 %v899_v43, %v3518_v63  ;;  %v988_v51 = vpop.f32.mrf.mxu1 }
 0x22d   :  { %v1326_v50 = vpop.f32.mrf.mxu2 }
 0x22e   :  { %v989_v54 = vadd.f32 %v988_v51, %v900_v47  ;;  %v1327_v11 = vadd.f32 %v1326_v50, %v3633_v31  ;;  %v2638_v51 = vld [vmem:[#allocation5 + $0x48] sm:$0xff] }
 0x22f   :  { %v1415_v57 = vpop.f32.mrf.mxu3  ;;  %1994 = vmatpush.bf16.msra.mxu3 %v2638_v51 }
 0x230   :  { %v1060_v59 = vmax.f32 %v989_v54, 0.0  ;;  %v1416_v49 = vadd.f32 %v1415_v57, %v1327_v11 }
 0x232   :  { %v1673_v53 = vmax.f32 %v1416_v49, 0.0  ;;  %1368 = vmatmul.bf16.gmra.mxu2 %v3556_v14  ;;  %v3645_v42 = vpack.c.bf16 %v1060_v59, %v1058_v13 }
 0x233   :  { %v902_v61 = vpop.f32.mrf.mxu0 }
 0x234   :  { %v3647_v7 = vpack.c.bf16 %v1673_v53, %v1671_v24  ;;  %v991_v8 = vpop.f32.mrf.mxu1  ;;  %1457 = vmatmul.bf16.gmra.mxu3 %v3645_v42  ;;  %v903_v10 = vadd.f32 %v902_v61, %v3518_v63 }
 0x235   :  { %v1329_v1 = vpop.f32.mrf.mxu2 }
 0x236   :  { %v1330_v4 = vadd.f32 %v1329_v1, %v3633_v31  ;;  %1511 = vmatmul.bf16.gmra.mxu0 %v3453_v36  ;;  %v992_v20 = vadd.f32 %v991_v8, %v903_v10 }
 0x237   :  { %1600 = vmatmul.bf16.gmra.mxu1 %v3553_v0  ;;  %v1418_v9 = vpop.f32.mrf.mxu3 }
 0x238   :  { %v1419_v17 = vadd.f32 %v1418_v9, %v1330_v4  ;;  %v1062_v6 = vmax.f32 %v992_v20, 0.0 }
 0x23a   :  { %v1675_v36 = vmax.f32 %v1419_v17, 0.0 }
 0x23b   :  { %v904_v62 = vpop.f32.mrf.mxu0 }
 0x23c   :  { %v905_v28 = vadd.f32 %v904_v62, %v3518_v63  ;;  %v993_v44 = vpop.f32.mrf.mxu1 }
 0x23d   :  { %v1331_v12 = vpop.f32.mrf.mxu2 }
 0x23e   :  { %v994_v55 = vadd.f32 %v993_v44, %v905_v28  ;;  %v1332_v35 = vadd.f32 %v1331_v12, %v3633_v31 }
 0x23f   :  { %v1420_v5 = vpop.f32.mrf.mxu3 }
 0x240   :  { %v1064_v30 = vmax.f32 %v994_v55, 0.0  ;;  %v1421_v34 = vadd.f32 %v1420_v5, %v1332_v35 }
 0x242   :  { %v1677_v2 = vmax.f32 %v1421_v34, 0.0  ;;  %1373 = vmatmul.bf16.gmra.mxu2 %v3568_v32  ;;  %v3657_v0 = vpack.c.bf16 %v1064_v30, %v1062_v6 }
 0x243   :  { %v907_v38 = vpop.f32.mrf.mxu0 }
 0x244   :  { %v996_v18 = vpop.f32.mrf.mxu1  ;;  %1462 = vmatmul.bf16.gmra.mxu3 %v3657_v0  ;;  %v3660_v15 = vpack.c.bf16 %v1677_v2, %v1675_v36  ;;  %v908_v46 = vadd.f32 %v907_v38, %v3518_v63 }
 0x245   :  { %v1334_v16 = vpop.f32.mrf.mxu2 }
 0x246   :  { %v1335_v33 = vadd.f32 %v1334_v16, %v3633_v31  ;;  %1516 = vmatmul.bf16.gmra.mxu0 %v3469_v21  ;;  %v997_v54 = vadd.f32 %v996_v18, %v908_v46  ;;  %v2629_v16 = vld [vmem:[#allocation5] sm:$0xff] }
 0x247   :  { %1605 = vmatmul.bf16.gmra.mxu1 %v3565_v39  ;;  %v1423_v43 = vpop.f32.mrf.mxu3  ;;  %1906 = vmatpush.bf16.msra.mxu2 %v2629_v16 }
 0x248   :  { %v1424_v47 = vadd.f32 %v1423_v43, %v1335_v33  ;;  %v1066_v53 = vmax.f32 %v997_v54, 0.0 }
 0x24a   :  { %v1679_v39 = vmax.f32 %v1424_v47, 0.0 }
 0x24b   :  { %v909_v50 = vpop.f32.mrf.mxu0 }
 0x24c   :  { %v910_v11 = vadd.f32 %v909_v50, %v3518_v63  ;;  %v998_v57 = vpop.f32.mrf.mxu1 }
 0x24d   :  { %v1336_v13 = vpop.f32.mrf.mxu2 }
 0x24e   :  { %v999_v59 = vadd.f32 %v998_v57, %v910_v11  ;;  %v1337_v49 = vadd.f32 %v1336_v13, %v3633_v31  ;;  %v2637_v57 = vld [vmem:[#allocation5 + $0x40] sm:$0xff] }
 0x24f   :  { %v1425_v24 = vpop.f32.mrf.mxu3  ;;  %1995 = vmatpush.bf16.msra.mxu3 %v2637_v57 }
 0x250   :  { %v1068_v21 = vmax.f32 %v999_v59, 0.0  ;;  %v1426_v61 = vadd.f32 %v1425_v24, %v1337_v49 }
 0x252   :  { %v1681_v8 = vmax.f32 %v1426_v61, 0.0  ;;  %1378 = vmatmul.bf16.gmra.mxu2 %v3580_v23  ;;  %v3669_v1 = vpack.c.bf16 %v1068_v21, %v1066_v53 }
 0x253   :  { %v912_v4 = vpop.f32.mrf.mxu0 }
 0x254   :  { %v1001_v9 = vpop.f32.mrf.mxu1  ;;  %1467 = vmatmul.bf16.gmra.mxu3 %v3669_v1  ;;  %v3672_v10 = vpack.c.bf16 %v1681_v8, %v1679_v39  ;;  %v913_v28 = vadd.f32 %v912_v4, %v3518_v63 }
 0x255   :  { %v1339_v17 = vpop.f32.mrf.mxu2 }
 0x256   :  { %v1340_v62 = vadd.f32 %v1339_v17, %v3633_v31  ;;  %1521 = vmatmul.bf16.gmra.mxu0 %v3485_v52  ;;  %v1002_v55 = vadd.f32 %v1001_v9, %v913_v28 }
 0x257   :  { %1610 = vmatmul.bf16.gmra.mxu1 %v3577_v22  ;;  %v1428_v20 = vpop.f32.mrf.mxu3 }
 0x258   :  { %v1429_v44 = vadd.f32 %v1428_v20, %v1340_v62  ;;  %v1070_v2 = vmax.f32 %v1002_v55, 0.0 }
 0x25a   :  { %v1683_v52 = vmax.f32 %v1429_v44, 0.0 }
 0x25b   :  { %v914_v12 = vpop.f32.mrf.mxu0 }
 0x25c   :  { %v915_v35 = vadd.f32 %v914_v12, %v3518_v63  ;;  %v1003_v5 = vpop.f32.mrf.mxu1 }
 0x25d   :  { %v1341_v6 = vpop.f32.mrf.mxu2 }
 0x25e   :  { %v1004_v30 = vadd.f32 %v1003_v5, %v915_v35  ;;  %v1342_v34 = vadd.f32 %v1341_v6, %v3633_v31 }
 0x25f   :  { %v1430_v36 = vpop.f32.mrf.mxu3 }
 0x260   :  { %v1072_v26 = vmax.f32 %v1004_v30, 0.0  ;;  %v1431_v38 = vadd.f32 %v1430_v36, %v1342_v34 }
 0x262   :  { %v1685_v18 = vmax.f32 %v1431_v38, 0.0  ;;  %1383 = vmatmul.bf16.gmra.mxu2 %v3592_v48  ;;  %v3681_v22 = vpack.c.bf16 %v1072_v26, %v1070_v2 }
 0x263   :  { %v917_v33 = vpop.f32.mrf.mxu0 }
 0x264   :  { %v1006_v43 = vpop.f32.mrf.mxu1  ;;  %1472 = vmatmul.bf16.gmra.mxu3 %v3681_v22  ;;  %v3684_v46 = vpack.c.bf16 %v1685_v18, %v1683_v52  ;;  %v918_v54 = vadd.f32 %v917_v33, %v3518_v63 }
 0x265   :  { %v1344_v47 = vpop.f32.mrf.mxu2 }
 0x266   :  { %v1345_v51 = vadd.f32 %v1344_v47, %v3633_v31  ;;  %1526 = vmatmul.bf16.gmra.mxu0 %v3501_v40  ;;  %v1007_v59 = vadd.f32 %v1006_v43, %v918_v54 }
 0x267   :  { %1615 = vmatmul.bf16.gmra.mxu1 %v3589_v56  ;;  %v1433_v50 = vpop.f32.mrf.mxu3 }
 0x268   :  { %v1434_v11 = vadd.f32 %v1433_v50, %v1345_v51  ;;  %v1074_v8 = vmax.f32 %v1007_v59, 0.0 }
 0x26a   :  { %v1687_v56 = vmax.f32 %v1434_v11, 0.0 }
 0x26b   :  { %v919_v13 = vpop.f32.mrf.mxu0 }
 0x26c   :  { %v920_v49 = vadd.f32 %v919_v13, %v3518_v63  ;;  %v1008_v24 = vpop.f32.mrf.mxu1 }
 0x26d   :  { %v1346_v53 = vpop.f32.mrf.mxu2 }
 0x26e   :  { %v1009_v21 = vadd.f32 %v1008_v24, %v920_v49  ;;  %v1347_v61 = vadd.f32 %v1346_v53, %v3633_v31 }
 0x26f   :  { %v1435_v39 = vpop.f32.mrf.mxu3 }
 0x270   :  { %v1076_v40 = vmax.f32 %v1009_v21, 0.0  ;;  %v1436_v4 = vadd.f32 %v1435_v39, %v1347_v61 }
 0x272   :  { %v1689_v9 = vmax.f32 %v1436_v4, 0.0  ;;  %1388 = vmatmul.bf16.gmra.mxu2 %v3604_v29  ;;  %v3693_v17 = vpack.c.bf16 %v1076_v40, %v1074_v8 }
 0x273   :  { %v922_v62 = vpop.f32.mrf.mxu0 }
 0x274   :  { %v1011_v20 = vpop.f32.mrf.mxu1  ;;  %1477 = vmatmul.bf16.gmra.mxu3 %v3693_v17  ;;  %v3696_v28 = vpack.c.bf16 %v1689_v9, %v1687_v56  ;;  %v923_v35 = vadd.f32 %v922_v62, %v3518_v63 }
 0x275   :  { %v1349_v44 = vpop.f32.mrf.mxu2 }
 0x276   :  { %v1350_v12 = vadd.f32 %v1349_v44, %v3633_v31  ;;  %1531 = vmatmul.bf16.gmra.mxu0 %v3520_v27  ;;  %v1012_v30 = vadd.f32 %v1011_v20, %v923_v35  ;;  %v3720_v44 = vperm.slane %v3627_v45, 1 }
 0x277   :  { %1620 = vmatmul.bf16.gmra.mxu1 %v3601_v37  ;;  %v1438_v55 = vpop.f32.mrf.mxu3 }
 0x278   :  { %v1439_v5 = vadd.f32 %v1438_v55, %v1350_v12  ;;  %v1078_v18 = vmax.f32 %v1012_v30, 0.0 }
 0x27a   :  { %v1691_v27 = vmax.f32 %v1439_v5, 0.0 }
 0x27b   :  { %v924_v6 = vpop.f32.mrf.mxu0 }
 0x27c   :  { %v925_v34 = vadd.f32 %v924_v6, %v3518_v63  ;;  %v1013_v36 = vpop.f32.mrf.mxu1 }
 0x27d   :  { %v1351_v2 = vpop.f32.mrf.mxu2 }
 0x27e   :  { %v1014_v26 = vadd.f32 %v1013_v36, %v925_v34  ;;  %v1352_v38 = vadd.f32 %v1351_v2, %v3633_v31 }
 0x27f   :  { %v1440_v52 = vpop.f32.mrf.mxu3 }
 0x280   :  { %v1080_v16 = vmax.f32 %v1014_v26, 0.0  ;;  %v1441_v33 = vadd.f32 %v1440_v52, %v1352_v38 }
 0x282   :  { %v1693_v43 = vmax.f32 %v1441_v33, 0.0  ;;  %1393 = vmatmul.bf16.gmra.mxu2 %v3616_v60  ;;  %v3705_v37 = vpack.c.bf16 %v1080_v16, %v1078_v18 }
 0x283   :  { %v927_v47 = vpop.f32.mrf.mxu0 }
 0x284   :  { %v1016_v51 = vpop.f32.mrf.mxu1  ;;  %1482 = vmatmul.bf16.gmra.mxu3 %v3705_v37  ;;  %v3708_v50 = vpack.c.bf16 %v1693_v43, %v1691_v27  ;;  %v928_v13 = vadd.f32 %v927_v47, %v3518_v63 }
 0x285   :  { %v1354_v54 = vpop.f32.mrf.mxu2 }
 0x286   :  { %v1355_v11 = vadd.f32 %v1354_v54, %v3633_v31  ;;  %1536 = vmatmul.bf16.gmra.mxu0 %v3532_v41  ;;  %v1017_v24 = vadd.f32 %v1016_v51, %v928_v13 }
 0x287   :  { %1625 = vmatmul.bf16.gmra.mxu1 %v3613_v58  ;;  %v1443_v57 = vpop.f32.mrf.mxu3 }
 0x288   :  { %v1444_v59 = vadd.f32 %v1443_v57, %v1355_v11  ;;  %v1082_v4 = vmax.f32 %v1017_v24, 0.0 }
 0x28a   :  { %v1695_v41 = vmax.f32 %v1444_v59, 0.0 }
 0x28b   :  { %v929_v49 = vpop.f32.mrf.mxu0 }
 0x28c   :  { %v930_v53 = vadd.f32 %v929_v49, %v3518_v63  ;;  %v1018_v21 = vpop.f32.mrf.mxu1 }
 0x28d   :  { %v1356_v61 = vpop.f32.mrf.mxu2 }
 0x28e   :  { %v1019_v39 = vadd.f32 %v1018_v21, %v930_v53  ;;  %v1357_v8 = vadd.f32 %v1356_v61, %v3633_v31 }
 0x28f   :  { %v1445_v40 = vpop.f32.mrf.mxu3 }
 0x290   :  { %v1084_v56 = vmax.f32 %v1019_v39, 0.0  ;;  %v1446_v9 = vadd.f32 %v1445_v40, %v1357_v8 }
 0x292   :  { %v1697_v62 = vmax.f32 %v1446_v9, 0.0  ;;  %1398 = vmatmul.bf16.gmra.mxu2 %v3636_v3  ;;  %v3717_v58 = vpack.c.bf16 %v1084_v56, %v1082_v4 }
 0x293   :  { %v1502_v20 = vpop.f32.mrf.mxu0 }
 0x294   :  { %v1591_v63 = vpop.f32.mrf.mxu1  ;;  %1487 = vmatmul.bf16.gmra.mxu3 %v3717_v58  ;;  %v3723_v12 = vpack.c.bf16 %v1697_v62, %v1695_v41  ;;  %v1503_v6 = vadd.f32 %v1502_v20, %v3720_v44 }
 0x295   :  { %v1359_v55 = vpop.f32.mrf.mxu2 }
 0x296   :  { %v1360_v35 = vadd.f32 %v1359_v55, %v3633_v31  ;;  %1541 = vmatmul.bf16.gmra.mxu0 %v3544_v19  ;;  %v1592_v36 = vadd.f32 %v1591_v63, %v1503_v6 }
 0x297   :  { %1630 = vmatmul.bf16.gmra.mxu1 %v3630_v25  ;;  %v1448_v5 = vpop.f32.mrf.mxu3 }
 0x298   :  { %v1449_v30 = vadd.f32 %v1448_v5, %v1360_v35  ;;  %v1672_v16 = vmax.f32 %v1592_v36, 0.0 }
 0x29a   :  { %v1699_v19 = vmax.f32 %v1449_v30, 0.0 }
 0x29b   :  { %v1504_v34 = vpop.f32.mrf.mxu0 }
 0x29c   :  { %v1505_v45 = vadd.f32 %v1504_v34, %v3720_v44  ;;  %v1593_v2 = vpop.f32.mrf.mxu1 }
 0x29d   :  { %v1361_v26 = vpop.f32.mrf.mxu2 }
 0x29e   :  { %v1594_v38 = vadd.f32 %v1593_v2, %v1505_v45  ;;  %v1362_v52 = vadd.f32 %v1361_v26, %v3633_v31 }
 0x29f   :  { %v1450_v18 = vpop.f32.mrf.mxu3 }
 0x2a0   :  { %v1674_v33 = vmax.f32 %v1594_v38, 0.0  ;;  %v1451_v27 = vadd.f32 %v1450_v18, %v1362_v52 }
 0x2a2   :  { %v1736_v43 = vpack.c.bf16 %v1674_v33, %v1672_v16  ;;  %v1701_v25 = vmax.f32 %v1451_v27, 0.0  ;;  %1907 = vmatmul.bf16.vlgmr.msra.gmra.mxu2 %v3647_v7 }
 0x2a3   :  { %v1507_v47 = vpop.f32.mrf.mxu0 }
 0x2a4   :  { %v1596_v51 = vpop.f32.mrf.mxu1  ;;  %1996 = vmatmul.bf16.vlgmr.msra.gmra.mxu3 %v1736_v43  ;;  %v3732_v54 = vpack.c.bf16 %v1701_v25, %v1699_v19  ;;  %v1508_v59 = vadd.f32 %v1507_v47, %v3720_v44 }
 0x2a5   :  { %v1364_v11 = vpop.f32.mrf.mxu2 }
 0x2a6   :  { %v1365_v57 = vadd.f32 %v1364_v11, %v3633_v31  ;;  %1546 = vmatmul.bf16.gmra.mxu0 %v3556_v14  ;;  %v1597_v53 = vadd.f32 %v1596_v51, %v1508_v59 }
 0x2a7   :  { %1635 = vmatmul.bf16.gmra.mxu1 %v3645_v42  ;;  %v1453_v13 = vpop.f32.mrf.mxu3 }
 0x2a8   :  { %v1454_v49 = vadd.f32 %v1453_v13, %v1365_v57  ;;  %v1676_v4 = vmax.f32 %v1597_v53, 0.0 }
 0x2aa   :  { %v1703_v14 = vmax.f32 %v1454_v49, 0.0 }
 0x2ab   :  { %v1509_v24 = vpop.f32.mrf.mxu0 }
 0x2ac   :  { %v1510_v7 = vadd.f32 %v1509_v24, %v3720_v44  ;;  %v1598_v21 = vpop.f32.mrf.mxu1 }
 0x2ad   :  { %v1366_v61 = vpop.f32.mrf.mxu2 }
 0x2ae   :  { %v1599_v39 = vadd.f32 %v1598_v21, %v1510_v7  ;;  %v1367_v8 = vadd.f32 %v1366_v61, %v3633_v31 }
 0x2af   :  { %v1455_v40 = vpop.f32.mrf.mxu3 }
 0x2b0   :  { %v1678_v56 = vmax.f32 %v1599_v39, 0.0  ;;  %v1456_v9 = vadd.f32 %v1455_v40, %v1367_v8 }
 0x2b2   :  { %v1705_v41 = vmax.f32 %v1456_v9, 0.0  ;;  %1912 = vmatmul.bf16.gmra.mxu2 %v3660_v15  ;;  %v1738_v42 = vpack.c.bf16 %v1678_v56, %v1676_v4 }
 0x2b3   :  { %v1512_v62 = vpop.f32.mrf.mxu0 }
 0x2b4   :  { %v1601_v20 = vpop.f32.mrf.mxu1  ;;  %2001 = vmatmul.bf16.gmra.mxu3 %v1738_v42  ;;  %v3741_v63 = vpack.c.bf16 %v1705_v41, %v1703_v14  ;;  %v1513_v6 = vadd.f32 %v1512_v62, %v3720_v44 }
 0x2b5   :  { %v1369_v55 = vpop.f32.mrf.mxu2 }
 0x2b6   :  { %v1370_v35 = vadd.f32 %v1369_v55, %v3633_v31  ;;  %1551 = vmatmul.bf16.gmra.mxu0 %v3568_v32  ;;  %v1602_v36 = vadd.f32 %v1601_v20, %v1513_v6 }
 0x2b7   :  { %1640 = vmatmul.bf16.gmra.mxu1 %v3657_v0  ;;  %v1458_v5 = vpop.f32.mrf.mxu3 }
 0x2b8   :  { %v1459_v30 = vadd.f32 %v1458_v5, %v1370_v35  ;;  %v1680_v18 = vmax.f32 %v1602_v36, 0.0 }
 0x2ba   :  { %v1707_v32 = vmax.f32 %v1459_v30, 0.0 }
 0x2bb   :  { %v1514_v34 = vpop.f32.mrf.mxu0 }
 0x2bc   :  { %v1515_v15 = vadd.f32 %v1514_v34, %v3720_v44  ;;  %v1603_v45 = vpop.f32.mrf.mxu1 }
 0x2bd   :  { %v1371_v2 = vpop.f32.mrf.mxu2 }
 0x2be   :  { %v1604_v26 = vadd.f32 %v1603_v45, %v1515_v15  ;;  %v1372_v38 = vadd.f32 %v1371_v2, %v3633_v31 }
 0x2bf   :  { %v1460_v52 = vpop.f32.mrf.mxu3 }
 0x2c0   :  { %v1682_v16 = vmax.f32 %v1604_v26, 0.0  ;;  %v1461_v33 = vadd.f32 %v1460_v52, %v1372_v38 }
 0x2c2   :  { %v1709_v27 = vmax.f32 %v1461_v33, 0.0  ;;  %1917 = vmatmul.bf16.gmra.mxu2 %v3672_v10  ;;  %v1740_v0 = vpack.c.bf16 %v1682_v16, %v1680_v18 }
 0x2c3   :  { %v1517_v19 = vpop.f32.mrf.mxu0 }
 0x2c4   :  { %v1606_v43 = vpop.f32.mrf.mxu1  ;;  %2006 = vmatmul.bf16.gmra.mxu3 %v1740_v0  ;;  %v3750_v25 = vpack.c.bf16 %v1709_v27, %v1707_v32  ;;  %v1518_v57 = vadd.f32 %v1517_v19, %v3720_v44 }
 0x2c5   :  { %v1374_v47 = vpop.f32.mrf.mxu2 }
 0x2c6   :  { %v1375_v51 = vadd.f32 %v1374_v47, %v3633_v31  ;;  %1556 = vmatmul.bf16.gmra.mxu0 %v3580_v23  ;;  %v1607_v49 = vadd.f32 %v1606_v43, %v1518_v57 }
 0x2c7   :  { %1645 = vmatmul.bf16.gmra.mxu1 %v3669_v1  ;;  %v1463_v11 = vpop.f32.mrf.mxu3 }
 0x2c8   :  { %v1464_v13 = vadd.f32 %v1463_v11, %v1375_v51  ;;  %v1684_v39 = vmax.f32 %v1607_v49, 0.0 }
 0x2ca   :  { %v1711_v23 = vmax.f32 %v1464_v13, 0.0 }
 0x2cb   :  { %v1519_v59 = vpop.f32.mrf.mxu0 }
 0x2cc   :  { %v1520_v10 = vadd.f32 %v1519_v59, %v3720_v44  ;;  %v1608_v24 = vpop.f32.mrf.mxu1 }
 0x2cd   :  { %v1376_v53 = vpop.f32.mrf.mxu2 }
 0x2ce   :  { %v1609_v7 = vadd.f32 %v1608_v24, %v1520_v10  ;;  %v1377_v21 = vadd.f32 %v1376_v53, %v3633_v31 }
 0x2cf   :  { %v1465_v61 = vpop.f32.mrf.mxu3 }
 0x2d0   :  { %v1686_v8 = vmax.f32 %v1609_v7, 0.0  ;;  %v1466_v40 = vadd.f32 %v1465_v61, %v1377_v21 }
 0x2d2   :  { %v1713_v4 = vmax.f32 %v1466_v40, 0.0  ;;  %1922 = vmatmul.bf16.gmra.mxu2 %v3684_v46  ;;  %v1742_v1 = vpack.c.bf16 %v1686_v8, %v1684_v39 }
 0x2d3   :  { %v1522_v56 = vpop.f32.mrf.mxu0 }
 0x2d4   :  { %v1611_v9 = vpop.f32.mrf.mxu1  ;;  %2011 = vmatmul.bf16.gmra.mxu3 %v1742_v1  ;;  %v3759_v14 = vpack.c.bf16 %v1713_v4, %v1711_v23  ;;  %v1523_v20 = vadd.f32 %v1522_v56, %v3720_v44 }
 0x2d5   :  { %v1379_v41 = vpop.f32.mrf.mxu2 }
 0x2d6   :  { %v1380_v42 = vadd.f32 %v1379_v41, %v3633_v31  ;;  %1561 = vmatmul.bf16.gmra.mxu0 %v3592_v48  ;;  %v1612_v5 = vadd.f32 %v1611_v9, %v1523_v20 }
 0x2d7   :  { %1650 = vmatmul.bf16.gmra.mxu1 %v3681_v22  ;;  %v1468_v62 = vpop.f32.mrf.mxu3 }
 0x2d8   :  { %v1469_v55 = vadd.f32 %v1468_v62, %v1380_v42  ;;  %v1688_v45 = vmax.f32 %v1612_v5, 0.0 }
 0x2da   :  { %v1715_v48 = vmax.f32 %v1469_v55, 0.0 }
 0x2db   :  { %v1524_v35 = vpop.f32.mrf.mxu0 }
 0x2dc   :  { %v1525_v46 = vadd.f32 %v1524_v35, %v3720_v44  ;;  %v1613_v6 = vpop.f32.mrf.mxu1 }
 0x2dd   :  { %v1381_v30 = vpop.f32.mrf.mxu2 }
 0x2de   :  { %v1614_v34 = vadd.f32 %v1613_v6, %v1525_v46  ;;  %v1382_v36 = vadd.f32 %v1381_v30, %v3633_v31 }
 0x2df   :  { %v1470_v15 = vpop.f32.mrf.mxu3 }
 0x2e0   :  { %v1690_v2 = vmax.f32 %v1614_v34, 0.0  ;;  %v1471_v26 = vadd.f32 %v1470_v15, %v1382_v36 }
 0x2e2   :  { %v1744_v38 = vpack.c.bf16 %v1690_v2, %v1688_v45  ;;  %v1717_v22 = vmax.f32 %v1471_v26, 0.0  ;;  %1927 = vmatmul.bf16.gmra.mxu2 %v3696_v28 }
 0x2e3   :  { %v1527_v52 = vpop.f32.mrf.mxu0 }
 0x2e4   :  { %v1616_v18 = vpop.f32.mrf.mxu1  ;;  %2016 = vmatmul.bf16.gmra.mxu3 %v1744_v38  ;;  %v3768_v16 = vpack.c.bf16 %v1717_v22, %v1715_v48  ;;  %v1528_v0 = vadd.f32 %v1527_v52, %v3720_v44 }
 0x2e5   :  { %v1384_v33 = vpop.f32.mrf.mxu2 }
 0x2e6   :  { %v1385_v32 = vadd.f32 %v1384_v33, %v3633_v31  ;;  %1566 = vmatmul.bf16.gmra.mxu0 %v3604_v29  ;;  %v1617_v47 = vadd.f32 %v1616_v18, %v1528_v0 }
 0x2e7   :  { %1655 = vmatmul.bf16.gmra.mxu1 %v3693_v17  ;;  %v1473_v27 = vpop.f32.mrf.mxu3 }
 0x2e8   :  { %v1474_v19 = vadd.f32 %v1473_v27, %v1385_v32  ;;  %v1692_v49 = vmax.f32 %v1617_v47, 0.0 }
 0x2ea   :  { %v1719_v29 = vmax.f32 %v1474_v19, 0.0 }
 0x2eb   :  { %v1529_v43 = vpop.f32.mrf.mxu0 }
 0x2ec   :  { %v1530_v28 = vadd.f32 %v1529_v43, %v3720_v44  ;;  %v1618_v51 = vpop.f32.mrf.mxu1 }
 0x2ed   :  { %v1386_v11 = vpop.f32.mrf.mxu2 }
 0x2ee   :  { %v1619_v57 = vadd.f32 %v1618_v51, %v1530_v28  ;;  %v1387_v13 = vadd.f32 %v1386_v11, %v3633_v31 }
 0x2ef   :  { %v1475_v59 = vpop.f32.mrf.mxu3 }
 0x2f0   :  { %v1694_v10 = vmax.f32 %v1619_v57, 0.0  ;;  %v1476_v24 = vadd.f32 %v1475_v59, %v1387_v13 }
 0x2f2   :  { %v1746_v53 = vpack.c.bf16 %v1694_v10, %v1692_v49  ;;  %v1721_v17 = vmax.f32 %v1476_v24, 0.0  ;;  %1932 = vmatmul.bf16.gmra.mxu2 %v3708_v50 }
 0x2f3   :  { %v1532_v7 = vpop.f32.mrf.mxu0 }
 0x2f4   :  { %v1621_v21 = vpop.f32.mrf.mxu1  ;;  %2021 = vmatmul.bf16.gmra.mxu3 %v1746_v53  ;;  %v3777_v61 = vpack.c.bf16 %v1721_v17, %v1719_v29  ;;  %v1533_v23 = vadd.f32 %v1532_v7, %v3720_v44 }
 0x2f5   :  { %v1389_v39 = vpop.f32.mrf.mxu2 }
 0x2f6   :  { %v1390_v8 = vadd.f32 %v1389_v39, %v3633_v31  ;;  %1571 = vmatmul.bf16.gmra.mxu0 %v3616_v60  ;;  %v1622_v56 = vadd.f32 %v1621_v21, %v1533_v23 }
 0x2f7   :  { %1660 = vmatmul.bf16.gmra.mxu1 %v3705_v37  ;;  %v1478_v40 = vpop.f32.mrf.mxu3 }
 0x2f8   :  { %v1479_v4 = vadd.f32 %v1478_v40, %v1390_v8  ;;  %v1696_v55 = vmax.f32 %v1622_v56, 0.0 }
 0x2fa   :  { %v1723_v60 = vmax.f32 %v1479_v4, 0.0 }
 0x2fb   :  { %v1534_v1 = vpop.f32.mrf.mxu0 }
 0x2fc   :  { %v1535_v50 = vadd.f32 %v1534_v1, %v3720_v44  ;;  %v1623_v9 = vpop.f32.mrf.mxu1 }
 0x2fd   :  { %v1391_v41 = vpop.f32.mrf.mxu2 }
 0x2fe   :  { %v1624_v42 = vadd.f32 %v1623_v9, %v1535_v50  ;;  %v1392_v62 = vadd.f32 %v1391_v41, %v3633_v31  ;;  %v3807_v41 = vld [vmem:[%s3876_s8] ss:$0 sm:$0xff]  ;;  %s2896_s8 = smov [#allocation7]  }
 0x2ff   :  { %v1480_v20 = vpop.f32.mrf.mxu3  ;;  %s2177_s11 = sshll.u32 %s2896_s8, 4  ;;  %s2178_s11 = int_to_ptr.vmem [resolvable:$true] %s2177_s11 }
 0x300   :  { %v1698_v35 = vmax.f32 %v1624_v42, 0.0  ;;  %v1481_v5 = vadd.f32 %v1480_v20, %v1392_v62 }
 0x302   :  { %v1748_v46 = vpack.c.bf16 %v1698_v35, %v1696_v55  ;;  %v1725_v37 = vmax.f32 %v1481_v5, 0.0  ;;  %1937 = vmatmul.bf16.gmra.mxu2 %v3723_v12 }
 0x303   :  { %v1537_v6 = vpop.f32.mrf.mxu0 }
 0x304   :  { %v1626_v30 = vpop.f32.mrf.mxu1  ;;  %2026 = vmatmul.bf16.gmra.mxu3 %v1748_v46  ;;  %v3786_v34 = vpack.c.bf16 %v1725_v37, %v1723_v60  ;;  %v1538_v2 = vadd.f32 %v1537_v6, %v3720_v44 }
 0x305   :  { %v1394_v36 = vpop.f32.mrf.mxu2 }
 0x306   :  { %v1395_v15 = vadd.f32 %v1394_v36, %v3633_v31  ;;  %1576 = vmatmul.bf16.gmra.mxu0 %v3636_v3  ;;  %v1627_v38 = vadd.f32 %v1626_v30, %v1538_v2 }
 0x307   :  { %1665 = vmatmul.bf16.gmra.mxu1 %v3717_v58  ;;  %v1483_v45 = vpop.f32.mrf.mxu3 }
 0x308   :  { %v1484_v26 = vadd.f32 %v1483_v45, %v1395_v15  ;;  %v1700_v27 = vmax.f32 %v1627_v38, 0.0 }
 0x30a   :  { %v1727_v3 = vmax.f32 %v1484_v26, 0.0 }
 0x30b   :  { %v1539_v48 = vpop.f32.mrf.mxu0 }
 0x30c   :  { %v1540_v12 = vadd.f32 %v1539_v48, %v3720_v44  ;;  %v1628_v22 = vpop.f32.mrf.mxu1 }
 0x30d   :  { %v1396_v52 = vpop.f32.mrf.mxu2 }
 0x30e   :  { %v1629_v18 = vadd.f32 %v1628_v22, %v1540_v12  ;;  %v1397_v33 = vadd.f32 %v1396_v52, %v3633_v31 }
 0x30f   :  { %v1485_v32 = vpop.f32.mrf.mxu3 }
 0x310   :  { %v1702_v0 = vmax.f32 %v1629_v18, 0.0  ;;  %v1486_v19 = vadd.f32 %v1485_v32, %v1397_v33 }
 0x312   :  { %v1750_v43 = vpack.c.bf16 %v1702_v0, %v1700_v27  ;;  %v1729_v58 = vmax.f32 %v1486_v19, 0.0  ;;  %1942 = vmatmul.bf16.gmra.mxu2 %v3732_v54 }
 0x313   :  { %v1542_v47 = vpop.f32.mrf.mxu0 }
 0x314   :  { %v1631_v28 = vpop.f32.mrf.mxu1  ;;  %2031 = vmatmul.bf16.gmra.mxu3 %v1750_v43  ;;  %v3795_v51 = vpack.c.bf16 %v1729_v58, %v1727_v3  ;;  %v1543_v59 = vadd.f32 %v1542_v47, %v3720_v44 }
 0x315   :  { %v1399_v11 = vpop.f32.mrf.mxu2 }
 0x316   :  { %v1400_v57 = vadd.f32 %v1399_v11, %v3633_v31  ;;  %v1632_v24 = vadd.f32 %v1631_v28, %v1543_v59 }
 0x317   :  { %v1488_v13 = vpop.f32.mrf.mxu3 }
 0x318   :  { %v1489_v49 = vadd.f32 %v1488_v13, %v1400_v57  ;;  %v1704_v39 = vmax.f32 %v1632_v24, 0.0 }
 0x31a   :  { %v1731_v23 = vmax.f32 %v1489_v49, 0.0 }
 0x31b   :  { %v1544_v10 = vpop.f32.mrf.mxu0 }
 0x31c   :  { %v1545_v29 = vadd.f32 %v1544_v10, %v3720_v44  ;;  %v1633_v53 = vpop.f32.mrf.mxu1 }
 0x31d   :  { %v1401_v17 = vpop.f32.mrf.mxu2 }
 0x31e   :  { %v1634_v7 = vadd.f32 %v1633_v53, %v1545_v29  ;;  %v1402_v54 = vadd.f32 %v1401_v17, %v3633_v31 }
 0x31f   :  { %v1490_v21 = vpop.f32.mrf.mxu3 }
 0x320   :  { %v1706_v8 = vmax.f32 %v1634_v7, 0.0  ;;  %v1491_v40 = vadd.f32 %v1490_v21, %v1402_v54 }
 0x322   :  { %v1752_v4 = vpack.c.bf16 %v1706_v8, %v1704_v39  ;;  %v1733_v1 = vmax.f32 %v1491_v40, 0.0  ;;  %1947 = vmatmul.bf16.gmra.mxu2 %v3741_v63 }
 0x323   :  { %v1547_v56 = vpop.f32.mrf.mxu0 }
 0x324   :  { %v1636_v50 = vpop.f32.mrf.mxu1  ;;  %2036 = vmatmul.bf16.gmra.mxu3 %v1752_v4  ;;  %v3802_v9 = vpack.c.bf16 %v1733_v1, %v1731_v23  ;;  %v1548_v62 = vadd.f32 %v1547_v56, %v3720_v44 }
 0x325   :  { %v1908_v31 = vpop.f32.mrf.mxu2 }
 0x326   :  { %v1909_v20 = vadd.f32 %v3807_v41, %v1908_v31  ;;  %v1637_v35 = vadd.f32 %v1636_v50, %v1548_v62 }
 0x327   :  { %v1997_v42 = vpop.f32.mrf.mxu3 }
 0x328   :  { %v1998_v60 = vadd.f32 %v1997_v42, %v1909_v20  ;;  %v1708_v36 = vmax.f32 %v1637_v35, 0.0 }
 0x32a   :  { %2748 = vtanh.f32 %v1998_v60 }
 0x32b   :  { %v1549_v55 = vpop.f32.mrf.mxu0 }
 0x32c   :  { %v1550_v63 = vadd.f32 %v1549_v55, %v3720_v44  ;;  %v1638_v5 = vpop.f32.mrf.mxu1 }
 0x32d   :  { %v1910_v46 = vpop.f32.mrf.mxu2 }
 0x32e   :  { %v1639_v37 = vadd.f32 %v1638_v5, %v1550_v63  ;;  %v1911_v6 = vadd.f32 %v3807_v41, %v1910_v46 }
 0x32f   :  { %v1999_v30 = vpop.f32.mrf.mxu3 }
 0x330   :  { %v1710_v15 = vmax.f32 %v1639_v37, 0.0  ;;  %v2000_v45 = vadd.f32 %v1999_v30, %v1911_v6  ;;  %v2749_v12 = vpop.eup %2748 }
 0x332   :  { %v1754_v2 = vpack.c.bf16 %v1710_v15, %v1708_v36  ;;  %2750 = vtanh.f32 %v2000_v45  ;;  %1952 = vmatmul.bf16.gmra.mxu2 %v3750_v25 }
 0x333   :  { %v1552_v26 = vpop.f32.mrf.mxu0 }
 0x334   :  { %v1641_v48 = vpop.f32.mrf.mxu1  ;;  %2041 = vmatmul.bf16.gmra.mxu3 %v1754_v2  ;;  %v1553_v18 = vadd.f32 %v1552_v26, %v3720_v44 }
 0x335   :  { %v1913_v38 = vpop.f32.mrf.mxu2 }
 0x336   :  { %v1914_v32 = vadd.f32 %v3807_v41, %v1913_v38  ;;  %v1642_v0 = vadd.f32 %v1641_v48, %v1553_v18 }
 0x337   :  { %v2002_v22 = vpop.f32.mrf.mxu3 }
 0x338   :  { %v2751_v52 = vpop.eup %2750  ;;  %v2003_v43 = vadd.f32 %v2002_v22, %v1914_v32  ;;  %v1712_v11 = vmax.f32 %v1642_v0, 0.0 }
 0x339   :  { %v2648_v33 = vpack.c.bf16 %v2751_v52, %v2749_v12 }
 0x33a   :  { %2752 = vtanh.f32 %v2003_v43 }
 0x33b   :  { %2649 = vst [vmem:[#allocation7] sm:$0xff] %v2648_v33   ;;  %v1554_v27 = vpop.f32.mrf.mxu0 }
 0x33c   :  { %v1555_v19 = vadd.f32 %v1554_v27, %v3720_v44  ;;  %v1643_v3 = vpop.f32.mrf.mxu1 }
 0x33d   :  { %v1915_v25 = vpop.f32.mrf.mxu2 }
 0x33e   :  { %v1644_v58 = vadd.f32 %v1643_v3, %v1555_v19  ;;  %v1916_v47 = vadd.f32 %v3807_v41, %v1915_v25 }
 0x33f   :  { %v2004_v28 = vpop.f32.mrf.mxu3 }
 0x340   :  { %v1714_v57 = vmax.f32 %v1644_v58, 0.0  ;;  %v2005_v13 = vadd.f32 %v2004_v28, %v1916_v47  ;;  %v2753_v29 = vpop.eup %2752 }
 0x342   :  { %v1756_v59 = vpack.c.bf16 %v1714_v57, %v1712_v11  ;;  %2754 = vtanh.f32 %v2005_v13  ;;  %1957 = vmatmul.bf16.gmra.mxu2 %v3759_v14 }
 0x343   :  { %v1557_v49 = vpop.f32.mrf.mxu0 }
 0x344   :  { %v1646_v10 = vpop.f32.mrf.mxu1  ;;  %2046 = vmatmul.bf16.gmra.mxu3 %v1756_v59  ;;  %v1558_v7 = vadd.f32 %v1557_v49, %v3720_v44 }
 0x345   :  { %v1918_v24 = vpop.f32.mrf.mxu2 }
 0x346   :  { %v1919_v21 = vadd.f32 %v3807_v41, %v1918_v24  ;;  %v1647_v8 = vadd.f32 %v1646_v10, %v1558_v7 }
 0x347   :  { %v2007_v53 = vpop.f32.mrf.mxu3 }
 0x348   :  { %v2755_v17 = vpop.eup %2754  ;;  %v2008_v4 = vadd.f32 %v2007_v53, %v1919_v21  ;;  %v1716_v31 = vmax.f32 %v1647_v8, 0.0 }
 0x349   :  { %v2653_v54 = vpack.c.bf16 %v2755_v17, %v2753_v29 }
 0x34a   :  { %2756 = vtanh.f32 %v2008_v4 }
 0x34b   :  { %2725 = vst [vmem:[#allocation7 + $0x8] sm:$0xff] %v2653_v54   ;;  %v1559_v39 = vpop.f32.mrf.mxu0 }
 0x34c   :  { %v1560_v40 = vadd.f32 %v1559_v39, %v3720_v44  ;;  %v1648_v23 = vpop.f32.mrf.mxu1 }
 0x34d   :  { %v1920_v14 = vpop.f32.mrf.mxu2 }
 0x34e   :  { %v1649_v1 = vadd.f32 %v1648_v23, %v1560_v40  ;;  %v1921_v56 = vadd.f32 %v3807_v41, %v1920_v14 }
 0x34f   :  { %v2009_v50 = vpop.f32.mrf.mxu3 }
 0x350   :  { %v1718_v42 = vmax.f32 %v1649_v1, 0.0  ;;  %v2010_v62 = vadd.f32 %v2009_v50, %v1921_v56  ;;  %v2757_v5 = vpop.eup %2756 }
 0x352   :  { %v1758_v20 = vpack.c.bf16 %v1718_v42, %v1716_v31  ;;  %2758 = vtanh.f32 %v2010_v62  ;;  %1962 = vmatmul.bf16.gmra.mxu2 %v3768_v16 }
 0x353   :  { %v1562_v55 = vpop.f32.mrf.mxu0 }
 0x354   :  { %v1651_v35 = vpop.f32.mrf.mxu1  ;;  %2051 = vmatmul.bf16.gmra.mxu3 %v1758_v20  ;;  %v1563_v37 = vadd.f32 %v1562_v55, %v3720_v44 }
 0x355   :  { %v1923_v63 = vpop.f32.mrf.mxu2 }
 0x356   :  { %v1924_v30 = vadd.f32 %v3807_v41, %v1923_v63  ;;  %v1652_v15 = vadd.f32 %v1651_v35, %v1563_v37 }
 0x357   :  { %v2012_v60 = vpop.f32.mrf.mxu3 }
 0x358   :  { %v2759_v46 = vpop.eup %2758  ;;  %v2013_v26 = vadd.f32 %v2012_v60, %v1924_v30  ;;  %v1720_v22 = vmax.f32 %v1652_v15, 0.0 }
 0x359   :  { %v2658_v6 = vpack.c.bf16 %v2759_v46, %v2757_v5 }
 0x35a   :  { %2760 = vtanh.f32 %v2013_v26 }
 0x35b   :  { %2726 = vst [vmem:[#allocation7 + $0x10] sm:$0xff] %v2658_v6   ;;  %v1564_v36 = vpop.f32.mrf.mxu0 }
 0x35c   :  { %v1565_v45 = vadd.f32 %v1564_v36, %v3720_v44  ;;  %v1653_v2 = vpop.f32.mrf.mxu1 }
 0x35d   :  { %v1925_v16 = vpop.f32.mrf.mxu2 }
 0x35e   :  { %v1654_v48 = vadd.f32 %v1653_v2, %v1565_v45  ;;  %v1926_v38 = vadd.f32 %v3807_v41, %v1925_v16 }
 0x35f   :  { %v2014_v12 = vpop.f32.mrf.mxu3 }
 0x360   :  { %v1722_v52 = vmax.f32 %v1654_v48, 0.0  ;;  %v2015_v18 = vadd.f32 %v2014_v12, %v1926_v38  ;;  %v2761_v19 = vpop.eup %2760 }
 0x362   :  { %v1760_v33 = vpack.c.bf16 %v1722_v52, %v1720_v22  ;;  %2762 = vtanh.f32 %v2015_v18  ;;  %1967 = vmatmul.bf16.gmra.mxu2 %v3777_v61 }
 0x363   :  { %v1567_v32 = vpop.f32.mrf.mxu0 }
 0x364   :  { %v1656_v27 = vpop.f32.mrf.mxu1  ;;  %2056 = vmatmul.bf16.gmra.mxu3 %v1760_v33  ;;  %v1568_v25 = vadd.f32 %v1567_v32, %v3720_v44 }
 0x365   :  { %v1928_v0 = vpop.f32.mrf.mxu2 }
 0x366   :  { %v1929_v47 = vadd.f32 %v3807_v41, %v1928_v0  ;;  %v1657_v11 = vadd.f32 %v1656_v27, %v1568_v25 }
 0x367   :  { %v2017_v3 = vpop.f32.mrf.mxu3 }
 0x368   :  { %v2763_v43 = vpop.eup %2762  ;;  %v2018_v59 = vadd.f32 %v2017_v3, %v1929_v47  ;;  %v1724_v29 = vmax.f32 %v1657_v11, 0.0 }
 0x369   :  { %v2663_v58 = vpack.c.bf16 %v2763_v43, %v2761_v19 }
 0x36a   :  { %2764 = vtanh.f32 %v2018_v59 }
 0x36b   :  { %2727 = vst [vmem:[#allocation7 + $0x18] sm:$0xff] %v2663_v58   ;;  %v1569_v28 = vpop.f32.mrf.mxu0 }
 0x36c   :  { %v1570_v57 = vadd.f32 %v1569_v28, %v3720_v44  ;;  %v1658_v13 = vpop.f32.mrf.mxu1 }
 0x36d   :  { %v1930_v61 = vpop.f32.mrf.mxu2 }
 0x36e   :  { %v1659_v49 = vadd.f32 %v1658_v13, %v1570_v57  ;;  %v1931_v10 = vadd.f32 %v3807_v41, %v1930_v61 }
 0x36f   :  { %v2019_v24 = vpop.f32.mrf.mxu3 }
 0x370   :  { %v1726_v53 = vmax.f32 %v1659_v49, 0.0  ;;  %v2020_v17 = vadd.f32 %v2019_v24, %v1931_v10  ;;  %v2765_v8 = vpop.eup %2764 }
 0x372   :  { %v1762_v7 = vpack.c.bf16 %v1726_v53, %v1724_v29  ;;  %2766 = vtanh.f32 %v2020_v17  ;;  %1972 = vmatmul.bf16.gmra.mxu2 %v3786_v34 }
 0x373   :  { %v1572_v54 = vpop.f32.mrf.mxu0 }
 0x374   :  { %v1661_v21 = vpop.f32.mrf.mxu1  ;;  %2061 = vmatmul.bf16.gmra.mxu3 %v1762_v7  ;;  %v1573_v4 = vadd.f32 %v1572_v54, %v3720_v44 }
 0x375   :  { %v1933_v39 = vpop.f32.mrf.mxu2 }
 0x376   :  { %v1934_v1 = vadd.f32 %v3807_v41, %v1933_v39  ;;  %v1662_v50 = vadd.f32 %v1661_v21, %v1573_v4 }
 0x377   :  { %v2022_v40 = vpop.f32.mrf.mxu3 }
 0x378   :  { %v2767_v23 = vpop.eup %2766  ;;  %v2023_v62 = vadd.f32 %v2022_v40, %v1934_v1  ;;  %v1728_v63 = vmax.f32 %v1662_v50, 0.0 }
 0x379   :  { %v2668_v14 = vpack.c.bf16 %v2767_v23, %v2765_v8 }
 0x37a   :  { %2768 = vtanh.f32 %v2023_v62 }
 0x37b   :  { %2728 = vst [vmem:[#allocation7 + $0x20] sm:$0xff] %v2668_v14   ;;  %v1574_v56 = vpop.f32.mrf.mxu0 }
 0x37c   :  { %v1575_v31 = vadd.f32 %v1574_v56, %v3720_v44  ;;  %v1663_v42 = vpop.f32.mrf.mxu1 }
 0x37d   :  { %v1935_v34 = vpop.f32.mrf.mxu2 }
 0x37e   :  { %v1664_v20 = vadd.f32 %v1663_v42, %v1575_v31  ;;  %v1936_v55 = vadd.f32 %v3807_v41, %v1935_v34 }
 0x37f   :  { %v2024_v35 = vpop.f32.mrf.mxu3 }
 0x380   :  { %v1730_v5 = vmax.f32 %v1664_v20, 0.0  ;;  %v2025_v60 = vadd.f32 %v2024_v35, %v1936_v55  ;;  %v2769_v36 = vpop.eup %2768 }
 0x382   :  { %v1764_v46 = vpack.c.bf16 %v1730_v5, %v1728_v63  ;;  %2770 = vtanh.f32 %v2025_v60  ;;  %1977 = vmatmul.bf16.gmra.mxu2 %v3795_v51 }
 0x383   :  { %v1577_v37 = vpop.f32.mrf.mxu0 }
 0x384   :  { %v1666_v6 = vpop.f32.mrf.mxu1  ;;  %2066 = vmatmul.bf16.gmra.mxu3 %v1764_v46  ;;  %v1578_v2 = vadd.f32 %v1577_v37, %v3720_v44 }
 0x385   :  { %v1938_v30 = vpop.f32.mrf.mxu2 }
 0x386   :  { %v1939_v16 = vadd.f32 %v3807_v41, %v1938_v30  ;;  %v1667_v38 = vadd.f32 %v1666_v6, %v1578_v2 }
 0x387   :  { %v2027_v15 = vpop.f32.mrf.mxu3 }
 0x388   :  { %v2771_v45 = vpop.eup %2770  ;;  %v2028_v22 = vadd.f32 %v2027_v15, %v1939_v16  ;;  %v1732_v27 = vmax.f32 %v1667_v38, 0.0 }
 0x389   :  { %v2673_v26 = vpack.c.bf16 %v2771_v45, %v2769_v36 }
 0x38a   :  { %2772 = vtanh.f32 %v2028_v22 }
 0x38b   :  { %2729 = vst [vmem:[#allocation7 + $0x28] sm:$0xff] %v2673_v26   ;;  %v1579_v48 = vpop.f32.mrf.mxu0 }
 0x38c   :  { %v1580_v12 = vadd.f32 %v1579_v48, %v3720_v44  ;;  %v1668_v52 = vpop.f32.mrf.mxu1 }
 0x38d   :  { %v1940_v51 = vpop.f32.mrf.mxu2 }
 0x38e   :  { %v1669_v18 = vadd.f32 %v1668_v52, %v1580_v12  ;;  %v1941_v33 = vadd.f32 %v3807_v41, %v1940_v51 }
 0x38f   :  { %v2029_v32 = vpop.f32.mrf.mxu3 }
 0x390   :  { %v1734_v0 = vmax.f32 %v1669_v18, 0.0  ;;  %v2030_v19 = vadd.f32 %v2029_v32, %v1941_v33  ;;  %v2773_v25 = vpop.eup %2772 }
 0x392   :  { %v1766_v3 = vpack.c.bf16 %v1734_v0, %v1732_v27  ;;  %2774 = vtanh.f32 %v2030_v19  ;;  %1982 = vmatmul.bf16.gmra.mxu2 %v3802_v9 }
 0x394   :  { %2071 = vmatmul.bf16.gmra.mxu3 %v1766_v3 }
 0x395   :  { %v1943_v43 = vpop.f32.mrf.mxu2 }
 0x396   :  { %v1944_v28 = vadd.f32 %v3807_v41, %v1943_v43 }
 0x397   :  { %v2032_v58 = vpop.f32.mrf.mxu3 }
 0x398   :  { %v2775_v44 = vpop.eup %2774  ;;  %v2033_v11 = vadd.f32 %v2032_v58, %v1944_v28 }
 0x399   :  { %v2678_v47 = vpack.c.bf16 %v2775_v44, %v2773_v25 }
 0x39a   :  { %2776 = vtanh.f32 %v2033_v11 }
 0x39b   :  { %2730 = vst [vmem:[#allocation7 + $0x30] sm:$0xff] %v2678_v47  }
 0x39d   :  { %v1945_v57 = vpop.f32.mrf.mxu2 }
 0x39e   :  { %v1946_v13 = vadd.f32 %v3807_v41, %v1945_v57 }
 0x39f   :  { %v2034_v59 = vpop.f32.mrf.mxu3 }
 0x3a0   :  { %v2035_v61 = vadd.f32 %v2034_v59, %v1946_v13  ;;  %v2777_v10 = vpop.eup %2776 }
 0x3a2   :  { %2778 = vtanh.f32 %v2035_v61 }
 0x3a5   :  { %v1948_v49 = vpop.f32.mrf.mxu2 }
 0x3a6   :  { %v1949_v53 = vadd.f32 %v3807_v41, %v1948_v49 }
 0x3a7   :  { %v2037_v9 = vpop.f32.mrf.mxu3 }
 0x3a8   :  { %v2779_v24 = vpop.eup %2778  ;;  %v2038_v17 = vadd.f32 %v2037_v9, %v1949_v53 }
 0x3a9   :  { %v2683_v29 = vpack.c.bf16 %v2779_v24, %v2777_v10 }
 0x3aa   :  { %2780 = vtanh.f32 %v2038_v17 }
 0x3ab   :  { %2731 = vst [vmem:[#allocation7 + $0x38] sm:$0xff] %v2683_v29  }
 0x3ad   :  { %v1950_v7 = vpop.f32.mrf.mxu2 }
 0x3ae   :  { %v1951_v54 = vadd.f32 %v3807_v41, %v1950_v7 }
 0x3af   :  { %v2039_v21 = vpop.f32.mrf.mxu3 }
 0x3b0   :  { %v2040_v39 = vadd.f32 %v2039_v21, %v1951_v54  ;;  %v2781_v40 = vpop.eup %2780 }
 0x3b2   :  { %2782 = vtanh.f32 %v2040_v39 }
 0x3b5   :  { %v1953_v8 = vpop.f32.mrf.mxu2 }
 0x3b6   :  { %v1954_v1 = vadd.f32 %v3807_v41, %v1953_v8 }
 0x3b7   :  { %v2042_v23 = vpop.f32.mrf.mxu3 }
 0x3b8   :  { %v2783_v4 = vpop.eup %2782  ;;  %v2043_v56 = vadd.f32 %v2042_v23, %v1954_v1 }
 0x3b9   :  { %v2688_v14 = vpack.c.bf16 %v2783_v4, %v2781_v40 }
 0x3ba   :  { %2784 = vtanh.f32 %v2043_v56 }
 0x3bb   :  { %2732 = vst [vmem:[#allocation7 + $0x40] sm:$0xff] %v2688_v14  }
 0x3bd   :  { %v1955_v50 = vpop.f32.mrf.mxu2 }
 0x3be   :  { %v1956_v31 = vadd.f32 %v3807_v41, %v1955_v50 }
 0x3bf   :  { %v2044_v42 = vpop.f32.mrf.mxu3 }
 0x3c0   :  { %v2045_v62 = vadd.f32 %v2044_v42, %v1956_v31  ;;  %v2785_v20 = vpop.eup %2784 }
 0x3c2   :  { %2786 = vtanh.f32 %v2045_v62 }
 0x3c5   :  { %v1958_v34 = vpop.f32.mrf.mxu2 }
 0x3c6   :  { %v1959_v5 = vadd.f32 %v3807_v41, %v1958_v34 }
 0x3c7   :  { %v2047_v55 = vpop.f32.mrf.mxu3 }
 0x3c8   :  { %v2787_v35 = vpop.eup %2786  ;;  %v2048_v60 = vadd.f32 %v2047_v55, %v1959_v5 }
 0x3c9   :  { %v2693_v63 = vpack.c.bf16 %v2787_v35, %v2785_v20 }
 0x3ca   :  { %2788 = vtanh.f32 %v2048_v60 }
 0x3cb   :  { %2733 = vst [vmem:[#allocation7 + $0x48] sm:$0xff] %v2693_v63  }
 0x3cd   :  { %v1960_v46 = vpop.f32.mrf.mxu2 }
 0x3ce   :  { %v1961_v37 = vadd.f32 %v3807_v41, %v1960_v46 }
 0x3cf   :  { %v2049_v6 = vpop.f32.mrf.mxu3 }
 0x3d0   :  { %v2050_v30 = vadd.f32 %v2049_v6, %v1961_v37  ;;  %v2789_v15 = vpop.eup %2788 }
 0x3d2   :  { %2790 = vtanh.f32 %v2050_v30 }
 0x3d5   :  { %v1963_v36 = vpop.f32.mrf.mxu2 }
 0x3d6   :  { %v1964_v16 = vadd.f32 %v3807_v41, %v1963_v36 }
 0x3d7   :  { %v2052_v45 = vpop.f32.mrf.mxu3 }
 0x3d8   :  { %v2791_v2 = vpop.eup %2790  ;;  %v2053_v48 = vadd.f32 %v2052_v45, %v1964_v16 }
 0x3d9   :  { %v2698_v26 = vpack.c.bf16 %v2791_v2, %v2789_v15 }
 0x3da   :  { %2792 = vtanh.f32 %v2053_v48 }
 0x3db   :  { %2734 = vst [vmem:[#allocation7 + $0x50] sm:$0xff] %v2698_v26  }
 0x3dd   :  { %v1965_v38 = vpop.f32.mrf.mxu2 }
 0x3de   :  { %v1966_v12 = vadd.f32 %v3807_v41, %v1965_v38 }
 0x3df   :  { %v2054_v22 = vpop.f32.mrf.mxu3 }
 0x3e0   :  { %v2055_v52 = vadd.f32 %v2054_v22, %v1966_v12  ;;  %v2793_v18 = vpop.eup %2792 }
 0x3e2   :  { %2794 = vtanh.f32 %v2055_v52 }
 0x3e5   :  { %v1968_v51 = vpop.f32.mrf.mxu2 }
 0x3e6   :  { %v1969_v0 = vadd.f32 %v3807_v41, %v1968_v51 }
 0x3e7   :  { %v2057_v33 = vpop.f32.mrf.mxu3 }
 0x3e8   :  { %v2795_v32 = vpop.eup %2794  ;;  %v2058_v19 = vadd.f32 %v2057_v33, %v1969_v0 }
 0x3e9   :  { %v2703_v27 = vpack.c.bf16 %v2795_v32, %v2793_v18 }
 0x3ea   :  { %2796 = vtanh.f32 %v2058_v19 }
 0x3eb   :  { %2735 = vst [vmem:[#allocation7 + $0x58] sm:$0xff] %v2703_v27  }
 0x3ed   :  { %v1970_v3 = vpop.f32.mrf.mxu2 }
 0x3ee   :  { %v1971_v43 = vadd.f32 %v3807_v41, %v1970_v3 }
 0x3ef   :  { %v2059_v25 = vpop.f32.mrf.mxu3 }
 0x3f0   :  { %v2060_v58 = vadd.f32 %v2059_v25, %v1971_v43  ;;  %v2797_v47 = vpop.eup %2796 }
 0x3f2   :  { %2798 = vtanh.f32 %v2060_v58 }
 0x3f5   :  { %v1973_v44 = vpop.f32.mrf.mxu2 }
 0x3f6   :  { %v1974_v13 = vadd.f32 %v3807_v41, %v1973_v44 }
 0x3f7   :  { %v2062_v28 = vpop.f32.mrf.mxu3 }
 0x3f8   :  { %v2799_v11 = vpop.eup %2798  ;;  %v2063_v59 = vadd.f32 %v2062_v28, %v1974_v13 }
 0x3f9   :  { %v2708_v57 = vpack.c.bf16 %v2799_v11, %v2797_v47 }
 0x3fa   :  { %2800 = vtanh.f32 %v2063_v59 }
 0x3fb   :  { %2736 = vst [vmem:[#allocation7 + $0x60] sm:$0xff] %v2708_v57  }
 0x3fd   :  { %v1975_v61 = vpop.f32.mrf.mxu2 }
 0x3fe   :  { %v1976_v49 = vadd.f32 %v3807_v41, %v1975_v61 }
 0x3ff   :  { %v2064_v10 = vpop.f32.mrf.mxu3 }
 0x400   :  { %v2065_v9 = vadd.f32 %v2064_v10, %v1976_v49  ;;  %v2801_v29 = vpop.eup %2800 }
 0x402   :  { %2802 = vtanh.f32 %v2065_v9 }
 0x405   :  { %v1978_v24 = vpop.f32.mrf.mxu2 }
 0x406   :  { %v1979_v54 = vadd.f32 %v3807_v41, %v1978_v24 }
 0x407   :  { %v2067_v53 = vpop.f32.mrf.mxu3 }
 0x408   :  { %v2803_v17 = vpop.eup %2802  ;;  %v2068_v21 = vadd.f32 %v2067_v53, %v1979_v54 }
 0x409   :  { %v2713_v7 = vpack.c.bf16 %v2803_v17, %v2801_v29 }
 0x40a   :  { %2804 = vtanh.f32 %v2068_v21 }
 0x40b   :  { %2737 = vst [vmem:[#allocation7 + $0x68] sm:$0xff] %v2713_v7  }
 0x40d   :  { %v1980_v39 = vpop.f32.mrf.mxu2 }
 0x40e   :  { %v1981_v8 = vadd.f32 %v3807_v41, %v1980_v39 }
 0x40f   :  { %v2069_v40 = vpop.f32.mrf.mxu3 }
 0x410   :  { %v2070_v23 = vadd.f32 %v2069_v40, %v1981_v8  ;;  %v2805_v14 = vpop.eup %2804 }
 0x412   :  { %2806 = vtanh.f32 %v2070_v23 }
 0x415   :  { %v1983_v4 = vpop.f32.mrf.mxu2 }
 0x416   :  { %v1984_v31 = vadd.f32 %v3807_v41, %v1983_v4 }
 0x417   :  { %v2072_v1 = vpop.f32.mrf.mxu3 }
 0x418   :  { %v2807_v56 = vpop.eup %2806  ;;  %v2073_v42 = vadd.f32 %v2072_v1, %v1984_v31 }
 0x419   :  { %v2718_v50 = vpack.c.bf16 %v2807_v56, %v2805_v14 }
 0x41a   :  { %2808 = vtanh.f32 %v2073_v42 }
 0x41b   :  { %2738 = vst [vmem:[#allocation7 + $0x70] sm:$0xff] %v2718_v50  }
 0x41d   :  { %v1985_v62 = vpop.f32.mrf.mxu2 }
 0x41e   :  { %v1986_v34 = vadd.f32 %v3807_v41, %v1985_v62 }
 0x41f   :  { %v2074_v20 = vpop.f32.mrf.mxu3 }
 0x420   :  { %v2075_v55 = vadd.f32 %v2074_v20, %v1986_v34  ;;  %v2809_v35 = vpop.eup %2808 }
 0x422   :  { %2810 = vtanh.f32 %v2075_v55 }
 0x428   :  { %v2811_v63 = vpop.eup %2810 }
 0x429   :  { %v2723_v5 = vpack.c.bf16 %v2811_v63, %v2809_v35 }
 0x42b   :  { %2739 = vst [vmem:[#allocation7 + $0x78] sm:$0xff] %v2723_v5  }
 0x42c   :  { %2185 = dma.vmem_to_hbm [thread:$0]  %s2178_s11, 2048, %s2180_s14, [#allocation4], %s2894_s21, %s2894_s21, %s2895_s22  }
 0x42d   :  { %2888 = dma.done.wait [#allocation4], 2048  }
 0x42e   :  { %2889 = vsyncadd [#allocation4], 4294965248 }
 0x42f   :  { %2190 = vsyncpa [#allocation3], 1 }
 0x430   :  { %2191 = vsyncpa [#allocation6], 1 }
 0x431   :  { %2192 = vsyncpa [#allocation4], 1 }

// kernel: tpu_custom_call.1
= control target key start
LH: loop header
LB: loop body
LE: loop exit
PB: predicated region body
PF: predicated region fallthrough
CT: control target
= control target key end

     0   :  { %14 = vsyncpa [#allocation3], 0  ;;  %s3868_s0 = inlined_call_operand.vmem [shape: f32[256,32], index: 0, kind: input, shape index: {}]   ;;  %s3869_s1 = inlined_call_operand.vmem [shape: bf16[32,256], index: 1, kind: input, shape index: {}]   ;;  %s3870_s2 = inlined_call_operand.vmem [shape: f32[1,256], index: 2, kind: input, shape index: {}]   ;;  %s3871_s3 = inlined_call_operand.vmem [shape: bf16[256,256], index: 3, kind: input, shape index: {}]   ;;  %s3872_s4 = inlined_call_operand.vmem [shape: f32[1,256], index: 4, kind: input, shape index: {}]   ;;  %s3873_s5 = inlined_call_operand.hbm [shape: bf16[256,256], index: 5, kind: input, shape index: {}]   ;;  %s3874_s6 = inlined_call_operand.vmem [shape: f32[1,256], index: 6, kind: input, shape index: {}]   ;;  %s3875_s7 = inlined_call_operand.hbm [shape: bf16[256,128], index: 7, kind: input, shape index: {}]   ;;  %s3876_s8 = inlined_call_operand.vmem [shape: f32[1,128], index: 8, kind: input, shape index: {}]   ;;  %s3877_s9 = inlined_call_operand.hbm [shape: bf16[256,128], index: 9, kind: output, shape index: {}]  }
   0x1   :  { %15 = vsyncpa [#allocation6], 0 }
   0x2   :  { %16 = vsyncpa [#allocation4], 0  ;;  %s31_s11 = sshll.u32 %s3873_s5, 4  ;;  %s2890_s12 = smov [#allocation2]   ;;  %s32_s11 = int_to_ptr.hbm [resolvable:$true] %s31_s11 }
   0x3   :  { %s33_s13 = sshll.u32 %s2890_s12, 4  ;;  %s46_s16 = sshll.u32 %s3875_s7, 4  ;;  %s34_s13 = int_to_ptr.vmem [resolvable:$true] %s33_s13  ;;  %s47_s16 = int_to_ptr.hbm [resolvable:$true] %s46_s16 }
   0x4   :  { %s2891_s17 = smov 128   ;;  %s2892_s18 = smov 8  }
   0x5   :  { %39 = dma.hbm_to_vmem [thread:$0]  %s32_s11, 4096, %s34_s13, [#allocation3], %s2891_s17, %s2891_s17, %s2892_s18  }
   0x6   :  { %s2893_s19 = smov [#allocation5]   ;;  %s2894_s21 = smov 64  }
   0x7   :  { %s48_s20 = sshll.u32 %s2893_s19, 4  ;;  %s2895_s22 = smov 4   ;;  %s49_s20 = int_to_ptr.vmem [resolvable:$true] %s48_s20 }
   0x8   :  { %54 = dma.hbm_to_vmem [thread:$0]  %s47_s16, 2048, %s49_s20, [#allocation6], %s2894_s21, %s2894_s21, %s2895_s22  }
   0x9   :  { %2884 = dma.done.wait [#allocation3], 4096  }
   0xa   :  { %2885 = vsyncadd [#allocation3], 4294963200 }
   0xb   :  { %2886 = dma.done.wait [#allocation6], 2048  }
   0xc   :  { %2887 = vsyncadd [#allocation6], 4294965248  ;;  %v2203_v0 = vld [vmem:[%s3869_s1 + $0x10] sm:$0xf]  ;;  %v2564_v1 = vld [vmem:[%s3869_s1 + $0x14] sm:$0xf0] }
   0xd   :  { %v2563_v2 = vld [vmem:[%s3869_s1 + $0x14] sm:$0xf]  ;;  %v2204_v3 = vor.u32 %v2564_v1, %v2203_v0  ;;  %v2205_v4 = vld [vmem:[%s3869_s1 + $0x18] sm:$0xf0]  ;;  %v2195_v5 = vld [vmem:[%s3869_s1] sm:$0xf] }
   0xe   :  { %v2562_v6 = vld [vmem:[%s3869_s1 + $0x4] sm:$0xf0]  ;;  %v2208_v7 = vor.u32 %v2563_v2, %v2205_v4  ;;  %v2561_v8 = vld [vmem:[%s3869_s1 + $0x4] sm:$0xf]  ;;  %v2197_v9 = vld [vmem:[%s3869_s1 + $0x8] sm:$0xf0] }
   0xf   :  { %v66_v10 = vld [vmem:[%s3868_s0] sm:$0xff]  ;;  %199 = vmatpush.bf16.msra.mxu0 %v2204_v3  ;;  %v2196_v11 = vor.u32 %v2562_v6, %v2195_v5  ;;  %v67_v12 = vld [vmem:[%s3868_s0 + $0x8] sm:$0xff]  ;;  %v2579_v13 = vld [vmem:[%s3871_s3 + $0x74] sm:$0xf]  ;;  %v2200_v15 = vor.u32 %v2561_v8, %v2197_v9  ;;  %vm144_vm0 = vcmask 261120   ;;  %s2179_s14 = sshll.u32 %s3877_s9, 4  ;;  %s2180_s14 = int_to_ptr.hbm [resolvable:$true] %s2179_s14 }
  0x10   :  { %v2301_v14 = vld [vmem:[%s3871_s3 + $0x78] sm:$0xf0]  ;;  %288 = vmatpush.bf16.msra.mxu1 %v2208_v7  ;;  %v2595_v17 = vld [vmem:[%s3871_s3 + $0xf4] sm:$0xf]  ;;  %v98_v20 = vpack.c.bf16 %v67_v12, %v66_v10  ;;  %v2577_v21 = vld [vmem:[%s3871_s3 + $0x64] sm:$0xf] }
  0x11   :  { %v2304_v16 = vor.u32 %v2579_v13, %v2301_v14  ;;  %v2365_v18 = vld [vmem:[%s3871_s3 + $0xf8] sm:$0xf0]  ;;  %v2293_v22 = vld [vmem:[%s3871_s3 + $0x68] sm:$0xf0]  ;;  %v2593_v23 = vld [vmem:[%s3871_s3 + $0xe4] sm:$0xf] }
  0x12   :  { %v2368_v19 = vor.u32 %v2595_v17, %v2365_v18  ;;  %v2296_v24 = vor.u32 %v2577_v21, %v2293_v22  ;;  %v2357_v25 = vld [vmem:[%s3871_s3 + $0xe8] sm:$0xf0]  ;;  %v68_v27 = vld [vmem:[%s3868_s0 + $0x10] sm:$0xff]  ;;  %v69_v28 = vld [vmem:[%s3868_s0 + $0x18] sm:$0xff] }
  0x13   :  { %200 = vmatpush.bf16.msra.mxu0 %v2196_v11  ;;  %v2360_v26 = vor.u32 %v2593_v23, %v2357_v25  ;;  %v99_v29 = vpack.c.bf16 %v69_v28, %v68_v27  ;;  %v70_v30 = vld [vmem:[%s3868_s0 + $0x20] sm:$0xff]  ;;  %v71_v31 = vld [vmem:[%s3868_s0 + $0x28] sm:$0xff]  ;;  %v2575_v33 = vld [vmem:[%s3871_s3 + $0x54] sm:$0xf] }
  0x14   :  { %289 = vmatpush.bf16.msra.mxu1 %v2200_v15  ;;  %v100_v32 = vpack.c.bf16 %v71_v31, %v70_v30  ;;  %v2285_v34 = vld [vmem:[%s3871_s3 + $0x58] sm:$0xf0]  ;;  %v2591_v35 = vld [vmem:[%s3871_s3 + $0xd4] sm:$0xf]  ;;  %v74_v42 = vld [vmem:[%s3868_s0 + $0x40] sm:$0xff] }
  0x15   :  { %v2288_v36 = vor.u32 %v2575_v33, %v2285_v34  ;;  %v2349_v37 = vld [vmem:[%s3871_s3 + $0xd8] sm:$0xf0]  ;;  %v72_v39 = vld [vmem:[%s3868_s0 + $0x30] sm:$0xff]  ;;  %v75_v43 = vld [vmem:[%s3868_s0 + $0x48] sm:$0xff] }
  0x16   :  { %2209 = vmatmul.msk.bf16.vlgmr.msra.gmra.mxu0 %vm144_vm0, %v98_v20  ;;  %v2352_v38 = vor.u32 %v2591_v35, %v2349_v37  ;;  %v73_v40 = vld [vmem:[%s3868_s0 + $0x38] sm:$0xff]  ;;  %v102_v44 = vpack.c.bf16 %v75_v43, %v74_v42  ;;  %v2573_v45 = vld [vmem:[%s3871_s3 + $0x44] sm:$0xf]  ;;  %v2277_v46 = vld [vmem:[%s3871_s3 + $0x48] sm:$0xf0] }
  0x17   :  { %843 = vmatpush.bf16.msrb.mxu0 %v2304_v16  ;;  %2225 = vmatmul.msk.bf16.vlgmr.msra.gmra.mxu1 %vm144_vm0, %v98_v20  ;;  %v101_v41 = vpack.c.bf16 %v73_v40, %v72_v39  ;;  %v2589_v47 = vld [vmem:[%s3871_s3 + $0xc4] sm:$0xf]  ;;  %v2280_v48 = vor.u32 %v2573_v45, %v2277_v46  ;;  %v2341_v49 = vld [vmem:[%s3871_s3 + $0xc8] sm:$0xf0]  ;;  %v2299_v50 = vld [vmem:[%s3871_s3 + $0x70] sm:$0xf] }
  0x18   :  { %932 = vmatpush.bf16.msrb.mxu1 %v2368_v19  ;;  %v2580_v51 = vld [vmem:[%s3871_s3 + $0x74] sm:$0xf0]  ;;  %v2344_v52 = vor.u32 %v2589_v47, %v2341_v49  ;;  %v2363_v54 = vld [vmem:[%s3871_s3 + $0xf0] sm:$0xf]  ;;  %v2291_v60 = vld [vmem:[%s3871_s3 + $0x60] sm:$0xf] }
  0x19   :  { %v2300_v53 = vor.u32 %v2580_v51, %v2299_v50  ;;  %v2596_v55 = vld [vmem:[%s3871_s3 + $0xf4] sm:$0xf0]  ;;  %v76_v57 = vld [vmem:[%s3868_s0 + $0x50] sm:$0xff]  ;;  %v2578_v61 = vld [vmem:[%s3871_s3 + $0x64] sm:$0xf0] }
  0x1a   :  { %v2364_v56 = vor.u32 %v2596_v55, %v2363_v54  ;;  %v77_v58 = vld [vmem:[%s3868_s0 + $0x58] sm:$0xff]  ;;  %v2355_v62 = vld [vmem:[%s3871_s3 + $0xe0] sm:$0xf]  ;;  %v2292_v63 = vor.u32 %v2578_v61, %v2291_v60  ;;  %v2594_v0 = vld [vmem:[%s3871_s3 + $0xe4] sm:$0xf0] }
  0x1b   :  { %844 = vmatpush.bf16.msrb.mxu0 %v2296_v24  ;;  %665 = vmatpush.bf16.msra.mxu2 %v2300_v53  ;;  %v103_v59 = vpack.c.bf16 %v77_v58, %v76_v57  ;;  %v2356_v1 = vor.u32 %v2594_v0, %v2355_v62  ;;  %v2283_v2 = vld [vmem:[%s3871_s3 + $0x50] sm:$0xf]  ;;  %v2576_v3 = vld [vmem:[%s3871_s3 + $0x54] sm:$0xf0]  ;;  %v2275_v8 = vld [vmem:[%s3871_s3 + $0x40] sm:$0xf] }
  0x1c   :  { %933 = vmatpush.bf16.msrb.mxu1 %v2360_v26  ;;  %754 = vmatpush.bf16.msra.mxu3 %v2364_v56  ;;  %v2347_v4 = vld [vmem:[%s3871_s3 + $0xd0] sm:$0xf]  ;;  %v2284_v5 = vor.u32 %v2576_v3, %v2283_v2  ;;  %v2592_v6 = vld [vmem:[%s3871_s3 + $0xd4] sm:$0xf0]  ;;  %v2574_v9 = vld [vmem:[%s3871_s3 + $0x44] sm:$0xf0] }
  0x1d   :  { %v2348_v7 = vor.u32 %v2592_v6, %v2347_v4  ;;  %v2339_v10 = vld [vmem:[%s3871_s3 + $0xc0] sm:$0xf]  ;;  %v2590_v11 = vld [vmem:[%s3871_s3 + $0xc4] sm:$0xf0]  ;;  %v2276_v12 = vor.u32 %v2574_v9, %v2275_v8  ;;  %v2267_v16 = vld [vmem:[%s3871_s3 + $0x30] sm:$0xf] }
  0x1e   :  { %v2340_v13 = vor.u32 %v2590_v11, %v2339_v10  ;;  %v78_v14 = vld [vmem:[%s3868_s0 + $0x60] sm:$0xff]  ;;  %v79_v15 = vld [vmem:[%s3868_s0 + $0x68] sm:$0xff]  ;;  %v2572_v17 = vld [vmem:[%s3871_s3 + $0x34] sm:$0xf0] }
  0x1f   :  { %845 = vmatpush.bf16.msrb.mxu0 %v2288_v36  ;;  %666 = vmatpush.bf16.msra.mxu2 %v2292_v63  ;;  %v2331_v18 = vld [vmem:[%s3871_s3 + $0xb0] sm:$0xf]  ;;  %v104_v19 = vpack.c.bf16 %v79_v15, %v78_v14  ;;  %v2268_v20 = vor.u32 %v2572_v17, %v2267_v16  ;;  %v2588_v21 = vld [vmem:[%s3871_s3 + $0xb4] sm:$0xf0]  ;;  %v2259_v23 = vld [vmem:[%s3871_s3 + $0x20] sm:$0xf] }
  0x20   :  { %934 = vmatpush.bf16.msrb.mxu1 %v2352_v38  ;;  %755 = vmatpush.bf16.msra.mxu3 %v2356_v1  ;;  %v2332_v22 = vor.u32 %v2588_v21, %v2331_v18  ;;  %v2570_v24 = vld [vmem:[%s3871_s3 + $0x24] sm:$0xf0]  ;;  %v2323_v26 = vld [vmem:[%s3871_s3 + $0xa0] sm:$0xf]  ;;  %v2571_v28 = vld [vmem:[%s3871_s3 + $0x34] sm:$0xf] }
  0x21   :  { %v2260_v25 = vor.u32 %v2570_v24, %v2259_v23  ;;  %v2586_v27 = vld [vmem:[%s3871_s3 + $0xa4] sm:$0xf0]  ;;  %v2587_v31 = vld [vmem:[%s3871_s3 + $0xb4] sm:$0xf]  ;;  %v2333_v33 = vld [vmem:[%s3871_s3 + $0xb8] sm:$0xf0] }
  0x22   :  { %v2324_v30 = vor.u32 %v2586_v27, %v2323_v26  ;;  %v2336_v34 = vor.u32 %v2587_v31, %v2333_v33  ;;  %v2251_v35 = vld [vmem:[%s3871_s3 + $0x10] sm:$0xf]  ;;  %v2568_v36 = vld [vmem:[%s3871_s3 + $0x14] sm:$0xf0]  ;;  %v2566_v42 = vld [vmem:[%s3871_s3 + $0x4] sm:$0xf0] }
  0x23   :  { %846 = vmatpush.bf16.msrb.mxu0 %v2280_v48  ;;  %667 = vmatpush.bf16.msra.mxu2 %v2284_v5  ;;  %v2315_v37 = vld [vmem:[%s3871_s3 + $0x90] sm:$0xf]  ;;  %v2252_v38 = vor.u32 %v2568_v36, %v2251_v35  ;;  %v2584_v39 = vld [vmem:[%s3871_s3 + $0x94] sm:$0xf0]  ;;  %v2307_v43 = vld [vmem:[%s3871_s3 + $0x80] sm:$0xf] }
  0x24   :  { %935 = vmatpush.bf16.msrb.mxu1 %v2344_v52  ;;  %756 = vmatpush.bf16.msra.mxu3 %v2348_v7  ;;  %v2316_v40 = vor.u32 %v2584_v39, %v2315_v37  ;;  %v2582_v45 = vld [vmem:[%s3871_s3 + $0x84] sm:$0xf0]  ;;  %v80_v46 = vld [vmem:[%s3868_s0 + $0x70] sm:$0xff]  ;;  %v81_v47 = vld [vmem:[%s3868_s0 + $0x78] sm:$0xff] }
  0x25   :  { %v2308_v48 = vor.u32 %v2582_v45, %v2307_v43  ;;  %v105_v49 = vpack.c.bf16 %v81_v47, %v80_v46  ;;  %v2427_v50 = vld [vmem:[#allocation2 + $0x70] sm:$0xf]  ;;  %v2612_v51 = vld [vmem:[#allocation2 + $0x74] sm:$0xf0]  ;;  %v82_v56 = vld [vmem:[%s3868_s0 + $0x80] sm:$0xff] }
  0x26   :  { %2210 = vmatmul.msk.bf16.gmra.mxu0 %vm144_vm0, %v99_v29  ;;  %v2428_v52 = vor.u32 %v2612_v51, %v2427_v50  ;;  %v2491_v53 = vld [vmem:[#allocation2 + $0xf0] sm:$0xf]  ;;  %v2628_v54 = vld [vmem:[#allocation2 + $0xf4] sm:$0xf0]  ;;  %v83_v57 = vld [vmem:[%s3868_s0 + $0x88] sm:$0xff] }
  0x27   :  { %2226 = vmatmul.msk.bf16.gmra.mxu1 %vm144_vm0, %v99_v29  ;;  %668 = vmatpush.bf16.msra.mxu2 %v2276_v12  ;;  %v2269_v29 = vld [vmem:[%s3871_s3 + $0x38] sm:$0xf0]  ;;  %v2492_v55 = vor.u32 %v2628_v54, %v2491_v53  ;;  %v106_v58 = vpack.c.bf16 %v83_v57, %v82_v56  ;;  %v2569_v0 = vld [vmem:[%s3871_s3 + $0x24] sm:$0xf]  ;;  %v2261_v1 = vld [vmem:[%s3871_s3 + $0x28] sm:$0xf0] }
  0x28   :  { %757 = vmatpush.bf16.msra.mxu3 %v2340_v13  ;;  %936 = vmatpush.bf16.msrb.mxu1 %v2336_v34  ;;  %v2264_v2 = vor.u32 %v2569_v0, %v2261_v1  ;;  %v2585_v3 = vld [vmem:[%s3871_s3 + $0xa4] sm:$0xf]  ;;  %v2325_v4 = vld [vmem:[%s3871_s3 + $0xa8] sm:$0xf0]  ;;  %v84_v16 = vld [vmem:[%s3868_s0 + $0x90] sm:$0xff] }
  0x29   :  { %v2328_v5 = vor.u32 %v2585_v3, %v2325_v4  ;;  %v85_v17 = vld [vmem:[%s3868_s0 + $0x98] sm:$0xff]  ;;  %v2610_v23 = vld [vmem:[#allocation2 + $0x64] sm:$0xf0]  ;;  %v2483_v26 = vld [vmem:[#allocation2 + $0xe0] sm:$0xf] }
  0x2a   :  { %v2626_v27 = vld [vmem:[#allocation2 + $0xe4] sm:$0xf0]  ;;  %v86_v39 = vld [vmem:[%s3868_s0 + $0xa0] sm:$0xff]  ;;  %v2567_v46 = vld [vmem:[%s3871_s3 + $0x14] sm:$0xf] }
  0x2b   :  { %669 = vmatpush.bf16.msra.mxu2 %v2268_v20  ;;  %v107_v20 = vpack.c.bf16 %v85_v17, %v84_v16  ;;  %v2253_v47 = vld [vmem:[%s3871_s3 + $0x18] sm:$0xf0]  ;;  %v88_v0 = vld [vmem:[%s3868_s0 + $0xb0] sm:$0xff] }
  0x2c   :  { %758 = vmatpush.bf16.msra.mxu3 %v2332_v22  ;;  %937 = vmatpush.bf16.msrb.mxu1 %v2328_v5  ;;  %v2419_v22 = vld [vmem:[#allocation2 + $0x60] sm:$0xf]  ;;  %v2317_v50 = vld [vmem:[%s3871_s3 + $0x98] sm:$0xf0] }
  0x2d   :  { %v89_v1 = vld [vmem:[%s3868_s0 + $0xb8] sm:$0xff] }
  0x2e   :  { %v109_v4 = vpack.c.bf16 %v89_v1, %v88_v0 }
  0x2f   :  { %670 = vmatpush.bf16.msra.mxu2 %v2260_v25  ;;  %v2420_v25 = vor.u32 %v2610_v23, %v2419_v22 }
  0x30   :  { %759 = vmatpush.bf16.msra.mxu3 %v2324_v30 }
  0x33   :  { %671 = vmatpush.bf16.msra.mxu2 %v2252_v38 }
  0x34   :  { %760 = vmatpush.bf16.msra.mxu3 %v2316_v40  ;;  %v87_v40 = vld [vmem:[%s3868_s0 + $0xa8] sm:$0xff] }
  0x35   :  { %v108_v43 = vpack.c.bf16 %v87_v40, %v86_v39 }
  0x36   :  { %2211 = vmatmul.msk.bf16.gmra.mxu0 %vm144_vm0, %v100_v32 }
  0x37   :  { %2227 = vmatmul.msk.bf16.gmra.mxu1 %vm144_vm0, %v100_v32  ;;  %v2272_v32 = vor.u32 %v2571_v28, %v2269_v29  ;;  %v2484_v28 = vor.u32 %v2626_v27, %v2483_v26  ;;  %v91_v26 = vld [vmem:[%s3868_s0 + $0xc8] sm:$0xff] }
  0x38   :  { %761 = vmatpush.bf16.msra.mxu3 %v2308_v48  ;;  %v2256_v48 = vor.u32 %v2567_v46, %v2253_v47 }
  0x39   :  { %847 = vmatpush.bf16.msrb.mxu0 %v2272_v32 }
  0x3c   :  { %1404 = vmatpush.bf16.msrb.mxu3 %v2492_v55 }
  0x3d   :  { %848 = vmatpush.bf16.msrb.mxu0 %v2264_v2 }
  0x40   :  { %1405 = vmatpush.bf16.msrb.mxu3 %v2484_v28 }
  0x41   :  { %849 = vmatpush.bf16.msrb.mxu0 %v2256_v48 }
  0x46   :  { %2212 = vmatmul.msk.bf16.gmra.mxu0 %vm144_vm0, %v101_v41 }
  0x47   :  { %2228 = vmatmul.msk.bf16.gmra.mxu1 %vm144_vm0, %v101_v41  ;;  %v2243_v41 = vld [vmem:[%s3871_s3] sm:$0xf] }
  0x56   :  { %2213 = vmatmul.msk.bf16.gmra.mxu0 %vm144_vm0, %v102_v44 }
  0x57   :  { %2229 = vmatmul.msk.bf16.gmra.mxu1 %vm144_vm0, %v102_v44  ;;  %v2244_v44 = vor.u32 %v2566_v42, %v2243_v41 }
  0x59   :  { %672 = vmatpush.bf16.msra.mxu2 %v2244_v44 }
  0x5d   :  { %1315 = vmatpush.bf16.msrb.mxu2 %v2428_v52 }
  0x61   :  { %1316 = vmatpush.bf16.msrb.mxu2 %v2420_v25  ;;  %v90_v25 = vld [vmem:[%s3868_s0 + $0xc0] sm:$0xff] }
  0x66   :  { %2214 = vmatmul.msk.bf16.gmra.mxu0 %vm144_vm0, %v103_v59 }
  0x67   :  { %2230 = vmatmul.msk.bf16.gmra.mxu1 %vm144_vm0, %v103_v59  ;;  %v118_v59 = vld [vmem:[%s3870_s2] sm:$0x3] }
  0x68   :  { %v3209_v62 = vperm.slane %v118_v59, 0  ;;  %v3212_v63 = vperm.slane %v118_v59, 1 }
  0x76   :  { %2215 = vmatmul.msk.bf16.gmra.mxu0 %vm144_vm0, %v104_v19 }
  0x77   :  { %2231 = vmatmul.msk.bf16.gmra.mxu1 %vm144_vm0, %v104_v19 }
  0x86   :  { %2216 = vmatmul.msk.bf16.gmra.mxu0 %vm144_vm0, %v105_v49 }
  0x87   :  { %2232 = vmatmul.msk.bf16.gmra.mxu1 %vm144_vm0, %v105_v49  ;;  %v2583_v49 = vld [vmem:[%s3871_s3 + $0x94] sm:$0xf] }
  0x88   :  { %v2320_v51 = vor.u32 %v2583_v49, %v2317_v50  ;;  %v92_v50 = vld [vmem:[%s3868_s0 + $0xd0] sm:$0xff] }
  0x8a   :  { %938 = vmatpush.bf16.msrb.mxu1 %v2320_v51  ;;  %v93_v51 = vld [vmem:[%s3868_s0 + $0xd8] sm:$0xff] }
  0x93   :  { %v202_v60 = vpop.f32.mrf.mxu0 }
  0x94   :  { %v291_v61 = vpop.f32.mrf.mxu1  ;;  %v203_v6 = vadd.f32 %v202_v60, %v3209_v62 }
  0x95   :  { %v292_v7 = vadd.f32 %v291_v61, %v3212_v63 }
  0x96   :  { %2217 = vmatmul.msk.bf16.gmra.mxu0 %vm144_vm0, %v106_v58  ;;  %v371_v12 = vmax.f32 %v203_v6, 0.0  ;;  %v2411_v6 = vld [vmem:[#allocation2 + $0x50] sm:$0xf] }
  0x97   :  { %2233 = vmatmul.msk.bf16.gmra.mxu1 %vm144_vm0, %v106_v58  ;;  %v372_v14 = vmax.f32 %v292_v7, 0.0  ;;  %v2608_v7 = vld [vmem:[#allocation2 + $0x54] sm:$0xf0] }
  0x9b   :  { %v204_v8 = vpop.f32.mrf.mxu0 }
  0x9c   :  { %v205_v9 = vadd.f32 %v204_v8, %v3209_v62  ;;  %v293_v10 = vpop.f32.mrf.mxu1 }
  0x9d   :  { %v294_v11 = vadd.f32 %v293_v10, %v3212_v63  ;;  %v2475_v10 = vld [vmem:[#allocation2 + $0xd0] sm:$0xf] }
  0x9e   :  { %v373_v13 = vmax.f32 %v205_v9, 0.0  ;;  %v2412_v9 = vor.u32 %v2608_v7, %v2411_v6 }
  0x9f   :  { %v374_v15 = vmax.f32 %v294_v11, 0.0  ;;  %v2624_v11 = vld [vmem:[#allocation2 + $0xd4] sm:$0xf0] }
  0xa0   :  { %v3237_v18 = vpack.c.bf16 %v373_v13, %v371_v12  ;;  %1317 = vmatpush.bf16.msrb.mxu2 %v2412_v9  ;;  %v2476_v12 = vor.u32 %v2624_v11, %v2475_v10 }
  0xa1   :  { %v3239_v19 = vpack.c.bf16 %v374_v15, %v372_v14 }
  0xa2   :  { %673 = vmatmul.bf16.vlgmr.msra.gmra.mxu2 %v3237_v18  ;;  %1406 = vmatpush.bf16.msrb.mxu3 %v2476_v12 }
  0xa3   :  { %762 = vmatmul.bf16.vlgmr.msra.gmra.mxu3 %v3239_v19  ;;  %v207_v21 = vpop.f32.mrf.mxu0 }
  0xa4   :  { %v296_v24 = vpop.f32.mrf.mxu1  ;;  %v208_v29 = vadd.f32 %v207_v21, %v3209_v62 }
  0xa5   :  { %v297_v30 = vadd.f32 %v296_v24, %v3212_v63 }
  0xa6   :  { %2218 = vmatmul.msk.bf16.gmra.mxu0 %vm144_vm0, %v107_v20  ;;  %v375_v35 = vmax.f32 %v208_v29, 0.0  ;;  %v110_v29 = vpack.c.bf16 %v91_v26, %v90_v25  ;;  %v2627_v25 = vld [vmem:[#allocation2 + $0xf4] sm:$0xf]  ;;  %v2493_v26 = vld [vmem:[#allocation2 + $0xf8] sm:$0xf0] }
  0xa7   :  { %2234 = vmatmul.msk.bf16.gmra.mxu1 %vm144_vm0, %v107_v20  ;;  %v376_v37 = vmax.f32 %v297_v30, 0.0 }
  0xab   :  { %v209_v31 = vpop.f32.mrf.mxu0 }
  0xac   :  { %v210_v32 = vadd.f32 %v209_v31, %v3209_v62  ;;  %v298_v33 = vpop.f32.mrf.mxu1 }
  0xad   :  { %v299_v34 = vadd.f32 %v298_v33, %v3212_v63  ;;  %v2245_v33 = vld [vmem:[%s3871_s3 + $0x8] sm:$0xf0] }
  0xae   :  { %v377_v36 = vmax.f32 %v210_v32, 0.0  ;;  %v2565_v32 = vld [vmem:[%s3871_s3 + $0x4] sm:$0xf] }
  0xaf   :  { %v378_v38 = vmax.f32 %v299_v34, 0.0  ;;  %v2248_v34 = vor.u32 %v2565_v32, %v2245_v33 }
  0xb0   :  { %v3255_v41 = vpack.c.bf16 %v377_v36, %v375_v35  ;;  %v2581_v35 = vld [vmem:[%s3871_s3 + $0x84] sm:$0xf]  ;;  %v2309_v36 = vld [vmem:[%s3871_s3 + $0x88] sm:$0xf0] }
  0xb1   :  { %v3257_v42 = vpack.c.bf16 %v378_v38, %v376_v37  ;;  %v2312_v37 = vor.u32 %v2581_v35, %v2309_v36  ;;  %850 = vmatpush.bf16.msrb.mxu0 %v2248_v34 }
  0xb2   :  { %678 = vmatmul.bf16.gmra.mxu2 %v3255_v41 }
  0xb3   :  { %767 = vmatmul.bf16.gmra.mxu3 %v3257_v42  ;;  %v212_v44 = vpop.f32.mrf.mxu0  ;;  %939 = vmatpush.bf16.msrb.mxu1 %v2312_v37 }
  0xb4   :  { %v301_v45 = vpop.f32.mrf.mxu1  ;;  %v213_v52 = vadd.f32 %v212_v44, %v3209_v62 }
  0xb5   :  { %v302_v53 = vadd.f32 %v301_v45, %v3212_v63 }
  0xb6   :  { %2219 = vmatmul.msk.bf16.gmra.mxu0 %vm144_vm0, %v108_v43  ;;  %v379_v58 = vmax.f32 %v213_v52, 0.0 }
  0xb7   :  { %2235 = vmatmul.msk.bf16.gmra.mxu1 %vm144_vm0, %v108_v43  ;;  %v380_v60 = vmax.f32 %v302_v53, 0.0 }
  0xbb   :  { %v214_v54 = vpop.f32.mrf.mxu0 }
  0xbc   :  { %v215_v55 = vadd.f32 %v214_v54, %v3209_v62  ;;  %v303_v56 = vpop.f32.mrf.mxu1  ;;  %v111_v54 = vpack.c.bf16 %v93_v51, %v92_v50 }
  0xbd   :  { %v304_v57 = vadd.f32 %v303_v56, %v3212_v63  ;;  %v2403_v56 = vld [vmem:[#allocation2 + $0x40] sm:$0xf] }
  0xbe   :  { %v381_v59 = vmax.f32 %v215_v55, 0.0 }
  0xbf   :  { %v382_v61 = vmax.f32 %v304_v57, 0.0  ;;  %v2606_v57 = vld [vmem:[#allocation2 + $0x44] sm:$0xf0] }
  0xc0   :  { %v3285_v2 = vpack.c.bf16 %v381_v59, %v379_v58  ;;  %v2404_v59 = vor.u32 %v2606_v57, %v2403_v56 }
  0xc1   :  { %v3287_v3 = vpack.c.bf16 %v382_v61, %v380_v60  ;;  %v2467_v60 = vld [vmem:[#allocation2 + $0xc0] sm:$0xf]  ;;  %v2622_v61 = vld [vmem:[#allocation2 + $0xc4] sm:$0xf0] }
  0xc2   :  { %683 = vmatmul.bf16.gmra.mxu2 %v3285_v2  ;;  %v2468_v0 = vor.u32 %v2622_v61, %v2467_v60 }
  0xc3   :  { %772 = vmatmul.bf16.gmra.mxu3 %v3287_v3  ;;  %v217_v5 = vpop.f32.mrf.mxu0  ;;  %1318 = vmatpush.bf16.msrb.mxu2 %v2404_v59 }
  0xc4   :  { %v306_v8 = vpop.f32.mrf.mxu1  ;;  %v218_v13 = vadd.f32 %v217_v5, %v3209_v62  ;;  %1407 = vmatpush.bf16.msrb.mxu3 %v2468_v0 }
  0xc5   :  { %v307_v14 = vadd.f32 %v306_v8, %v3212_v63 }
  0xc6   :  { %2220 = vmatmul.msk.bf16.gmra.mxu0 %vm144_vm0, %v109_v4  ;;  %v383_v21 = vmax.f32 %v218_v13, 0.0  ;;  %v94_v13 = vld [vmem:[%s3868_s0 + $0xe0] sm:$0xff] }
  0xc7   :  { %2236 = vmatmul.msk.bf16.gmra.mxu1 %vm144_vm0, %v109_v4  ;;  %v384_v23 = vmax.f32 %v307_v14, 0.0  ;;  %v95_v14 = vld [vmem:[%s3868_s0 + $0xe8] sm:$0xff] }
  0xcb   :  { %v219_v15 = vpop.f32.mrf.mxu0 }
  0xcc   :  { %v220_v16 = vadd.f32 %v219_v15, %v3209_v62  ;;  %v308_v17 = vpop.f32.mrf.mxu1 }
  0xcd   :  { %v309_v20 = vadd.f32 %v308_v17, %v3212_v63  ;;  %v112_v17 = vpack.c.bf16 %v95_v14, %v94_v13  ;;  %v2421_v13 = vld [vmem:[#allocation2 + $0x68] sm:$0xf0]  ;;  %v2625_v14 = vld [vmem:[#allocation2 + $0xe4] sm:$0xf] }
  0xce   :  { %v385_v22 = vmax.f32 %v220_v16, 0.0 }
  0xcf   :  { %v386_v24 = vmax.f32 %v309_v20, 0.0 }
  0xd0   :  { %v3303_v27 = vpack.c.bf16 %v385_v22, %v383_v21  ;;  %v2611_v22 = vld [vmem:[#allocation2 + $0x74] sm:$0xf] }
  0xd1   :  { %v3305_v28 = vpack.c.bf16 %v386_v24, %v384_v23  ;;  %v2429_v23 = vld [vmem:[#allocation2 + $0x78] sm:$0xf0] }
  0xd2   :  { %688 = vmatmul.bf16.gmra.mxu2 %v3303_v27  ;;  %v2432_v24 = vor.u32 %v2611_v22, %v2429_v23  ;;  %v2485_v22 = vld [vmem:[#allocation2 + $0xe8] sm:$0xf0] }
  0xd3   :  { %777 = vmatmul.bf16.gmra.mxu3 %v3305_v28  ;;  %v222_v30 = vpop.f32.mrf.mxu0 }
  0xd4   :  { %v311_v31 = vpop.f32.mrf.mxu1  ;;  %v223_v38 = vadd.f32 %v222_v30, %v3209_v62  ;;  %1493 = vmatpush.bf16.msra.mxu0 %v2432_v24 }
  0xd5   :  { %v312_v39 = vadd.f32 %v311_v31, %v3212_v63 }
  0xd6   :  { %2221 = vmatmul.msk.bf16.gmra.mxu0 %vm144_vm0, %v110_v29  ;;  %v387_v46 = vmax.f32 %v223_v38, 0.0 }
  0xd7   :  { %2237 = vmatmul.msk.bf16.gmra.mxu1 %vm144_vm0, %v110_v29  ;;  %v388_v48 = vmax.f32 %v312_v39, 0.0  ;;  %v2496_v29 = vor.u32 %v2627_v25, %v2493_v26  ;;  %v2488_v25 = vor.u32 %v2625_v14, %v2485_v22 }
  0xd9   :  { %1582 = vmatpush.bf16.msra.mxu1 %v2496_v29 }
  0xdb   :  { %v224_v40 = vpop.f32.mrf.mxu0 }
  0xdc   :  { %v225_v43 = vadd.f32 %v224_v40, %v3209_v62  ;;  %v313_v44 = vpop.f32.mrf.mxu1  ;;  %v96_v40 = vld [vmem:[%s3868_s0 + $0xf0] sm:$0xff] }
  0xdd   :  { %v314_v45 = vadd.f32 %v313_v44, %v3212_v63  ;;  %1583 = vmatpush.bf16.msra.mxu1 %v2488_v25 }
  0xde   :  { %v389_v47 = vmax.f32 %v225_v43, 0.0  ;;  %v97_v43 = vld [vmem:[%s3868_s0 + $0xf8] sm:$0xff] }
  0xdf   :  { %v390_v49 = vmax.f32 %v314_v45, 0.0 }
  0xe0   :  { %v3333_v52 = vpack.c.bf16 %v389_v47, %v387_v46  ;;  %v113_v46 = vpack.c.bf16 %v97_v43, %v96_v40 }
  0xe1   :  { %v3335_v53 = vpack.c.bf16 %v390_v49, %v388_v48  ;;  %v2395_v48 = vld [vmem:[#allocation2 + $0x30] sm:$0xf]  ;;  %v2604_v49 = vld [vmem:[#allocation2 + $0x34] sm:$0xf0] }
  0xe2   :  { %693 = vmatmul.bf16.gmra.mxu2 %v3333_v52  ;;  %v2396_v51 = vor.u32 %v2604_v49, %v2395_v48  ;;  %v2618_v48 = vld [vmem:[#allocation2 + $0xa4] sm:$0xf0] }
  0xe3   :  { %782 = vmatmul.bf16.gmra.mxu3 %v3335_v53  ;;  %v227_v55 = vpop.f32.mrf.mxu0 }
  0xe4   :  { %v316_v58 = vpop.f32.mrf.mxu1  ;;  %v228_v1 = vadd.f32 %v227_v55, %v3209_v62  ;;  %1319 = vmatpush.bf16.msrb.mxu2 %v2396_v51  ;;  %v2620_v55 = vld [vmem:[#allocation2 + $0xb4] sm:$0xf0] }
  0xe5   :  { %v317_v4 = vadd.f32 %v316_v58, %v3212_v63 }
  0xe6   :  { %2222 = vmatmul.msk.bf16.gmra.mxu0 %vm144_vm0, %v111_v54  ;;  %v391_v9 = vmax.f32 %v228_v1, 0.0 }
  0xe7   :  { %2238 = vmatmul.msk.bf16.gmra.mxu1 %vm144_vm0, %v111_v54  ;;  %v392_v11 = vmax.f32 %v317_v4, 0.0  ;;  %v2459_v54 = vld [vmem:[#allocation2 + $0xb0] sm:$0xf] }
  0xe8   :  { %v2460_v56 = vor.u32 %v2620_v55, %v2459_v54 }
  0xea   :  { %1408 = vmatpush.bf16.msrb.mxu3 %v2460_v56 }
  0xeb   :  { %v229_v5 = vpop.f32.mrf.mxu0 }
  0xec   :  { %v230_v6 = vadd.f32 %v229_v5, %v3209_v62  ;;  %v318_v7 = vpop.f32.mrf.mxu1 }
  0xed   :  { %v319_v8 = vadd.f32 %v318_v7, %v3212_v63 }
  0xee   :  { %v393_v10 = vmax.f32 %v230_v6, 0.0 }
  0xef   :  { %v394_v12 = vmax.f32 %v319_v8, 0.0 }
  0xf0   :  { %v3351_v15 = vpack.c.bf16 %v393_v10, %v391_v9 }
  0xf1   :  { %v3353_v16 = vpack.c.bf16 %v394_v12, %v392_v11  ;;  %v2609_v12 = vld [vmem:[#allocation2 + $0x64] sm:$0xf] }
  0xf2   :  { %698 = vmatmul.bf16.gmra.mxu2 %v3351_v15 }
  0xf3   :  { %787 = vmatmul.bf16.gmra.mxu3 %v3353_v16  ;;  %v232_v20 = vpop.f32.mrf.mxu0 }
  0xf4   :  { %v321_v21 = vpop.f32.mrf.mxu1  ;;  %v233_v30 = vadd.f32 %v232_v20, %v3209_v62 }
  0xf5   :  { %v322_v31 = vadd.f32 %v321_v21, %v3212_v63  ;;  %v2424_v21 = vor.u32 %v2609_v12, %v2421_v13 }
  0xf6   :  { %2223 = vmatmul.msk.bf16.gmra.mxu0 %vm144_vm0, %v112_v17  ;;  %v395_v36 = vmax.f32 %v233_v30, 0.0 }
  0xf7   :  { %2239 = vmatmul.msk.bf16.gmra.mxu1 %vm144_vm0, %v112_v17  ;;  %v396_v38 = vmax.f32 %v322_v31, 0.0  ;;  %1494 = vmatpush.bf16.msra.mxu0 %v2424_v21  ;;  %v3396_v31 = vld [vmem:[%s3872_s4] sm:$0x3] }
  0xfb   :  { %v234_v32 = vpop.f32.mrf.mxu0 }
  0xfc   :  { %v235_v33 = vadd.f32 %v234_v32, %v3209_v62  ;;  %v323_v34 = vpop.f32.mrf.mxu1 }
  0xfd   :  { %v324_v35 = vadd.f32 %v323_v34, %v3212_v63  ;;  %v3404_v34 = vperm.slane %v3396_v31, 0 }
  0xfe   :  { %v397_v37 = vmax.f32 %v235_v33, 0.0 }
  0xff   :  { %v398_v39 = vmax.f32 %v324_v35, 0.0 }
 0x100   :  { %v3369_v44 = vpack.c.bf16 %v397_v37, %v395_v36  ;;  %v2387_v36 = vld [vmem:[#allocation2 + $0x20] sm:$0xf]  ;;  %v2602_v37 = vld [vmem:[#allocation2 + $0x24] sm:$0xf0] }
 0x101   :  { %v3371_v45 = vpack.c.bf16 %v398_v39, %v396_v38  ;;  %v2388_v39 = vor.u32 %v2602_v37, %v2387_v36 }
 0x102   :  { %703 = vmatmul.bf16.gmra.mxu2 %v3369_v44 }
 0x103   :  { %792 = vmatmul.bf16.gmra.mxu3 %v3371_v45  ;;  %v237_v47 = vpop.f32.mrf.mxu0  ;;  %1320 = vmatpush.bf16.msrb.mxu2 %v2388_v39 }
 0x104   :  { %v326_v50 = vpop.f32.mrf.mxu1  ;;  %v238_v57 = vadd.f32 %v237_v47, %v3209_v62  ;;  %v2451_v47 = vld [vmem:[#allocation2 + $0xa0] sm:$0xf] }
 0x105   :  { %v327_v58 = vadd.f32 %v326_v50, %v3212_v63  ;;  %v2452_v50 = vor.u32 %v2618_v48, %v2451_v47 }
 0x106   :  { %2224 = vmatmul.msk.bf16.gmra.mxu0 %vm144_vm0, %v113_v46  ;;  %v399_v1 = vmax.f32 %v238_v57, 0.0 }
 0x107   :  { %2240 = vmatmul.msk.bf16.gmra.mxu1 %vm144_vm0, %v113_v46  ;;  %v400_v5 = vmax.f32 %v327_v58, 0.0  ;;  %1409 = vmatpush.bf16.msrb.mxu3 %v2452_v50 }
 0x10b   :  { %v239_v59 = vpop.f32.mrf.mxu0 }
 0x10c   :  { %v240_v60 = vadd.f32 %v239_v59, %v3209_v62  ;;  %v328_v61 = vpop.f32.mrf.mxu1 }
 0x10d   :  { %v329_v0 = vadd.f32 %v328_v61, %v3212_v63 }
 0x10e   :  { %v401_v4 = vmax.f32 %v240_v60, 0.0 }
 0x10f   :  { %v402_v6 = vmax.f32 %v329_v0, 0.0 }
 0x110   :  { %v3381_v7 = vpack.c.bf16 %v401_v4, %v399_v1 }
 0x111   :  { %v3383_v8 = vpack.c.bf16 %v402_v6, %v400_v5 }
 0x112   :  { %708 = vmatmul.bf16.gmra.mxu2 %v3381_v7 }
 0x113   :  { %797 = vmatmul.bf16.gmra.mxu3 %v3383_v8  ;;  %v242_v9 = vpop.f32.mrf.mxu0 }
 0x114   :  { %v331_v10 = vpop.f32.mrf.mxu1  ;;  %v243_v11 = vadd.f32 %v242_v9, %v3209_v62 }
 0x115   :  { %v332_v17 = vadd.f32 %v331_v10, %v3212_v63 }
 0x116   :  { %851 = vmatmul.bf16.vlgmr.msrb.gmra.mxu0 %v3237_v18  ;;  %v403_v18 = vmax.f32 %v243_v11, 0.0 }
 0x117   :  { %940 = vmatmul.bf16.vlgmr.msrb.gmra.mxu1 %v3239_v19  ;;  %v404_v19 = vmax.f32 %v332_v17, 0.0 }
 0x11b   :  { %v244_v20 = vpop.f32.mrf.mxu0 }
 0x11c   :  { %v245_v23 = vadd.f32 %v244_v20, %v3209_v62  ;;  %v333_v24 = vpop.f32.mrf.mxu1 }
 0x11d   :  { %v334_v26 = vadd.f32 %v333_v24, %v3212_v63  ;;  %v2413_v24 = vld [vmem:[#allocation2 + $0x58] sm:$0xf0] }
 0x11e   :  { %v405_v29 = vmax.f32 %v245_v23, 0.0  ;;  %v2607_v23 = vld [vmem:[#allocation2 + $0x54] sm:$0xf] }
 0x11f   :  { %v406_v30 = vmax.f32 %v334_v26, 0.0 }
 0x120   :  { %v3398_v32 = vpack.c.bf16 %v405_v29, %v403_v18  ;;  %v2416_v18 = vor.u32 %v2607_v23, %v2413_v24  ;;  %v2623_v29 = vld [vmem:[#allocation2 + $0xd4] sm:$0xf] }
 0x121   :  { %v3400_v33 = vpack.c.bf16 %v406_v30, %v404_v19  ;;  %v2477_v19 = vld [vmem:[#allocation2 + $0xd8] sm:$0xf0] }
 0x122   :  { %713 = vmatmul.bf16.gmra.mxu2 %v3398_v32  ;;  %v2480_v36 = vor.u32 %v2623_v29, %v2477_v19  ;;  %1495 = vmatpush.bf16.msra.mxu0 %v2416_v18 }
 0x123   :  { %802 = vmatmul.bf16.gmra.mxu3 %v3400_v33  ;;  %v247_v35 = vpop.f32.mrf.mxu0 }
 0x124   :  { %v336_v38 = vpop.f32.mrf.mxu1  ;;  %v248_v51 = vadd.f32 %v247_v35, %v3209_v62  ;;  %1584 = vmatpush.bf16.msra.mxu1 %v2480_v36 }
 0x125   :  { %v674_v40 = vpop.f32.mrf.mxu2  ;;  %v337_v54 = vadd.f32 %v336_v38, %v3212_v63 }
 0x126   :  { %v675_v43 = vadd.f32 %v674_v40, %v3404_v34  ;;  %v763_v46 = vpop.f32.mrf.mxu3  ;;  %856 = vmatmul.bf16.gmra.mxu0 %v3255_v41  ;;  %v407_v41 = vmax.f32 %v248_v51, 0.0 }
 0x127   :  { %945 = vmatmul.bf16.gmra.mxu1 %v3257_v42  ;;  %v408_v0 = vmax.f32 %v337_v54, 0.0 }
 0x128   :  { %v764_v49 = vadd.f32 %v763_v46, %v675_v43 }
 0x12a   :  { %v1021_v9 = vmax.f32 %v764_v49, 0.0 }
 0x12b   :  { %v249_v55 = vpop.f32.mrf.mxu0 }
 0x12c   :  { %v250_v56 = vadd.f32 %v249_v55, %v3209_v62  ;;  %v338_v57 = vpop.f32.mrf.mxu1  ;;  %v2379_v55 = vld [vmem:[#allocation2 + $0x10] sm:$0xf] }
 0x12d   :  { %v339_v58 = vadd.f32 %v338_v57, %v3212_v63  ;;  %v676_v59 = vpop.f32.mrf.mxu2 }
 0x12e   :  { %v409_v60 = vmax.f32 %v250_v56, 0.0  ;;  %v677_v42 = vadd.f32 %v676_v59, %v3404_v34  ;;  %v765_v61 = vpop.f32.mrf.mxu3  ;;  %v2600_v56 = vld [vmem:[#allocation2 + $0x14] sm:$0xf0] }
 0x12f   :  { %v410_v1 = vmax.f32 %v339_v58, 0.0  ;;  %v2380_v58 = vor.u32 %v2600_v56, %v2379_v55 }
 0x130   :  { %v766_v4 = vadd.f32 %v765_v61, %v677_v42  ;;  %v3415_v5 = vpack.c.bf16 %v409_v60, %v407_v41  ;;  %v2443_v61 = vld [vmem:[#allocation2 + $0x90] sm:$0xf] }
 0x131   :  { %v3417_v6 = vpack.c.bf16 %v410_v1, %v408_v0  ;;  %1321 = vmatpush.bf16.msrb.mxu2 %v2380_v58  ;;  %v2616_v0 = vld [vmem:[#allocation2 + $0x94] sm:$0xf0] }
 0x132   :  { %v1023_v10 = vmax.f32 %v766_v4, 0.0  ;;  %718 = vmatmul.bf16.gmra.mxu2 %v3415_v5  ;;  %v2444_v4 = vor.u32 %v2616_v0, %v2443_v61 }
 0x133   :  { %807 = vmatmul.bf16.gmra.mxu3 %v3417_v6  ;;  %v252_v11 = vpop.f32.mrf.mxu0 }
 0x134   :  { %v3421_v12 = vpack.c.bf16 %v1023_v10, %v1021_v9  ;;  %v341_v13 = vpop.f32.mrf.mxu1  ;;  %v253_v22 = vadd.f32 %v252_v11, %v3209_v62  ;;  %1410 = vmatpush.bf16.msrb.mxu3 %v2444_v4 }
 0x135   :  { %v679_v14 = vpop.f32.mrf.mxu2  ;;  %v342_v25 = vadd.f32 %v341_v13, %v3212_v63 }
 0x136   :  { %v680_v17 = vadd.f32 %v679_v14, %v3404_v34  ;;  %v768_v20 = vpop.f32.mrf.mxu3  ;;  %861 = vmatmul.bf16.gmra.mxu0 %v3285_v2 }
 0x137   :  { %950 = vmatmul.bf16.gmra.mxu1 %v3287_v3  ;;  %v411_v3 = vmax.f32 %v253_v22, 0.0  ;;  %v412_v43 = vmax.f32 %v342_v25, 0.0 }
 0x138   :  { %v769_v21 = vadd.f32 %v768_v20, %v680_v17 }
 0x13a   :  { %v1025_v50 = vmax.f32 %v769_v21, 0.0 }
 0x13b   :  { %v254_v26 = vpop.f32.mrf.mxu0 }
 0x13c   :  { %v255_v30 = vadd.f32 %v254_v26, %v3209_v62  ;;  %v343_v35 = vpop.f32.mrf.mxu1 }
 0x13d   :  { %v344_v37 = vadd.f32 %v343_v35, %v3212_v63  ;;  %v681_v2 = vpop.f32.mrf.mxu2 }
 0x13e   :  { %v413_v38 = vmax.f32 %v255_v30, 0.0  ;;  %v682_v39 = vadd.f32 %v681_v2, %v3404_v34  ;;  %v770_v40 = vpop.f32.mrf.mxu3 }
 0x13f   :  { %v414_v46 = vmax.f32 %v344_v37, 0.0 }
 0x140   :  { %v771_v47 = vadd.f32 %v770_v40, %v682_v39  ;;  %v3431_v48 = vpack.c.bf16 %v413_v38, %v411_v3  ;;  %v2605_v40 = vld [vmem:[#allocation2 + $0x44] sm:$0xf] }
 0x141   :  { %v3433_v49 = vpack.c.bf16 %v414_v46, %v412_v43  ;;  %v2405_v43 = vld [vmem:[#allocation2 + $0x48] sm:$0xf0] }
 0x142   :  { %v1027_v51 = vmax.f32 %v771_v47, 0.0  ;;  %723 = vmatmul.bf16.gmra.mxu2 %v3431_v48 }
 0x143   :  { %812 = vmatmul.bf16.gmra.mxu3 %v3433_v49  ;;  %v257_v54 = vpop.f32.mrf.mxu0 }
 0x144   :  { %v346_v57 = vpop.f32.mrf.mxu1  ;;  %v3437_v59 = vpack.c.bf16 %v1027_v51, %v1025_v50  ;;  %v258_v9 = vadd.f32 %v257_v54, %v3209_v62  ;;  %v2408_v50 = vor.u32 %v2605_v40, %v2405_v43  ;;  %v2621_v51 = vld [vmem:[#allocation2 + $0xc4] sm:$0xf]  ;;  %v2469_v54 = vld [vmem:[#allocation2 + $0xc8] sm:$0xf0] }
 0x145   :  { %v684_v41 = vpop.f32.mrf.mxu2  ;;  %v347_v10 = vadd.f32 %v346_v57, %v3212_v63  ;;  %v2472_v57 = vor.u32 %v2621_v51, %v2469_v54 }
 0x146   :  { %v685_v60 = vadd.f32 %v684_v41, %v3404_v34  ;;  %v773_v42 = vpop.f32.mrf.mxu3  ;;  %866 = vmatmul.bf16.gmra.mxu0 %v3303_v27  ;;  %v415_v27 = vmax.f32 %v258_v9, 0.0 }
 0x147   :  { %955 = vmatmul.bf16.gmra.mxu1 %v3305_v28  ;;  %v416_v23 = vmax.f32 %v347_v10, 0.0  ;;  %1496 = vmatpush.bf16.msra.mxu0 %v2408_v50 }
 0x148   :  { %v774_v1 = vadd.f32 %v773_v42, %v685_v60  ;;  %1585 = vmatpush.bf16.msra.mxu1 %v2472_v57 }
 0x14a   :  { %v1029_v29 = vmax.f32 %v774_v1, 0.0 }
 0x14b   :  { %v259_v11 = vpop.f32.mrf.mxu0 }
 0x14c   :  { %v260_v13 = vadd.f32 %v259_v11, %v3209_v62  ;;  %v348_v14 = vpop.f32.mrf.mxu1 }
 0x14d   :  { %v349_v17 = vadd.f32 %v348_v14, %v3212_v63  ;;  %v686_v20 = vpop.f32.mrf.mxu2  ;;  %v2371_v14 = vld [vmem:[#allocation2] sm:$0xf] }
 0x14e   :  { %v417_v21 = vmax.f32 %v260_v13, 0.0  ;;  %v687_v28 = vadd.f32 %v686_v20, %v3404_v34  ;;  %v775_v22 = vpop.f32.mrf.mxu3 }
 0x14f   :  { %v418_v24 = vmax.f32 %v349_v17, 0.0  ;;  %v2598_v17 = vld [vmem:[#allocation2 + $0x4] sm:$0xf0] }
 0x150   :  { %v776_v25 = vadd.f32 %v775_v22, %v687_v28  ;;  %v3447_v26 = vpack.c.bf16 %v417_v21, %v415_v27  ;;  %v2372_v27 = vor.u32 %v2598_v17, %v2371_v14  ;;  %v2619_v14 = vld [vmem:[#allocation2 + $0xb4] sm:$0xf]  ;;  %v2461_v17 = vld [vmem:[#allocation2 + $0xb8] sm:$0xf0] }
 0x151   :  { %v3449_v18 = vpack.c.bf16 %v418_v24, %v416_v23  ;;  %v2435_v24 = vld [vmem:[#allocation2 + $0x80] sm:$0xf] }
 0x152   :  { %v1031_v19 = vmax.f32 %v776_v25, 0.0  ;;  %728 = vmatmul.bf16.gmra.mxu2 %v3447_v26  ;;  %v2614_v25 = vld [vmem:[#allocation2 + $0x84] sm:$0xf0] }
 0x153   :  { %817 = vmatmul.bf16.gmra.mxu3 %v3449_v18  ;;  %v262_v30 = vpop.f32.mrf.mxu0  ;;  %1322 = vmatpush.bf16.msrb.mxu2 %v2372_v27 }
 0x154   :  { %v351_v35 = vpop.f32.mrf.mxu1  ;;  %v3453_v36 = vpack.c.bf16 %v1031_v19, %v1029_v29  ;;  %v263_v39 = vadd.f32 %v262_v30, %v3209_v62  ;;  %v2436_v19 = vor.u32 %v2614_v25, %v2435_v24 }
 0x155   :  { %v689_v37 = vpop.f32.mrf.mxu2  ;;  %v352_v46 = vadd.f32 %v351_v35, %v3212_v63 }
 0x156   :  { %v690_v2 = vadd.f32 %v689_v37, %v3404_v34  ;;  %v778_v3 = vpop.f32.mrf.mxu3  ;;  %871 = vmatmul.bf16.gmra.mxu0 %v3333_v52  ;;  %1411 = vmatpush.bf16.msrb.mxu3 %v2436_v19 }
 0x157   :  { %960 = vmatmul.bf16.gmra.mxu1 %v3335_v53  ;;  %v419_v53 = vmax.f32 %v263_v39, 0.0  ;;  %v420_v61 = vmax.f32 %v352_v46, 0.0 }
 0x158   :  { %v779_v38 = vadd.f32 %v778_v3, %v690_v2 }
 0x15a   :  { %v1033_v10 = vmax.f32 %v779_v38, 0.0 }
 0x15b   :  { %v264_v47 = vpop.f32.mrf.mxu0 }
 0x15c   :  { %v265_v55 = vadd.f32 %v264_v47, %v3209_v62  ;;  %v353_v56 = vpop.f32.mrf.mxu1 }
 0x15d   :  { %v354_v58 = vadd.f32 %v353_v56, %v3212_v63  ;;  %v691_v52 = vpop.f32.mrf.mxu2 }
 0x15e   :  { %v421_v41 = vmax.f32 %v265_v55, 0.0  ;;  %v692_v60 = vadd.f32 %v691_v52, %v3404_v34  ;;  %v780_v42 = vpop.f32.mrf.mxu3 }
 0x15f   :  { %v422_v0 = vmax.f32 %v354_v58, 0.0 }
 0x160   :  { %v781_v1 = vadd.f32 %v780_v42, %v692_v60  ;;  %v3463_v4 = vpack.c.bf16 %v421_v41, %v419_v53 }
 0x161   :  { %v3465_v9 = vpack.c.bf16 %v422_v0, %v420_v61  ;;  %v2603_v0 = vld [vmem:[#allocation2 + $0x34] sm:$0xf] }
 0x162   :  { %v1035_v11 = vmax.f32 %v781_v1, 0.0  ;;  %733 = vmatmul.bf16.gmra.mxu2 %v3463_v4  ;;  %v2397_v1 = vld [vmem:[#allocation2 + $0x38] sm:$0xf0] }
 0x163   :  { %822 = vmatmul.bf16.gmra.mxu3 %v3465_v9  ;;  %v267_v13 = vpop.f32.mrf.mxu0 }
 0x164   :  { %v356_v20 = vpop.f32.mrf.mxu1  ;;  %v3469_v21 = vpack.c.bf16 %v1035_v11, %v1033_v10  ;;  %v268_v30 = vadd.f32 %v267_v13, %v3209_v62  ;;  %v2400_v13 = vor.u32 %v2603_v0, %v2397_v1 }
 0x165   :  { %v694_v28 = vpop.f32.mrf.mxu2  ;;  %v357_v35 = vadd.f32 %v356_v20, %v3212_v63 }
 0x166   :  { %v695_v22 = vadd.f32 %v694_v28, %v3404_v34  ;;  %v783_v23 = vpop.f32.mrf.mxu3  ;;  %876 = vmatmul.bf16.gmra.mxu0 %v3351_v15  ;;  %v423_v15 = vmax.f32 %v268_v30, 0.0  ;;  %v2464_v28 = vor.u32 %v2619_v14, %v2461_v17 }
 0x167   :  { %965 = vmatmul.bf16.gmra.mxu1 %v3353_v16  ;;  %v424_v46 = vmax.f32 %v357_v35, 0.0  ;;  %1497 = vmatpush.bf16.msra.mxu0 %v2400_v13 }
 0x168   :  { %v784_v29 = vadd.f32 %v783_v23, %v695_v22  ;;  %1586 = vmatpush.bf16.msra.mxu1 %v2464_v28 }
 0x16a   :  { %v1037_v55 = vmax.f32 %v784_v29, 0.0 }
 0x16b   :  { %v269_v37 = vpop.f32.mrf.mxu0 }
 0x16c   :  { %v270_v2 = vadd.f32 %v269_v37, %v3209_v62  ;;  %v358_v3 = vpop.f32.mrf.mxu1 }
 0x16d   :  { %v359_v38 = vadd.f32 %v358_v3, %v3212_v63  ;;  %v696_v39 = vpop.f32.mrf.mxu2 }
 0x16e   :  { %v425_v40 = vmax.f32 %v270_v2, 0.0  ;;  %v697_v16 = vadd.f32 %v696_v39, %v3404_v34  ;;  %v785_v43 = vpop.f32.mrf.mxu3 }
 0x16f   :  { %v426_v47 = vmax.f32 %v359_v38, 0.0  ;;  %v2636_v38 = vld [vmem:[#allocation5 + $0x38] sm:$0xff] }
 0x170   :  { %v786_v50 = vadd.f32 %v785_v43, %v697_v16  ;;  %v3479_v51 = vpack.c.bf16 %v425_v40, %v423_v15  ;;  %1899 = vmatpush.bf16.msra.mxu2 %v2636_v38 }
 0x171   :  { %v3481_v54 = vpack.c.bf16 %v426_v47, %v424_v46 }
 0x172   :  { %v1039_v56 = vmax.f32 %v786_v50, 0.0  ;;  %738 = vmatmul.bf16.gmra.mxu2 %v3479_v51  ;;  %v2644_v50 = vld [vmem:[#allocation5 + $0x78] sm:$0xff] }
 0x173   :  { %827 = vmatmul.bf16.gmra.mxu3 %v3481_v54  ;;  %v272_v57 = vpop.f32.mrf.mxu0 }
 0x174   :  { %v361_v58 = vpop.f32.mrf.mxu1  ;;  %v3485_v52 = vpack.c.bf16 %v1039_v56, %v1037_v55  ;;  %v273_v61 = vadd.f32 %v272_v57, %v3209_v62  ;;  %1988 = vmatpush.bf16.msra.mxu3 %v2644_v50 }
 0x175   :  { %v699_v53 = vpop.f32.mrf.mxu2  ;;  %v362_v10 = vadd.f32 %v361_v58, %v3212_v63 }
 0x176   :  { %v700_v41 = vadd.f32 %v699_v53, %v3404_v34  ;;  %v788_v60 = vpop.f32.mrf.mxu3  ;;  %881 = vmatmul.bf16.gmra.mxu0 %v3369_v44 }
 0x177   :  { %970 = vmatmul.bf16.gmra.mxu1 %v3371_v45  ;;  %v427_v45 = vmax.f32 %v273_v61, 0.0  ;;  %v428_v29 = vmax.f32 %v362_v10, 0.0 }
 0x178   :  { %v789_v42 = vadd.f32 %v788_v60, %v700_v41 }
 0x17a   :  { %v1041_v2 = vmax.f32 %v789_v42, 0.0 }
 0x17b   :  { %v274_v11 = vpop.f32.mrf.mxu0 }
 0x17c   :  { %v275_v20 = vadd.f32 %v274_v11, %v3209_v62  ;;  %v363_v27 = vpop.f32.mrf.mxu1 }
 0x17d   :  { %v364_v22 = vadd.f32 %v363_v27, %v3212_v63  ;;  %v701_v44 = vpop.f32.mrf.mxu2 }
 0x17e   :  { %v429_v23 = vmax.f32 %v275_v20, 0.0  ;;  %v702_v24 = vadd.f32 %v701_v44, %v3404_v34  ;;  %v790_v25 = vpop.f32.mrf.mxu3 }
 0x17f   :  { %v430_v19 = vmax.f32 %v364_v22, 0.0 }
 0x180   :  { %v791_v30 = vadd.f32 %v790_v25, %v702_v24  ;;  %v3495_v35 = vpack.c.bf16 %v429_v23, %v427_v45  ;;  %v2601_v24 = vld [vmem:[#allocation2 + $0x24] sm:$0xf]  ;;  %v2389_v25 = vld [vmem:[#allocation2 + $0x28] sm:$0xf0] }
 0x181   :  { %v3497_v37 = vpack.c.bf16 %v430_v19, %v428_v29  ;;  %v2392_v19 = vor.u32 %v2601_v24, %v2389_v25 }
 0x182   :  { %v1043_v3 = vmax.f32 %v791_v30, 0.0  ;;  %743 = vmatmul.bf16.gmra.mxu2 %v3495_v35  ;;  %v2453_v30 = vld [vmem:[#allocation2 + $0xa8] sm:$0xf0] }
 0x183   :  { %832 = vmatmul.bf16.gmra.mxu3 %v3497_v37  ;;  %v277_v39 = vpop.f32.mrf.mxu0  ;;  %1498 = vmatpush.bf16.msra.mxu0 %v2392_v19 }
 0x184   :  { %v366_v15 = vpop.f32.mrf.mxu1  ;;  %v3501_v40 = vpack.c.bf16 %v1043_v3, %v1041_v2  ;;  %v278_v55 = vadd.f32 %v277_v39, %v3209_v62 }
 0x185   :  { %v704_v16 = vpop.f32.mrf.mxu2  ;;  %v367_v56 = vadd.f32 %v366_v15, %v3212_v63 }
 0x186   :  { %v705_v43 = vadd.f32 %v704_v16, %v3404_v34  ;;  %v793_v46 = vpop.f32.mrf.mxu3  ;;  %886 = vmatmul.bf16.gmra.mxu0 %v3381_v7  ;;  %v431_v42 = vmax.f32 %v278_v55, 0.0 }
 0x187   :  { %975 = vmatmul.bf16.gmra.mxu1 %v3383_v8  ;;  %v432_v8 = vmax.f32 %v367_v56, 0.0 }
 0x188   :  { %v794_v47 = vadd.f32 %v793_v46, %v705_v43 }
 0x18a   :  { %v1045_v14 = vmax.f32 %v794_v47, 0.0 }
 0x18b   :  { %v279_v57 = vpop.f32.mrf.mxu0 }
 0x18c   :  { %v280_v58 = vadd.f32 %v279_v57, %v3209_v62  ;;  %v368_v53 = vpop.f32.mrf.mxu1  ;;  %v2635_v57 = vld [vmem:[#allocation5 + $0x30] sm:$0xff] }
 0x18d   :  { %v369_v41 = vadd.f32 %v368_v53, %v3212_v63  ;;  %v706_v60 = vpop.f32.mrf.mxu2  ;;  %v3518_v63 = vperm.slane %v3396_v31, 1  ;;  %v2617_v31 = vld [vmem:[#allocation2 + $0xa4] sm:$0xf]  ;;  %1900 = vmatpush.bf16.msra.mxu2 %v2635_v57 }
 0x18e   :  { %v433_v61 = vmax.f32 %v280_v58, 0.0  ;;  %v707_v7 = vadd.f32 %v706_v60, %v3404_v34  ;;  %v795_v0 = vpop.f32.mrf.mxu3  ;;  %v2456_v39 = vor.u32 %v2617_v31, %v2453_v30 }
 0x18f   :  { %v434_v1 = vmax.f32 %v369_v41, 0.0 }
 0x190   :  { %v796_v10 = vadd.f32 %v795_v0, %v707_v7  ;;  %v3511_v11 = vpack.c.bf16 %v433_v61, %v431_v42  ;;  %1587 = vmatpush.bf16.msra.mxu1 %v2456_v39  ;;  %v2599_v39 = vld [vmem:[#allocation2 + $0x14] sm:$0xf] }
 0x191   :  { %v3513_v13 = vpack.c.bf16 %v434_v1, %v432_v8  ;;  %v2643_v8 = vld [vmem:[#allocation5 + $0x70] sm:$0xff] }
 0x192   :  { %v1047_v17 = vmax.f32 %v796_v10, 0.0  ;;  %748 = vmatmul.bf16.gmra.mxu2 %v3511_v11  ;;  %1989 = vmatpush.bf16.msra.mxu3 %v2643_v8  ;;  %v2634_v8 = vld [vmem:[#allocation5 + $0x28] sm:$0xff] }
 0x193   :  { %837 = vmatmul.bf16.gmra.mxu3 %v3513_v13  ;;  %v852_v62 = vpop.f32.mrf.mxu0  ;;  %1901 = vmatpush.bf16.msra.mxu2 %v2634_v8 }
 0x194   :  { %v941_v20 = vpop.f32.mrf.mxu1  ;;  %v3520_v27 = vpack.c.bf16 %v1047_v17, %v1045_v14  ;;  %v853_v45 = vadd.f32 %v852_v62, %v3518_v63 }
 0x195   :  { %v709_v28 = vpop.f32.mrf.mxu2 }
 0x196   :  { %v710_v22 = vadd.f32 %v709_v28, %v3404_v34  ;;  %v798_v44 = vpop.f32.mrf.mxu3  ;;  %891 = vmatmul.bf16.gmra.mxu0 %v3398_v32  ;;  %v942_v2 = vadd.f32 %v941_v20, %v853_v45 }
 0x197   :  { %980 = vmatmul.bf16.gmra.mxu1 %v3400_v33 }
 0x198   :  { %v799_v23 = vadd.f32 %v798_v44, %v710_v22  ;;  %v1022_v43 = vmax.f32 %v942_v2, 0.0 }
 0x19a   :  { %v1049_v50 = vmax.f32 %v799_v23, 0.0 }
 0x19b   :  { %v854_v29 = vpop.f32.mrf.mxu0 }
 0x19c   :  { %v855_v3 = vadd.f32 %v854_v29, %v3518_v63  ;;  %v943_v38 = vpop.f32.mrf.mxu1 }
 0x19d   :  { %v711_v15 = vpop.f32.mrf.mxu2 }
 0x19e   :  { %v944_v16 = vadd.f32 %v943_v38, %v855_v3  ;;  %v712_v32 = vadd.f32 %v711_v15, %v3404_v34  ;;  %v800_v33 = vpop.f32.mrf.mxu3  ;;  %v2381_v15 = vld [vmem:[#allocation2 + $0x18] sm:$0xf0] }
 0x1a0   :  { %v1024_v46 = vmax.f32 %v944_v16, 0.0  ;;  %v801_v47 = vadd.f32 %v800_v33, %v712_v32  ;;  %v2384_v32 = vor.u32 %v2599_v39, %v2381_v15  ;;  %v2615_v33 = vld [vmem:[#allocation2 + $0x94] sm:$0xf] }
 0x1a2   :  { %v3528_v55 = vpack.c.bf16 %v1024_v46, %v1022_v43  ;;  %v1051_v56 = vmax.f32 %v801_v47, 0.0  ;;  %1323 = vmatmul.bf16.vlgmr.msrb.gmra.mxu2 %v3421_v12  ;;  %v2445_v43 = vld [vmem:[#allocation2 + $0x98] sm:$0xf0]  ;;  %1499 = vmatpush.bf16.msra.mxu0 %v2384_v32 }
 0x1a3   :  { %v857_v58 = vpop.f32.mrf.mxu0 }
 0x1a4   :  { %v946_v53 = vpop.f32.mrf.mxu1  ;;  %1412 = vmatmul.bf16.vlgmr.msrb.gmra.mxu3 %v3528_v55  ;;  %v3532_v41 = vpack.c.bf16 %v1051_v56, %v1049_v50  ;;  %v858_v7 = vadd.f32 %v857_v58, %v3518_v63  ;;  %v2448_v56 = vor.u32 %v2615_v33, %v2445_v43 }
 0x1a5   :  { %v714_v60 = vpop.f32.mrf.mxu2 }
 0x1a6   :  { %v715_v42 = vadd.f32 %v714_v60, %v3404_v34  ;;  %v803_v61 = vpop.f32.mrf.mxu3  ;;  %896 = vmatmul.bf16.gmra.mxu0 %v3415_v5  ;;  %v947_v10 = vadd.f32 %v946_v53, %v858_v7  ;;  %1588 = vmatpush.bf16.msra.mxu1 %v2448_v56  ;;  %v2597_v56 = vld [vmem:[#allocation2 + $0x4] sm:$0xf] }
 0x1a7   :  { %985 = vmatmul.bf16.gmra.mxu1 %v3417_v6 }
 0x1a8   :  { %v804_v0 = vadd.f32 %v803_v61, %v715_v42  ;;  %v1026_v44 = vmax.f32 %v947_v10, 0.0 }
 0x1aa   :  { %v1053_v23 = vmax.f32 %v804_v0, 0.0 }
 0x1ab   :  { %v859_v1 = vpop.f32.mrf.mxu0 }
 0x1ac   :  { %v860_v14 = vadd.f32 %v859_v1, %v3518_v63  ;;  %v948_v17 = vpop.f32.mrf.mxu1 }
 0x1ad   :  { %v716_v62 = vpop.f32.mrf.mxu2 }
 0x1ae   :  { %v949_v20 = vadd.f32 %v948_v17, %v860_v14  ;;  %v717_v28 = vadd.f32 %v716_v62, %v3404_v34  ;;  %v805_v22 = vpop.f32.mrf.mxu3 }
 0x1b0   :  { %v1028_v45 = vmax.f32 %v949_v20, 0.0  ;;  %v806_v5 = vadd.f32 %v805_v22, %v717_v28 }
 0x1b2   :  { %v1055_v6 = vmax.f32 %v806_v5, 0.0  ;;  %1328 = vmatmul.bf16.gmra.mxu2 %v3437_v59  ;;  %v3541_v24 = vpack.c.bf16 %v1028_v45, %v1026_v44  ;;  %v2642_v44 = vld [vmem:[#allocation5 + $0x68] sm:$0xff] }
 0x1b3   :  { %v862_v25 = vpop.f32.mrf.mxu0  ;;  %1990 = vmatpush.bf16.msra.mxu3 %v2642_v44  ;;  %v2633_v44 = vld [vmem:[#allocation5 + $0x20] sm:$0xff] }
 0x1b4   :  { %v951_v29 = vpop.f32.mrf.mxu1  ;;  %1417 = vmatmul.bf16.gmra.mxu3 %v3541_v24  ;;  %v3544_v19 = vpack.c.bf16 %v1055_v6, %v1053_v23  ;;  %v863_v3 = vadd.f32 %v862_v25, %v3518_v63  ;;  %1902 = vmatpush.bf16.msra.mxu2 %v2633_v44 }
 0x1b5   :  { %v719_v31 = vpop.f32.mrf.mxu2 }
 0x1b6   :  { %v720_v30 = vadd.f32 %v719_v31, %v3404_v34  ;;  %v808_v2 = vpop.f32.mrf.mxu3  ;;  %901 = vmatmul.bf16.gmra.mxu0 %v3431_v48  ;;  %v952_v46 = vadd.f32 %v951_v29, %v863_v3 }
 0x1b7   :  { %990 = vmatmul.bf16.gmra.mxu1 %v3433_v49 }
 0x1b8   :  { %v809_v38 = vadd.f32 %v808_v2, %v720_v30  ;;  %v1030_v53 = vmax.f32 %v952_v46, 0.0 }
 0x1ba   :  { %v1057_v61 = vmax.f32 %v809_v38, 0.0 }
 0x1bb   :  { %v864_v16 = vpop.f32.mrf.mxu0 }
 0x1bc   :  { %v865_v47 = vadd.f32 %v864_v16, %v3518_v63  ;;  %v953_v50 = vpop.f32.mrf.mxu1 }
 0x1bd   :  { %v721_v57 = vpop.f32.mrf.mxu2 }
 0x1be   :  { %v954_v58 = vadd.f32 %v953_v50, %v865_v47  ;;  %v722_v48 = vadd.f32 %v721_v57, %v3404_v34  ;;  %v810_v49 = vpop.f32.mrf.mxu3  ;;  %v2373_v57 = vld [vmem:[#allocation2 + $0x8] sm:$0xf0] }
 0x1c0   :  { %v1032_v60 = vmax.f32 %v954_v58, 0.0  ;;  %v811_v42 = vadd.f32 %v810_v49, %v722_v48  ;;  %v2376_v48 = vor.u32 %v2597_v56, %v2373_v57  ;;  %v2613_v49 = vld [vmem:[#allocation2 + $0x84] sm:$0xf] }
 0x1c2   :  { %v1059_v7 = vmax.f32 %v811_v42, 0.0  ;;  %1333 = vmatmul.bf16.gmra.mxu2 %v3453_v36  ;;  %v3553_v0 = vpack.c.bf16 %v1032_v60, %v1030_v53  ;;  %v2437_v53 = vld [vmem:[#allocation2 + $0x88] sm:$0xf0]  ;;  %1500 = vmatpush.bf16.msra.mxu0 %v2376_v48 }
 0x1c3   :  { %v867_v1 = vpop.f32.mrf.mxu0 }
 0x1c4   :  { %v956_v10 = vpop.f32.mrf.mxu1  ;;  %1422 = vmatmul.bf16.gmra.mxu3 %v3553_v0  ;;  %v3556_v14 = vpack.c.bf16 %v1059_v7, %v1057_v61  ;;  %v868_v28 = vadd.f32 %v867_v1, %v3518_v63  ;;  %v2440_v7 = vor.u32 %v2613_v49, %v2437_v53 }
 0x1c5   :  { %v724_v17 = vpop.f32.mrf.mxu2 }
 0x1c6   :  { %v725_v62 = vadd.f32 %v724_v17, %v3404_v34  ;;  %v813_v20 = vpop.f32.mrf.mxu3  ;;  %906 = vmatmul.bf16.gmra.mxu0 %v3447_v26  ;;  %v957_v5 = vadd.f32 %v956_v10, %v868_v28  ;;  %1589 = vmatpush.bf16.msra.mxu1 %v2440_v7 }
 0x1c7   :  { %995 = vmatmul.bf16.gmra.mxu1 %v3449_v18 }
 0x1c8   :  { %v814_v22 = vadd.f32 %v813_v20, %v725_v62  ;;  %v1034_v2 = vmax.f32 %v957_v5, 0.0 }
 0x1ca   :  { %v1061_v38 = vmax.f32 %v814_v22, 0.0 }
 0x1cb   :  { %v869_v45 = vpop.f32.mrf.mxu0 }
 0x1cc   :  { %v870_v23 = vadd.f32 %v869_v45, %v3518_v63  ;;  %v958_v6 = vpop.f32.mrf.mxu1 }
 0x1cd   :  { %v726_v25 = vpop.f32.mrf.mxu2 }
 0x1ce   :  { %v959_v29 = vadd.f32 %v958_v6, %v870_v23  ;;  %v727_v31 = vadd.f32 %v726_v25, %v3404_v34  ;;  %v815_v30 = vpop.f32.mrf.mxu3 }
 0x1d0   :  { %v1036_v3 = vmax.f32 %v959_v29, 0.0  ;;  %v816_v26 = vadd.f32 %v815_v30, %v727_v31 }
 0x1d2   :  { %v1063_v18 = vmax.f32 %v816_v26, 0.0  ;;  %1338 = vmatmul.bf16.gmra.mxu2 %v3469_v21  ;;  %v3565_v39 = vpack.c.bf16 %v1036_v3, %v1034_v2  ;;  %v2641_v2 = vld [vmem:[#allocation5 + $0x60] sm:$0xff] }
 0x1d3   :  { %v872_v15 = vpop.f32.mrf.mxu0  ;;  %1991 = vmatpush.bf16.msra.mxu3 %v2641_v2 }
 0x1d4   :  { %v961_v16 = vpop.f32.mrf.mxu1  ;;  %1427 = vmatmul.bf16.gmra.mxu3 %v3565_v39  ;;  %v3568_v32 = vpack.c.bf16 %v1063_v18, %v1061_v38  ;;  %v873_v47 = vadd.f32 %v872_v15, %v3518_v63 }
 0x1d5   :  { %v729_v33 = vpop.f32.mrf.mxu2 }
 0x1d6   :  { %v730_v43 = vadd.f32 %v729_v33, %v3404_v34  ;;  %v818_v46 = vpop.f32.mrf.mxu3  ;;  %911 = vmatmul.bf16.gmra.mxu0 %v3463_v4  ;;  %v962_v60 = vadd.f32 %v961_v16, %v873_v47 }
 0x1d7   :  { %1000 = vmatmul.bf16.gmra.mxu1 %v3465_v9 }
 0x1d8   :  { %v819_v50 = vadd.f32 %v818_v46, %v730_v43  ;;  %v1038_v10 = vmax.f32 %v962_v60, 0.0 }
 0x1da   :  { %v1065_v20 = vmax.f32 %v819_v50, 0.0 }
 0x1db   :  { %v874_v58 = vpop.f32.mrf.mxu0 }
 0x1dc   :  { %v875_v42 = vadd.f32 %v874_v58, %v3518_v63  ;;  %v963_v61 = vpop.f32.mrf.mxu1 }
 0x1dd   :  { %v731_v8 = vpop.f32.mrf.mxu2 }
 0x1de   :  { %v964_v1 = vadd.f32 %v963_v61, %v875_v42  ;;  %v732_v4 = vadd.f32 %v731_v8, %v3404_v34  ;;  %v820_v9 = vpop.f32.mrf.mxu3 }
 0x1e0   :  { %v1040_v17 = vmax.f32 %v964_v1, 0.0  ;;  %v821_v62 = vadd.f32 %v820_v9, %v732_v4 }
 0x1e2   :  { %v1067_v28 = vmax.f32 %v821_v62, 0.0  ;;  %1343 = vmatmul.bf16.gmra.mxu2 %v3485_v52  ;;  %v3577_v22 = vpack.c.bf16 %v1040_v17, %v1038_v10 }
 0x1e3   :  { %v877_v45 = vpop.f32.mrf.mxu0 }
 0x1e4   :  { %v966_v5 = vpop.f32.mrf.mxu1  ;;  %1432 = vmatmul.bf16.gmra.mxu3 %v3577_v22  ;;  %v3580_v23 = vpack.c.bf16 %v1067_v28, %v1065_v20  ;;  %v878_v31 = vadd.f32 %v877_v45, %v3518_v63 }
 0x1e5   :  { %v734_v6 = vpop.f32.mrf.mxu2 }
 0x1e6   :  { %v735_v25 = vadd.f32 %v734_v6, %v3404_v34  ;;  %v823_v29 = vpop.f32.mrf.mxu3  ;;  %916 = vmatmul.bf16.gmra.mxu0 %v3479_v51  ;;  %v967_v26 = vadd.f32 %v966_v5, %v878_v31  ;;  %v2632_v5 = vld [vmem:[#allocation5 + $0x18] sm:$0xff] }
 0x1e7   :  { %1005 = vmatmul.bf16.gmra.mxu1 %v3481_v54  ;;  %1903 = vmatpush.bf16.msra.mxu2 %v2632_v5 }
 0x1e8   :  { %v824_v30 = vadd.f32 %v823_v29, %v735_v25  ;;  %v1042_v46 = vmax.f32 %v967_v26, 0.0 }
 0x1ea   :  { %v1069_v50 = vmax.f32 %v824_v30, 0.0 }
 0x1eb   :  { %v879_v3 = vpop.f32.mrf.mxu0 }
 0x1ec   :  { %v880_v38 = vadd.f32 %v879_v3, %v3518_v63  ;;  %v968_v18 = vpop.f32.mrf.mxu1 }
 0x1ed   :  { %v736_v15 = vpop.f32.mrf.mxu2 }
 0x1ee   :  { %v969_v16 = vadd.f32 %v968_v18, %v880_v38  ;;  %v737_v33 = vadd.f32 %v736_v15, %v3404_v34  ;;  %v825_v43 = vpop.f32.mrf.mxu3  ;;  %v2640_v38 = vld [vmem:[#allocation5 + $0x58] sm:$0xff] }
 0x1ef   :  { %1992 = vmatpush.bf16.msra.mxu3 %v2640_v38 }
 0x1f0   :  { %v1044_v47 = vmax.f32 %v969_v16, 0.0  ;;  %v826_v51 = vadd.f32 %v825_v43, %v737_v33 }
 0x1f2   :  { %v1071_v54 = vmax.f32 %v826_v51, 0.0  ;;  %1348 = vmatmul.bf16.gmra.mxu2 %v3501_v40  ;;  %v3589_v56 = vpack.c.bf16 %v1044_v47, %v1042_v46 }
 0x1f3   :  { %v882_v57 = vpop.f32.mrf.mxu0 }
 0x1f4   :  { %v971_v58 = vpop.f32.mrf.mxu1  ;;  %1437 = vmatmul.bf16.gmra.mxu3 %v3589_v56  ;;  %v3592_v48 = vpack.c.bf16 %v1071_v54, %v1069_v50  ;;  %v883_v42 = vadd.f32 %v882_v57, %v3518_v63 }
 0x1f5   :  { %v739_v49 = vpop.f32.mrf.mxu2 }
 0x1f6   :  { %v740_v53 = vadd.f32 %v739_v49, %v3404_v34  ;;  %v828_v60 = vpop.f32.mrf.mxu3  ;;  %921 = vmatmul.bf16.gmra.mxu0 %v3495_v35  ;;  %v972_v8 = vadd.f32 %v971_v58, %v883_v42 }
 0x1f7   :  { %1010 = vmatmul.bf16.gmra.mxu1 %v3497_v37 }
 0x1f8   :  { %v829_v61 = vadd.f32 %v828_v60, %v740_v53  ;;  %v1046_v20 = vmax.f32 %v972_v8, 0.0 }
 0x1fa   :  { %v1073_v45 = vmax.f32 %v829_v61, 0.0 }
 0x1fb   :  { %v884_v7 = vpop.f32.mrf.mxu0 }
 0x1fc   :  { %v885_v1 = vadd.f32 %v884_v7, %v3518_v63  ;;  %v973_v4 = vpop.f32.mrf.mxu1 }
 0x1fd   :  { %v741_v9 = vpop.f32.mrf.mxu2 }
 0x1fe   :  { %v974_v10 = vadd.f32 %v973_v4, %v885_v1  ;;  %v742_v17 = vadd.f32 %v741_v9, %v3404_v34  ;;  %v830_v62 = vpop.f32.mrf.mxu3 }
 0x200   :  { %v1048_v28 = vmax.f32 %v974_v10, 0.0  ;;  %v831_v44 = vadd.f32 %v830_v62, %v742_v17 }
 0x202   :  { %v1075_v35 = vmax.f32 %v831_v44, 0.0  ;;  %1353 = vmatmul.bf16.gmra.mxu2 %v3520_v27  ;;  %v3601_v37 = vpack.c.bf16 %v1048_v28, %v1046_v20 }
 0x203   :  { %v887_v6 = vpop.f32.mrf.mxu0 }
 0x204   :  { %v976_v25 = vpop.f32.mrf.mxu1  ;;  %1442 = vmatmul.bf16.gmra.mxu3 %v3601_v37  ;;  %v3604_v29 = vpack.c.bf16 %v1075_v35, %v1073_v45  ;;  %v888_v3 = vadd.f32 %v887_v6, %v3518_v63  ;;  %v3627_v45 = vld [vmem:[%s3874_s6] sm:$0x3] }
 0x205   :  { %v744_v31 = vpop.f32.mrf.mxu2 }
 0x206   :  { %v745_v30 = vadd.f32 %v744_v31, %v3404_v34  ;;  %v833_v2 = vpop.f32.mrf.mxu3  ;;  %926 = vmatmul.bf16.gmra.mxu0 %v3511_v11  ;;  %v977_v15 = vadd.f32 %v976_v25, %v888_v3  ;;  %v3633_v31 = vperm.slane %v3627_v45, 0 }
 0x207   :  { %1015 = vmatmul.bf16.gmra.mxu1 %v3513_v13 }
 0x208   :  { %v834_v26 = vadd.f32 %v833_v2, %v745_v30  ;;  %v1050_v50 = vmax.f32 %v977_v15, 0.0  ;;  %v2631_v30 = vld [vmem:[#allocation5 + $0x10] sm:$0xff] }
 0x209   :  { %1904 = vmatpush.bf16.msra.mxu2 %v2631_v30 }
 0x20a   :  { %v1077_v57 = vmax.f32 %v834_v26, 0.0 }
 0x20b   :  { %v889_v18 = vpop.f32.mrf.mxu0 }
 0x20c   :  { %v890_v16 = vadd.f32 %v889_v18, %v3518_v63  ;;  %v978_v33 = vpop.f32.mrf.mxu1 }
 0x20d   :  { %v746_v43 = vpop.f32.mrf.mxu2 }
 0x20e   :  { %v979_v46 = vadd.f32 %v978_v33, %v890_v16  ;;  %v747_v47 = vadd.f32 %v746_v43, %v3404_v34  ;;  %v835_v51 = vpop.f32.mrf.mxu3  ;;  %v2639_v33 = vld [vmem:[#allocation5 + $0x50] sm:$0xff] }
 0x20f   :  { %1993 = vmatpush.bf16.msra.mxu3 %v2639_v33 }
 0x210   :  { %v1052_v54 = vmax.f32 %v979_v46, 0.0  ;;  %v836_v11 = vadd.f32 %v835_v51, %v747_v47 }
 0x212   :  { %v1079_v13 = vmax.f32 %v836_v11, 0.0  ;;  %1358 = vmatmul.bf16.gmra.mxu2 %v3532_v41  ;;  %v3613_v58 = vpack.c.bf16 %v1052_v54, %v1050_v50 }
 0x213   :  { %v892_v49 = vpop.f32.mrf.mxu0 }
 0x214   :  { %v981_v53 = vpop.f32.mrf.mxu1  ;;  %1447 = vmatmul.bf16.gmra.mxu3 %v3613_v58  ;;  %v3616_v60 = vpack.c.bf16 %v1079_v13, %v1077_v57  ;;  %v893_v8 = vadd.f32 %v892_v49, %v3518_v63 }
 0x215   :  { %v749_v42 = vpop.f32.mrf.mxu2 }
 0x216   :  { %v750_v61 = vadd.f32 %v749_v42, %v3404_v34  ;;  %v838_v7 = vpop.f32.mrf.mxu3  ;;  %1501 = vmatmul.bf16.vlgmr.msra.gmra.mxu0 %v3421_v12  ;;  %v982_v9 = vadd.f32 %v981_v53, %v893_v8 }
 0x217   :  { %1590 = vmatmul.bf16.vlgmr.msra.gmra.mxu1 %v3528_v55 }
 0x218   :  { %v839_v1 = vadd.f32 %v838_v7, %v750_v61  ;;  %v1054_v12 = vmax.f32 %v982_v9, 0.0 }
 0x21a   :  { %v1081_v5 = vmax.f32 %v839_v1, 0.0 }
 0x21b   :  { %v894_v4 = vpop.f32.mrf.mxu0 }
 0x21c   :  { %v895_v10 = vadd.f32 %v894_v4, %v3518_v63  ;;  %v983_v17 = vpop.f32.mrf.mxu1 }
 0x21d   :  { %v751_v62 = vpop.f32.mrf.mxu2 }
 0x21e   :  { %v984_v20 = vadd.f32 %v983_v17, %v895_v10  ;;  %v752_v28 = vadd.f32 %v751_v62, %v3404_v34  ;;  %v840_v44 = vpop.f32.mrf.mxu3 }
 0x220   :  { %v1056_v55 = vmax.f32 %v984_v20, 0.0  ;;  %v841_v35 = vadd.f32 %v840_v44, %v752_v28 }
 0x222   :  { %v1083_v6 = vmax.f32 %v841_v35, 0.0  ;;  %1363 = vmatmul.bf16.gmra.mxu2 %v3544_v19  ;;  %v3630_v25 = vpack.c.bf16 %v1056_v55, %v1054_v12 }
 0x223   :  { %v897_v34 = vpop.f32.mrf.mxu0 }
 0x224   :  { %v986_v2 = vpop.f32.mrf.mxu1  ;;  %1452 = vmatmul.bf16.gmra.mxu3 %v3630_v25  ;;  %v3636_v3 = vpack.c.bf16 %v1083_v6, %v1081_v5  ;;  %v898_v15 = vadd.f32 %v897_v34, %v3518_v63 }
 0x225   :  { %v1324_v26 = vpop.f32.mrf.mxu2 }
 0x226   :  { %v1325_v38 = vadd.f32 %v1324_v26, %v3633_v31  ;;  %1506 = vmatmul.bf16.gmra.mxu0 %v3437_v59  ;;  %v987_v46 = vadd.f32 %v986_v2, %v898_v15  ;;  %v2630_v26 = vld [vmem:[#allocation5 + $0x8] sm:$0xff] }
 0x227   :  { %1595 = vmatmul.bf16.gmra.mxu1 %v3541_v24  ;;  %v1413_v18 = vpop.f32.mrf.mxu3  ;;  %1905 = vmatpush.bf16.msra.mxu2 %v2630_v26 }
 0x228   :  { %v1414_v16 = vadd.f32 %v1413_v18, %v1325_v38  ;;  %v1058_v13 = vmax.f32 %v987_v46, 0.0 }
 0x22a   :  { %v1671_v24 = vmax.f32 %v1414_v16, 0.0 }
 0x22b   :  { %v899_v43 = vpop.f32.mrf.mxu0 }
 0x22c   :  { %v900_v47 = vadd.f32 %v899_v43, %v3518_v63  ;;  %v988_v51 = vpop.f32.mrf.mxu1 }
 0x22d   :  { %v1326_v50 = vpop.f32.mrf.mxu2 }
 0x22e   :  { %v989_v54 = vadd.f32 %v988_v51, %v900_v47  ;;  %v1327_v11 = vadd.f32 %v1326_v50, %v3633_v31  ;;  %v2638_v51 = vld [vmem:[#allocation5 + $0x48] sm:$0xff] }
 0x22f   :  { %v1415_v57 = vpop.f32.mrf.mxu3  ;;  %1994 = vmatpush.bf16.msra.mxu3 %v2638_v51 }
 0x230   :  { %v1060_v59 = vmax.f32 %v989_v54, 0.0  ;;  %v1416_v49 = vadd.f32 %v1415_v57, %v1327_v11 }
 0x232   :  { %v1673_v53 = vmax.f32 %v1416_v49, 0.0  ;;  %1368 = vmatmul.bf16.gmra.mxu2 %v3556_v14  ;;  %v3645_v42 = vpack.c.bf16 %v1060_v59, %v1058_v13 }
 0x233   :  { %v902_v61 = vpop.f32.mrf.mxu0 }
 0x234   :  { %v3647_v7 = vpack.c.bf16 %v1673_v53, %v1671_v24  ;;  %v991_v8 = vpop.f32.mrf.mxu1  ;;  %1457 = vmatmul.bf16.gmra.mxu3 %v3645_v42  ;;  %v903_v10 = vadd.f32 %v902_v61, %v3518_v63 }
 0x235   :  { %v1329_v1 = vpop.f32.mrf.mxu2 }
 0x236   :  { %v1330_v4 = vadd.f32 %v1329_v1, %v3633_v31  ;;  %1511 = vmatmul.bf16.gmra.mxu0 %v3453_v36  ;;  %v992_v20 = vadd.f32 %v991_v8, %v903_v10 }
 0x237   :  { %1600 = vmatmul.bf16.gmra.mxu1 %v3553_v0  ;;  %v1418_v9 = vpop.f32.mrf.mxu3 }
 0x238   :  { %v1419_v17 = vadd.f32 %v1418_v9, %v1330_v4  ;;  %v1062_v6 = vmax.f32 %v992_v20, 0.0 }
 0x23a   :  { %v1675_v36 = vmax.f32 %v1419_v17, 0.0 }
 0x23b   :  { %v904_v62 = vpop.f32.mrf.mxu0 }
 0x23c   :  { %v905_v28 = vadd.f32 %v904_v62, %v3518_v63  ;;  %v993_v44 = vpop.f32.mrf.mxu1 }
 0x23d   :  { %v1331_v12 = vpop.f32.mrf.mxu2 }
 0x23e   :  { %v994_v55 = vadd.f32 %v993_v44, %v905_v28  ;;  %v1332_v35 = vadd.f32 %v1331_v12, %v3633_v31 }
 0x23f   :  { %v1420_v5 = vpop.f32.mrf.mxu3 }
 0x240   :  { %v1064_v30 = vmax.f32 %v994_v55, 0.0  ;;  %v1421_v34 = vadd.f32 %v1420_v5, %v1332_v35 }
 0x242   :  { %v1677_v2 = vmax.f32 %v1421_v34, 0.0  ;;  %1373 = vmatmul.bf16.gmra.mxu2 %v3568_v32  ;;  %v3657_v0 = vpack.c.bf16 %v1064_v30, %v1062_v6 }
 0x243   :  { %v907_v38 = vpop.f32.mrf.mxu0 }
 0x244   :  { %v996_v18 = vpop.f32.mrf.mxu1  ;;  %1462 = vmatmul.bf16.gmra.mxu3 %v3657_v0  ;;  %v3660_v15 = vpack.c.bf16 %v1677_v2, %v1675_v36  ;;  %v908_v46 = vadd.f32 %v907_v38, %v3518_v63 }
 0x245   :  { %v1334_v16 = vpop.f32.mrf.mxu2 }
 0x246   :  { %v1335_v33 = vadd.f32 %v1334_v16, %v3633_v31  ;;  %1516 = vmatmul.bf16.gmra.mxu0 %v3469_v21  ;;  %v997_v54 = vadd.f32 %v996_v18, %v908_v46  ;;  %v2629_v16 = vld [vmem:[#allocation5] sm:$0xff] }
 0x247   :  { %1605 = vmatmul.bf16.gmra.mxu1 %v3565_v39  ;;  %v1423_v43 = vpop.f32.mrf.mxu3  ;;  %1906 = vmatpush.bf16.msra.mxu2 %v2629_v16 }
 0x248   :  { %v1424_v47 = vadd.f32 %v1423_v43, %v1335_v33  ;;  %v1066_v53 = vmax.f32 %v997_v54, 0.0 }
 0x24a   :  { %v1679_v39 = vmax.f32 %v1424_v47, 0.0 }
 0x24b   :  { %v909_v50 = vpop.f32.mrf.mxu0 }
 0x24c   :  { %v910_v11 = vadd.f32 %v909_v50, %v3518_v63  ;;  %v998_v57 = vpop.f32.mrf.mxu1 }
 0x24d   :  { %v1336_v13 = vpop.f32.mrf.mxu2 }
 0x24e   :  { %v999_v59 = vadd.f32 %v998_v57, %v910_v11  ;;  %v1337_v49 = vadd.f32 %v1336_v13, %v3633_v31  ;;  %v2637_v57 = vld [vmem:[#allocation5 + $0x40] sm:$0xff] }
 0x24f   :  { %v1425_v24 = vpop.f32.mrf.mxu3  ;;  %1995 = vmatpush.bf16.msra.mxu3 %v2637_v57 }
 0x250   :  { %v1068_v21 = vmax.f32 %v999_v59, 0.0  ;;  %v1426_v61 = vadd.f32 %v1425_v24, %v1337_v49 }
 0x252   :  { %v1681_v8 = vmax.f32 %v1426_v61, 0.0  ;;  %1378 = vmatmul.bf16.gmra.mxu2 %v3580_v23  ;;  %v3669_v1 = vpack.c.bf16 %v1068_v21, %v1066_v53 }
 0x253   :  { %v912_v4 = vpop.f32.mrf.mxu0 }
 0x254   :  { %v1001_v9 = vpop.f32.mrf.mxu1  ;;  %1467 = vmatmul.bf16.gmra.mxu3 %v3669_v1  ;;  %v3672_v10 = vpack.c.bf16 %v1681_v8, %v1679_v39  ;;  %v913_v28 = vadd.f32 %v912_v4, %v3518_v63 }
 0x255   :  { %v1339_v17 = vpop.f32.mrf.mxu2 }
 0x256   :  { %v1340_v62 = vadd.f32 %v1339_v17, %v3633_v31  ;;  %1521 = vmatmul.bf16.gmra.mxu0 %v3485_v52  ;;  %v1002_v55 = vadd.f32 %v1001_v9, %v913_v28 }
 0x257   :  { %1610 = vmatmul.bf16.gmra.mxu1 %v3577_v22  ;;  %v1428_v20 = vpop.f32.mrf.mxu3 }
 0x258   :  { %v1429_v44 = vadd.f32 %v1428_v20, %v1340_v62  ;;  %v1070_v2 = vmax.f32 %v1002_v55, 0.0 }
 0x25a   :  { %v1683_v52 = vmax.f32 %v1429_v44, 0.0 }
 0x25b   :  { %v914_v12 = vpop.f32.mrf.mxu0 }
 0x25c   :  { %v915_v35 = vadd.f32 %v914_v12, %v3518_v63  ;;  %v1003_v5 = vpop.f32.mrf.mxu1 }
 0x25d   :  { %v1341_v6 = vpop.f32.mrf.mxu2 }
 0x25e   :  { %v1004_v30 = vadd.f32 %v1003_v5, %v915_v35  ;;  %v1342_v34 = vadd.f32 %v1341_v6, %v3633_v31 }
 0x25f   :  { %v1430_v36 = vpop.f32.mrf.mxu3 }
 0x260   :  { %v1072_v26 = vmax.f32 %v1004_v30, 0.0  ;;  %v1431_v38 = vadd.f32 %v1430_v36, %v1342_v34 }
 0x262   :  { %v1685_v18 = vmax.f32 %v1431_v38, 0.0  ;;  %1383 = vmatmul.bf16.gmra.mxu2 %v3592_v48  ;;  %v3681_v22 = vpack.c.bf16 %v1072_v26, %v1070_v2 }
 0x263   :  { %v917_v33 = vpop.f32.mrf.mxu0 }
 0x264   :  { %v1006_v43 = vpop.f32.mrf.mxu1  ;;  %1472 = vmatmul.bf16.gmra.mxu3 %v3681_v22  ;;  %v3684_v46 = vpack.c.bf16 %v1685_v18, %v1683_v52  ;;  %v918_v54 = vadd.f32 %v917_v33, %v3518_v63 }
 0x265   :  { %v1344_v47 = vpop.f32.mrf.mxu2 }
 0x266   :  { %v1345_v51 = vadd.f32 %v1344_v47, %v3633_v31  ;;  %1526 = vmatmul.bf16.gmra.mxu0 %v3501_v40  ;;  %v1007_v59 = vadd.f32 %v1006_v43, %v918_v54 }
 0x267   :  { %1615 = vmatmul.bf16.gmra.mxu1 %v3589_v56  ;;  %v1433_v50 = vpop.f32.mrf.mxu3 }
 0x268   :  { %v1434_v11 = vadd.f32 %v1433_v50, %v1345_v51  ;;  %v1074_v8 = vmax.f32 %v1007_v59, 0.0 }
 0x26a   :  { %v1687_v56 = vmax.f32 %v1434_v11, 0.0 }
 0x26b   :  { %v919_v13 = vpop.f32.mrf.mxu0 }
 0x26c   :  { %v920_v49 = vadd.f32 %v919_v13, %v3518_v63  ;;  %v1008_v24 = vpop.f32.mrf.mxu1 }
 0x26d   :  { %v1346_v53 = vpop.f32.mrf.mxu2 }
 0x26e   :  { %v1009_v21 = vadd.f32 %v1008_v24, %v920_v49  ;;  %v1347_v61 = vadd.f32 %v1346_v53, %v3633_v31 }
 0x26f   :  { %v1435_v39 = vpop.f32.mrf.mxu3 }
 0x270   :  { %v1076_v40 = vmax.f32 %v1009_v21, 0.0  ;;  %v1436_v4 = vadd.f32 %v1435_v39, %v1347_v61 }
 0x272   :  { %v1689_v9 = vmax.f32 %v1436_v4, 0.0  ;;  %1388 = vmatmul.bf16.gmra.mxu2 %v3604_v29  ;;  %v3693_v17 = vpack.c.bf16 %v1076_v40, %v1074_v8 }
 0x273   :  { %v922_v62 = vpop.f32.mrf.mxu0 }
 0x274   :  { %v1011_v20 = vpop.f32.mrf.mxu1  ;;  %1477 = vmatmul.bf16.gmra.mxu3 %v3693_v17  ;;  %v3696_v28 = vpack.c.bf16 %v1689_v9, %v1687_v56  ;;  %v923_v35 = vadd.f32 %v922_v62, %v3518_v63 }
 0x275   :  { %v1349_v44 = vpop.f32.mrf.mxu2 }
 0x276   :  { %v1350_v12 = vadd.f32 %v1349_v44, %v3633_v31  ;;  %1531 = vmatmul.bf16.gmra.mxu0 %v3520_v27  ;;  %v1012_v30 = vadd.f32 %v1011_v20, %v923_v35  ;;  %v3720_v44 = vperm.slane %v3627_v45, 1 }
 0x277   :  { %1620 = vmatmul.bf16.gmra.mxu1 %v3601_v37  ;;  %v1438_v55 = vpop.f32.mrf.mxu3 }
 0x278   :  { %v1439_v5 = vadd.f32 %v1438_v55, %v1350_v12  ;;  %v1078_v18 = vmax.f32 %v1012_v30, 0.0 }
 0x27a   :  { %v1691_v27 = vmax.f32 %v1439_v5, 0.0 }
 0x27b   :  { %v924_v6 = vpop.f32.mrf.mxu0 }
 0x27c   :  { %v925_v34 = vadd.f32 %v924_v6, %v3518_v63  ;;  %v1013_v36 = vpop.f32.mrf.mxu1 }
 0x27d   :  { %v1351_v2 = vpop.f32.mrf.mxu2 }
 0x27e   :  { %v1014_v26 = vadd.f32 %v1013_v36, %v925_v34  ;;  %v1352_v38 = vadd.f32 %v1351_v2, %v3633_v31 }
 0x27f   :  { %v1440_v52 = vpop.f32.mrf.mxu3 }
 0x280   :  { %v1080_v16 = vmax.f32 %v1014_v26, 0.0  ;;  %v1441_v33 = vadd.f32 %v1440_v52, %v1352_v38 }
 0x282   :  { %v1693_v43 = vmax.f32 %v1441_v33, 0.0  ;;  %1393 = vmatmul.bf16.gmra.mxu2 %v3616_v60  ;;  %v3705_v37 = vpack.c.bf16 %v1080_v16, %v1078_v18 }
 0x283   :  { %v927_v47 = vpop.f32.mrf.mxu0 }
 0x284   :  { %v1016_v51 = vpop.f32.mrf.mxu1  ;;  %1482 = vmatmul.bf16.gmra.mxu3 %v3705_v37  ;;  %v3708_v50 = vpack.c.bf16 %v1693_v43, %v1691_v27  ;;  %v928_v13 = vadd.f32 %v927_v47, %v3518_v63 }
 0x285   :  { %v1354_v54 = vpop.f32.mrf.mxu2 }
 0x286   :  { %v1355_v11 = vadd.f32 %v1354_v54, %v3633_v31  ;;  %1536 = vmatmul.bf16.gmra.mxu0 %v3532_v41  ;;  %v1017_v24 = vadd.f32 %v1016_v51, %v928_v13 }
 0x287   :  { %1625 = vmatmul.bf16.gmra.mxu1 %v3613_v58  ;;  %v1443_v57 = vpop.f32.mrf.mxu3 }
 0x288   :  { %v1444_v59 = vadd.f32 %v1443_v57, %v1355_v11  ;;  %v1082_v4 = vmax.f32 %v1017_v24, 0.0 }
 0x28a   :  { %v1695_v41 = vmax.f32 %v1444_v59, 0.0 }
 0x28b   :  { %v929_v49 = vpop.f32.mrf.mxu0 }
 0x28c   :  { %v930_v53 = vadd.f32 %v929_v49, %v3518_v63  ;;  %v1018_v21 = vpop.f32.mrf.mxu1 }
 0x28d   :  { %v1356_v61 = vpop.f32.mrf.mxu2 }
 0x28e   :  { %v1019_v39 = vadd.f32 %v1018_v21, %v930_v53  ;;  %v1357_v8 = vadd.f32 %v1356_v61, %v3633_v31 }
 0x28f   :  { %v1445_v40 = vpop.f32.mrf.mxu3 }
 0x290   :  { %v1084_v56 = vmax.f32 %v1019_v39, 0.0  ;;  %v1446_v9 = vadd.f32 %v1445_v40, %v1357_v8 }
 0x292   :  { %v1697_v62 = vmax.f32 %v1446_v9, 0.0  ;;  %1398 = vmatmul.bf16.gmra.mxu2 %v3636_v3  ;;  %v3717_v58 = vpack.c.bf16 %v1084_v56, %v1082_v4 }
 0x293   :  { %v1502_v20 = vpop.f32.mrf.mxu0 }
 0x294   :  { %v1591_v63 = vpop.f32.mrf.mxu1  ;;  %1487 = vmatmul.bf16.gmra.mxu3 %v3717_v58  ;;  %v3723_v12 = vpack.c.bf16 %v1697_v62, %v1695_v41  ;;  %v1503_v6 = vadd.f32 %v1502_v20, %v3720_v44 }
 0x295   :  { %v1359_v55 = vpop.f32.mrf.mxu2 }
 0x296   :  { %v1360_v35 = vadd.f32 %v1359_v55, %v3633_v31  ;;  %1541 = vmatmul.bf16.gmra.mxu0 %v3544_v19  ;;  %v1592_v36 = vadd.f32 %v1591_v63, %v1503_v6 }
 0x297   :  { %1630 = vmatmul.bf16.gmra.mxu1 %v3630_v25  ;;  %v1448_v5 = vpop.f32.mrf.mxu3 }
 0x298   :  { %v1449_v30 = vadd.f32 %v1448_v5, %v1360_v35  ;;  %v1672_v16 = vmax.f32 %v1592_v36, 0.0 }
 0x29a   :  { %v1699_v19 = vmax.f32 %v1449_v30, 0.0 }
 0x29b   :  { %v1504_v34 = vpop.f32.mrf.mxu0 }
 0x29c   :  { %v1505_v45 = vadd.f32 %v1504_v34, %v3720_v44  ;;  %v1593_v2 = vpop.f32.mrf.mxu1 }
 0x29d   :  { %v1361_v26 = vpop.f32.mrf.mxu2 }
 0x29e   :  { %v1594_v38 = vadd.f32 %v1593_v2, %v1505_v45  ;;  %v1362_v52 = vadd.f32 %v1361_v26, %v3633_v31 }
 0x29f   :  { %v1450_v18 = vpop.f32.mrf.mxu3 }
 0x2a0   :  { %v1674_v33 = vmax.f32 %v1594_v38, 0.0  ;;  %v1451_v27 = vadd.f32 %v1450_v18, %v1362_v52 }
 0x2a2   :  { %v1736_v43 = vpack.c.bf16 %v1674_v33, %v1672_v16  ;;  %v1701_v25 = vmax.f32 %v1451_v27, 0.0  ;;  %1907 = vmatmul.bf16.vlgmr.msra.gmra.mxu2 %v3647_v7 }
 0x2a3   :  { %v1507_v47 = vpop.f32.mrf.mxu0 }
 0x2a4   :  { %v1596_v51 = vpop.f32.mrf.mxu1  ;;  %1996 = vmatmul.bf16.vlgmr.msra.gmra.mxu3 %v1736_v43  ;;  %v3732_v54 = vpack.c.bf16 %v1701_v25, %v1699_v19  ;;  %v1508_v59 = vadd.f32 %v1507_v47, %v3720_v44 }
 0x2a5   :  { %v1364_v11 = vpop.f32.mrf.mxu2 }
 0x2a6   :  { %v1365_v57 = vadd.f32 %v1364_v11, %v3633_v31  ;;  %1546 = vmatmul.bf16.gmra.mxu0 %v3556_v14  ;;  %v1597_v53 = vadd.f32 %v1596_v51, %v1508_v59 }
 0x2a7   :  { %1635 = vmatmul.bf16.gmra.mxu1 %v3645_v42  ;;  %v1453_v13 = vpop.f32.mrf.mxu3 }
 0x2a8   :  { %v1454_v49 = vadd.f32 %v1453_v13, %v1365_v57  ;;  %v1676_v4 = vmax.f32 %v1597_v53, 0.0 }
 0x2aa   :  { %v1703_v14 = vmax.f32 %v1454_v49, 0.0 }
 0x2ab   :  { %v1509_v24 = vpop.f32.mrf.mxu0 }
 0x2ac   :  { %v1510_v7 = vadd.f32 %v1509_v24, %v3720_v44  ;;  %v1598_v21 = vpop.f32.mrf.mxu1 }
 0x2ad   :  { %v1366_v61 = vpop.f32.mrf.mxu2 }
 0x2ae   :  { %v1599_v39 = vadd.f32 %v1598_v21, %v1510_v7  ;;  %v1367_v8 = vadd.f32 %v1366_v61, %v3633_v31 }
 0x2af   :  { %v1455_v40 = vpop.f32.mrf.mxu3 }
 0x2b0   :  { %v1678_v56 = vmax.f32 %v1599_v39, 0.0  ;;  %v1456_v9 = vadd.f32 %v1455_v40, %v1367_v8 }
 0x2b2   :  { %v1705_v41 = vmax.f32 %v1456_v9, 0.0  ;;  %1912 = vmatmul.bf16.gmra.mxu2 %v3660_v15  ;;  %v1738_v42 = vpack.c.bf16 %v1678_v56, %v1676_v4 }
 0x2b3   :  { %v1512_v62 = vpop.f32.mrf.mxu0 }
 0x2b4   :  { %v1601_v20 = vpop.f32.mrf.mxu1  ;;  %2001 = vmatmul.bf16.gmra.mxu3 %v1738_v42  ;;  %v3741_v63 = vpack.c.bf16 %v1705_v41, %v1703_v14  ;;  %v1513_v6 = vadd.f32 %v1512_v62, %v3720_v44 }
 0x2b5   :  { %v1369_v55 = vpop.f32.mrf.mxu2 }
 0x2b6   :  { %v1370_v35 = vadd.f32 %v1369_v55, %v3633_v31  ;;  %1551 = vmatmul.bf16.gmra.mxu0 %v3568_v32  ;;  %v1602_v36 = vadd.f32 %v1601_v20, %v1513_v6 }
 0x2b7   :  { %1640 = vmatmul.bf16.gmra.mxu1 %v3657_v0  ;;  %v1458_v5 = vpop.f32.mrf.mxu3 }
 0x2b8   :  { %v1459_v30 = vadd.f32 %v1458_v5, %v1370_v35  ;;  %v1680_v18 = vmax.f32 %v1602_v36, 0.0 }
 0x2ba   :  { %v1707_v32 = vmax.f32 %v1459_v30, 0.0 }
 0x2bb   :  { %v1514_v34 = vpop.f32.mrf.mxu0 }
 0x2bc   :  { %v1515_v15 = vadd.f32 %v1514_v34, %v3720_v44  ;;  %v1603_v45 = vpop.f32.mrf.mxu1 }
 0x2bd   :  { %v1371_v2 = vpop.f32.mrf.mxu2 }
 0x2be   :  { %v1604_v26 = vadd.f32 %v1603_v45, %v1515_v15  ;;  %v1372_v38 = vadd.f32 %v1371_v2, %v3633_v31 }
 0x2bf   :  { %v1460_v52 = vpop.f32.mrf.mxu3 }
 0x2c0   :  { %v1682_v16 = vmax.f32 %v1604_v26, 0.0  ;;  %v1461_v33 = vadd.f32 %v1460_v52, %v1372_v38 }
 0x2c2   :  { %v1709_v27 = vmax.f32 %v1461_v33, 0.0  ;;  %1917 = vmatmul.bf16.gmra.mxu2 %v3672_v10  ;;  %v1740_v0 = vpack.c.bf16 %v1682_v16, %v1680_v18 }
 0x2c3   :  { %v1517_v19 = vpop.f32.mrf.mxu0 }
 0x2c4   :  { %v1606_v43 = vpop.f32.mrf.mxu1  ;;  %2006 = vmatmul.bf16.gmra.mxu3 %v1740_v0  ;;  %v3750_v25 = vpack.c.bf16 %v1709_v27, %v1707_v32  ;;  %v1518_v57 = vadd.f32 %v1517_v19, %v3720_v44 }
 0x2c5   :  { %v1374_v47 = vpop.f32.mrf.mxu2 }
 0x2c6   :  { %v1375_v51 = vadd.f32 %v1374_v47, %v3633_v31  ;;  %1556 = vmatmul.bf16.gmra.mxu0 %v3580_v23  ;;  %v1607_v49 = vadd.f32 %v1606_v43, %v1518_v57 }
 0x2c7   :  { %1645 = vmatmul.bf16.gmra.mxu1 %v3669_v1  ;;  %v1463_v11 = vpop.f32.mrf.mxu3 }
 0x2c8   :  { %v1464_v13 = vadd.f32 %v1463_v11, %v1375_v51  ;;  %v1684_v39 = vmax.f32 %v1607_v49, 0.0 }
 0x2ca   :  { %v1711_v23 = vmax.f32 %v1464_v13, 0.0 }
 0x2cb   :  { %v1519_v59 = vpop.f32.mrf.mxu0 }
 0x2cc   :  { %v1520_v10 = vadd.f32 %v1519_v59, %v3720_v44  ;;  %v1608_v24 = vpop.f32.mrf.mxu1 }
 0x2cd   :  { %v1376_v53 = vpop.f32.mrf.mxu2 }
 0x2ce   :  { %v1609_v7 = vadd.f32 %v1608_v24, %v1520_v10  ;;  %v1377_v21 = vadd.f32 %v1376_v53, %v3633_v31 }
 0x2cf   :  { %v1465_v61 = vpop.f32.mrf.mxu3 }
 0x2d0   :  { %v1686_v8 = vmax.f32 %v1609_v7, 0.0  ;;  %v1466_v40 = vadd.f32 %v1465_v61, %v1377_v21 }
 0x2d2   :  { %v1713_v4 = vmax.f32 %v1466_v40, 0.0  ;;  %1922 = vmatmul.bf16.gmra.mxu2 %v3684_v46  ;;  %v1742_v1 = vpack.c.bf16 %v1686_v8, %v1684_v39 }
 0x2d3   :  { %v1522_v56 = vpop.f32.mrf.mxu0 }
 0x2d4   :  { %v1611_v9 = vpop.f32.mrf.mxu1  ;;  %2011 = vmatmul.bf16.gmra.mxu3 %v1742_v1  ;;  %v3759_v14 = vpack.c.bf16 %v1713_v4, %v1711_v23  ;;  %v1523_v20 = vadd.f32 %v1522_v56, %v3720_v44 }
 0x2d5   :  { %v1379_v41 = vpop.f32.mrf.mxu2 }
 0x2d6   :  { %v1380_v42 = vadd.f32 %v1379_v41, %v3633_v31  ;;  %1561 = vmatmul.bf16.gmra.mxu0 %v3592_v48  ;;  %v1612_v5 = vadd.f32 %v1611_v9, %v1523_v20 }
 0x2d7   :  { %1650 = vmatmul.bf16.gmra.mxu1 %v3681_v22  ;;  %v1468_v62 = vpop.f32.mrf.mxu3 }
 0x2d8   :  { %v1469_v55 = vadd.f32 %v1468_v62, %v1380_v42  ;;  %v1688_v45 = vmax.f32 %v1612_v5, 0.0 }
 0x2da   :  { %v1715_v48 = vmax.f32 %v1469_v55, 0.0 }
 0x2db   :  { %v1524_v35 = vpop.f32.mrf.mxu0 }
 0x2dc   :  { %v1525_v46 = vadd.f32 %v1524_v35, %v3720_v44  ;;  %v1613_v6 = vpop.f32.mrf.mxu1 }
 0x2dd   :  { %v1381_v30 = vpop.f32.mrf.mxu2 }
 0x2de   :  { %v1614_v34 = vadd.f32 %v1613_v6, %v1525_v46  ;;  %v1382_v36 = vadd.f32 %v1381_v30, %v3633_v31 }
 0x2df   :  { %v1470_v15 = vpop.f32.mrf.mxu3 }
 0x2e0   :  { %v1690_v2 = vmax.f32 %v1614_v34, 0.0  ;;  %v1471_v26 = vadd.f32 %v1470_v15, %v1382_v36 }
 0x2e2   :  { %v1744_v38 = vpack.c.bf16 %v1690_v2, %v1688_v45  ;;  %v1717_v22 = vmax.f32 %v1471_v26, 0.0  ;;  %1927 = vmatmul.bf16.gmra.mxu2 %v3696_v28 }
 0x2e3   :  { %v1527_v52 = vpop.f32.mrf.mxu0 }
 0x2e4   :  { %v1616_v18 = vpop.f32.mrf.mxu1  ;;  %2016 = vmatmul.bf16.gmra.mxu3 %v1744_v38  ;;  %v3768_v16 = vpack.c.bf16 %v1717_v22, %v1715_v48  ;;  %v1528_v0 = vadd.f32 %v1527_v52, %v3720_v44 }
 0x2e5   :  { %v1384_v33 = vpop.f32.mrf.mxu2 }
 0x2e6   :  { %v1385_v32 = vadd.f32 %v1384_v33, %v3633_v31  ;;  %1566 = vmatmul.bf16.gmra.mxu0 %v3604_v29  ;;  %v1617_v47 = vadd.f32 %v1616_v18, %v1528_v0 }
 0x2e7   :  { %1655 = vmatmul.bf16.gmra.mxu1 %v3693_v17  ;;  %v1473_v27 = vpop.f32.mrf.mxu3 }
 0x2e8   :  { %v1474_v19 = vadd.f32 %v1473_v27, %v1385_v32  ;;  %v1692_v49 = vmax.f32 %v1617_v47, 0.0 }
 0x2ea   :  { %v1719_v29 = vmax.f32 %v1474_v19, 0.0 }
 0x2eb   :  { %v1529_v43 = vpop.f32.mrf.mxu0 }
 0x2ec   :  { %v1530_v28 = vadd.f32 %v1529_v43, %v3720_v44  ;;  %v1618_v51 = vpop.f32.mrf.mxu1 }
 0x2ed   :  { %v1386_v11 = vpop.f32.mrf.mxu2 }
 0x2ee   :  { %v1619_v57 = vadd.f32 %v1618_v51, %v1530_v28  ;;  %v1387_v13 = vadd.f32 %v1386_v11, %v3633_v31 }
 0x2ef   :  { %v1475_v59 = vpop.f32.mrf.mxu3 }
 0x2f0   :  { %v1694_v10 = vmax.f32 %v1619_v57, 0.0  ;;  %v1476_v24 = vadd.f32 %v1475_v59, %v1387_v13 }
 0x2f2   :  { %v1746_v53 = vpack.c.bf16 %v1694_v10, %v1692_v49  ;;  %v1721_v17 = vmax.f32 %v1476_v24, 0.0  ;;  %1932 = vmatmul.bf16.gmra.mxu2 %v3708_v50 }
 0x2f3   :  { %v1532_v7 = vpop.f32.mrf.mxu0 }
 0x2f4   :  { %v1621_v21 = vpop.f32.mrf.mxu1  ;;  %2021 = vmatmul.bf16.gmra.mxu3 %v1746_v53  ;;  %v3777_v61 = vpack.c.bf16 %v1721_v17, %v1719_v29  ;;  %v1533_v23 = vadd.f32 %v1532_v7, %v3720_v44 }
 0x2f5   :  { %v1389_v39 = vpop.f32.mrf.mxu2 }
 0x2f6   :  { %v1390_v8 = vadd.f32 %v1389_v39, %v3633_v31  ;;  %1571 = vmatmul.bf16.gmra.mxu0 %v3616_v60  ;;  %v1622_v56 = vadd.f32 %v1621_v21, %v1533_v23 }
 0x2f7   :  { %1660 = vmatmul.bf16.gmra.mxu1 %v3705_v37  ;;  %v1478_v40 = vpop.f32.mrf.mxu3 }
 0x2f8   :  { %v1479_v4 = vadd.f32 %v1478_v40, %v1390_v8  ;;  %v1696_v55 = vmax.f32 %v1622_v56, 0.0 }
 0x2fa   :  { %v1723_v60 = vmax.f32 %v1479_v4, 0.0 }
 0x2fb   :  { %v1534_v1 = vpop.f32.mrf.mxu0 }
 0x2fc   :  { %v1535_v50 = vadd.f32 %v1534_v1, %v3720_v44  ;;  %v1623_v9 = vpop.f32.mrf.mxu1 }
 0x2fd   :  { %v1391_v41 = vpop.f32.mrf.mxu2 }
 0x2fe   :  { %v1624_v42 = vadd.f32 %v1623_v9, %v1535_v50  ;;  %v1392_v62 = vadd.f32 %v1391_v41, %v3633_v31  ;;  %v3807_v41 = vld [vmem:[%s3876_s8] ss:$0 sm:$0xff]  ;;  %s2896_s8 = smov [#allocation7]  }
 0x2ff   :  { %v1480_v20 = vpop.f32.mrf.mxu3  ;;  %s2177_s11 = sshll.u32 %s2896_s8, 4  ;;  %s2178_s11 = int_to_ptr.vmem [resolvable:$true] %s2177_s11 }
 0x300   :  { %v1698_v35 = vmax.f32 %v1624_v42, 0.0  ;;  %v1481_v5 = vadd.f32 %v1480_v20, %v1392_v62 }
 0x302   :  { %v1748_v46 = vpack.c.bf16 %v1698_v35, %v1696_v55  ;;  %v1725_v37 = vmax.f32 %v1481_v5, 0.0  ;;  %1937 = vmatmul.bf16.gmra.mxu2 %v3723_v12 }
 0x303   :  { %v1537_v6 = vpop.f32.mrf.mxu0 }
 0x304   :  { %v1626_v30 = vpop.f32.mrf.mxu1  ;;  %2026 = vmatmul.bf16.gmra.mxu3 %v1748_v46  ;;  %v3786_v34 = vpack.c.bf16 %v1725_v37, %v1723_v60  ;;  %v1538_v2 = vadd.f32 %v1537_v6, %v3720_v44 }
 0x305   :  { %v1394_v36 = vpop.f32.mrf.mxu2 }
 0x306   :  { %v1395_v15 = vadd.f32 %v1394_v36, %v3633_v31  ;;  %1576 = vmatmul.bf16.gmra.mxu0 %v3636_v3  ;;  %v1627_v38 = vadd.f32 %v1626_v30, %v1538_v2 }
 0x307   :  { %1665 = vmatmul.bf16.gmra.mxu1 %v3717_v58  ;;  %v1483_v45 = vpop.f32.mrf.mxu3 }
 0x308   :  { %v1484_v26 = vadd.f32 %v1483_v45, %v1395_v15  ;;  %v1700_v27 = vmax.f32 %v1627_v38, 0.0 }
 0x30a   :  { %v1727_v3 = vmax.f32 %v1484_v26, 0.0 }
 0x30b   :  { %v1539_v48 = vpop.f32.mrf.mxu0 }
 0x30c   :  { %v1540_v12 = vadd.f32 %v1539_v48, %v3720_v44  ;;  %v1628_v22 = vpop.f32.mrf.mxu1 }
 0x30d   :  { %v1396_v52 = vpop.f32.mrf.mxu2 }
 0x30e   :  { %v1629_v18 = vadd.f32 %v1628_v22, %v1540_v12  ;;  %v1397_v33 = vadd.f32 %v1396_v52, %v3633_v31 }
 0x30f   :  { %v1485_v32 = vpop.f32.mrf.mxu3 }
 0x310   :  { %v1702_v0 = vmax.f32 %v1629_v18, 0.0  ;;  %v1486_v19 = vadd.f32 %v1485_v32, %v1397_v33 }
 0x312   :  { %v1750_v43 = vpack.c.bf16 %v1702_v0, %v1700_v27  ;;  %v1729_v58 = vmax.f32 %v1486_v19, 0.0  ;;  %1942 = vmatmul.bf16.gmra.mxu2 %v3732_v54 }
 0x313   :  { %v1542_v47 = vpop.f32.mrf.mxu0 }
 0x314   :  { %v1631_v28 = vpop.f32.mrf.mxu1  ;;  %2031 = vmatmul.bf16.gmra.mxu3 %v1750_v43  ;;  %v3795_v51 = vpack.c.bf16 %v1729_v58, %v1727_v3  ;;  %v1543_v59 = vadd.f32 %v1542_v47, %v3720_v44 }
 0x315   :  { %v1399_v11 = vpop.f32.mrf.mxu2 }
 0x316   :  { %v1400_v57 = vadd.f32 %v1399_v11, %v3633_v31  ;;  %v1632_v24 = vadd.f32 %v1631_v28, %v1543_v59 }
 0x317   :  { %v1488_v13 = vpop.f32.mrf.mxu3 }
 0x318   :  { %v1489_v49 = vadd.f32 %v1488_v13, %v1400_v57  ;;  %v1704_v39 = vmax.f32 %v1632_v24, 0.0 }
 0x31a   :  { %v1731_v23 = vmax.f32 %v1489_v49, 0.0 }
 0x31b   :  { %v1544_v10 = vpop.f32.mrf.mxu0 }
 0x31c   :  { %v1545_v29 = vadd.f32 %v1544_v10, %v3720_v44  ;;  %v1633_v53 = vpop.f32.mrf.mxu1 }
 0x31d   :  { %v1401_v17 = vpop.f32.mrf.mxu2 }
 0x31e   :  { %v1634_v7 = vadd.f32 %v1633_v53, %v1545_v29  ;;  %v1402_v54 = vadd.f32 %v1401_v17, %v3633_v31 }
 0x31f   :  { %v1490_v21 = vpop.f32.mrf.mxu3 }
 0x320   :  { %v1706_v8 = vmax.f32 %v1634_v7, 0.0  ;;  %v1491_v40 = vadd.f32 %v1490_v21, %v1402_v54 }
 0x322   :  { %v1752_v4 = vpack.c.bf16 %v1706_v8, %v1704_v39  ;;  %v1733_v1 = vmax.f32 %v1491_v40, 0.0  ;;  %1947 = vmatmul.bf16.gmra.mxu2 %v3741_v63 }
 0x323   :  { %v1547_v56 = vpop.f32.mrf.mxu0 }
 0x324   :  { %v1636_v50 = vpop.f32.mrf.mxu1  ;;  %2036 = vmatmul.bf16.gmra.mxu3 %v1752_v4  ;;  %v3802_v9 = vpack.c.bf16 %v1733_v1, %v1731_v23  ;;  %v1548_v62 = vadd.f32 %v1547_v56, %v3720_v44 }
 0x325   :  { %v1908_v31 = vpop.f32.mrf.mxu2 }
 0x326   :  { %v1909_v20 = vadd.f32 %v3807_v41, %v1908_v31  ;;  %v1637_v35 = vadd.f32 %v1636_v50, %v1548_v62 }
 0x327   :  { %v1997_v42 = vpop.f32.mrf.mxu3 }
 0x328   :  { %v1998_v60 = vadd.f32 %v1997_v42, %v1909_v20  ;;  %v1708_v36 = vmax.f32 %v1637_v35, 0.0 }
 0x32a   :  { %2748 = vtanh.f32 %v1998_v60 }
 0x32b   :  { %v1549_v55 = vpop.f32.mrf.mxu0 }
 0x32c   :  { %v1550_v63 = vadd.f32 %v1549_v55, %v3720_v44  ;;  %v1638_v5 = vpop.f32.mrf.mxu1 }
 0x32d   :  { %v1910_v46 = vpop.f32.mrf.mxu2 }
 0x32e   :  { %v1639_v37 = vadd.f32 %v1638_v5, %v1550_v63  ;;  %v1911_v6 = vadd.f32 %v3807_v41, %v1910_v46 }
 0x32f   :  { %v1999_v30 = vpop.f32.mrf.mxu3 }
 0x330   :  { %v1710_v15 = vmax.f32 %v1639_v37, 0.0  ;;  %v2000_v45 = vadd.f32 %v1999_v30, %v1911_v6  ;;  %v2749_v12 = vpop.eup %2748 }
 0x332   :  { %v1754_v2 = vpack.c.bf16 %v1710_v15, %v1708_v36  ;;  %2750 = vtanh.f32 %v2000_v45  ;;  %1952 = vmatmul.bf16.gmra.mxu2 %v3750_v25 }
 0x333   :  { %v1552_v26 = vpop.f32.mrf.mxu0 }
 0x334   :  { %v1641_v48 = vpop.f32.mrf.mxu1  ;;  %2041 = vmatmul.bf16.gmra.mxu3 %v1754_v2  ;;  %v1553_v18 = vadd.f32 %v1552_v26, %v3720_v44 }
 0x335   :  { %v1913_v38 = vpop.f32.mrf.mxu2 }
 0x336   :  { %v1914_v32 = vadd.f32 %v3807_v41, %v1913_v38  ;;  %v1642_v0 = vadd.f32 %v1641_v48, %v1553_v18 }
 0x337   :  { %v2002_v22 = vpop.f32.mrf.mxu3 }
 0x338   :  { %v2751_v52 = vpop.eup %2750  ;;  %v2003_v43 = vadd.f32 %v2002_v22, %v1914_v32  ;;  %v1712_v11 = vmax.f32 %v1642_v0, 0.0 }
 0x339   :  { %v2648_v33 = vpack.c.bf16 %v2751_v52, %v2749_v12 }
 0x33a   :  { %2752 = vtanh.f32 %v2003_v43 }
 0x33b   :  { %2649 = vst [vmem:[#allocation7] sm:$0xff] %v2648_v33   ;;  %v1554_v27 = vpop.f32.mrf.mxu0 }
 0x33c   :  { %v1555_v19 = vadd.f32 %v1554_v27, %v3720_v44  ;;  %v1643_v3 = vpop.f32.mrf.mxu1 }
 0x33d   :  { %v1915_v25 = vpop.f32.mrf.mxu2 }
 0x33e   :  { %v1644_v58 = vadd.f32 %v1643_v3, %v1555_v19  ;;  %v1916_v47 = vadd.f32 %v3807_v41, %v1915_v25 }
 0x33f   :  { %v2004_v28 = vpop.f32.mrf.mxu3 }
 0x340   :  { %v1714_v57 = vmax.f32 %v1644_v58, 0.0  ;;  %v2005_v13 = vadd.f32 %v2004_v28, %v1916_v47  ;;  %v2753_v29 = vpop.eup %2752 }
 0x342   :  { %v1756_v59 = vpack.c.bf16 %v1714_v57, %v1712_v11  ;;  %2754 = vtanh.f32 %v2005_v13  ;;  %1957 = vmatmul.bf16.gmra.mxu2 %v3759_v14 }
 0x343   :  { %v1557_v49 = vpop.f32.mrf.mxu0 }
 0x344   :  { %v1646_v10 = vpop.f32.mrf.mxu1  ;;  %2046 = vmatmul.bf16.gmra.mxu3 %v1756_v59  ;;  %v1558_v7 = vadd.f32 %v1557_v49, %v3720_v44 }
 0x345   :  { %v1918_v24 = vpop.f32.mrf.mxu2 }
 0x346   :  { %v1919_v21 = vadd.f32 %v3807_v41, %v1918_v24  ;;  %v1647_v8 = vadd.f32 %v1646_v10, %v1558_v7 }
 0x347   :  { %v2007_v53 = vpop.f32.mrf.mxu3 }
 0x348   :  { %v2755_v17 = vpop.eup %2754  ;;  %v2008_v4 = vadd.f32 %v2007_v53, %v1919_v21  ;;  %v1716_v31 = vmax.f32 %v1647_v8, 0.0 }
 0x349   :  { %v2653_v54 = vpack.c.bf16 %v2755_v17, %v2753_v29 }
 0x34a   :  { %2756 = vtanh.f32 %v2008_v4 }
 0x34b   :  { %2725 = vst [vmem:[#allocation7 + $0x8] sm:$0xff] %v2653_v54   ;;  %v1559_v39 = vpop.f32.mrf.mxu0 }
 0x34c   :  { %v1560_v40 = vadd.f32 %v1559_v39, %v3720_v44  ;;  %v1648_v23 = vpop.f32.mrf.mxu1 }
 0x34d   :  { %v1920_v14 = vpop.f32.mrf.mxu2 }
 0x34e   :  { %v1649_v1 = vadd.f32 %v1648_v23, %v1560_v40  ;;  %v1921_v56 = vadd.f32 %v3807_v41, %v1920_v14 }
 0x34f   :  { %v2009_v50 = vpop.f32.mrf.mxu3 }
 0x350   :  { %v1718_v42 = vmax.f32 %v1649_v1, 0.0  ;;  %v2010_v62 = vadd.f32 %v2009_v50, %v1921_v56  ;;  %v2757_v5 = vpop.eup %2756 }
 0x352   :  { %v1758_v20 = vpack.c.bf16 %v1718_v42, %v1716_v31  ;;  %2758 = vtanh.f32 %v2010_v62  ;;  %1962 = vmatmul.bf16.gmra.mxu2 %v3768_v16 }
 0x353   :  { %v1562_v55 = vpop.f32.mrf.mxu0 }
 0x354   :  { %v1651_v35 = vpop.f32.mrf.mxu1  ;;  %2051 = vmatmul.bf16.gmra.mxu3 %v1758_v20  ;;  %v1563_v37 = vadd.f32 %v1562_v55, %v3720_v44 }
 0x355   :  { %v1923_v63 = vpop.f32.mrf.mxu2 }
 0x356   :  { %v1924_v30 = vadd.f32 %v3807_v41, %v1923_v63  ;;  %v1652_v15 = vadd.f32 %v1651_v35, %v1563_v37 }
 0x357   :  { %v2012_v60 = vpop.f32.mrf.mxu3 }
 0x358   :  { %v2759_v46 = vpop.eup %2758  ;;  %v2013_v26 = vadd.f32 %v2012_v60, %v1924_v30  ;;  %v1720_v22 = vmax.f32 %v1652_v15, 0.0 }
 0x359   :  { %v2658_v6 = vpack.c.bf16 %v2759_v46, %v2757_v5 }
 0x35a   :  { %2760 = vtanh.f32 %v2013_v26 }
 0x35b   :  { %2726 = vst [vmem:[#allocation7 + $0x10] sm:$0xff] %v2658_v6   ;;  %v1564_v36 = vpop.f32.mrf.mxu0 }
 0x35c   :  { %v1565_v45 = vadd.f32 %v1564_v36, %v3720_v44  ;;  %v1653_v2 = vpop.f32.mrf.mxu1 }
 0x35d   :  { %v1925_v16 = vpop.f32.mrf.mxu2 }
 0x35e   :  { %v1654_v48 = vadd.f32 %v1653_v2, %v1565_v45  ;;  %v1926_v38 = vadd.f32 %v3807_v41, %v1925_v16 }
 0x35f   :  { %v2014_v12 = vpop.f32.mrf.mxu3 }
 0x360   :  { %v1722_v52 = vmax.f32 %v1654_v48, 0.0  ;;  %v2015_v18 = vadd.f32 %v2014_v12, %v1926_v38  ;;  %v2761_v19 = vpop.eup %2760 }
 0x362   :  { %v1760_v33 = vpack.c.bf16 %v1722_v52, %v1720_v22  ;;  %2762 = vtanh.f32 %v2015_v18  ;;  %1967 = vmatmul.bf16.gmra.mxu2 %v3777_v61 }
 0x363   :  { %v1567_v32 = vpop.f32.mrf.mxu0 }
 0x364   :  { %v1656_v27 = vpop.f32.mrf.mxu1  ;;  %2056 = vmatmul.bf16.gmra.mxu3 %v1760_v33  ;;  %v1568_v25 = vadd.f32 %v1567_v32, %v3720_v44 }
 0x365   :  { %v1928_v0 = vpop.f32.mrf.mxu2 }
 0x366   :  { %v1929_v47 = vadd.f32 %v3807_v41, %v1928_v0  ;;  %v1657_v11 = vadd.f32 %v1656_v27, %v1568_v25 }
 0x367   :  { %v2017_v3 = vpop.f32.mrf.mxu3 }
 0x368   :  { %v2763_v43 = vpop.eup %2762  ;;  %v2018_v59 = vadd.f32 %v2017_v3, %v1929_v47  ;;  %v1724_v29 = vmax.f32 %v1657_v11, 0.0 }
 0x369   :  { %v2663_v58 = vpack.c.bf16 %v2763_v43, %v2761_v19 }
 0x36a   :  { %2764 = vtanh.f32 %v2018_v59 }
 0x36b   :  { %2727 = vst [vmem:[#allocation7 + $0x18] sm:$0xff] %v2663_v58   ;;  %v1569_v28 = vpop.f32.mrf.mxu0 }
 0x36c   :  { %v1570_v57 = vadd.f32 %v1569_v28, %v3720_v44  ;;  %v1658_v13 = vpop.f32.mrf.mxu1 }
 0x36d   :  { %v1930_v61 = vpop.f32.mrf.mxu2 }
 0x36e   :  { %v1659_v49 = vadd.f32 %v1658_v13, %v1570_v57  ;;  %v1931_v10 = vadd.f32 %v3807_v41, %v1930_v61 }
 0x36f   :  { %v2019_v24 = vpop.f32.mrf.mxu3 }
 0x370   :  { %v1726_v53 = vmax.f32 %v1659_v49, 0.0  ;;  %v2020_v17 = vadd.f32 %v2019_v24, %v1931_v10  ;;  %v2765_v8 = vpop.eup %2764 }
 0x372   :  { %v1762_v7 = vpack.c.bf16 %v1726_v53, %v1724_v29  ;;  %2766 = vtanh.f32 %v2020_v17  ;;  %1972 = vmatmul.bf16.gmra.mxu2 %v3786_v34 }
 0x373   :  { %v1572_v54 = vpop.f32.mrf.mxu0 }
 0x374   :  { %v1661_v21 = vpop.f32.mrf.mxu1  ;;  %2061 = vmatmul.bf16.gmra.mxu3 %v1762_v7  ;;  %v1573_v4 = vadd.f32 %v1572_v54, %v3720_v44 }
 0x375   :  { %v1933_v39 = vpop.f32.mrf.mxu2 }
 0x376   :  { %v1934_v1 = vadd.f32 %v3807_v41, %v1933_v39  ;;  %v1662_v50 = vadd.f32 %v1661_v21, %v1573_v4 }
 0x377   :  { %v2022_v40 = vpop.f32.mrf.mxu3 }
 0x378   :  { %v2767_v23 = vpop.eup %2766  ;;  %v2023_v62 = vadd.f32 %v2022_v40, %v1934_v1  ;;  %v1728_v63 = vmax.f32 %v1662_v50, 0.0 }
 0x379   :  { %v2668_v14 = vpack.c.bf16 %v2767_v23, %v2765_v8 }
 0x37a   :  { %2768 = vtanh.f32 %v2023_v62 }
 0x37b   :  { %2728 = vst [vmem:[#allocation7 + $0x20] sm:$0xff] %v2668_v14   ;;  %v1574_v56 = vpop.f32.mrf.mxu0 }
 0x37c   :  { %v1575_v31 = vadd.f32 %v1574_v56, %v3720_v44  ;;  %v1663_v42 = vpop.f32.mrf.mxu1 }
 0x37d   :  { %v1935_v34 = vpop.f32.mrf.mxu2 }
 0x37e   :  { %v1664_v20 = vadd.f32 %v1663_v42, %v1575_v31  ;;  %v1936_v55 = vadd.f32 %v3807_v41, %v1935_v34 }
 0x37f   :  { %v2024_v35 = vpop.f32.mrf.mxu3 }
 0x380   :  { %v1730_v5 = vmax.f32 %v1664_v20, 0.0  ;;  %v2025_v60 = vadd.f32 %v2024_v35, %v1936_v55  ;;  %v2769_v36 = vpop.eup %2768 }
 0x382   :  { %v1764_v46 = vpack.c.bf16 %v1730_v5, %v1728_v63  ;;  %2770 = vtanh.f32 %v2025_v60  ;;  %1977 = vmatmul.bf16.gmra.mxu2 %v3795_v51 }
 0x383   :  { %v1577_v37 = vpop.f32.mrf.mxu0 }
 0x384   :  { %v1666_v6 = vpop.f32.mrf.mxu1  ;;  %2066 = vmatmul.bf16.gmra.mxu3 %v1764_v46  ;;  %v1578_v2 = vadd.f32 %v1577_v37, %v3720_v44 }
 0x385   :  { %v1938_v30 = vpop.f32.mrf.mxu2 }
 0x386   :  { %v1939_v16 = vadd.f32 %v3807_v41, %v1938_v30  ;;  %v1667_v38 = vadd.f32 %v1666_v6, %v1578_v2 }
 0x387   :  { %v2027_v15 = vpop.f32.mrf.mxu3 }
 0x388   :  { %v2771_v45 = vpop.eup %2770  ;;  %v2028_v22 = vadd.f32 %v2027_v15, %v1939_v16  ;;  %v1732_v27 = vmax.f32 %v1667_v38, 0.0 }
 0x389   :  { %v2673_v26 = vpack.c.bf16 %v2771_v45, %v2769_v36 }
 0x38a   :  { %2772 = vtanh.f32 %v2028_v22 }
 0x38b   :  { %2729 = vst [vmem:[#allocation7 + $0x28] sm:$0xff] %v2673_v26   ;;  %v1579_v48 = vpop.f32.mrf.mxu0 }
 0x38c   :  { %v1580_v12 = vadd.f32 %v1579_v48, %v3720_v44  ;;  %v1668_v52 = vpop.f32.mrf.mxu1 }
 0x38d   :  { %v1940_v51 = vpop.f32.mrf.mxu2 }
 0x38e   :  { %v1669_v18 = vadd.f32 %v1668_v52, %v1580_v12  ;;  %v1941_v33 = vadd.f32 %v3807_v41, %v1940_v51 }
 0x38f   :  { %v2029_v32 = vpop.f32.mrf.mxu3 }
 0x390   :  { %v1734_v0 = vmax.f32 %v1669_v18, 0.0  ;;  %v2030_v19 = vadd.f32 %v2029_v32, %v1941_v33  ;;  %v2773_v25 = vpop.eup %2772 }
 0x392   :  { %v1766_v3 = vpack.c.bf16 %v1734_v0, %v1732_v27  ;;  %2774 = vtanh.f32 %v2030_v19  ;;  %1982 = vmatmul.bf16.gmra.mxu2 %v3802_v9 }
 0x394   :  { %2071 = vmatmul.bf16.gmra.mxu3 %v1766_v3 }
 0x395   :  { %v1943_v43 = vpop.f32.mrf.mxu2 }
 0x396   :  { %v1944_v28 = vadd.f32 %v3807_v41, %v1943_v43 }
 0x397   :  { %v2032_v58 = vpop.f32.mrf.mxu3 }
 0x398   :  { %v2775_v44 = vpop.eup %2774  ;;  %v2033_v11 = vadd.f32 %v2032_v58, %v1944_v28 }
 0x399   :  { %v2678_v47 = vpack.c.bf16 %v2775_v44, %v2773_v25 }
 0x39a   :  { %2776 = vtanh.f32 %v2033_v11 }
 0x39b   :  { %2730 = vst [vmem:[#allocation7 + $0x30] sm:$0xff] %v2678_v47  }
 0x39d   :  { %v1945_v57 = vpop.f32.mrf.mxu2 }
 0x39e   :  { %v1946_v13 = vadd.f32 %v3807_v41, %v1945_v57 }
 0x39f   :  { %v2034_v59 = vpop.f32.mrf.mxu3 }
 0x3a0   :  { %v2035_v61 = vadd.f32 %v2034_v59, %v1946_v13  ;;  %v2777_v10 = vpop.eup %2776 }
 0x3a2   :  { %2778 = vtanh.f32 %v2035_v61 }
 0x3a5   :  { %v1948_v49 = vpop.f32.mrf.mxu2 }
 0x3a6   :  { %v1949_v53 = vadd.f32 %v3807_v41, %v1948_v49 }
 0x3a7   :  { %v2037_v9 = vpop.f32.mrf.mxu3 }
 0x3a8   :  { %v2779_v24 = vpop.eup %2778  ;;  %v2038_v17 = vadd.f32 %v2037_v9, %v1949_v53 }
 0x3a9   :  { %v2683_v29 = vpack.c.bf16 %v2779_v24, %v2777_v10 }
 0x3aa   :  { %2780 = vtanh.f32 %v2038_v17 }
 0x3ab   :  { %2731 = vst [vmem:[#allocation7 + $0x38] sm:$0xff] %v2683_v29  }
 0x3ad   :  { %v1950_v7 = vpop.f32.mrf.mxu2 }
 0x3ae   :  { %v1951_v54 = vadd.f32 %v3807_v41, %v1950_v7 }
 0x3af   :  { %v2039_v21 = vpop.f32.mrf.mxu3 }
 0x3b0   :  { %v2040_v39 = vadd.f32 %v2039_v21, %v1951_v54  ;;  %v2781_v40 = vpop.eup %2780 }
 0x3b2   :  { %2782 = vtanh.f32 %v2040_v39 }
 0x3b5   :  { %v1953_v8 = vpop.f32.mrf.mxu2 }
 0x3b6   :  { %v1954_v1 = vadd.f32 %v3807_v41, %v1953_v8 }
 0x3b7   :  { %v2042_v23 = vpop.f32.mrf.mxu3 }
 0x3b8   :  { %v2783_v4 = vpop.eup %2782  ;;  %v2043_v56 = vadd.f32 %v2042_v23, %v1954_v1 }
 0x3b9   :  { %v2688_v14 = vpack.c.bf16 %v2783_v4, %v2781_v40 }
 0x3ba   :  { %2784 = vtanh.f32 %v2043_v56 }
 0x3bb   :  { %2732 = vst [vmem:[#allocation7 + $0x40] sm:$0xff] %v2688_v14  }
 0x3bd   :  { %v1955_v50 = vpop.f32.mrf.mxu2 }
 0x3be   :  { %v1956_v31 = vadd.f32 %v3807_v41, %v1955_v50 }
 0x3bf   :  { %v2044_v42 = vpop.f32.mrf.mxu3 }
 0x3c0   :  { %v2045_v62 = vadd.f32 %v2044_v42, %v1956_v31  ;;  %v2785_v20 = vpop.eup %2784 }
 0x3c2   :  { %2786 = vtanh.f32 %v2045_v62 }
 0x3c5   :  { %v1958_v34 = vpop.f32.mrf.mxu2 }
 0x3c6   :  { %v1959_v5 = vadd.f32 %v3807_v41, %v1958_v34 }
 0x3c7   :  { %v2047_v55 = vpop.f32.mrf.mxu3 }
 0x3c8   :  { %v2787_v35 = vpop.eup %2786  ;;  %v2048_v60 = vadd.f32 %v2047_v55, %v1959_v5 }
 0x3c9   :  { %v2693_v63 = vpack.c.bf16 %v2787_v35, %v2785_v20 }
 0x3ca   :  { %2788 = vtanh.f32 %v2048_v60 }
 0x3cb   :  { %2733 = vst [vmem:[#allocation7 + $0x48] sm:$0xff] %v2693_v63  }
 0x3cd   :  { %v1960_v46 = vpop.f32.mrf.mxu2 }
 0x3ce   :  { %v1961_v37 = vadd.f32 %v3807_v41, %v1960_v46 }
 0x3cf   :  { %v2049_v6 = vpop.f32.mrf.mxu3 }
 0x3d0   :  { %v2050_v30 = vadd.f32 %v2049_v6, %v1961_v37  ;;  %v2789_v15 = vpop.eup %2788 }
 0x3d2   :  { %2790 = vtanh.f32 %v2050_v30 }
 0x3d5   :  { %v1963_v36 = vpop.f32.mrf.mxu2 }
 0x3d6   :  { %v1964_v16 = vadd.f32 %v3807_v41, %v1963_v36 }
 0x3d7   :  { %v2052_v45 = vpop.f32.mrf.mxu3 }
 0x3d8   :  { %v2791_v2 = vpop.eup %2790  ;;  %v2053_v48 = vadd.f32 %v2052_v45, %v1964_v16 }
 0x3d9   :  { %v2698_v26 = vpack.c.bf16 %v2791_v2, %v2789_v15 }
 0x3da   :  { %2792 = vtanh.f32 %v2053_v48 }
 0x3db   :  { %2734 = vst [vmem:[#allocation7 + $0x50] sm:$0xff] %v2698_v26  }
 0x3dd   :  { %v1965_v38 = vpop.f32.mrf.mxu2 }
 0x3de   :  { %v1966_v12 = vadd.f32 %v3807_v41, %v1965_v38 }
 0x3df   :  { %v2054_v22 = vpop.f32.mrf.mxu3 }
 0x3e0   :  { %v2055_v52 = vadd.f32 %v2054_v22, %v1966_v12  ;;  %v2793_v18 = vpop.eup %2792 }
 0x3e2   :  { %2794 = vtanh.f32 %v2055_v52 }
 0x3e5   :  { %v1968_v51 = vpop.f32.mrf.mxu2 }
 0x3e6   :  { %v1969_v0 = vadd.f32 %v3807_v41, %v1968_v51 }
 0x3e7   :  { %v2057_v33 = vpop.f32.mrf.mxu3 }
 0x3e8   :  { %v2795_v32 = vpop.eup %2794  ;;  %v2058_v19 = vadd.f32 %v2057_v33, %v1969_v0 }
 0x3e9   :  { %v2703_v27 = vpack.c.bf16 %v2795_v32, %v2793_v18 }
 0x3ea   :  { %2796 = vtanh.f32 %v2058_v19 }
 0x3eb   :  { %2735 = vst [vmem:[#allocation7 + $0x58] sm:$0xff] %v2703_v27  }
 0x3ed   :  { %v1970_v3 = vpop.f32.mrf.mxu2 }
 0x3ee   :  { %v1971_v43 = vadd.f32 %v3807_v41, %v1970_v3 }
 0x3ef   :  { %v2059_v25 = vpop.f32.mrf.mxu3 }
 0x3f0   :  { %v2060_v58 = vadd.f32 %v2059_v25, %v1971_v43  ;;  %v2797_v47 = vpop.eup %2796 }
 0x3f2   :  { %2798 = vtanh.f32 %v2060_v58 }
 0x3f5   :  { %v1973_v44 = vpop.f32.mrf.mxu2 }
 0x3f6   :  { %v1974_v13 = vadd.f32 %v3807_v41, %v1973_v44 }
 0x3f7   :  { %v2062_v28 = vpop.f32.mrf.mxu3 }
 0x3f8   :  { %v2799_v11 = vpop.eup %2798  ;;  %v2063_v59 = vadd.f32 %v2062_v28, %v1974_v13 }
 0x3f9   :  { %v2708_v57 = vpack.c.bf16 %v2799_v11, %v2797_v47 }
 0x3fa   :  { %2800 = vtanh.f32 %v2063_v59 }
 0x3fb   :  { %2736 = vst [vmem:[#allocation7 + $0x60] sm:$0xff] %v2708_v57  }
 0x3fd   :  { %v1975_v61 = vpop.f32.mrf.mxu2 }
 0x3fe   :  { %v1976_v49 = vadd.f32 %v3807_v41, %v1975_v61 }
 0x3ff   :  { %v2064_v10 = vpop.f32.mrf.mxu3 }
 0x400   :  { %v2065_v9 = vadd.f32 %v2064_v10, %v1976_v49  ;;  %v2801_v29 = vpop.eup %2800 }
 0x402   :  { %2802 = vtanh.f32 %v2065_v9 }
 0x405   :  { %v1978_v24 = vpop.f32.mrf.mxu2 }
 0x406   :  { %v1979_v54 = vadd.f32 %v3807_v41, %v1978_v24 }
 0x407   :  { %v2067_v53 = vpop.f32.mrf.mxu3 }
 0x408   :  { %v2803_v17 = vpop.eup %2802  ;;  %v2068_v21 = vadd.f32 %v2067_v53, %v1979_v54 }
 0x409   :  { %v2713_v7 = vpack.c.bf16 %v2803_v17, %v2801_v29 }
 0x40a   :  { %2804 = vtanh.f32 %v2068_v21 }
 0x40b   :  { %2737 = vst [vmem:[#allocation7 + $0x68] sm:$0xff] %v2713_v7  }
 0x40d   :  { %v1980_v39 = vpop.f32.mrf.mxu2 }
 0x40e   :  { %v1981_v8 = vadd.f32 %v3807_v41, %v1980_v39 }
 0x40f   :  { %v2069_v40 = vpop.f32.mrf.mxu3 }
 0x410   :  { %v2070_v23 = vadd.f32 %v2069_v40, %v1981_v8  ;;  %v2805_v14 = vpop.eup %2804 }
 0x412   :  { %2806 = vtanh.f32 %v2070_v23 }
 0x415   :  { %v1983_v4 = vpop.f32.mrf.mxu2 }
 0x416   :  { %v1984_v31 = vadd.f32 %v3807_v41, %v1983_v4 }
 0x417   :  { %v2072_v1 = vpop.f32.mrf.mxu3 }
 0x418   :  { %v2807_v56 = vpop.eup %2806  ;;  %v2073_v42 = vadd.f32 %v2072_v1, %v1984_v31 }
 0x419   :  { %v2718_v50 = vpack.c.bf16 %v2807_v56, %v2805_v14 }
 0x41a   :  { %2808 = vtanh.f32 %v2073_v42 }
 0x41b   :  { %2738 = vst [vmem:[#allocation7 + $0x70] sm:$0xff] %v2718_v50  }
 0x41d   :  { %v1985_v62 = vpop.f32.mrf.mxu2 }
 0x41e   :  { %v1986_v34 = vadd.f32 %v3807_v41, %v1985_v62 }
 0x41f   :  { %v2074_v20 = vpop.f32.mrf.mxu3 }
 0x420   :  { %v2075_v55 = vadd.f32 %v2074_v20, %v1986_v34  ;;  %v2809_v35 = vpop.eup %2808 }
 0x422   :  { %2810 = vtanh.f32 %v2075_v55 }
 0x428   :  { %v2811_v63 = vpop.eup %2810 }
 0x429   :  { %v2723_v5 = vpack.c.bf16 %v2811_v63, %v2809_v35 }
 0x42b   :  { %2739 = vst [vmem:[#allocation7 + $0x78] sm:$0xff] %v2723_v5  }
 0x42c   :  { %2185 = dma.vmem_to_hbm [thread:$0]  %s2178_s11, 2048, %s2180_s14, [#allocation4], %s2894_s21, %s2894_s21, %s2895_s22  }
 0x42d   :  { %2888 = dma.done.wait [#allocation4], 2048  }
 0x42e   :  { %2889 = vsyncadd [#allocation4], 4294965248 }
 0x42f   :  { %2190 = vsyncpa [#allocation3], 1 }
 0x430   :  { %2191 = vsyncpa [#allocation6], 1 }
 0x431   :  { %2192 = vsyncpa [#allocation4], 1 }

</bundles_post_ra>
